<compile_context>
chip_gen: v5e
topology: v5e:2x2
jax: 0.10.0
libtpu: 0.0.40
codegen_flags: <defaults>
</compile_context>

<pallas_src>
import functools

import jax
import jax.numpy as jnp
from jax.experimental import pallas as pl
from jax.experimental.pallas import tpu as pltpu


# ----------------------------------------------------------------------------
# Pallas kernel: one M-tile of   ReLU(patches @ W_packed + b_packed)
# ----------------------------------------------------------------------------
def _matmul_bias_crelu_kernel(p_ref, w_ref, b_ref, o_ref):
    """p_ref: (Mt, K)       bf16  im2col patches, feature order (kh, kw, [re|im], cin)
       w_ref: (K, 2*Cout)   bf16  packed complex weights [[Wr, Wi], [-Wi, Wr]] per tap
       b_ref: (1, 2*Cout)   f32   [br | bi]
       o_ref: (Mt, 2*Cout)  f32   [out_r | out_i]   (CReLU == ReLU on each part)
    """
    acc = jnp.dot(p_ref[...], w_ref[...], preferred_element_type=jnp.float32)
    o_ref[...] = jnp.maximum(acc + b_ref[...], 0.0)


def _packed_conv_crelu(patches, w_packed, b_packed, *, m_tile=128):
    """patches: (M, K) bf16, w_packed: (K, N2) bf16, b_packed: (N2,) f32."""
    M, K = patches.shape
    K2, N2 = w_packed.shape
    assert K == K2
    Mp = pl.cdiv(M, m_tile) * m_tile
    if Mp != M:
        patches = jnp.pad(patches, ((0, Mp - M), (0, 0)))
    b2 = b_packed.reshape(1, N2).astype(jnp.float32)

    out = pl.pallas_call(
        _matmul_bias_crelu_kernel,
        out_shape=jax.ShapeDtypeStruct((Mp, N2), jnp.float32),
        grid_spec=pltpu.PrefetchScalarGridSpec(
            num_scalar_prefetch=0,
            grid=(Mp // m_tile,),
            in_specs=[
                pl.BlockSpec((m_tile, K), lambda i: (i, 0)),   # patch row tile
                pl.BlockSpec((K, N2), lambda i: (0, 0)),       # weights resident
                pl.BlockSpec((1, N2), lambda i: (0, 0)),       # bias resident
            ],
            out_specs=pl.BlockSpec((m_tile, N2), lambda i: (i, 0)),
        ),
        compiler_params=pltpu.CompilerParams(
            dimension_semantics=("parallel",)),
    )(patches, w_packed, b2)
    return out[:M]


# ----------------------------------------------------------------------------
# Wrapper glue: complex weight packing + im2col patch construction
# ----------------------------------------------------------------------------
def _pack_complex_weights(wr, wi):
    """(KH,KW,Cin,Cout) x2 -> (KH*KW*2*Cin, 2*Cout) bf16, row order (kh,kw,part,cin)."""
    KH, KW, Cin, Cout = wr.shape
    top = jnp.concatenate([wr, wi], axis=-1)    # rows multiplying the real part
    bot = jnp.concatenate([-wi, wr], axis=-1)   # rows multiplying the imag part
    w = jnp.stack([top, bot], axis=2)           # (KH, KW, 2, Cin, 2*Cout)
    return w.reshape(KH * KW * 2 * Cin, 2 * Cout).astype(jnp.bfloat16)


def _im2col_complex(xr, xi, KH, KW, pad):
    """NHWC real/imag -> (N*H*W, KH*KW*2*Cin) bf16 patches, order (kh,kw,[re|im],cin)."""
    N, H, W, Cin = xr.shape
    x = jnp.concatenate([xr, xi], axis=-1)                       # (N,H,W,2Cin)
    xp = jnp.pad(x, ((0, 0), (pad, pad), (pad, pad), (0, 0)))
    slabs = [xp[:, kh:kh + H, kw:kw + W, :]
             for kh in range(KH) for kw in range(KW)]
    patches = jnp.concatenate(slabs, axis=-1)                    # (N,H,W,KH*KW*2Cin)
    return patches.reshape(N * H * W, KH * KW * 2 * Cin).astype(jnp.bfloat16)


def complex_conv2d_crelu(xr, xi, wr, wi, br, bi, padding, m_tile=128):
    """Complex conv2d (stride 1) + bias + CReLU.  NHWC in / NHWC out (fp32)."""
    N, H, W, Cin = xr.shape
    KH, KW, _, Cout = wr.shape
    assert 2 * padding == KH - 1 and KH == KW, "stride-1 'same' conv only"
    patches = _im2col_complex(xr, xi, KH, KW, padding)
    w_packed = _pack_complex_weights(wr, wi)
    b_packed = jnp.concatenate([br, bi])
    out = _packed_conv_crelu(patches, w_packed, b_packed, m_tile=m_tile)
    out = out.reshape(N, H, W, 2 * Cout)
    return out[..., :Cout], out[..., Cout:]


# ----------------------------------------------------------------------------
# Stage-1 fusion helpers (exact algebraic rewrites)
# ----------------------------------------------------------------------------
def _as_3x3_center(w1):
    """1x1 conv weight (1,1,Cin,Cout) -> equivalent 3x3 (pad 1) center-tap weight."""
    Cin, Cout = w1.shape[2], w1.shape[3]
    return jnp.zeros((3, 3, Cin, Cout), w1.dtype).at[1, 1].set(w1[0, 0])


def _avgpool3_then_1x1(w1):
    """avg_pool(3,s=1,p=1,count_include_pad) + 1x1 conv == 3x3 conv with w/9 at all taps."""
    return jnp.tile(w1 / 9.0, (3, 3, 1, 1))


# ----------------------------------------------------------------------------
# Parameter construction (deterministic, synthetic)
# ----------------------------------------------------------------------------
def _make_cconv_params(key, cin, cout, k):
    kr, ki, kbr, kbi = jax.random.split(key, 4)
    scale = 1.0 / (k * k * cin) ** 0.5
    wr = scale * jax.random.normal(kr, (k, k, cin, cout), jnp.float32)
    wi = scale * jax.random.normal(ki, (k, k, cin, cout), jnp.float32)
    br = 0.01 * jax.random.normal(kbr, (cout,), jnp.float32)
    bi = 0.01 * jax.random.normal(kbi, (cout,), jnp.float32)
    return wr, wi, br, bi


def init_inception_a_params(key, in_channels, pool_features):
    keys = jax.random.split(key, 7)
    return {
        "branch1x1":      _make_cconv_params(keys[0], in_channels, 64, 1),
        "branch5x5_1":    _make_cconv_params(keys[1], in_channels, 48, 1),
        "branch5x5_2":    _make_cconv_params(keys[2], 48, 64, 5),
        "branch3x3dbl_1": _make_cconv_params(keys[3], in_channels, 64, 3 // 3),
        "branch3x3dbl_2": _make_cconv_params(keys[4], 64, 96, 3),
        "branch3x3dbl_3": _make_cconv_params(keys[5], 96, 96, 3),
        "branch_pool":    _make_cconv_params(keys[6], in_channels, pool_features, 1),
    }


# ----------------------------------------------------------------------------
# ComplexInceptionA forward (NCHW in / NCHW out, mirroring the PyTorch module)
# ----------------------------------------------------------------------------
def complex_inception_a(x_real_nchw, x_im_nchw, params, m_tile=128):
    xr = jnp.transpose(x_real_nchw, (0, 2, 3, 1)).astype(jnp.float32)   # NHWC
    xi = jnp.transpose(x_im_nchw, (0, 2, 3, 1)).astype(jnp.float32)

    w1r, w1i, b1r, b1i = params["branch1x1"]
    w5r, w5i, b5r, b5i = params["branch5x5_1"]
    w3r, w3i, b3r, b3i = params["branch3x3dbl_1"]
    wpr, wpi, bpr, bpi = params["branch_pool"]
    c1, c5, c3 = w1r.shape[-1], w5r.shape[-1], w3r.shape[-1]

    # --- stage 1: all branches reading x, fused into ONE 3x3 complex conv ----
    wr_eff = jnp.concatenate(
        [_as_3x3_center(w1r), _as_3x3_center(w5r), _as_3x3_center(w3r),
         _avgpool3_then_1x1(wpr)], axis=-1)
    wi_eff = jnp.concatenate(
        [_as_3x3_center(w1i), _as_3x3_center(w5i), _as_3x3_center(w3i),
         _avgpool3_then_1x1(wpi)], axis=-1)
    br_eff = jnp.concatenate([b1r, b5r, b3r, bpr])
    bi_eff = jnp.concatenate([b1i, b5i, b3i, bpi])
    s1_r, s1_i = complex_conv2d_crelu(xr, xi, wr_eff, wi_eff, br_eff, bi_eff,
                                      padding=1, m_tile=m_tile)
    o1, o2, o3 = c1, c1 + c5, c1 + c5 + c3
    b1_r,   b1_i   = s1_r[..., :o1],    s1_i[..., :o1]
    b5in_r, b5in_i = s1_r[..., o1:o2],  s1_i[..., o1:o2]
    b3in_r, b3in_i = s1_r[..., o2:o3],  s1_i[..., o2:o3]
    bp_r,   bp_i   = s1_r[..., o3:],    s1_i[..., o3:]

    # --- stage 2: 5x5 branch tail --------------------------------------------
    b5_r, b5_i = complex_conv2d_crelu(b5in_r, b5in_i, *params["branch5x5_2"],
                                      padding=2, m_tile=m_tile)

    # --- stage 3/4: 3x3 double branch tail -----------------------------------
    b3_r, b3_i = complex_conv2d_crelu(b3in_r, b3in_i, *params["branch3x3dbl_2"],
                                      padding=1, m_tile=m_tile)
    b3_r, b3_i = complex_conv2d_crelu(b3_r, b3_i, *params["branch3x3dbl_3"],
                                      padding=1, m_tile=m_tile)

    # concat on channels (NHWC last axis), back to NCHW
    out_r = jnp.concatenate([b1_r, b5_r, b3_r, bp_r], axis=-1)
    out_i = jnp.concatenate([b1_i, b5_i, b3_i, bp_i], axis=-1)
    return (jnp.transpose(out_r, (0, 3, 1, 2)),
            jnp.transpose(out_i, (0, 3, 1, 2)))


# ----------------------------------------------------------------------------
if __name__ == "__main__":
    N, C_IN, H, W = 2, 4, 16, 16
    POOL_FEATURES = 8

    key = jax.random.PRNGKey(0)
    k_xr, k_xi, k_p = jax.random.split(key, 3)
    x_real = jax.random.normal(k_xr, (N, C_IN, H, W), jnp.float32)   # NCHW like torch
    x_im = jax.random.normal(k_xi, (N, C_IN, H, W), jnp.float32)

    # Fix the 1x1 weight shape for branch3x3dbl_1 (kernel_size=1 in the module).
    params = init_inception_a_params(k_p, C_IN, POOL_FEATURES)
    params["branch3x3dbl_1"] = _make_cconv_params(
        jax.random.split(k_p, 7)[3], C_IN, 64, 1)

    fwd = jax.jit(functools.partial(complex_inception_a, params=params))
    out_r, out_i = fwd(x_real, x_im)
    jax.block_until_ready((out_r, out_i))

    expected_c = 64 + 64 + 96 + POOL_FEATURES
    assert out_r.shape == (N, expected_c, H, W), out_r.shape
    assert out_i.shape == (N, expected_c, H, W), out_i.shape
    assert jnp.all(jnp.isfinite(out_r)) and jnp.all(jnp.isfinite(out_i))
    # CReLU outputs are non-negative
    assert float(jnp.min(out_r)) >= 0.0 and float(jnp.min(out_i)) >= 0.0

    print("KERNEL_OK")
</pallas_src>

<mosaic_0001>
module attributes {stable_mosaic.version = 11 : i64} {
  func.func @_matmul_bias_crelu_kernel(%arg0: i32, %arg1: memref<128x72xbf16, #tpu.memory_space<vmem>>, %arg2: memref<72x368xbf16, #tpu.memory_space<vmem>>, %arg3: memref<1x368xf32, #tpu.memory_space<vmem>>, %arg4: memref<128x368xf32, #tpu.memory_space<vmem>>) attributes {dimension_semantics = [#tpu.dimension_semantics<parallel>], iteration_bounds = array<i64: 4>, scalar_prefetch = 0 : i64, scratch_operands = 0 : i64, tpu.core_type = #tpu.core_type<tc>, window_params = [{transform_indices = @transform_0, window_bounds = array<i64: 128, 72>}, {pipeline_mode = #tpu.pipeline_mode<synchronous>, transform_indices = @transform_1, window_bounds = array<i64: 72, 368>}, {pipeline_mode = #tpu.pipeline_mode<synchronous>, transform_indices = @transform_2, window_bounds = array<i64: 1, 368>}, {transform_indices = @transform_3, window_bounds = array<i64: 128, 368>}]} {
    %c0 = arith.constant 0 : index
    %c0_0 = arith.constant 0 : index
    %0 = vector.load %arg1[%c0, %c0_0] : memref<128x72xbf16, #tpu.memory_space<vmem>>, vector<128x72xbf16>
    %c0_1 = arith.constant 0 : index
    %c0_2 = arith.constant 0 : index
    %1 = vector.load %arg2[%c0_1, %c0_2] : memref<72x368xbf16, #tpu.memory_space<vmem>>, vector<72x368xbf16>
    %cst = arith.constant dense<0.000000e+00> : vector<128x368xf32>
    %2 = tpu.matmul %0, %1, %cst {dimension_numbers = #tpu.dot_dimension_numbers<[1], [0], [0], [1], [0, 0, 1, 1], [], []>} : vector<128x72xbf16>, vector<72x368xbf16>, vector<128x368xf32> -> vector<128x368xf32>
    %c0_3 = arith.constant 0 : index
    %c0_4 = arith.constant 0 : index
    %3 = vector.load %arg3[%c0_3, %c0_4] : memref<1x368xf32, #tpu.memory_space<vmem>>, vector<1x368xf32>
    %4 = vector.broadcast %3 : vector<1x368xf32> to vector<128x368xf32>
    %5 = arith.addf %2, %4 : vector<128x368xf32>
    %cst_5 = arith.constant 0.000000e+00 : f32
    %6 = vector.broadcast %cst_5 : f32 to vector<128x368xf32>
    %7 = arith.maximumf %5, %6 : vector<128x368xf32>
    %c0_6 = arith.constant 0 : index
    %c0_7 = arith.constant 0 : index
    %8 = vector.load %arg4[%c0_6, %c0_7] : memref<128x368xf32, #tpu.memory_space<vmem>>, vector<128x368xf32>
    tpu.vector_store %arg4[%c0_6, %c0_7], %7 {strides = array<i32>} : memref<128x368xf32, #tpu.memory_space<vmem>>, vector<128x368xf32>,
    return
  }
  func.func @transform_0(%arg0: i32) -> (i32, i32) {
    %c0_i32 = arith.constant 0 : i32
    %c0_i32_0 = arith.constant 0 : i32
    return %arg0, %c0_i32 : i32, i32
  }
  func.func @transform_1(%arg0: i32) -> (i32, i32) {
    %c0_i32 = arith.constant 0 : i32
    %c0_i32_0 = arith.constant 0 : i32
    %c0_i32_1 = arith.constant 0 : i32
    return %c0_i32, %c0_i32_0 : i32, i32
  }
  func.func @transform_2(%arg0: i32) -> (i32, i32) {
    %c0_i32 = arith.constant 0 : i32
    %c0_i32_0 = arith.constant 0 : i32
    %c0_i32_1 = arith.constant 0 : i32
    return %c0_i32, %c0_i32_0 : i32, i32
  }
  func.func @transform_3(%arg0: i32) -> (i32, i32) {
    %c0_i32 = arith.constant 0 : i32
    %c0_i32_0 = arith.constant 0 : i32
    return %arg0, %c0_i32 : i32, i32
  }
}

module attributes {stable_mosaic.version = 11 : i64} {
  func.func @_matmul_bias_crelu_kernel(%arg0: i32, %arg1: memref<128x2400xbf16, #tpu.memory_space<vmem>>, %arg2: memref<2400x128xbf16, #tpu.memory_space<vmem>>, %arg3: memref<1x128xf32, #tpu.memory_space<vmem>>, %arg4: memref<128x128xf32, #tpu.memory_space<vmem>>) attributes {dimension_semantics = [#tpu.dimension_semantics<parallel>], iteration_bounds = array<i64: 4>, scalar_prefetch = 0 : i64, scratch_operands = 0 : i64, tpu.core_type = #tpu.core_type<tc>, window_params = [{transform_indices = @transform_0, window_bounds = array<i64: 128, 2400>}, {pipeline_mode = #tpu.pipeline_mode<synchronous>, transform_indices = @transform_1, window_bounds = array<i64: 2400, 128>}, {pipeline_mode = #tpu.pipeline_mode<synchronous>, transform_indices = @transform_2, window_bounds = array<i64: 1, 128>}, {transform_indices = @transform_3, window_bounds = array<i64: 128, 128>}]} {
    %c0 = arith.constant 0 : index
    %c0_0 = arith.constant 0 : index
    %0 = vector.load %arg1[%c0, %c0_0] : memref<128x2400xbf16, #tpu.memory_space<vmem>>, vector<128x2400xbf16>
    %c0_1 = arith.constant 0 : index
    %c0_2 = arith.constant 0 : index
    %1 = vector.load %arg2[%c0_1, %c0_2] : memref<2400x128xbf16, #tpu.memory_space<vmem>>, vector<2400x128xbf16>
    %cst = arith.constant dense<0.000000e+00> : vector<128x128xf32>
    %2 = tpu.matmul %0, %1, %cst {dimension_numbers = #tpu.dot_dimension_numbers<[1], [0], [0], [1], [0, 0, 1, 1], [], []>} : vector<128x2400xbf16>, vector<2400x128xbf16>, vector<128x128xf32> -> vector<128x128xf32>
    %c0_3 = arith.constant 0 : index
    %c0_4 = arith.constant 0 : index
    %3 = vector.load %arg3[%c0_3, %c0_4] : memref<1x128xf32, #tpu.memory_space<vmem>>, vector<1x128xf32>
    %4 = vector.broadcast %3 : vector<1x128xf32> to vector<128x128xf32>
    %5 = arith.addf %2, %4 : vector<128x128xf32>
    %cst_5 = arith.constant 0.000000e+00 : f32
    %6 = vector.broadcast %cst_5 : f32 to vector<128x128xf32>
    %7 = arith.maximumf %5, %6 : vector<128x128xf32>
    %c0_6 = arith.constant 0 : index
    %c0_7 = arith.constant 0 : index
    %8 = vector.load %arg4[%c0_6, %c0_7] : memref<128x128xf32, #tpu.memory_space<vmem>>, vector<128x128xf32>
    tpu.vector_store %arg4[%c0_6, %c0_7], %7 {strides = array<i32>} : memref<128x128xf32, #tpu.memory_space<vmem>>, vector<128x128xf32>,
    return
  }
  func.func @transform_0(%arg0: i32) -> (i32, i32) {
    %c0_i32 = arith.constant 0 : i32
    %c0_i32_0 = arith.constant 0 : i32
    return %arg0, %c0_i32 : i32, i32
  }
  func.func @transform_1(%arg0: i32) -> (i32, i32) {
    %c0_i32 = arith.constant 0 : i32
    %c0_i32_0 = arith.constant 0 : i32
    %c0_i32_1 = arith.constant 0 : i32
    return %c0_i32, %c0_i32_0 : i32, i32
  }
  func.func @transform_2(%arg0: i32) -> (i32, i32) {
    %c0_i32 = arith.constant 0 : i32
    %c0_i32_0 = arith.constant 0 : i32
    %c0_i32_1 = arith.constant 0 : i32
    return %c0_i32, %c0_i32_0 : i32, i32
  }
  func.func @transform_3(%arg0: i32) -> (i32, i32) {
    %c0_i32 = arith.constant 0 : i32
    %c0_i32_0 = arith.constant 0 : i32
    return %arg0, %c0_i32 : i32, i32
  }
}

module attributes {stable_mosaic.version = 11 : i64} {
  func.func @_matmul_bias_crelu_kernel(%arg0: i32, %arg1: memref<128x1152xbf16, #tpu.memory_space<vmem>>, %arg2: memref<1152x192xbf16, #tpu.memory_space<vmem>>, %arg3: memref<1x192xf32, #tpu.memory_space<vmem>>, %arg4: memref<128x192xf32, #tpu.memory_space<vmem>>) attributes {dimension_semantics = [#tpu.dimension_semantics<parallel>], iteration_bounds = array<i64: 4>, scalar_prefetch = 0 : i64, scratch_operands = 0 : i64, tpu.core_type = #tpu.core_type<tc>, window_params = [{transform_indices = @transform_0, window_bounds = array<i64: 128, 1152>}, {pipeline_mode = #tpu.pipeline_mode<synchronous>, transform_indices = @transform_1, window_bounds = array<i64: 1152, 192>}, {pipeline_mode = #tpu.pipeline_mode<synchronous>, transform_indices = @transform_2, window_bounds = array<i64: 1, 192>}, {transform_indices = @transform_3, window_bounds = array<i64: 128, 192>}]} {
    %c0 = arith.constant 0 : index
    %c0_0 = arith.constant 0 : index
    %0 = vector.load %arg1[%c0, %c0_0] : memref<128x1152xbf16, #tpu.memory_space<vmem>>, vector<128x1152xbf16>
    %c0_1 = arith.constant 0 : index
    %c0_2 = arith.constant 0 : index
    %1 = vector.load %arg2[%c0_1, %c0_2] : memref<1152x192xbf16, #tpu.memory_space<vmem>>, vector<1152x192xbf16>
    %cst = arith.constant dense<0.000000e+00> : vector<128x192xf32>
    %2 = tpu.matmul %0, %1, %cst {dimension_numbers = #tpu.dot_dimension_numbers<[1], [0], [0], [1], [0, 0, 1, 1], [], []>} : vector<128x1152xbf16>, vector<1152x192xbf16>, vector<128x192xf32> -> vector<128x192xf32>
    %c0_3 = arith.constant 0 : index
    %c0_4 = arith.constant 0 : index
    %3 = vector.load %arg3[%c0_3, %c0_4] : memref<1x192xf32, #tpu.memory_space<vmem>>, vector<1x192xf32>
    %4 = vector.broadcast %3 : vector<1x192xf32> to vector<128x192xf32>
    %5 = arith.addf %2, %4 : vector<128x192xf32>
    %cst_5 = arith.constant 0.000000e+00 : f32
    %6 = vector.broadcast %cst_5 : f32 to vector<128x192xf32>
    %7 = arith.maximumf %5, %6 : vector<128x192xf32>
    %c0_6 = arith.constant 0 : index
    %c0_7 = arith.constant 0 : index
    %8 = vector.load %arg4[%c0_6, %c0_7] : memref<128x192xf32, #tpu.memory_space<vmem>>, vector<128x192xf32>
    tpu.vector_store %arg4[%c0_6, %c0_7], %7 {strides = array<i32>} : memref<128x192xf32, #tpu.memory_space<vmem>>, vector<128x192xf32>,
    return
  }
  func.func @transform_0(%arg0: i32) -> (i32, i32) {
    %c0_i32 = arith.constant 0 : i32
    %c0_i32_0 = arith.constant 0 : i32
    return %arg0, %c0_i32 : i32, i32
  }
  func.func @transform_1(%arg0: i32) -> (i32, i32) {
    %c0_i32 = arith.constant 0 : i32
    %c0_i32_0 = arith.constant 0 : i32
    %c0_i32_1 = arith.constant 0 : i32
    return %c0_i32, %c0_i32_0 : i32, i32
  }
  func.func @transform_2(%arg0: i32) -> (i32, i32) {
    %c0_i32 = arith.constant 0 : i32
    %c0_i32_0 = arith.constant 0 : i32
    %c0_i32_1 = arith.constant 0 : i32
    return %c0_i32, %c0_i32_0 : i32, i32
  }
  func.func @transform_3(%arg0: i32) -> (i32, i32) {
    %c0_i32 = arith.constant 0 : i32
    %c0_i32_0 = arith.constant 0 : i32
    return %arg0, %c0_i32 : i32, i32
  }
}

module attributes {stable_mosaic.version = 11 : i64} {
  func.func @_matmul_bias_crelu_kernel(%arg0: i32, %arg1: memref<128x1728xbf16, #tpu.memory_space<vmem>>, %arg2: memref<1728x192xbf16, #tpu.memory_space<vmem>>, %arg3: memref<1x192xf32, #tpu.memory_space<vmem>>, %arg4: memref<128x192xf32, #tpu.memory_space<vmem>>) attributes {dimension_semantics = [#tpu.dimension_semantics<parallel>], iteration_bounds = array<i64: 4>, scalar_prefetch = 0 : i64, scratch_operands = 0 : i64, tpu.core_type = #tpu.core_type<tc>, window_params = [{transform_indices = @transform_0, window_bounds = array<i64: 128, 1728>}, {pipeline_mode = #tpu.pipeline_mode<synchronous>, transform_indices = @transform_1, window_bounds = array<i64: 1728, 192>}, {pipeline_mode = #tpu.pipeline_mode<synchronous>, transform_indices = @transform_2, window_bounds = array<i64: 1, 192>}, {transform_indices = @transform_3, window_bounds = array<i64: 128, 192>}]} {
    %c0 = arith.constant 0 : index
    %c0_0 = arith.constant 0 : index
    %0 = vector.load %arg1[%c0, %c0_0] : memref<128x1728xbf16, #tpu.memory_space<vmem>>, vector<128x1728xbf16>
    %c0_1 = arith.constant 0 : index
    %c0_2 = arith.constant 0 : index
    %1 = vector.load %arg2[%c0_1, %c0_2] : memref<1728x192xbf16, #tpu.memory_space<vmem>>, vector<1728x192xbf16>
    %cst = arith.constant dense<0.000000e+00> : vector<128x192xf32>
    %2 = tpu.matmul %0, %1, %cst {dimension_numbers = #tpu.dot_dimension_numbers<[1], [0], [0], [1], [0, 0, 1, 1], [], []>} : vector<128x1728xbf16>, vector<1728x192xbf16>, vector<128x192xf32> -> vector<128x192xf32>
    %c0_3 = arith.constant 0 : index
    %c0_4 = arith.constant 0 : index
    %3 = vector.load %arg3[%c0_3, %c0_4] : memref<1x192xf32, #tpu.memory_space<vmem>>, vector<1x192xf32>
    %4 = vector.broadcast %3 : vector<1x192xf32> to vector<128x192xf32>
    %5 = arith.addf %2, %4 : vector<128x192xf32>
    %cst_5 = arith.constant 0.000000e+00 : f32
    %6 = vector.broadcast %cst_5 : f32 to vector<128x192xf32>
    %7 = arith.maximumf %5, %6 : vector<128x192xf32>
    %c0_6 = arith.constant 0 : index
    %c0_7 = arith.constant 0 : index
    %8 = vector.load %arg4[%c0_6, %c0_7] : memref<128x192xf32, #tpu.memory_space<vmem>>, vector<128x192xf32>
    tpu.vector_store %arg4[%c0_6, %c0_7], %7 {strides = array<i32>} : memref<128x192xf32, #tpu.memory_space<vmem>>, vector<128x192xf32>,
    return
  }
  func.func @transform_0(%arg0: i32) -> (i32, i32) {
    %c0_i32 = arith.constant 0 : i32
    %c0_i32_0 = arith.constant 0 : i32
    return %arg0, %c0_i32 : i32, i32
  }
  func.func @transform_1(%arg0: i32) -> (i32, i32) {
    %c0_i32 = arith.constant 0 : i32
    %c0_i32_0 = arith.constant 0 : i32
    %c0_i32_1 = arith.constant 0 : i32
    return %c0_i32, %c0_i32_0 : i32, i32
  }
  func.func @transform_2(%arg0: i32) -> (i32, i32) {
    %c0_i32 = arith.constant 0 : i32
    %c0_i32_0 = arith.constant 0 : i32
    %c0_i32_1 = arith.constant 0 : i32
    return %c0_i32, %c0_i32_0 : i32, i32
  }
  func.func @transform_3(%arg0: i32) -> (i32, i32) {
    %c0_i32 = arith.constant 0 : i32
    %c0_i32_0 = arith.constant 0 : i32
    return %arg0, %c0_i32 : i32, i32
  }
}

</mosaic_0001>

<bundles_post_ra>
// kernel: complex_inception_a.4
= control target key start
LH: loop header
LB: loop body
LE: loop exit
PB: predicated region body
PF: predicated region fallthrough
CT: control target
= control target key end

     0   :  { %s855_s12 = smov 0   ;;  %s1119_s0 = inlined_call_operand.vmem [shape: bf16[512,72], index: 0, kind: input, shape index: {}]   ;;  %s1120_s1 = inlined_call_operand.vmem [shape: bf16[72,368], index: 1, kind: input, shape index: {}]   ;;  %s1121_s2 = inlined_call_operand.vmem [shape: f32[1,368], index: 2, kind: input, shape index: {}]   ;;  %s1122_s3 = inlined_call_operand.vmem [shape: f32[512,368], index: 3, kind: output, shape index: {}]  }
   0x1 LB: > { %s668_s13 = sadd.s32 4294967295, %s833_s12   ;;  %p672_p0 = scmp.ge.s32.totalorder %s833_s12, 1  ;;  %s833_s12 = sphi %s855_s12, %s13_s12  }
   0x2   : > { %p138_p1 = scmp.lt.s32.totalorder %s833_s12, 5 }
   0x4   : > { %p139_p2 = pnand %p672_p0, %p138_p1 }
   0x5   : > { %s673_s30 = sshll.u32 (!%p139_p2), %s668_s13, 4 }
   0x6   : > { %142 = sbr.rel (%p139_p2) target bundleno = 263 (0x107), region = 32  ;;  %p164_p3 = scmp.lt.s32.totalorder (!%p139_p2), %s673_s30, 63 }
   0xb   : > { %v209_v0 = vld [vmem:[%s1120_s1 + $0x60] sm:$0xff]  ;;  %v210_v1 = vld [vmem:[%s1120_s1 + $0x68] sm:$0xf]  ;;  %vm356_vm0 = vcmask 1043456   ;;  %v801_v9 = vld [vmem:[%s1120_s1 + $0x50] sm:$0xf0] }
   0xc   : > { %v301_v2 = vunpack.c.l.b16 %v209_v0  ;;  %v302_v3 = vunpack.c.h.b16 %v209_v0  ;;  %v303_v4 = vunpack.c.l.b16 %v210_v1  ;;  %v747_v8 = vld [vmem:[%s1120_s1 + $0x48] sm:$0xf]  ;;  %v800_v10 = vld [vmem:[%s1120_s1 + $0x4c] sm:$0xf]  ;;  %v749_v11 = vld [vmem:[%s1120_s1 + $0x54] sm:$0xf0] }
   0xd   : > { %v755_v12 = vld [vmem:[%s1120_s1 + $0x50] sm:$0xf]  ;;  %v802_v13 = vld [vmem:[%s1120_s1 + $0x58] sm:$0xf0]  ;;  %v748_v17 = vor.u32 %v801_v9, %v747_v8  ;;  %v752_v18 = vor.u32 %v800_v10, %v749_v11  ;;  %v797_v22 = vld [vmem:[%s1120_s1 + $0x34] sm:$0xf] }
   0xe   : > { %v316_v5 = vpack.c.b16 %v301_v2, %v301_v2  ;;  %v317_v6 = vpack.c.b16 %v302_v3, %v302_v3  ;;  %v318_v7 = vpack.c.b16 %v303_v4, %v303_v4  ;;  %v890_v19 = vor.u32 %v802_v13, %v755_v12  ;;  %v735_v20 = vld [vmem:[%s1120_s1 + $0x30] sm:$0xf]  ;;  %v798_v21 = vld [vmem:[%s1120_s1 + $0x38] sm:$0xf0]  ;;  %v737_v23 = vld [vmem:[%s1120_s1 + $0x3c] sm:$0xf0] }
   0xf   : > { %v743_v24 = vld [vmem:[%s1120_s1 + $0x38] sm:$0xf]  ;;  %v799_v25 = vld [vmem:[%s1120_s1 + $0x40] sm:$0xf0]  ;;  %v736_v26 = vor.u32 %v798_v21, %v735_v20  ;;  %v740_v28 = vor.u32 %v797_v22, %v737_v23  ;;  %v794_v31 = vld [vmem:[%s1120_s1 + $0x1c] sm:$0xf] }
  0x10   : > { %v358_v14 = vsel %vm356_vm0, %v316_v5, 0  ;;  %v361_v15 = vsel %vm356_vm0, %v317_v6, 0  ;;  %v887_v16 = vsel %vm356_vm0, %v318_v7, 0  ;;  %v723_v27 = vld [vmem:[%s1120_s1 + $0x18] sm:$0xf]  ;;  %v744_v29 = vor.u32 %v799_v25, %v743_v24  ;;  %s1124_s30 = smov (!%p164_p3, %s673_s30), 63 }
  0x11   : > { %369 = vmatpush.bf16.msra.mxu0 %v358_v14  ;;  %803 = vmatpush.bf16.msra.mxu3 %v358_v14  ;;  %v795_v30 = vld [vmem:[%s1120_s1 + $0x20] sm:$0xf0]  ;;  %v725_v32 = vld [vmem:[%s1120_s1 + $0x24] sm:$0xf0]  ;;  %v731_v33 = vld [vmem:[%s1120_s1 + $0x20] sm:$0xf] }
  0x12   : > { %418 = vmatpush.bf16.msra.mxu1 %v361_v15  ;;  %467 = vmatpush.bf16.msra.mxu2 %v887_v16  ;;  %v796_v34 = vld [vmem:[%s1120_s1 + $0x28] sm:$0xf0]  ;;  %v724_v35 = vor.u32 %v795_v30, %v723_v27  ;;  %v711_v36 = vld [vmem:[%s1120_s1] sm:$0xf]  ;;  %v728_v37 = vor.u32 %v794_v31, %v725_v32  ;;  %v791_v40 = vld [vmem:[%s1120_s1 + $0x4] sm:$0xf] }
  0x13   : > { %v732_v38 = vor.u32 %v796_v34, %v731_v33  ;;  %v792_v39 = vld [vmem:[%s1120_s1 + $0x8] sm:$0xf0]  ;;  %s674_s9 = sshll.u32 %s1124_s30, 2  ;;  %v713_v41 = vld [vmem:[%s1120_s1 + $0xc] sm:$0xf0]  ;;  %vm331_vm1 = vcmask 588800  }
  0x14   : > { %v719_v42 = vld [vmem:[%s1120_s1 + $0x8] sm:$0xf]  ;;  %v793_v43 = vld [vmem:[%s1120_s1 + $0x10] sm:$0xf0]  ;;  %v712_v44 = vor.u32 %v792_v39, %v711_v36  ;;  %s953_s19 = scalar_lea.vmem %s1119_s0, %s674_s9  ;;  %v716_v45 = vor.u32 %v791_v40, %v713_v41  ;;  %v211_v55 = vld [vmem:[%s1121_s2] sm:$0x7] }
  0x15   : > { %370 = vmatpush.bf16.msra.mxu0 %v748_v17  ;;  %804 = vmatpush.bf16.msra.mxu3 %v748_v17  ;;  %v720_v46 = vor.u32 %v793_v43, %v719_v42  ;;  %v783_v47 = vld [vmem:[%s953_s19] sm:$0xff]  ;;  %v789_v48 = vld [vmem:[%s953_s19 + $0x30] sm:$0xff]  ;;  %v784_v49 = vld [vmem:[%s953_s19 + $0x8] sm:$0xff]  ;;  %v992_v56 = vperm.slane %v211_v55, 0  ;;  %s818_s22 = smul.u32 24, %s1124_s30  ;;  %v995_v57 = vperm.slane %v211_v55, 1 }
  0x16   : > { %419 = vmatpush.bf16.msra.mxu1 %v752_v18  ;;  %468 = vmatpush.bf16.msra.mxu2 %v890_v19  ;;  %v790_v50 = vld [vmem:[%s953_s19 + $0x38] sm:$0xff]  ;;  %v785_v51 = vld [vmem:[%s953_s19 + $0x10] sm:$0xff]  ;;  %v787_v53 = vld [vmem:[%s953_s19 + $0x20] sm:$0xff]  ;;  %v1004_v0 = vperm.slane %v211_v55, 2  ;;  %vm563_vm2 = vcmask 916480  }
  0x17   : > { %v786_v52 = vld [vmem:[%s953_s19 + $0x18] sm:$0xff]  ;;  %v788_v54 = vld [vmem:[%s953_s19 + $0x28] sm:$0xff]  ;;  %s1001_s25 = scalar_lea.vmem %s1122_s3, %s818_s22 }
  0x19   : > { %371 = vmatpush.bf16.msra.mxu0 %v736_v26  ;;  %805 = vmatpush.bf16.msra.mxu3 %v736_v26 }
  0x1a   : > { %420 = vmatpush.bf16.msra.mxu1 %v740_v28  ;;  %469 = vmatpush.bf16.msra.mxu2 %v744_v29 }
  0x1d   : > { %372 = vmatpush.bf16.msra.mxu0 %v724_v35  ;;  %806 = vmatpush.bf16.msra.mxu3 %v724_v35 }
  0x1e   : > { %421 = vmatpush.bf16.msra.mxu1 %v728_v37  ;;  %470 = vmatpush.bf16.msra.mxu2 %v732_v38 }
  0x21   : > { %373 = vmatpush.bf16.msra.mxu0 %v712_v44  ;;  %807 = vmatpush.bf16.msra.mxu3 %v712_v44 }
  0x22   : > { %422 = vmatpush.bf16.msra.mxu1 %v716_v45  ;;  %471 = vmatpush.bf16.msra.mxu2 %v720_v46 }
  0x24   : > { %757 = vmatmul.msk.bf16.vlgmr.msra.gmra.mxu0 %vm331_vm1, %v783_v47  ;;  %763 = vmatmul.msk.bf16.vlgmr.msra.gmra.mxu3 %vm331_vm1, %v789_v48 }
  0x25   : > { %808 = vmatpush.bf16.msrb.mxu3 %v361_v15  ;;  %765 = vmatmul.msk.bf16.vlgmr.msra.gmra.mxu1 %vm331_vm1, %v783_v47 }
  0x26   : > { %773 = vmatmul.msk.bf16.vlgmr.msra.gmra.mxu2 %vm331_vm1, %v783_v47 }
  0x29   : > { %809 = vmatpush.bf16.msrb.mxu3 %v752_v18 }
  0x2d   : > { %810 = vmatpush.bf16.msrb.mxu3 %v740_v28 }
  0x31   : > { %811 = vmatpush.bf16.msrb.mxu3 %v728_v37 }
  0x34   : > { %758 = vmatmul.msk.bf16.gmra.mxu0 %vm331_vm1, %v784_v49  ;;  %764 = vmatmul.msk.bf16.gmra.mxu3 %vm331_vm1, %v790_v50 }
  0x35   : > { %812 = vmatpush.bf16.msrb.mxu3 %v716_v45  ;;  %766 = vmatmul.msk.bf16.gmra.mxu1 %vm331_vm1, %v784_v49 }
  0x36   : > { %774 = vmatmul.msk.bf16.gmra.mxu2 %vm331_vm1, %v784_v49 }
  0x39   : > { %813 = vmatpush.bf16.msra.mxu3 %v887_v16 }
  0x3d   : > { %814 = vmatpush.bf16.msra.mxu3 %v890_v19 }
  0x41   : > { %815 = vmatpush.bf16.msra.mxu3 %v744_v29 }
  0x44   : > { %759 = vmatmul.msk.bf16.gmra.mxu0 %vm331_vm1, %v785_v51  ;;  %771 = vmatmul.msk.bf16.vlgmr.msrb.gmra.mxu3 %vm331_vm1, %v789_v48 }
  0x45   : > { %816 = vmatpush.bf16.msra.mxu3 %v732_v38  ;;  %767 = vmatmul.msk.bf16.gmra.mxu1 %vm331_vm1, %v785_v51 }
  0x46   : > { %775 = vmatmul.msk.bf16.gmra.mxu2 %vm331_vm1, %v785_v51 }
  0x49   : > { %817 = vmatpush.bf16.msra.mxu3 %v720_v46 }
  0x54   : > { %760 = vmatmul.msk.bf16.gmra.mxu0 %vm331_vm1, %v786_v52  ;;  %772 = vmatmul.msk.bf16.gmra.mxu3 %vm331_vm1, %v790_v50 }
  0x55   : > { %768 = vmatmul.msk.bf16.gmra.mxu1 %vm331_vm1, %v786_v52 }
  0x56   : > { %776 = vmatmul.msk.bf16.gmra.mxu2 %vm331_vm1, %v786_v52 }
  0x64   : > { %761 = vmatmul.msk.bf16.gmra.mxu0 %vm331_vm1, %v787_v53  ;;  %779 = vmatmul.msk.bf16.vlgmr.msra.gmra.mxu3 %vm331_vm1, %v789_v48 }
  0x65   : > { %769 = vmatmul.msk.bf16.gmra.mxu1 %vm331_vm1, %v787_v53 }
  0x66   : > { %777 = vmatmul.msk.bf16.gmra.mxu2 %vm331_vm1, %v787_v53 }
  0x74   : > { %762 = vmatmul.msk.bf16.gmra.mxu0 %vm331_vm1, %v788_v54  ;;  %780 = vmatmul.msk.bf16.gmra.mxu3 %vm331_vm1, %v790_v50 }
  0x75   : > { %770 = vmatmul.msk.bf16.gmra.mxu1 %vm331_vm1, %v788_v54 }
  0x76   : > { %778 = vmatmul.msk.bf16.gmra.mxu2 %vm331_vm1, %v788_v54 }
  0xa1   : > { %v375_v58 = vpop.f32.mrf.mxu0 }
  0xa2   : > { %v376_v59 = vadd.f32 %v375_v58, %v992_v56  ;;  %v424_v60 = vpop.f32.mrf.mxu1 }
  0xa3   : > { %v425_v61 = vadd.f32 %v424_v60, %v995_v57 }
  0xa4   : > { %v513_v62 = vmax.f32 %v376_v59, 0.0 }
  0xa5   : > { %v514_v63 = vmax.f32 %v425_v61, 0.0 }
  0xa6   : > { %561 = vst [vmem:[%s1001_s25] sm:$0xff] %v513_v62 }
  0xa7   : > { %562 = vst [vmem:[%s1001_s25 + $0x8] sm:$0xff] %v514_v63  ;;  %v405_v1 = vpop.f32.mrf.mxu3 }
  0xa8   : > { %v406_v2 = vadd.f32 %v405_v1, %v992_v56 }
  0xa9   : > { %v473_v3 = vpop.f32.mrf.mxu2  ;;  %v377_v5 = vpop.f32.mrf.mxu0 }
  0xaa   : > { %v474_v4 = vadd.f32 %v473_v3, %v1004_v0  ;;  %v549_v6 = vmax.f32 %v406_v2, 0.0  ;;  %v378_v7 = vadd.f32 %v377_v5, %v992_v56  ;;  %v426_v8 = vpop.f32.mrf.mxu1 }
  0xab   : > { %v427_v10 = vadd.f32 %v426_v8, %v995_v57 }
  0xac   : > { %v515_v9 = vmax.f32 %v474_v4, 0.0  ;;  %598 = vst [vmem:[%s1001_s25 + $0x120] sm:$0xff] %v549_v6  ;;  %v516_v11 = vmax.f32 %v378_v7, 0.0 }
  0xad   : > { %v517_v12 = vmax.f32 %v427_v10, 0.0 }
  0xae   : > { %564 = vst.msk [vmem:[%s1001_s25 + $0x10] sm:$0xff] %vm563_vm2, %v515_v9 }
  0xaf   : > { %565 = vst [vmem:[%s1001_s25 + $0x18] sm:$0xff] %v516_v11  ;;  %v407_v13 = vpop.f32.mrf.mxu3 }
  0xb0   : > { %566 = vst [vmem:[%s1001_s25 + $0x20] sm:$0xff] %v517_v12  ;;  %v408_v14 = vadd.f32 %v407_v13, %v992_v56 }
  0xb1   : > { %v475_v15 = vpop.f32.mrf.mxu2  ;;  %v380_v17 = vpop.f32.mrf.mxu0 }
  0xb2   : > { %v476_v16 = vadd.f32 %v475_v15, %v1004_v0  ;;  %v552_v18 = vmax.f32 %v408_v14, 0.0  ;;  %v381_v19 = vadd.f32 %v380_v17, %v992_v56  ;;  %v429_v20 = vpop.f32.mrf.mxu1 }
  0xb3   : > { %v430_v22 = vadd.f32 %v429_v20, %v995_v57 }
  0xb4   : > { %v518_v21 = vmax.f32 %v476_v16, 0.0  ;;  %601 = vst [vmem:[%s1001_s25 + $0x138] sm:$0xff] %v552_v18  ;;  %v519_v23 = vmax.f32 %v381_v19, 0.0 }
  0xb5   : > { %v520_v24 = vmax.f32 %v430_v22, 0.0 }
  0xb6   : > { %567 = vst.msk [vmem:[%s1001_s25 + $0x28] sm:$0xff] %vm563_vm2, %v518_v21 }
  0xb7   : > { %568 = vst [vmem:[%s1001_s25 + $0x30] sm:$0xff] %v519_v23  ;;  %v410_v25 = vpop.f32.mrf.mxu3 }
  0xb8   : > { %569 = vst [vmem:[%s1001_s25 + $0x38] sm:$0xff] %v520_v24  ;;  %v411_v26 = vadd.f32 %v410_v25, %v992_v56 }
  0xb9   : > { %v478_v27 = vpop.f32.mrf.mxu2  ;;  %v382_v29 = vpop.f32.mrf.mxu0 }
  0xba   : > { %v479_v28 = vadd.f32 %v478_v27, %v1004_v0  ;;  %v555_v30 = vmax.f32 %v411_v26, 0.0  ;;  %v383_v31 = vadd.f32 %v382_v29, %v992_v56  ;;  %v431_v32 = vpop.f32.mrf.mxu1 }
  0xbb   : > { %v432_v34 = vadd.f32 %v431_v32, %v995_v57 }
  0xbc   : > { %v521_v33 = vmax.f32 %v479_v28, 0.0  ;;  %604 = vst [vmem:[%s1001_s25 + $0x150] sm:$0xff] %v555_v30  ;;  %v522_v35 = vmax.f32 %v383_v31, 0.0 }
  0xbd   : > { %v523_v36 = vmax.f32 %v432_v34, 0.0 }
  0xbe   : > { %570 = vst.msk [vmem:[%s1001_s25 + $0x40] sm:$0xff] %vm563_vm2, %v521_v33 }
  0xbf   : > { %571 = vst [vmem:[%s1001_s25 + $0x48] sm:$0xff] %v522_v35  ;;  %v412_v37 = vpop.f32.mrf.mxu3 }
  0xc0   : > { %572 = vst [vmem:[%s1001_s25 + $0x50] sm:$0xff] %v523_v36  ;;  %v413_v38 = vadd.f32 %v412_v37, %v992_v56 }
  0xc1   : > { %v480_v39 = vpop.f32.mrf.mxu2  ;;  %v385_v41 = vpop.f32.mrf.mxu0 }
  0xc2   : > { %v481_v40 = vadd.f32 %v480_v39, %v1004_v0  ;;  %v558_v42 = vmax.f32 %v413_v38, 0.0  ;;  %v386_v43 = vadd.f32 %v385_v41, %v992_v56  ;;  %v434_v44 = vpop.f32.mrf.mxu1 }
  0xc3   : > { %v435_v46 = vadd.f32 %v434_v44, %v995_v57 }
  0xc4   : > { %v524_v45 = vmax.f32 %v481_v40, 0.0  ;;  %607 = vst [vmem:[%s1001_s25 + $0x168] sm:$0xff] %v558_v42  ;;  %v525_v47 = vmax.f32 %v386_v43, 0.0 }
  0xc5   : > { %v526_v48 = vmax.f32 %v435_v46, 0.0 }
  0xc6   : > { %573 = vst.msk [vmem:[%s1001_s25 + $0x58] sm:$0xff] %vm563_vm2, %v524_v45 }
  0xc7   : > { %574 = vst [vmem:[%s1001_s25 + $0x60] sm:$0xff] %v525_v47  ;;  %v454_v49 = vpop.f32.mrf.mxu3 }
  0xc8   : > { %575 = vst [vmem:[%s1001_s25 + $0x68] sm:$0xff] %v526_v48  ;;  %v455_v50 = vadd.f32 %v454_v49, %v995_v57 }
  0xc9   : > { %v483_v51 = vpop.f32.mrf.mxu2  ;;  %v387_v53 = vpop.f32.mrf.mxu0 }
  0xca   : > { %v484_v52 = vadd.f32 %v483_v51, %v1004_v0  ;;  %v550_v54 = vmax.f32 %v455_v50, 0.0  ;;  %v388_v55 = vadd.f32 %v387_v53, %v992_v56  ;;  %v436_v58 = vpop.f32.mrf.mxu1 }
  0xcb   : > { %v437_v60 = vadd.f32 %v436_v58, %v995_v57 }
  0xcc   : > { %v527_v59 = vmax.f32 %v484_v52, 0.0  ;;  %599 = vst [vmem:[%s1001_s25 + $0x128] sm:$0xff] %v550_v54  ;;  %v528_v61 = vmax.f32 %v388_v55, 0.0 }
  0xcd   : > { %v529_v62 = vmax.f32 %v437_v60, 0.0 }
  0xce   : > { %576 = vst.msk [vmem:[%s1001_s25 + $0x70] sm:$0xff] %vm563_vm2, %v527_v59 }
  0xcf   : > { %577 = vst [vmem:[%s1001_s25 + $0x78] sm:$0xff] %v528_v61  ;;  %v456_v63 = vpop.f32.mrf.mxu3 }
  0xd0   : > { %578 = vst [vmem:[%s1001_s25 + $0x80] sm:$0xff] %v529_v62  ;;  %v457_v1 = vadd.f32 %v456_v63, %v995_v57 }
  0xd1   : > { %v485_v2 = vpop.f32.mrf.mxu2  ;;  %v390_v4 = vpop.f32.mrf.mxu0 }
  0xd2   : > { %v486_v3 = vadd.f32 %v485_v2, %v1004_v0  ;;  %v553_v5 = vmax.f32 %v457_v1, 0.0  ;;  %v391_v6 = vadd.f32 %v390_v4, %v992_v56  ;;  %v439_v7 = vpop.f32.mrf.mxu1 }
  0xd3   : > { %v440_v9 = vadd.f32 %v439_v7, %v995_v57 }
  0xd4   : > { %v530_v8 = vmax.f32 %v486_v3, 0.0  ;;  %602 = vst [vmem:[%s1001_s25 + $0x140] sm:$0xff] %v553_v5  ;;  %v531_v10 = vmax.f32 %v391_v6, 0.0 }
  0xd5   : > { %v532_v11 = vmax.f32 %v440_v9, 0.0 }
  0xd6   : > { %579 = vst.msk [vmem:[%s1001_s25 + $0x88] sm:$0xff] %vm563_vm2, %v530_v8 }
  0xd7   : > { %580 = vst [vmem:[%s1001_s25 + $0x90] sm:$0xff] %v531_v10  ;;  %v459_v12 = vpop.f32.mrf.mxu3 }
  0xd8   : > { %581 = vst [vmem:[%s1001_s25 + $0x98] sm:$0xff] %v532_v11  ;;  %v460_v13 = vadd.f32 %v459_v12, %v995_v57 }
  0xd9   : > { %v488_v14 = vpop.f32.mrf.mxu2  ;;  %v392_v16 = vpop.f32.mrf.mxu0 }
  0xda   : > { %v489_v15 = vadd.f32 %v488_v14, %v1004_v0  ;;  %v556_v17 = vmax.f32 %v460_v13, 0.0  ;;  %v393_v18 = vadd.f32 %v392_v16, %v992_v56  ;;  %v441_v19 = vpop.f32.mrf.mxu1 }
  0xdb   : > { %v442_v21 = vadd.f32 %v441_v19, %v995_v57 }
  0xdc   : > { %v533_v20 = vmax.f32 %v489_v15, 0.0  ;;  %605 = vst [vmem:[%s1001_s25 + $0x158] sm:$0xff] %v556_v17  ;;  %v534_v22 = vmax.f32 %v393_v18, 0.0 }
  0xdd   : > { %v535_v23 = vmax.f32 %v442_v21, 0.0 }
  0xde   : > { %582 = vst.msk [vmem:[%s1001_s25 + $0xa0] sm:$0xff] %vm563_vm2, %v533_v20 }
  0xdf   : > { %583 = vst [vmem:[%s1001_s25 + $0xa8] sm:$0xff] %v534_v22  ;;  %v461_v24 = vpop.f32.mrf.mxu3 }
  0xe0   : > { %584 = vst [vmem:[%s1001_s25 + $0xb0] sm:$0xff] %v535_v23  ;;  %v462_v25 = vadd.f32 %v461_v24, %v995_v57 }
  0xe1   : > { %v490_v26 = vpop.f32.mrf.mxu2  ;;  %v395_v28 = vpop.f32.mrf.mxu0 }
  0xe2   : > { %v491_v27 = vadd.f32 %v490_v26, %v1004_v0  ;;  %v559_v29 = vmax.f32 %v462_v25, 0.0  ;;  %v396_v30 = vadd.f32 %v395_v28, %v992_v56  ;;  %v444_v31 = vpop.f32.mrf.mxu1 }
  0xe3   : > { %v445_v33 = vadd.f32 %v444_v31, %v995_v57 }
  0xe4   : > { %v536_v32 = vmax.f32 %v491_v27, 0.0  ;;  %608 = vst [vmem:[%s1001_s25 + $0x170] sm:$0xff] %v559_v29  ;;  %v537_v34 = vmax.f32 %v396_v30, 0.0 }
  0xe5   : > { %v538_v35 = vmax.f32 %v445_v33, 0.0 }
  0xe6   : > { %585 = vst.msk [vmem:[%s1001_s25 + $0xb8] sm:$0xff] %vm563_vm2, %v536_v32 }
  0xe7   : > { %586 = vst [vmem:[%s1001_s25 + $0xc0] sm:$0xff] %v537_v34  ;;  %v503_v36 = vpop.f32.mrf.mxu3 }
  0xe8   : > { %587 = vst [vmem:[%s1001_s25 + $0xc8] sm:$0xff] %v538_v35  ;;  %v504_v38 = vadd.f32 %v503_v36, %v1004_v0 }
  0xe9   : > { %v493_v37 = vpop.f32.mrf.mxu2  ;;  %v397_v40 = vpop.f32.mrf.mxu0 }
  0xea   : > { %v494_v39 = vadd.f32 %v493_v37, %v1004_v0  ;;  %v551_v41 = vmax.f32 %v504_v38, 0.0  ;;  %v398_v42 = vadd.f32 %v397_v40, %v992_v56  ;;  %v446_v43 = vpop.f32.mrf.mxu1 }
  0xeb   : > { %v447_v45 = vadd.f32 %v446_v43, %v995_v57 }
  0xec   : > { %v539_v44 = vmax.f32 %v494_v39, 0.0  ;;  %600 = vst.msk [vmem:[%s1001_s25 + $0x130] sm:$0xff] %vm563_vm2, %v551_v41  ;;  %v540_v46 = vmax.f32 %v398_v42, 0.0 }
  0xed   : > { %v541_v47 = vmax.f32 %v447_v45, 0.0 }
  0xee   : > { %588 = vst.msk [vmem:[%s1001_s25 + $0xd0] sm:$0xff] %vm563_vm2, %v539_v44 }
  0xef   : > { %589 = vst [vmem:[%s1001_s25 + $0xd8] sm:$0xff] %v540_v46  ;;  %v505_v48 = vpop.f32.mrf.mxu3 }
  0xf0   : > { %590 = vst [vmem:[%s1001_s25 + $0xe0] sm:$0xff] %v541_v47  ;;  %v506_v50 = vadd.f32 %v505_v48, %v1004_v0 }
  0xf1   : > { %v495_v49 = vpop.f32.mrf.mxu2  ;;  %v400_v52 = vpop.f32.mrf.mxu0 }
  0xf2   : > { %v496_v51 = vadd.f32 %v495_v49, %v1004_v0  ;;  %v554_v53 = vmax.f32 %v506_v50, 0.0  ;;  %v401_v54 = vadd.f32 %v400_v52, %v992_v56  ;;  %v449_v55 = vpop.f32.mrf.mxu1 }
  0xf3   : > { %v450_v59 = vadd.f32 %v449_v55, %v995_v57 }
  0xf4   : > { %v542_v58 = vmax.f32 %v496_v51, 0.0  ;;  %603 = vst.msk [vmem:[%s1001_s25 + $0x148] sm:$0xff] %vm563_vm2, %v554_v53  ;;  %v543_v60 = vmax.f32 %v401_v54, 0.0 }
  0xf5   : > { %v544_v61 = vmax.f32 %v450_v59, 0.0 }
  0xf6   : > { %591 = vst.msk [vmem:[%s1001_s25 + $0xe8] sm:$0xff] %vm563_vm2, %v542_v58 }
  0xf7   : > { %592 = vst [vmem:[%s1001_s25 + $0xf0] sm:$0xff] %v543_v60  ;;  %v508_v62 = vpop.f32.mrf.mxu3 }
  0xf8   : > { %593 = vst [vmem:[%s1001_s25 + $0xf8] sm:$0xff] %v544_v61  ;;  %v509_v1 = vadd.f32 %v508_v62, %v1004_v0 }
  0xf9   : > { %v498_v63 = vpop.f32.mrf.mxu2  ;;  %v402_v3 = vpop.f32.mrf.mxu0 }
  0xfa   : > { %v499_v2 = vadd.f32 %v498_v63, %v1004_v0  ;;  %v557_v4 = vmax.f32 %v509_v1, 0.0  ;;  %v403_v5 = vadd.f32 %v402_v3, %v992_v56  ;;  %v451_v6 = vpop.f32.mrf.mxu1 }
  0xfb   : > { %v452_v8 = vadd.f32 %v451_v6, %v995_v57 }
  0xfc   : > { %v545_v7 = vmax.f32 %v499_v2, 0.0  ;;  %606 = vst.msk [vmem:[%s1001_s25 + $0x160] sm:$0xff] %vm563_vm2, %v557_v4  ;;  %v546_v9 = vmax.f32 %v403_v5, 0.0 }
  0xfd   : > { %v547_v10 = vmax.f32 %v452_v8, 0.0 }
  0xfe   : > { %594 = vst.msk [vmem:[%s1001_s25 + $0x100] sm:$0xff] %vm563_vm2, %v545_v7 }
  0xff   : > { %595 = vst [vmem:[%s1001_s25 + $0x108] sm:$0xff] %v546_v9  ;;  %v510_v11 = vpop.f32.mrf.mxu3 }
 0x100   : > { %596 = vst [vmem:[%s1001_s25 + $0x110] sm:$0xff] %v547_v10  ;;  %v511_v13 = vadd.f32 %v510_v11, %v1004_v0 }
 0x101   : > { %v500_v12 = vpop.f32.mrf.mxu2 }
 0x102   : > { %v501_v56 = vadd.f32 %v500_v12, %v1004_v0  ;;  %v560_v14 = vmax.f32 %v511_v13, 0.0 }
 0x104   : > { %v548_v15 = vmax.f32 %v501_v56, 0.0  ;;  %609 = vst.msk [vmem:[%s1001_s25 + $0x178] sm:$0xff] %vm563_vm2, %v560_v14 }
 0x106   : > { %597 = vst.msk [vmem:[%s1001_s25 + $0x118] sm:$0xff] %vm563_vm2, %v548_v15 }
 0x107 PF: > { %s13_s12 = sadd.s32 1, %s833_s12  }
 0x108   : > { %p10_p4 = scmp.ge.s32.totalorder %s13_s12, 6  }
 0x10a   :  { %12 = sbr.rel (!%p10_p4) target bundleno = 1 (0x1), region = 62 }

// kernel: complex_inception_a.5
= control target key start
LH: loop header
LB: loop body
LE: loop exit
PB: predicated region body
PF: predicated region fallthrough
CT: control target
= control target key end

     0   :  { %s4937_s12 = smov 0   ;;  %s6041_s0 = inlined_call_operand.vmem [shape: bf16[512,2400], index: 0, kind: input, shape index: {}]   ;;  %s6042_s1 = inlined_call_operand.vmem [shape: bf16[2400,128], index: 1, kind: input, shape index: {}]   ;;  %s6043_s2 = inlined_call_operand.vmem [shape: f32[1,128], index: 2, kind: input, shape index: {}]   ;;  %s6044_s3 = inlined_call_operand.vmem [shape: f32[512,128], index: 3, kind: output, shape index: {}]  }
   0x1 LB: > { %s3346_s13 = sadd.s32 4294967295, %s4915_s12   ;;  %p3350_p0 = scmp.ge.s32.totalorder %s4915_s12, 1  ;;  %s4915_s12 = sphi %s4937_s12, %s13_s12  }
   0x2   : > { %p139_p1 = scmp.lt.s32.totalorder %s4915_s12, 5 }
   0x4   : > { %p140_p2 = pnand %p3350_p0, %p139_p1 }
   0x5   : > { %s3351_s5 = sshll.u32 (!%p140_p2), %s3346_s13, 4 }
   0x6   : > { %143 = sbr.rel (%p140_p2) target bundleno = 786 (0x312), region = 32  ;;  %p165_p3 = scmp.lt.s32.totalorder (!%p140_p2), %s3351_s5, 63 }
   0xb   : > { %v4732_v0 = vld [vmem:[%s6042_s1 + $0x38] sm:$0xff]  ;;  %v4731_v3 = vld [vmem:[%s6042_s1 + $0x30] sm:$0xff]  ;;  %v4730_v6 = vld [vmem:[%s6042_s1 + $0x28] sm:$0xff]  ;;  %s6046_s5 = smov (!%p165_p3, %s3351_s5), 63  ;;  %vm2302_vm0 = vcmask 785408  }
   0xc   : > { %v4951_v1 = vld [vmem:[%s6042_s1 + $0xb8] sm:$0xff]  ;;  %2327 = vmatpush.bf16.msra.mxu0 %v4732_v0  ;;  %4875 = vmatpush.bf16.msra.mxu3 %v4732_v0  ;;  %v4966_v4 = vld [vmem:[%s6042_s1 + $0xb0] sm:$0xff]  ;;  %v4981_v7 = vld [vmem:[%s6042_s1 + $0xa8] sm:$0xff]  ;;  %s4899_s21 = smul.u32 76, %s6046_s5 }
   0xd   : > { %v4956_v2 = vld [vmem:[%s6042_s1 + $0x78] sm:$0xff]  ;;  %4891 = vmatpush.bf16.msra.mxu2 %v4951_v1  ;;  %v4971_v5 = vld [vmem:[%s6042_s1 + $0x70] sm:$0xff]  ;;  %v4986_v8 = vld [vmem:[%s6042_s1 + $0x68] sm:$0xff] }
   0xe   : > { %4883 = vmatpush.bf16.msra.mxu1 %v4956_v2  ;;  %v4729_v9 = vld [vmem:[%s6042_s1 + $0x20] sm:$0xff]  ;;  %v4728_v12 = vld [vmem:[%s6042_s1 + $0x18] sm:$0xff]  ;;  %v4727_v15 = vld [vmem:[%s6042_s1 + $0x10] sm:$0xff]  ;;  %s5042_s30 = scalar_lea.vmem %s6041_s0, %s4899_s21 }
   0xf   : > { %v4996_v10 = vld [vmem:[%s6042_s1 + $0xa0] sm:$0xff]  ;;  %v5013_v13 = vld [vmem:[%s6042_s1 + $0x98] sm:$0xff]  ;;  %v5029_v16 = vld [vmem:[%s6042_s1 + $0x90] sm:$0xff] }
  0x10   : > { %2328 = vmatpush.bf16.msra.mxu0 %v4731_v3  ;;  %4876 = vmatpush.bf16.msra.mxu3 %v4731_v3  ;;  %v5001_v11 = vld [vmem:[%s6042_s1 + $0x60] sm:$0xff]  ;;  %v5018_v14 = vld [vmem:[%s6042_s1 + $0x58] sm:$0xff]  ;;  %v5034_v17 = vld [vmem:[%s6042_s1 + $0x50] sm:$0xff] }
  0x11   : > { %4892 = vmatpush.bf16.msra.mxu2 %v4966_v4  ;;  %v4726_v18 = vld [vmem:[%s6042_s1 + $0x8] sm:$0xff]  ;;  %v4725_v21 = vld [vmem:[%s6042_s1] sm:$0xff]  ;;  %v3509_v26 = vld [vmem:[%s5042_s30 + $0x130] sm:$0xf] }
  0x12   : > { %4884 = vmatpush.bf16.msra.mxu1 %v4971_v5  ;;  %v5049_v19 = vld [vmem:[%s6042_s1 + $0x88] sm:$0xff]  ;;  %v5062_v22 = vld [vmem:[%s6042_s1 + $0x80] sm:$0xff]  ;;  %v4620_v27 = vld [vmem:[%s5042_s30 + $0x178] sm:$0xf0] }
  0x13   : > { %v5054_v20 = vld [vmem:[%s6042_s1 + $0x48] sm:$0xff]  ;;  %v5067_v23 = vld [vmem:[%s6042_s1 + $0x40] sm:$0xff]  ;;  %v3517_v28 = vld [vmem:[%s5042_s30 + $0x138] sm:$0xf]  ;;  %v3510_v34 = vor.u32 %v4620_v27, %v3509_v26 }
  0x14   : > { %2329 = vmatpush.bf16.msra.mxu0 %v4730_v6  ;;  %4877 = vmatpush.bf16.msra.mxu3 %v4730_v6  ;;  %v3357_v24 = vld [vmem:[%s5042_s30] sm:$0xf]  ;;  %v4582_v25 = vld [vmem:[%s5042_s30 + $0x48] sm:$0xf0]  ;;  %v4621_v29 = vld [vmem:[%s5042_s30 + $0x180] sm:$0xf0] }
  0x15   : > { %4893 = vmatpush.bf16.msra.mxu2 %v4981_v7  ;;  %v4611_v30 = vld [vmem:[%s5042_s30 + $0x134] sm:$0xf]  ;;  %v3511_v31 = vld [vmem:[%s5042_s30 + $0x17c] sm:$0xf0]  ;;  %v4756_v32 = vld [vmem:[%s6042_s1 + $0xf8] sm:$0xff]  ;;  %v3358_v33 = vor.u32 %v4582_v25, %v3357_v24  ;;  %v3518_v35 = vor.u32 %v4621_v29, %v3517_v28 }
  0x16   : > { %4885 = vmatpush.bf16.msra.mxu1 %v4986_v8  ;;  %v3514_v36 = vor.u32 %v4611_v30, %v3511_v31  ;;  %v4780_v37 = vld [vmem:[%s6042_s1 + $0x1b8] sm:$0xff]  ;;  %v4755_v39 = vld [vmem:[%s6042_s1 + $0xf0] sm:$0xff]  ;;  %v4754_v42 = vld [vmem:[%s6042_s1 + $0xe8] sm:$0xff] }
  0x17   : > { %v4772_v38 = vld [vmem:[%s6042_s1 + $0x178] sm:$0xff]  ;;  %v4779_v40 = vld [vmem:[%s6042_s1 + $0x1b0] sm:$0xff]  ;;  %v4778_v43 = vld [vmem:[%s6042_s1 + $0x1a8] sm:$0xff] }
  0x18   : > { %2330 = vmatpush.bf16.msra.mxu0 %v4729_v9  ;;  %4878 = vmatpush.bf16.msra.mxu3 %v4729_v9  ;;  %v4771_v41 = vld [vmem:[%s6042_s1 + $0x170] sm:$0xff]  ;;  %v4770_v44 = vld [vmem:[%s6042_s1 + $0x168] sm:$0xff]  ;;  %v3433_v45 = vld [vmem:[%s5042_s30 + $0x98] sm:$0xf] }
  0x19   : > { %4894 = vmatpush.bf16.msra.mxu2 %v4996_v10  ;;  %v4753_v46 = vld [vmem:[%s6042_s1 + $0xe0] sm:$0xff]  ;;  %v3585_v48 = vld [vmem:[%s5042_s30 + $0x1c8] sm:$0xf]  ;;  %v4639_v49 = vld [vmem:[%s5042_s30 + $0x210] sm:$0xf0] }
  0x1a   : > { %4886 = vmatpush.bf16.msra.mxu1 %v5001_v11  ;;  %v4601_v47 = vld [vmem:[%s5042_s30 + $0xe0] sm:$0xf0]  ;;  %v3593_v50 = vld [vmem:[%s5042_s30 + $0x1d0] sm:$0xf]  ;;  %v4640_v51 = vld [vmem:[%s5042_s30 + $0x218] sm:$0xf0]  ;;  %v3586_v57 = vor.u32 %v4639_v49, %v3585_v48 }
  0x1b   : > { %v4630_v52 = vld [vmem:[%s5042_s30 + $0x1cc] sm:$0xf]  ;;  %v3587_v53 = vld [vmem:[%s5042_s30 + $0x214] sm:$0xf0]  ;;  %v4777_v54 = vld [vmem:[%s6042_s1 + $0x1a0] sm:$0xff]  ;;  %v3434_v56 = vor.u32 %v4601_v47, %v3433_v45  ;;  %v3594_v58 = vor.u32 %v4640_v51, %v3593_v50 }
  0x1c   : > { %2331 = vmatpush.bf16.msra.mxu0 %v4728_v12  ;;  %4879 = vmatpush.bf16.msra.mxu3 %v4728_v12  ;;  %v4769_v55 = vld [vmem:[%s6042_s1 + $0x160] sm:$0xff]  ;;  %v3590_v59 = vor.u32 %v4630_v52, %v3587_v53  ;;  %v4752_v60 = vld [vmem:[%s6042_s1 + $0xd8] sm:$0xff]  ;;  %v4751_v63 = vld [vmem:[%s6042_s1 + $0xd0] sm:$0xff] }
  0x1d   : > { %4895 = vmatpush.bf16.msra.mxu2 %v5013_v13  ;;  %v4776_v61 = vld [vmem:[%s6042_s1 + $0x198] sm:$0xff]  ;;  %v3661_v0 = vld [vmem:[%s5042_s30 + $0x260] sm:$0xf]  ;;  %v4573_v3 = vld [vmem:[%s5042_s30 + $0x4] sm:$0xf] }
  0x1e   : > { %4887 = vmatpush.bf16.msra.mxu1 %v5018_v14  ;;  %v4768_v62 = vld [vmem:[%s6042_s1 + $0x158] sm:$0xff]  ;;  %v3669_v6 = vld [vmem:[%s5042_s30 + $0x268] sm:$0xf]  ;;  %v4649_v9 = vld [vmem:[%s5042_s30 + $0x264] sm:$0xf] }
  0x1f   : > { %v4677_v24 = vld [vmem:[%s5042_s30 + $0x340] sm:$0xf0]  ;;  %v4592_v25 = vld [vmem:[%s5042_s30 + $0x9c] sm:$0xf]  ;;  %v3435_v26 = vld [vmem:[%s5042_s30 + $0xe4] sm:$0xf0] }
  0x20   : > { %2332 = vmatpush.bf16.msra.mxu0 %v4727_v15  ;;  %4880 = vmatpush.bf16.msra.mxu3 %v4727_v15  ;;  %v3745_v27 = vld [vmem:[%s5042_s30 + $0x300] sm:$0xf]  ;;  %v4668_v28 = vld [vmem:[%s5042_s30 + $0x2fc] sm:$0xf]  ;;  %v3739_v29 = vld [vmem:[%s5042_s30 + $0x344] sm:$0xf0]  ;;  %v3438_v31 = vor.u32 %v4592_v25, %v3435_v26 }
  0x21   : > { %4896 = vmatpush.bf16.msra.mxu2 %v5029_v16  ;;  %v4762_v47 = vld [vmem:[%s6042_s1 + $0x128] sm:$0xff]  ;;  %v4812_v48 = vld [vmem:[%s6042_s1 + $0x2b8] sm:$0xff]  ;;  %v4761_v50 = vld [vmem:[%s6042_s1 + $0x120] sm:$0xff] }
  0x22   : > { %4888 = vmatpush.bf16.msra.mxu1 %v5034_v17  ;;  %v4804_v49 = vld [vmem:[%s6042_s1 + $0x278] sm:$0xff]  ;;  %v3889_v52 = vld [vmem:[%s5042_s30 + $0x428] sm:$0xf]  ;;  %v4715_v53 = vld [vmem:[%s5042_s30 + $0x470] sm:$0xf0] }
  0x23   : > { %v4760_v51 = vld [vmem:[%s6042_s1 + $0x118] sm:$0xff] }
  0x24   : > { %2333 = vmatpush.bf16.msra.mxu0 %v4726_v18  ;;  %4881 = vmatpush.bf16.msra.mxu3 %v4726_v18  ;;  %v4775_v18 = vld [vmem:[%s6042_s1 + $0x190] sm:$0xff] }
  0x25   : > { %4897 = vmatpush.bf16.msra.mxu2 %v5049_v19 }
  0x26   : > { %4889 = vmatpush.bf16.msra.mxu1 %v5054_v20 }
  0x28   : > { %2334 = vmatpush.bf16.msra.mxu0 %v4725_v21  ;;  %4882 = vmatpush.bf16.msra.mxu3 %v4725_v21  ;;  %v4774_v21 = vld [vmem:[%s6042_s1 + $0x188] sm:$0xff] }
  0x29   : > { %4898 = vmatpush.bf16.msra.mxu2 %v5062_v22 }
  0x2a   : > { %4890 = vmatpush.bf16.msra.mxu1 %v5067_v23 }
  0x2b   : > { %2335 = vmatmul.bf16.vlgmr.msra.gmra.mxu0 %v3358_v33  ;;  %2345 = vmatmul.bf16.vlgmr.msra.gmra.mxu3 %v3510_v34  ;;  %v3742_v33 = vor.u32 %v4668_v28, %v3739_v29  ;;  %v4764_v34 = vld [vmem:[%s6042_s1 + $0x138] sm:$0xff]  ;;  %v3443_v28 = vld [vmem:[%s5042_s30 + $0xec] sm:$0xf0]  ;;  %v4810_v29 = vld [vmem:[%s6042_s1 + $0x2a8] sm:$0xff] }
  0x2c   : > { %2474 = vmatpush.bf16.msrb.mxu3 %v4756_v32  ;;  %2376 = vmatpush.bf16.msrb.mxu0 %v4956_v2  ;;  %v4658_v2 = vld [vmem:[%s5042_s30 + $0x2a8] sm:$0xf0] }
  0x2d   : > { %2443 = vmatmul.bf16.vlgmr.msra.gmra.mxu2 %v3518_v35  ;;  %2394 = vmatmul.bf16.vlgmr.msra.gmra.mxu1 %v3514_v36  ;;  %v3662_v12 = vor.u32 %v4658_v2, %v3661_v0  ;;  %v4765_v35 = vld [vmem:[%s6042_s1 + $0x140] sm:$0xff]  ;;  %v4696_v36 = vld [vmem:[%s5042_s30 + $0x3d8] sm:$0xf0]  ;;  %v4758_v2 = vld [vmem:[%s6042_s1 + $0x108] sm:$0xff] }
  0x2e   : > { %2621 = vmatpush.bf16.msrb.mxu2 %v4780_v37  ;;  %2572 = vmatpush.bf16.msrb.mxu1 %v4772_v38  ;;  %v3365_v37 = vld [vmem:[%s5042_s30 + $0x8] sm:$0xf]  ;;  %v4583_v38 = vld [vmem:[%s5042_s30 + $0x50] sm:$0xf0] }
  0x30   : > { %2377 = vmatpush.bf16.msrb.mxu0 %v4971_v5  ;;  %2475 = vmatpush.bf16.msrb.mxu3 %v4755_v39  ;;  %v3359_v5 = vld [vmem:[%s5042_s30 + $0x4c] sm:$0xf0]  ;;  %v3821_v39 = vld [vmem:[%s5042_s30 + $0x398] sm:$0xf] }
  0x32   : > { %2622 = vmatpush.bf16.msrb.mxu2 %v4779_v40  ;;  %2573 = vmatpush.bf16.msrb.mxu1 %v4771_v41  ;;  %v4697_v40 = vld [vmem:[%s5042_s30 + $0x3e0] sm:$0xf0]  ;;  %v4687_v41 = vld [vmem:[%s5042_s30 + $0x394] sm:$0xf] }
  0x33   : > { %v3822_v45 = vor.u32 %v4697_v40, %v3821_v39  ;;  %v4612_v39 = vld [vmem:[%s5042_s30 + $0x13c] sm:$0xf]  ;;  %v3519_v40 = vld [vmem:[%s5042_s30 + $0x184] sm:$0xf0] }
  0x34   : > { %2378 = vmatpush.bf16.msrb.mxu0 %v4986_v8  ;;  %2476 = vmatpush.bf16.msrb.mxu3 %v4754_v42  ;;  %v4659_v8 = vld [vmem:[%s5042_s30 + $0x2b0] sm:$0xf0]  ;;  %v3815_v42 = vld [vmem:[%s5042_s30 + $0x3dc] sm:$0xf0] }
  0x35   : > { %v3670_v15 = vor.u32 %v4659_v8, %v3669_v6  ;;  %v4803_v6 = vld [vmem:[%s6042_s1 + $0x270] sm:$0xff]  ;;  %v4757_v8 = vld [vmem:[%s6042_s1 + $0x100] sm:$0xff] }
  0x36   : > { %2623 = vmatpush.bf16.msrb.mxu2 %v4778_v43  ;;  %2574 = vmatpush.bf16.msrb.mxu1 %v4770_v44  ;;  %v3366_v44 = vor.u32 %v4583_v38, %v3365_v37  ;;  %v4785_v38 = vld [vmem:[%s6042_s1 + $0x1e0] sm:$0xff] }
  0x38   : > { %2379 = vmatpush.bf16.msrb.mxu0 %v5001_v11  ;;  %2477 = vmatpush.bf16.msrb.mxu3 %v4753_v46  ;;  %v3663_v11 = vld [vmem:[%s5042_s30 + $0x2ac] sm:$0xf0]  ;;  %v3818_v46 = vor.u32 %v4687_v41, %v3815_v42  ;;  %v4809_v41 = vld [vmem:[%s6042_s1 + $0x2a0] sm:$0xff] }
  0x39   : > { %v4793_v42 = vld [vmem:[%s6042_s1 + $0x220] sm:$0xff] }
  0x3a   : > { %2624 = vmatpush.bf16.msrb.mxu2 %v4777_v54  ;;  %2575 = vmatpush.bf16.msrb.mxu1 %v4769_v55  ;;  %v3441_v54 = vld [vmem:[%s5042_s30 + $0xa0] sm:$0xf]  ;;  %v4602_v55 = vld [vmem:[%s5042_s30 + $0xe8] sm:$0xf0] }
  0x3b   : > { %2340 = vmatmul.bf16.gmra.mxu0 %v3434_v56  ;;  %2350 = vmatmul.bf16.gmra.mxu3 %v3586_v57  ;;  %v3897_v56 = vld [vmem:[%s5042_s30 + $0x430] sm:$0xf]  ;;  %v4716_v57 = vld [vmem:[%s5042_s30 + $0x478] sm:$0xf0] }
  0x3c   : > { %2380 = vmatpush.bf16.msrb.mxu0 %v5018_v14  ;;  %2478 = vmatpush.bf16.msrb.mxu3 %v4752_v60  ;;  %v3362_v14 = vor.u32 %v4573_v3, %v3359_v5  ;;  %v4759_v60 = vld [vmem:[%s6042_s1 + $0x110] sm:$0xff] }
  0x3d   : > { %2448 = vmatmul.bf16.gmra.mxu2 %v3594_v58  ;;  %2399 = vmatmul.bf16.gmra.mxu1 %v3590_v59  ;;  %v4706_v58 = vld [vmem:[%s5042_s30 + $0x42c] sm:$0xf]  ;;  %v3891_v59 = vld [vmem:[%s5042_s30 + $0x474] sm:$0xf0]  ;;  %v4787_v3 = vld [vmem:[%s6042_s1 + $0x1f0] sm:$0xff] }
  0x3e   : > { %2625 = vmatpush.bf16.msrb.mxu2 %v4776_v61  ;;  %2576 = vmatpush.bf16.msrb.mxu1 %v4768_v62  ;;  %v3890_v61 = vor.u32 %v4715_v53, %v3889_v52  ;;  %v3442_v62 = vor.u32 %v4602_v55, %v3441_v54  ;;  %v3894_v0 = vor.u32 %v4706_v58, %v3891_v59  ;;  %v4811_v5 = vld [vmem:[%s6042_s1 + $0x2b0] sm:$0xff]  ;;  %v5310_v54 = vld [vmem:[%s6043_s2] ss:$0 sm:$0xff]  ;;  %v4784_v55 = vld [vmem:[%s6042_s1 + $0x1d8] sm:$0xff] }
  0x40   : > { %2381 = vmatpush.bf16.msrb.mxu0 %v5034_v17  ;;  %2479 = vmatpush.bf16.msrb.mxu3 %v4751_v63  ;;  %v3666_v17 = vor.u32 %v4649_v9, %v3663_v11  ;;  %v3898_v63 = vor.u32 %v4716_v57, %v3897_v56  ;;  %v4796_v9 = vld [vmem:[%s6042_s1 + $0x238] sm:$0xff]  ;;  %v4574_v11 = vld [vmem:[%s5042_s30 + $0xc] sm:$0xf] }
  0x42   : > { %2626 = vmatpush.bf16.msrb.mxu2 %v4775_v18  ;;  %v3381_v18 = vld [vmem:[%s5042_s30 + $0x18] sm:$0xf] }
  0x44   : > { %2382 = vmatpush.bf16.msrb.mxu0 %v5054_v20  ;;  %v4750_v20 = vld [vmem:[%s6042_s1 + $0xc8] sm:$0xff] }
  0x45   : > { %2480 = vmatpush.bf16.msrb.mxu3 %v4750_v20  ;;  %v4575_v20 = vld [vmem:[%s5042_s30 + $0x14] sm:$0xf] }
  0x46   : > { %2627 = vmatpush.bf16.msrb.mxu2 %v4774_v21  ;;  %v3375_v21 = vld [vmem:[%s5042_s30 + $0x5c] sm:$0xf0] }
  0x47   : > { %v3378_v26 = vor.u32 %v4575_v20, %v3375_v21 }
  0x48   : > { %2383 = vmatpush.bf16.msrb.mxu0 %v5067_v23  ;;  %v3737_v23 = vld [vmem:[%s5042_s30 + $0x2f8] sm:$0xf] }
  0x49   : > { %v3738_v30 = vor.u32 %v4677_v24, %v3737_v23 }
  0x4b   : > { %2355 = vmatmul.bf16.gmra.mxu3 %v3662_v12  ;;  %2384 = vmatmul.bf16.vlgmr.msrb.gmra.mxu0 %v3362_v14  ;;  %v3367_v12 = vld [vmem:[%s5042_s30 + $0x54] sm:$0xf0]  ;;  %v4795_v14 = vld [vmem:[%s6042_s1 + $0x230] sm:$0xff] }
  0x4c   : > { %2425 = vmatpush.bf16.msra.mxu0 %v4951_v1  ;;  %v4767_v1 = vld [vmem:[%s6042_s1 + $0x150] sm:$0xff]  ;;  %v3370_v23 = vor.u32 %v4574_v11, %v3367_v12  ;;  %v4642_v11 = vld [vmem:[%s5042_s30 + $0x228] sm:$0xf0]  ;;  %v4632_v12 = vld [vmem:[%s5042_s30 + $0x1dc] sm:$0xf] }
  0x4d   : > { %2453 = vmatmul.bf16.gmra.mxu2 %v3670_v15  ;;  %2404 = vmatmul.bf16.gmra.mxu1 %v3666_v17  ;;  %v3373_v15 = vld [vmem:[%s5042_s30 + $0x10] sm:$0xf]  ;;  %v4584_v17 = vld [vmem:[%s5042_s30 + $0x58] sm:$0xf0] }
  0x4e   : > { %2577 = vmatpush.bf16.msrb.mxu1 %v4767_v1  ;;  %v4585_v1 = vld [vmem:[%s5042_s30 + $0x60] sm:$0xf0]  ;;  %v3374_v24 = vor.u32 %v4584_v17, %v3373_v15 }
  0x4f   : > { %v3382_v25 = vor.u32 %v4585_v1, %v3381_v18 }
  0x50   : > { %2426 = vmatpush.bf16.msra.mxu0 %v4966_v4  ;;  %v4678_v4 = vld [vmem:[%s5042_s30 + $0x348] sm:$0xf0] }
  0x51   : > { %v3746_v32 = vor.u32 %v4678_v4, %v3745_v27  ;;  %v4786_v27 = vld [vmem:[%s6042_s1 + $0x1e8] sm:$0xff]  ;;  %v4593_v4 = vld [vmem:[%s5042_s30 + $0xa4] sm:$0xf] }
  0x54   : > { %2427 = vmatpush.bf16.msra.mxu0 %v4981_v7  ;;  %v4766_v7 = vld [vmem:[%s6042_s1 + $0x148] sm:$0xff] }
  0x55   : > { %2578 = vmatpush.bf16.msrb.mxu1 %v4766_v7  ;;  %v3457_v7 = vld [vmem:[%s5042_s30 + $0xb0] sm:$0xf] }
  0x58   : > { %2428 = vmatpush.bf16.msra.mxu0 %v4996_v10  ;;  %v4749_v10 = vld [vmem:[%s6042_s1 + $0xc0] sm:$0xff] }
  0x59   : > { %2481 = vmatpush.bf16.msrb.mxu3 %v4749_v10  ;;  %2579 = vmatpush.bf16.msrb.mxu1 %v4765_v35  ;;  %v4604_v10 = vld [vmem:[%s5042_s30 + $0xf8] sm:$0xf0]  ;;  %v3446_v35 = vor.u32 %v4593_v4, %v3443_v28  ;;  %v4783_v4 = vld [vmem:[%s6042_s1 + $0x1d0] sm:$0xff] }
  0x5b   : > { %2360 = vmatmul.bf16.gmra.mxu3 %v3738_v30  ;;  %2389 = vmatmul.bf16.gmra.mxu0 %v3438_v31  ;;  %v4794_v30 = vld [vmem:[%s6042_s1 + $0x228] sm:$0xff] }
  0x5c   : > { %2429 = vmatpush.bf16.msra.mxu0 %v5013_v13  ;;  %v4773_v13 = vld [vmem:[%s6042_s1 + $0x180] sm:$0xff]  ;;  %v4802_v31 = vld [vmem:[%s6042_s1 + $0x268] sm:$0xff] }
  0x5d   : > { %2458 = vmatmul.bf16.gmra.mxu2 %v3746_v32  ;;  %2409 = vmatmul.bf16.gmra.mxu1 %v3742_v33  ;;  %v3449_v32 = vld [vmem:[%s5042_s30 + $0xa8] sm:$0xf]  ;;  %v4603_v33 = vld [vmem:[%s5042_s30 + $0xf0] sm:$0xf0] }
  0x5e   : > { %2628 = vmatpush.bf16.msrb.mxu2 %v4773_v13  ;;  %2768 = vmatpush.bf16.msra.mxu1 %v4804_v49  ;;  %v4594_v13 = vld [vmem:[%s5042_s30 + $0xac] sm:$0xf] }
  0x60   : > { %2430 = vmatpush.bf16.msra.mxu0 %v5029_v16  ;;  %v3813_v16 = vld [vmem:[%s5042_s30 + $0x390] sm:$0xf] }
  0x61   : > { %v3814_v43 = vor.u32 %v4696_v36, %v3813_v16  ;;  %v3450_v16 = vor.u32 %v4603_v33, %v3449_v32  ;;  %v3458_v36 = vor.u32 %v4604_v10, %v3457_v7  ;;  %v4650_v7 = vld [vmem:[%s5042_s30 + $0x26c] sm:$0xf]  ;;  %v3671_v10 = vld [vmem:[%s5042_s30 + $0x2b4] sm:$0xf0] }
  0x62   : > { %2817 = vmatpush.bf16.msra.mxu2 %v4812_v48  ;;  %2769 = vmatpush.bf16.msra.mxu1 %v4803_v6  ;;  %v3522_v48 = vor.u32 %v4612_v39, %v3519_v40  ;;  %v3601_v6 = vld [vmem:[%s5042_s30 + $0x1d8] sm:$0xf]  ;;  %v4661_v39 = vld [vmem:[%s5042_s30 + $0x2c0] sm:$0xf0]  ;;  %v4651_v40 = vld [vmem:[%s5042_s30 + $0x274] sm:$0xf] }
  0x64   : > { %2431 = vmatpush.bf16.msra.mxu0 %v5049_v19  ;;  %v4763_v19 = vld [vmem:[%s6042_s1 + $0x130] sm:$0xff] }
  0x66   : > { %2818 = vmatpush.bf16.msra.mxu2 %v4811_v5  ;;  %2770 = vmatpush.bf16.msra.mxu1 %v4802_v31  ;;  %v4800_v5 = vld [vmem:[%s6042_s1 + $0x258] sm:$0xff] }
  0x68   : > { %2432 = vmatpush.bf16.msra.mxu0 %v5062_v22  ;;  %v4788_v22 = vld [vmem:[%s6042_s1 + $0x1f8] sm:$0xff] }
  0x69   : > { %2670 = vmatpush.bf16.msra.mxu3 %v4788_v22  ;;  %v3527_v22 = vld [vmem:[%s5042_s30 + $0x18c] sm:$0xf0] }
  0x6a   : > { %2819 = vmatpush.bf16.msra.mxu2 %v4810_v29 }
  0x6b   : > { %2365 = vmatmul.bf16.gmra.mxu3 %v3814_v43  ;;  %2433 = vmatmul.bf16.vlgmr.msra.gmra.mxu0 %v3366_v44  ;;  %v3525_v43 = vld [vmem:[%s5042_s30 + $0x140] sm:$0xf]  ;;  %v4622_v44 = vld [vmem:[%s5042_s30 + $0x188] sm:$0xf0] }
  0x6c   : > { %2523 = vmatpush.bf16.msrb.mxu0 %v4764_v34  ;;  %v3451_v34 = vld [vmem:[%s5042_s30 + $0xf4] sm:$0xf0]  ;;  %v3526_v49 = vor.u32 %v4622_v44, %v3525_v43 }
  0x6d   : > { %2463 = vmatmul.bf16.gmra.mxu2 %v3822_v45  ;;  %2414 = vmatmul.bf16.gmra.mxu1 %v3818_v46  ;;  %v3454_v37 = vor.u32 %v4594_v13, %v3451_v34  ;;  %v3533_v45 = vld [vmem:[%s5042_s30 + $0x148] sm:$0xf]  ;;  %v4623_v46 = vld [vmem:[%s5042_s30 + $0x190] sm:$0xf0] }
  0x6e   : > { %2671 = vmatpush.bf16.msra.mxu3 %v4787_v3  ;;  %2820 = vmatpush.bf16.msra.mxu2 %v4809_v41  ;;  %v4792_v3 = vld [vmem:[%s6042_s1 + $0x218] sm:$0xff]  ;;  %v4807_v34 = vld [vmem:[%s6042_s1 + $0x290] sm:$0xff]  ;;  %v3679_v41 = vld [vmem:[%s5042_s30 + $0x2bc] sm:$0xf0] }
  0x70   : > { %2524 = vmatpush.bf16.msrb.mxu0 %v4763_v19  ;;  %v4801_v19 = vld [vmem:[%s6042_s1 + $0x260] sm:$0xff] }
  0x71   : > { %2771 = vmatpush.bf16.msra.mxu1 %v4801_v19 }
  0x72   : > { %2672 = vmatpush.bf16.msra.mxu3 %v4786_v27 }
  0x74   : > { %2525 = vmatpush.bf16.msrb.mxu0 %v4762_v47  ;;  %v4613_v47 = vld [vmem:[%s5042_s30 + $0x144] sm:$0xf] }
  0x75   : > { %v3530_v52 = vor.u32 %v4613_v47, %v3527_v22  ;;  %2772 = vmatpush.bf16.msra.mxu1 %v4800_v5 }
  0x76   : > { %2673 = vmatpush.bf16.msra.mxu3 %v4785_v38  ;;  %v3685_v38 = vld [vmem:[%s5042_s30 + $0x278] sm:$0xf] }
  0x77   : > { %v3686_v22 = vor.u32 %v4661_v39, %v3685_v38  ;;  %v4688_v39 = vld [vmem:[%s5042_s30 + $0x39c] sm:$0xf] }
  0x78   : > { %2526 = vmatpush.bf16.msrb.mxu0 %v4761_v50 }
  0x7a   : > { %2674 = vmatpush.bf16.msra.mxu3 %v4784_v55 }
  0x7b   : > { %2370 = vmatmul.bf16.gmra.mxu3 %v3890_v61  ;;  %2438 = vmatmul.bf16.gmra.mxu0 %v3442_v62  ;;  %v4631_v62 = vld [vmem:[%s5042_s30 + $0x1d4] sm:$0xf] }
  0x7c   : > { %2527 = vmatpush.bf16.msrb.mxu0 %v4760_v51  ;;  %v3534_v51 = vor.u32 %v4623_v46, %v3533_v45  ;;  %v3674_v45 = vor.u32 %v4650_v7, %v3671_v10 }
  0x7d   : > { %2468 = vmatmul.bf16.gmra.mxu2 %v3898_v63  ;;  %2419 = vmatmul.bf16.gmra.mxu1 %v3894_v0  ;;  %v3595_v63 = vld [vmem:[%s5042_s30 + $0x21c] sm:$0xf0] }
  0x7e   : > { %v3598_v1 = vor.u32 %v4631_v62, %v3595_v63  ;;  %2675 = vmatpush.bf16.msra.mxu3 %v4783_v4 }
  0x80   : > { %2528 = vmatpush.bf16.msrb.mxu0 %v4759_v60 }
  0x84   : > { %2529 = vmatpush.bf16.msrb.mxu0 %v4758_v2  ;;  %v4808_v2 = vld [vmem:[%s6042_s1 + $0x298] sm:$0xff] }
  0x85   : > { %2821 = vmatpush.bf16.msra.mxu2 %v4808_v2  ;;  %v4669_v2 = vld [vmem:[%s5042_s30 + $0x304] sm:$0xf] }
  0x88   : > { %2530 = vmatpush.bf16.msrb.mxu0 %v4757_v8  ;;  %v4641_v8 = vld [vmem:[%s5042_s30 + $0x220] sm:$0xf0] }
  0x89   : > { %v3602_v20 = vor.u32 %v4641_v8, %v3601_v6  ;;  %2822 = vmatpush.bf16.msra.mxu2 %v4807_v34  ;;  %v4806_v6 = vld [vmem:[%s6042_s1 + $0x288] sm:$0xff] }
  0x8a   : > { %v4798_v8 = vld [vmem:[%s6042_s1 + $0x248] sm:$0xff] }
  0x8b   : > { %2482 = vmatmul.bf16.vlgmr.msrb.gmra.mxu3 %v3370_v23  ;;  %2531 = vmatmul.bf16.vlgmr.msrb.gmra.mxu0 %v3374_v24 }
  0x8c   : > { %2719 = vmatpush.bf16.msra.mxu0 %v4796_v9  ;;  %v3609_v9 = vld [vmem:[%s5042_s30 + $0x1e0] sm:$0xf] }
  0x8d   : > { %2629 = vmatmul.bf16.vlgmr.msrb.gmra.mxu2 %v3382_v25  ;;  %2580 = vmatmul.bf16.vlgmr.msrb.gmra.mxu1 %v3378_v26  ;;  %v3610_v23 = vor.u32 %v4642_v11, %v3609_v9  ;;  %v3753_v9 = vld [vmem:[%s5042_s30 + $0x308] sm:$0xf]  ;;  %v4679_v11 = vld [vmem:[%s5042_s30 + $0x350] sm:$0xf0] }
  0x8e   : > { %2823 = vmatpush.bf16.msra.mxu2 %v4806_v6 }
  0x90   : > { %2720 = vmatpush.bf16.msra.mxu0 %v4795_v14  ;;  %v3603_v14 = vld [vmem:[%s5042_s30 + $0x224] sm:$0xf0] }
  0x91   : > { %v3606_v24 = vor.u32 %v4632_v12, %v3603_v14  ;;  %v3761_v12 = vld [vmem:[%s5042_s30 + $0x310] sm:$0xf]  ;;  %v4680_v14 = vld [vmem:[%s5042_s30 + $0x358] sm:$0xf0] }
  0x92   : > { %v3762_v4 = vor.u32 %v4680_v14, %v3761_v12  ;;  %v4707_v14 = vld [vmem:[%s5042_s30 + $0x434] sm:$0xf] }
  0x94   : > { %2721 = vmatpush.bf16.msra.mxu0 %v4794_v30 }
  0x98   : > { %2722 = vmatpush.bf16.msra.mxu0 %v4793_v42 }
  0x9b   : > { %2487 = vmatmul.bf16.gmra.mxu3 %v3446_v35  ;;  %2536 = vmatmul.bf16.gmra.mxu0 %v3450_v16  ;;  %v4791_v35 = vld [vmem:[%s6042_s1 + $0x210] sm:$0xff] }
  0x9c   : > { %2723 = vmatpush.bf16.msra.mxu0 %v4792_v3  ;;  %v4799_v16 = vld [vmem:[%s6042_s1 + $0x250] sm:$0xff] }
  0x9d   : > { %2634 = vmatmul.bf16.gmra.mxu2 %v3458_v36  ;;  %2585 = vmatmul.bf16.gmra.mxu1 %v3454_v37  ;;  %v3677_v36 = vld [vmem:[%s5042_s30 + $0x270] sm:$0xf]  ;;  %v4660_v37 = vld [vmem:[%s5042_s30 + $0x2b8] sm:$0xf0] }
  0x9e   : > { %2773 = vmatpush.bf16.msra.mxu1 %v4799_v16  ;;  %v3678_v46 = vor.u32 %v4660_v37, %v3677_v36  ;;  %v3747_v3 = vld [vmem:[%s5042_s30 + $0x34c] sm:$0xf0] }
  0xa0   : > { %2724 = vmatpush.bf16.msra.mxu0 %v4791_v35 }
  0xa2   : > { %2774 = vmatpush.bf16.msra.mxu1 %v4798_v8 }
  0xa8   : > { %v5305_v50 = vpop.f32.mrf.mxu0 }
  0xa9   : > { %v2337_v19 = vadd.f32 %v5310_v54, %v5305_v50  ;;  %v4782_v50 = vld [vmem:[%s6042_s1 + $0x1c8] sm:$0xff] }
  0xaa   : > { %v2395_v53 = vpop.f32.mrf.mxu1  ;;  %2676 = vmatpush.bf16.msra.mxu3 %v4782_v50 }
  0xab   : > { %2492 = vmatmul.bf16.gmra.mxu3 %v3522_v48  ;;  %2541 = vmatmul.bf16.gmra.mxu0 %v3526_v49  ;;  %v3682_v48 = vor.u32 %v4651_v40, %v3679_v41  ;;  %v3823_v40 = vld [vmem:[%s5042_s30 + $0x3e4] sm:$0xf0] }
  0xac   : > { %v3826_v50 = vor.u32 %v4688_v39, %v3823_v40  ;;  %v4819_v40 = vld [vmem:[%s6042_s1 + $0x2f0] sm:$0xff] }
  0xad   : > { %2639 = vmatmul.bf16.gmra.mxu2 %v3534_v51  ;;  %2590 = vmatmul.bf16.gmra.mxu1 %v3530_v52 }
  0xae   : > { %v2346_v56 = vpop.f32.mrf.mxu3 }
  0xaf   : > { %v2347_v57 = vadd.f32 %v5310_v54, %v2346_v56 }
  0xb0   : > { %v2444_v58 = vpop.f32.mrf.mxu2  ;;  %v5316_v59 = vpop.f32.mrf.mxu0 }
  0xb1   : > { %v2396_v60 = vadd.f32 %v2395_v53, %v2347_v57  ;;  %v2339_v56 = vadd.f32 %v5310_v54, %v5316_v59  ;;  %v4790_v59 = vld [vmem:[%s6042_s1 + $0x208] sm:$0xff] }
  0xb2   : > { %v2397_v61 = vpop.f32.mrf.mxu1  ;;  %2725 = vmatpush.bf16.msra.mxu0 %v4790_v59 }
  0xb3   : > { %v5320_v0 = vadd.f32 %v2444_v58, %v2396_v60 }
  0xb6   : > { %v2348_v15 = vpop.f32.mrf.mxu3 }
  0xb7   : > { %v2349_v17 = vadd.f32 %v5310_v54, %v2348_v15  ;;  %v4670_v15 = vld [vmem:[%s5042_s30 + $0x30c] sm:$0xf] }
  0xb8   : > { %v2446_v18 = vpop.f32.mrf.mxu2  ;;  %v5338_v21 = vpop.f32.mrf.mxu0 }
  0xb9   : > { %v2398_v25 = vadd.f32 %v2397_v61, %v2349_v17  ;;  %v3755_v17 = vld [vmem:[%s5042_s30 + $0x354] sm:$0xf0] }
  0xba   : > { %v2400_v26 = vpop.f32.mrf.mxu1 }
  0xbb   : > { %v5340_v27 = vadd.f32 %v2446_v18, %v2398_v25  ;;  %2497 = vmatmul.bf16.gmra.mxu3 %v3598_v1  ;;  %2546 = vmatmul.bf16.gmra.mxu0 %v3602_v20  ;;  %v2342_v1 = vadd.f32 %v5310_v54, %v5338_v21  ;;  %v3754_v25 = vor.u32 %v4679_v11, %v3753_v9  ;;  %v4781_v21 = vld [vmem:[%s6042_s1 + $0x1c0] sm:$0xff] }
  0xbc   : > { %2677 = vmatpush.bf16.msra.mxu3 %v4781_v21 }
  0xbd   : > { %2644 = vmatmul.bf16.gmra.mxu2 %v3610_v23  ;;  %2595 = vmatmul.bf16.gmra.mxu1 %v3606_v24  ;;  %v3750_v24 = vor.u32 %v4669_v2, %v3747_v3  ;;  %v4820_v3 = vld [vmem:[%s6042_s1 + $0x2f8] sm:$0xff] }
  0xbe   : > { %v2351_v28 = vpop.f32.mrf.mxu3 }
  0xbf   : > { %v2352_v29 = vadd.f32 %v5310_v54, %v2351_v28  ;;  %v3758_v28 = vor.u32 %v4670_v15, %v3755_v17  ;;  %v3899_v15 = vld [vmem:[%s5042_s30 + $0x47c] sm:$0xf0] }
  0xc0   : > { %v2449_v30 = vpop.f32.mrf.mxu2  ;;  %v5346_v31 = vpop.f32.mrf.mxu0  ;;  %2866 = vmatpush.bf16.msrb.mxu3 %v4820_v3  ;;  %v3902_v21 = vor.u32 %v4707_v14, %v3899_v15 }
  0xc1   : > { %v2401_v32 = vadd.f32 %v2400_v26, %v2352_v29  ;;  %v2344_v10 = vadd.f32 %v5310_v54, %v5346_v31  ;;  %v4789_v31 = vld [vmem:[%s6042_s1 + $0x200] sm:$0xff] }
  0xc2   : > { %v2402_v33 = vpop.f32.mrf.mxu1  ;;  %2726 = vmatpush.bf16.msra.mxu0 %v4789_v31 }
  0xc3   : > { %v5350_v13 = vadd.f32 %v2449_v30, %v2401_v32 }
  0xc4   : > { %2867 = vmatpush.bf16.msrb.mxu3 %v4819_v40 }
  0xc6   : > { %v2353_v42 = vpop.f32.mrf.mxu3 }
  0xc7   : > { %v2354_v43 = vadd.f32 %v5310_v54, %v2353_v42  ;;  %v4805_v42 = vld [vmem:[%s6042_s1 + $0x280] sm:$0xff] }
  0xc8   : > { %v2451_v44 = vpop.f32.mrf.mxu2  ;;  %v2385_v47 = vpop.f32.mrf.mxu0  ;;  %2824 = vmatpush.bf16.msra.mxu2 %v4805_v42 }
  0xc9   : > { %v2403_v49 = vadd.f32 %v2402_v33, %v2354_v43  ;;  %v5370_v51 = vadd.f32 %v2385_v47, %v2337_v19  ;;  %v4797_v19 = vld [vmem:[%s6042_s1 + $0x240] sm:$0xff] }
  0xca   : > { %v2405_v52 = vpop.f32.mrf.mxu1  ;;  %v3829_v43 = vld [vmem:[%s5042_s30 + $0x3a0] sm:$0xf]  ;;  %v4689_v47 = vld [vmem:[%s5042_s30 + $0x3a4] sm:$0xf]  ;;  %2775 = vmatpush.bf16.msra.mxu1 %v4797_v19 }
  0xcb   : > { %v5372_v53 = vadd.f32 %v2451_v44, %v2403_v49  ;;  %2502 = vmatmul.bf16.gmra.mxu3 %v3674_v45  ;;  %2551 = vmatmul.bf16.gmra.mxu0 %v3678_v46  ;;  %v4698_v44 = vld [vmem:[%s5042_s30 + $0x3e8] sm:$0xf0]  ;;  %v3837_v45 = vld [vmem:[%s5042_s30 + $0x3a8] sm:$0xf]  ;;  %v4699_v46 = vld [vmem:[%s5042_s30 + $0x3f0] sm:$0xf0] }
  0xcd   : > { %2649 = vmatmul.bf16.gmra.mxu2 %v3686_v22  ;;  %2600 = vmatmul.bf16.gmra.mxu1 %v3682_v48  ;;  %v3831_v22 = vld [vmem:[%s5042_s30 + $0x3ec] sm:$0xf0] }
  0xce   : > { %v2356_v55 = vpop.f32.mrf.mxu3 }
  0xcf   : > { %v2357_v57 = vadd.f32 %v5310_v54, %v2356_v55  ;;  %v3830_v55 = vor.u32 %v4698_v44, %v3829_v43 }
  0xd0   : > { %v2454_v58 = vpop.f32.mrf.mxu2  ;;  %v2387_v60 = vpop.f32.mrf.mxu0 }
  0xd1   : > { %v2406_v61 = vadd.f32 %v2405_v52, %v2357_v57  ;;  %v5380_v62 = vadd.f32 %v2387_v60, %v2339_v56  ;;  %v3838_v57 = vor.u32 %v4699_v46, %v3837_v45  ;;  %v4576_v46 = vld [vmem:[%s5042_s30 + $0x1c] sm:$0xf] }
  0xd2   : > { %v2407_v63 = vpop.f32.mrf.mxu1 }
  0xd3   : > { %v5384_v5 = vadd.f32 %v2454_v58, %v2406_v61  ;;  %v3834_v58 = vor.u32 %v4689_v47, %v3831_v22  ;;  %v3383_v47 = vld [vmem:[%s5042_s30 + $0x64] sm:$0xf0] }
  0xd6   : > { %v2358_v18 = vpop.f32.mrf.mxu3 }
  0xd7   : > { %v2359_v20 = vadd.f32 %v5310_v54, %v2358_v18  ;;  %v3905_v18 = vld [vmem:[%s5042_s30 + $0x438] sm:$0xf] }
  0xd8   : > { %v2456_v23 = vpop.f32.mrf.mxu2  ;;  %v2390_v26 = vpop.f32.mrf.mxu0 }
  0xd9   : > { %v2408_v29 = vadd.f32 %v2407_v63, %v2359_v20  ;;  %v5404_v30 = vadd.f32 %v2390_v26, %v2342_v1  ;;  %v4717_v1 = vld [vmem:[%s5042_s30 + $0x480] sm:$0xf0]  ;;  %v3913_v20 = vld [vmem:[%s5042_s30 + $0x440] sm:$0xf]  ;;  %v4844_v26 = vld [vmem:[%s6042_s1 + $0x3b8] sm:$0xff] }
  0xda   : > { %v2410_v32 = vpop.f32.mrf.mxu1  ;;  %3013 = vmatpush.bf16.msrb.mxu2 %v4844_v26  ;;  %v4595_v26 = vld [vmem:[%s5042_s30 + $0xb4] sm:$0xf] }
  0xdb   : > { %v5406_v33 = vadd.f32 %v2456_v23, %v2408_v29  ;;  %2507 = vmatmul.bf16.gmra.mxu3 %v3750_v24  ;;  %2556 = vmatmul.bf16.gmra.mxu0 %v3754_v25  ;;  %v4718_v23 = vld [vmem:[%s5042_s30 + $0x488] sm:$0xf0]  ;;  %v4708_v24 = vld [vmem:[%s5042_s30 + $0x43c] sm:$0xf]  ;;  %v3907_v25 = vld [vmem:[%s5042_s30 + $0x484] sm:$0xf0] }
  0xdd   : > { %2654 = vmatmul.bf16.gmra.mxu2 %v3762_v4  ;;  %2605 = vmatmul.bf16.gmra.mxu1 %v3758_v28  ;;  %v4836_v4 = vld [vmem:[%s6042_s1 + $0x378] sm:$0xff] }
  0xde   : > { %v2361_v7 = vpop.f32.mrf.mxu3  ;;  %2964 = vmatpush.bf16.msrb.mxu1 %v4836_v4 }
  0xdf   : > { %v2362_v34 = vadd.f32 %v5310_v54, %v2361_v7  ;;  %v3906_v7 = vor.u32 %v4717_v1, %v3905_v18 }
  0xe0   : > { %v2459_v35 = vpop.f32.mrf.mxu2  ;;  %v2392_v16 = vpop.f32.mrf.mxu0 }
  0xe1   : > { %v2411_v36 = vadd.f32 %v2410_v32, %v2362_v34  ;;  %v5414_v37 = vadd.f32 %v2392_v16, %v2344_v10  ;;  %v3914_v34 = vor.u32 %v4718_v23, %v3913_v20 }
  0xe2   : > { %v2412_v38 = vpop.f32.mrf.mxu1 }
  0xe3   : > { %v5418_v41 = vadd.f32 %v2459_v35, %v2411_v36  ;;  %v3910_v35 = vor.u32 %v4708_v24, %v3907_v25 }
  0xe6   : > { %v2363_v48 = vpop.f32.mrf.mxu3 }
  0xe7   : > { %v2364_v49 = vadd.f32 %v5310_v54, %v2363_v48  ;;  %v3389_v48 = vld [vmem:[%s5042_s30 + $0x20] sm:$0xf] }
  0xe8   : > { %v2461_v52 = vpop.f32.mrf.mxu2  ;;  %v2434_v56 = vpop.f32.mrf.mxu0 }
  0xe9   : > { %v2413_v60 = vadd.f32 %v2412_v38, %v2364_v49  ;;  %v5437_v61 = vadd.f32 %v2434_v56, %v5370_v51  ;;  %v4586_v49 = vld [vmem:[%s5042_s30 + $0x68] sm:$0xf0]  ;;  %v3391_v56 = vld [vmem:[%s5042_s30 + $0x6c] sm:$0xf0] }
  0xea   : > { %v2415_v63 = vpop.f32.mrf.mxu1 }
  0xeb   : > { %v5439_v2 = vadd.f32 %v2461_v52, %v2413_v60  ;;  %2512 = vmatmul.bf16.gmra.mxu3 %v3826_v50  ;;  %2561 = vmatmul.bf16.gmra.mxu0 %v3830_v55  ;;  %v3397_v52 = vld [vmem:[%s5042_s30 + $0x28] sm:$0xf]  ;;  %v4587_v50 = vld [vmem:[%s5042_s30 + $0x70] sm:$0xf0]  ;;  %v4577_v55 = vld [vmem:[%s5042_s30 + $0x24] sm:$0xf] }
  0xed   : > { %2659 = vmatmul.bf16.gmra.mxu2 %v3838_v57  ;;  %2610 = vmatmul.bf16.gmra.mxu1 %v3834_v58  ;;  %v4843_v57 = vld [vmem:[%s6042_s1 + $0x3b0] sm:$0xff] }
  0xee   : > { %v2366_v51 = vpop.f32.mrf.mxu3  ;;  %v4835_v58 = vld [vmem:[%s6042_s1 + $0x370] sm:$0xff]  ;;  %3014 = vmatpush.bf16.msrb.mxu2 %v4843_v57 }
  0xef   : > { %v2367_v6 = vadd.f32 %v5310_v54, %v2366_v51  ;;  %v3386_v51 = vor.u32 %v4576_v46, %v3383_v47  ;;  %2965 = vmatpush.bf16.msrb.mxu1 %v4835_v58  ;;  %v4614_v58 = vld [vmem:[%s5042_s30 + $0x14c] sm:$0xf] }
  0xf0   : > { %v2464_v59 = vpop.f32.mrf.mxu2  ;;  %v2436_v8 = vpop.f32.mrf.mxu0 }
  0xf1   : > { %v2416_v9 = vadd.f32 %v2415_v63, %v2367_v6  ;;  %v5446_v11 = vadd.f32 %v2436_v8, %v5380_v62  ;;  %v4828_v62 = vld [vmem:[%s6042_s1 + $0x338] sm:$0xff]  ;;  %v3390_v6 = vor.u32 %v4586_v49, %v3389_v48  ;;  %v3398_v8 = vor.u32 %v4587_v50, %v3397_v52  ;;  %v4817_v49 = vld [vmem:[%s6042_s1 + $0x2e0] sm:$0xff] }
  0xf2   : > { %v2417_v12 = vpop.f32.mrf.mxu1  ;;  %2915 = vmatpush.bf16.msrb.mxu0 %v4828_v62  ;;  %v3459_v62 = vld [vmem:[%s5042_s30 + $0xfc] sm:$0xf0] }
  0xf3   : > { %v5450_v17 = vadd.f32 %v2464_v59, %v2416_v9  ;;  %v3394_v9 = vor.u32 %v4577_v55, %v3391_v56 }
  0xf6   : > { %v2368_v28 = vpop.f32.mrf.mxu3 }
  0xf7   : > { %v2369_v29 = vadd.f32 %v5310_v54, %v2368_v28  ;;  %v3465_v28 = vld [vmem:[%s5042_s30 + $0xb8] sm:$0xf] }
  0xf8   : > { %v2466_v32 = vpop.f32.mrf.mxu2  ;;  %v2439_v10 = vpop.f32.mrf.mxu0 }
  0xf9   : > { %v2418_v16 = vadd.f32 %v2417_v12, %v2369_v29  ;;  %v5469_v36 = vadd.f32 %v2439_v10, %v5404_v30  ;;  %v4605_v29 = vld [vmem:[%s5042_s30 + $0x100] sm:$0xf0]  ;;  %v3467_v10 = vld [vmem:[%s5042_s30 + $0x104] sm:$0xf0] }
  0xfa   : > { %v2420_v38 = vpop.f32.mrf.mxu1 }
  0xfb   : > { %v5471_v39 = vadd.f32 %v2466_v32, %v2418_v16  ;;  %2517 = vmatmul.bf16.gmra.mxu3 %v3902_v21  ;;  %2566 = vmatmul.bf16.gmra.mxu0 %v3906_v7  ;;  %v3473_v32 = vld [vmem:[%s5042_s30 + $0xc0] sm:$0xf]  ;;  %v4606_v21 = vld [vmem:[%s5042_s30 + $0x108] sm:$0xf0]  ;;  %v4596_v7 = vld [vmem:[%s5042_s30 + $0xbc] sm:$0xf] }
  0xfc   : > { %v4834_v16 = vld [vmem:[%s6042_s1 + $0x368] sm:$0xff] }
  0xfd   : > { %2664 = vmatmul.bf16.gmra.mxu2 %v3914_v34  ;;  %2615 = vmatmul.bf16.gmra.mxu1 %v3910_v35  ;;  %v4826_v35 = vld [vmem:[%s6042_s1 + $0x328] sm:$0xff] }
  0xfe   : > { %v2371_v30 = vpop.f32.mrf.mxu3  ;;  %2966 = vmatpush.bf16.msrb.mxu1 %v4834_v16 }
  0xff   : > { %v2372_v42 = vadd.f32 %v5310_v54, %v2371_v30 }
 0x100   : > { %v2469_v31 = vpop.f32.mrf.mxu2  ;;  %v2441_v19 = vpop.f32.mrf.mxu0 }
 0x101   : > { %v2421_v43 = vadd.f32 %v2420_v38, %v2372_v42  ;;  %v5478_v44 = vadd.f32 %v2441_v19, %v5414_v37  ;;  %v4827_v37 = vld [vmem:[%s6042_s1 + $0x330] sm:$0xff]  ;;  %v3462_v42 = vor.u32 %v4595_v26, %v3459_v62 }
 0x102   : > { %v2422_v45 = vpop.f32.mrf.mxu1  ;;  %2916 = vmatpush.bf16.msrb.mxu0 %v4827_v37 }
 0x103   : > { %v5482_v22 = vadd.f32 %v2469_v31, %v2421_v43  ;;  %v3466_v31 = vor.u32 %v4605_v29, %v3465_v28  ;;  %v3474_v43 = vor.u32 %v4606_v21, %v3473_v32  ;;  %v4816_v32 = vld [vmem:[%s6042_s1 + $0x2d8] sm:$0xff] }
 0x106   : > { %v2373_v60 = vpop.f32.mrf.mxu3  ;;  %2917 = vmatpush.bf16.msrb.mxu0 %v4826_v35 }
 0x107   : > { %v2374_v63 = vadd.f32 %v5310_v54, %v2373_v60  ;;  %v4818_v54 = vld [vmem:[%s6042_s1 + $0x2e8] sm:$0xff]  ;;  %v3535_v60 = vld [vmem:[%s5042_s30 + $0x194] sm:$0xf0] }
 0x108   : > { %v2471_v3 = vpop.f32.mrf.mxu2  ;;  %v2532_v59 = vpop.f32.mrf.mxu0  ;;  %2868 = vmatpush.bf16.msrb.mxu3 %v4818_v54  ;;  %v4833_v54 = vld [vmem:[%s6042_s1 + $0x360] sm:$0xff] }
 0x109   : > { %v2423_v12 = vadd.f32 %v2422_v45, %v2374_v63  ;;  %v3470_v45 = vor.u32 %v4596_v7, %v3467_v10  ;;  %2967 = vmatpush.bf16.msrb.mxu1 %v4833_v54 }
 0x10a   : > { %v2581_v14 = vpop.f32.mrf.mxu1 }
 0x10b   : > { %v5500_v15 = vadd.f32 %v2471_v3, %v2423_v12  ;;  %2678 = vmatmul.bf16.vlgmr.msra.gmra.mxu3 %v3386_v51  ;;  %2727 = vmatmul.bf16.vlgmr.msra.gmra.mxu0 %v3390_v6  ;;  %v3541_v3 = vld [vmem:[%s5042_s30 + $0x150] sm:$0xf]  ;;  %v4624_v51 = vld [vmem:[%s5042_s30 + $0x198] sm:$0xf0]  ;;  %v3549_v6 = vld [vmem:[%s5042_s30 + $0x158] sm:$0xf] }
 0x10c   : > { %2869 = vmatpush.bf16.msrb.mxu3 %v4817_v49  ;;  %v4832_v49 = vld [vmem:[%s6042_s1 + $0x358] sm:$0xff] }
 0x10d   : > { %2825 = vmatmul.bf16.vlgmr.msra.gmra.mxu2 %v3398_v8  ;;  %2776 = vmatmul.bf16.vlgmr.msra.gmra.mxu1 %v3394_v9  ;;  %v4615_v8 = vld [vmem:[%s5042_s30 + $0x154] sm:$0xf]  ;;  %v3543_v9 = vld [vmem:[%s5042_s30 + $0x19c] sm:$0xf0] }
 0x10e   : > { %v2483_v18 = vpop.f32.mrf.mxu3  ;;  %v3546_v62 = vor.u32 %v4615_v8, %v3543_v9  ;;  %2968 = vmatpush.bf16.msrb.mxu1 %v4832_v49 }
 0x10f   : > { %v2484_v1 = vadd.f32 %v2483_v18, %v5437_v61  ;;  %v4842_v61 = vld [vmem:[%s6042_s1 + $0x3a8] sm:$0xff] }
 0x110   : > { %v2630_v20 = vpop.f32.mrf.mxu2  ;;  %v2534_v23 = vpop.f32.mrf.mxu0  ;;  %3015 = vmatpush.bf16.msrb.mxu2 %v4842_v61  ;;  %2870 = vmatpush.bf16.msrb.mxu3 %v4816_v32  ;;  %v4831_v32 = vld [vmem:[%s6042_s1 + $0x350] sm:$0xff] }
 0x111   : > { %v2533_v24 = vadd.f32 %v2532_v59, %v2484_v1  ;;  %v4625_v59 = vld [vmem:[%s5042_s30 + $0x1a0] sm:$0xf0] }
 0x112   : > { %v2583_v25 = vpop.f32.mrf.mxu1  ;;  %v3550_v26 = vor.u32 %v4625_v59, %v3549_v6  ;;  %v4815_v6 = vld [vmem:[%s6042_s1 + $0x2d0] sm:$0xff]  ;;  %2969 = vmatpush.bf16.msrb.mxu1 %v4831_v32 }
 0x113   : > { %v2582_v4 = vadd.f32 %v2581_v14, %v2533_v24  ;;  %v4825_v14 = vld [vmem:[%s6042_s1 + $0x320] sm:$0xff]  ;;  %v3542_v24 = vor.u32 %v4624_v51, %v3541_v3 }
 0x114   : > { %2918 = vmatpush.bf16.msrb.mxu0 %v4825_v14  ;;  %2871 = vmatpush.bf16.msrb.mxu3 %v4815_v6  ;;  %v4830_v6 = vld [vmem:[%s6042_s1 + $0x348] sm:$0xff] }
 0x115   : > { %v5514_v34 = vadd.f32 %v2630_v20, %v2582_v4 }
 0x116   : > { %v2485_v38 = vpop.f32.mrf.mxu3  ;;  %2970 = vmatpush.bf16.msrb.mxu1 %v4830_v6 }
 0x117   : > { %v2486_v40 = vadd.f32 %v2485_v38, %v5446_v11  ;;  %v4633_v38 = vld [vmem:[%s5042_s30 + $0x1e4] sm:$0xf] }
 0x118   : > { %v2632_v30 = vpop.f32.mrf.mxu2  ;;  %v2537_v19 = vpop.f32.mrf.mxu0 }
 0x119   : > { %v2535_v46 = vadd.f32 %v2534_v23, %v2486_v40  ;;  %v3538_v23 = vor.u32 %v4614_v58, %v3535_v60  ;;  %v3611_v40 = vld [vmem:[%s5042_s30 + $0x22c] sm:$0xf0] }
 0x11a   : > { %v2586_v47 = vpop.f32.mrf.mxu1 }
 0x11b   : > { %v2584_v48 = vadd.f32 %v2583_v25, %v2535_v46  ;;  %2683 = vmatmul.bf16.gmra.mxu3 %v3462_v42  ;;  %2732 = vmatmul.bf16.gmra.mxu0 %v3466_v31  ;;  %v3617_v42 = vld [vmem:[%s5042_s30 + $0x1e8] sm:$0xf]  ;;  %v4643_v31 = vld [vmem:[%s5042_s30 + $0x230] sm:$0xf0]  ;;  %v3619_v46 = vld [vmem:[%s5042_s30 + $0x234] sm:$0xf0] }
 0x11d   : > { %2830 = vmatmul.bf16.gmra.mxu2 %v3474_v43  ;;  %2781 = vmatmul.bf16.gmra.mxu1 %v3470_v45  ;;  %v5526_v11 = vadd.f32 %v2632_v30, %v2584_v48  ;;  %v4644_v43 = vld [vmem:[%s5042_s30 + $0x238] sm:$0xf0]  ;;  %v4634_v45 = vld [vmem:[%s5042_s30 + $0x1ec] sm:$0xf] }
 0x11e   : > { %v2488_v52 = vpop.f32.mrf.mxu3  ;;  %v4824_v48 = vld [vmem:[%s6042_s1 + $0x318] sm:$0xff]  ;;  %v3622_v60 = vor.u32 %v4634_v45, %v3619_v46 }
 0x11f   : > { %v2489_v50 = vadd.f32 %v2488_v52, %v5469_v36  ;;  %v4841_v36 = vld [vmem:[%s6042_s1 + $0x3a0] sm:$0xff]  ;;  %2919 = vmatpush.bf16.msrb.mxu0 %v4824_v48 }
 0x120   : > { %v2635_v55 = vpop.f32.mrf.mxu2  ;;  %v2539_v56 = vpop.f32.mrf.mxu0  ;;  %3016 = vmatpush.bf16.msrb.mxu2 %v4841_v36 }
 0x121   : > { %v2538_v57 = vadd.f32 %v2537_v19, %v2489_v50  ;;  %v3625_v19 = vld [vmem:[%s5042_s30 + $0x1f0] sm:$0xf] }
 0x122   : > { %v2588_v37 = vpop.f32.mrf.mxu1  ;;  %v3626_v58 = vor.u32 %v4644_v43, %v3625_v19  ;;  %v4814_v19 = vld [vmem:[%s6042_s1 + $0x2c8] sm:$0xff] }
 0x123   : > { %v2587_v63 = vadd.f32 %v2586_v47, %v2538_v57  ;;  %v3618_v57 = vor.u32 %v4643_v31, %v3617_v42  ;;  %2872 = vmatpush.bf16.msrb.mxu3 %v4814_v19  ;;  %v4829_v19 = vld [vmem:[%s6042_s1 + $0x340] sm:$0xff] }
 0x124   : > { %2971 = vmatpush.bf16.msrb.mxu1 %v4829_v19 }
 0x125   : > { %v5540_v12 = vadd.f32 %v2635_v55, %v2587_v63 }
 0x126   : > { %v2490_v18 = vpop.f32.mrf.mxu3 }
 0x127   : > { %v2491_v1 = vadd.f32 %v2490_v18, %v5478_v44  ;;  %v4652_v18 = vld [vmem:[%s5042_s30 + $0x27c] sm:$0xf] }
 0x128   : > { %v2637_v20 = vpop.f32.mrf.mxu2  ;;  %v2542_v25 = vpop.f32.mrf.mxu0 }
 0x129   : > { %v2540_v4 = vadd.f32 %v2539_v56, %v2491_v1  ;;  %v3614_v56 = vor.u32 %v4633_v38, %v3611_v40  ;;  %v3687_v1 = vld [vmem:[%s5042_s30 + $0x2c4] sm:$0xf0] }
 0x12a   : > { %v2591_v28 = vpop.f32.mrf.mxu1 }
 0x12b   : > { %v2589_v29 = vadd.f32 %v2588_v37, %v2540_v4  ;;  %2688 = vmatmul.bf16.gmra.mxu3 %v3538_v23  ;;  %2737 = vmatmul.bf16.gmra.mxu0 %v3542_v24  ;;  %v3693_v23 = vld [vmem:[%s5042_s30 + $0x280] sm:$0xf]  ;;  %v4662_v24 = vld [vmem:[%s5042_s30 + $0x2c8] sm:$0xf0]  ;;  %v3695_v4 = vld [vmem:[%s5042_s30 + $0x2cc] sm:$0xf0] }
 0x12d   : > { %2835 = vmatmul.bf16.gmra.mxu2 %v3550_v26  ;;  %2786 = vmatmul.bf16.gmra.mxu1 %v3546_v62  ;;  %v5552_v44 = vadd.f32 %v2637_v20, %v2589_v29  ;;  %v4663_v26 = vld [vmem:[%s5042_s30 + $0x2d0] sm:$0xf0]  ;;  %v4653_v62 = vld [vmem:[%s5042_s30 + $0x284] sm:$0xf] }
 0x12e   : > { %v2493_v21 = vpop.f32.mrf.mxu3  ;;  %v4823_v29 = vld [vmem:[%s6042_s1 + $0x310] sm:$0xff]  ;;  %v3698_v40 = vor.u32 %v4653_v62, %v3695_v4 }
 0x12f   : > { %v2494_v7 = vadd.f32 %v2493_v21, %v5320_v0  ;;  %v4840_v0 = vld [vmem:[%s6042_s1 + $0x398] sm:$0xff]  ;;  %2920 = vmatpush.bf16.msrb.mxu0 %v4823_v29 }
 0x130   : > { %v2640_v10 = vpop.f32.mrf.mxu2  ;;  %v2544_v61 = vpop.f32.mrf.mxu0  ;;  %3017 = vmatpush.bf16.msrb.mxu2 %v4840_v0 }
 0x131   : > { %v2543_v35 = vadd.f32 %v2542_v25, %v2494_v7  ;;  %v3701_v25 = vld [vmem:[%s5042_s30 + $0x288] sm:$0xf] }
 0x132   : > { %v2593_v16 = vpop.f32.mrf.mxu1  ;;  %v3702_v38 = vor.u32 %v4663_v26, %v3701_v25  ;;  %v4813_v25 = vld [vmem:[%s6042_s1 + $0x2c0] sm:$0xff] }
 0x133   : > { %v2592_v30 = vadd.f32 %v2591_v28, %v2543_v35  ;;  %v3694_v35 = vor.u32 %v4662_v24, %v3693_v23  ;;  %2873 = vmatpush.bf16.msrb.mxu3 %v4813_v25  ;;  %v4868_v25 = vld [vmem:[%s6042_s1 + $0x478] sm:$0xff] }
 0x134   : > { %3160 = vmatpush.bf16.msra.mxu1 %v4868_v25 }
 0x135   : > { %v5566_v47 = vadd.f32 %v2640_v10, %v2592_v30 }
 0x136   : > { %v2495_v52 = vpop.f32.mrf.mxu3 }
 0x137   : > { %v2496_v50 = vadd.f32 %v2495_v52, %v5340_v27  ;;  %v4671_v52 = vld [vmem:[%s5042_s30 + $0x314] sm:$0xf] }
 0x138   : > { %v2642_v55 = vpop.f32.mrf.mxu2  ;;  %v2547_v37 = vpop.f32.mrf.mxu0 }
 0x139   : > { %v2545_v63 = vadd.f32 %v2544_v61, %v2496_v50  ;;  %v3690_v61 = vor.u32 %v4652_v18, %v3687_v1  ;;  %v3763_v50 = vld [vmem:[%s5042_s30 + $0x35c] sm:$0xf0] }
 0x13a   : > { %v2596_v3 = vpop.f32.mrf.mxu1 }
 0x13b   : > { %v2594_v51 = vadd.f32 %v2593_v16, %v2545_v63  ;;  %2693 = vmatmul.bf16.gmra.mxu3 %v3614_v56  ;;  %2742 = vmatmul.bf16.gmra.mxu0 %v3618_v57  ;;  %v3769_v56 = vld [vmem:[%s5042_s30 + $0x318] sm:$0xf]  ;;  %v4681_v57 = vld [vmem:[%s5042_s30 + $0x360] sm:$0xf0]  ;;  %v3771_v63 = vld [vmem:[%s5042_s30 + $0x364] sm:$0xf0] }
 0x13d   : > { %2840 = vmatmul.bf16.gmra.mxu2 %v3626_v58  ;;  %2791 = vmatmul.bf16.gmra.mxu1 %v3622_v60  ;;  %v5578_v27 = vadd.f32 %v2642_v55, %v2594_v51  ;;  %v4682_v58 = vld [vmem:[%s5042_s30 + $0x368] sm:$0xf0]  ;;  %v4672_v60 = vld [vmem:[%s5042_s30 + $0x31c] sm:$0xf] }
 0x13e   : > { %v2498_v59 = vpop.f32.mrf.mxu3  ;;  %v4822_v51 = vld [vmem:[%s6042_s1 + $0x308] sm:$0xff]  ;;  %v3774_v1 = vor.u32 %v4672_v60, %v3771_v63 }
 0x13f   : > { %v2499_v8 = vadd.f32 %v2498_v59, %v5350_v13  ;;  %v4839_v13 = vld [vmem:[%s6042_s1 + $0x390] sm:$0xff]  ;;  %2921 = vmatpush.bf16.msrb.mxu0 %v4822_v51 }
 0x140   : > { %v2645_v9 = vpop.f32.mrf.mxu2  ;;  %v2549_v36 = vpop.f32.mrf.mxu0  ;;  %3018 = vmatpush.bf16.msrb.mxu2 %v4839_v13 }
 0x141   : > { %v2548_v14 = vadd.f32 %v2547_v37, %v2499_v8  ;;  %v3777_v37 = vld [vmem:[%s5042_s30 + $0x320] sm:$0xf] }
 0x142   : > { %v2598_v54 = vpop.f32.mrf.mxu1  ;;  %v3778_v18 = vor.u32 %v4682_v58, %v3777_v37  ;;  %v4852_v37 = vld [vmem:[%s6042_s1 + $0x3f8] sm:$0xff] }
 0x143   : > { %v2597_v20 = vadd.f32 %v2596_v3, %v2548_v14  ;;  %v3770_v14 = vor.u32 %v4681_v57, %v3769_v56  ;;  %3062 = vmatpush.bf16.msra.mxu3 %v4852_v37 }
 0x145   : > { %v5592_v28 = vadd.f32 %v2645_v9, %v2597_v20 }
 0x146   : > { %v2500_v21 = vpop.f32.mrf.mxu3 }
 0x147   : > { %v2501_v7 = vadd.f32 %v2500_v21, %v5372_v53  ;;  %v4690_v21 = vld [vmem:[%s5042_s30 + $0x3ac] sm:$0xf] }
 0x148   : > { %v2647_v10 = vpop.f32.mrf.mxu2  ;;  %v2552_v16 = vpop.f32.mrf.mxu0 }
 0x149   : > { %v2550_v30 = vadd.f32 %v2549_v36, %v2501_v7  ;;  %v3766_v36 = vor.u32 %v4671_v52, %v3763_v50  ;;  %v3839_v7 = vld [vmem:[%s5042_s30 + $0x3f4] sm:$0xf0] }
 0x14a   : > { %v2601_v42 = vpop.f32.mrf.mxu1 }
 0x14b   : > { %v2599_v31 = vadd.f32 %v2598_v54, %v2550_v30  ;;  %2698 = vmatmul.bf16.gmra.mxu3 %v3690_v61  ;;  %2747 = vmatmul.bf16.gmra.mxu0 %v3694_v35  ;;  %v3845_v61 = vld [vmem:[%s5042_s30 + $0x3b0] sm:$0xf]  ;;  %v4700_v35 = vld [vmem:[%s5042_s30 + $0x3f8] sm:$0xf0]  ;;  %v3847_v30 = vld [vmem:[%s5042_s30 + $0x3fc] sm:$0xf0] }
 0x14d   : > { %2845 = vmatmul.bf16.gmra.mxu2 %v3702_v38  ;;  %2796 = vmatmul.bf16.gmra.mxu1 %v3698_v40  ;;  %v5604_v53 = vadd.f32 %v2647_v10, %v2599_v31  ;;  %v4701_v38 = vld [vmem:[%s5042_s30 + $0x400] sm:$0xf0]  ;;  %v4691_v40 = vld [vmem:[%s5042_s30 + $0x3b4] sm:$0xf] }
 0x14e   : > { %v2503_v43 = vpop.f32.mrf.mxu3  ;;  %v4821_v31 = vld [vmem:[%s6042_s1 + $0x300] sm:$0xff]  ;;  %v3850_v50 = vor.u32 %v4691_v40, %v3847_v30 }
 0x14f   : > { %v2504_v45 = vadd.f32 %v2503_v43, %v5384_v5  ;;  %v4838_v5 = vld [vmem:[%s6042_s1 + $0x388] sm:$0xff]  ;;  %2922 = vmatpush.bf16.msrb.mxu0 %v4821_v31 }
 0x150   : > { %v2650_v46 = vpop.f32.mrf.mxu2  ;;  %v2554_v0 = vpop.f32.mrf.mxu0  ;;  %3019 = vmatpush.bf16.msrb.mxu2 %v4838_v5 }
 0x151   : > { %v2553_v48 = vadd.f32 %v2552_v16, %v2504_v45  ;;  %v3853_v16 = vld [vmem:[%s5042_s30 + $0x3b8] sm:$0xf] }
 0x152   : > { %v2603_v49 = vpop.f32.mrf.mxu1  ;;  %v3854_v52 = vor.u32 %v4701_v38, %v3853_v16  ;;  %v4851_v16 = vld [vmem:[%s6042_s1 + $0x3f0] sm:$0xff] }
 0x153   : > { %v2602_v55 = vadd.f32 %v2601_v42, %v2553_v48  ;;  %v3846_v48 = vor.u32 %v4700_v35, %v3845_v61  ;;  %3063 = vmatpush.bf16.msra.mxu3 %v4851_v16 }
 0x155   : > { %v5618_v3 = vadd.f32 %v2650_v46, %v2602_v55 }
 0x156   : > { %v2505_v59 = vpop.f32.mrf.mxu3 }
 0x157   : > { %v2506_v8 = vadd.f32 %v2505_v59, %v5406_v33  ;;  %v4709_v59 = vld [vmem:[%s5042_s30 + $0x444] sm:$0xf] }
 0x158   : > { %v2652_v9 = vpop.f32.mrf.mxu2  ;;  %v2557_v54 = vpop.f32.mrf.mxu0 }
 0x159   : > { %v2555_v20 = vadd.f32 %v2554_v0, %v2506_v8  ;;  %v3842_v0 = vor.u32 %v4690_v21, %v3839_v7  ;;  %v3915_v8 = vld [vmem:[%s5042_s30 + $0x48c] sm:$0xf0] }
 0x15a   : > { %v2606_v23 = vpop.f32.mrf.mxu1 }
 0x15b   : > { %v2604_v24 = vadd.f32 %v2603_v49, %v2555_v20  ;;  %2703 = vmatmul.bf16.gmra.mxu3 %v3766_v36  ;;  %2752 = vmatmul.bf16.gmra.mxu0 %v3770_v14  ;;  %v3921_v36 = vld [vmem:[%s5042_s30 + $0x448] sm:$0xf]  ;;  %v4719_v14 = vld [vmem:[%s5042_s30 + $0x490] sm:$0xf0]  ;;  %v3923_v20 = vld [vmem:[%s5042_s30 + $0x494] sm:$0xf0] }
 0x15d   : > { %2850 = vmatmul.bf16.gmra.mxu2 %v3778_v18  ;;  %2801 = vmatmul.bf16.gmra.mxu1 %v3774_v1  ;;  %v5630_v33 = vadd.f32 %v2652_v9, %v2604_v24  ;;  %v4720_v18 = vld [vmem:[%s5042_s30 + $0x498] sm:$0xf0]  ;;  %v4710_v1 = vld [vmem:[%s5042_s30 + $0x44c] sm:$0xf] }
 0x15e   : > { %v2508_v26 = vpop.f32.mrf.mxu3  ;;  %v4860_v24 = vld [vmem:[%s6042_s1 + $0x438] sm:$0xff]  ;;  %v3926_v7 = vor.u32 %v4710_v1, %v3923_v20 }
 0x15f   : > { %v2509_v62 = vadd.f32 %v2508_v26, %v5418_v41  ;;  %v4837_v41 = vld [vmem:[%s6042_s1 + $0x380] sm:$0xff]  ;;  %3111 = vmatpush.bf16.msra.mxu0 %v4860_v24 }
 0x160   : > { %v2655_v4 = vpop.f32.mrf.mxu2  ;;  %v2559_v13 = vpop.f32.mrf.mxu0  ;;  %3020 = vmatpush.bf16.msrb.mxu2 %v4837_v41 }
 0x161   : > { %v2558_v29 = vadd.f32 %v2557_v54, %v2509_v62  ;;  %v3929_v54 = vld [vmem:[%s5042_s30 + $0x450] sm:$0xf] }
 0x162   : > { %v2608_v32 = vpop.f32.mrf.mxu1  ;;  %v3930_v21 = vor.u32 %v4720_v18, %v3929_v54  ;;  %v4850_v54 = vld [vmem:[%s6042_s1 + $0x3e8] sm:$0xff] }
 0x163   : > { %v2607_v10 = vadd.f32 %v2606_v23, %v2558_v29  ;;  %v3922_v29 = vor.u32 %v4719_v14, %v3921_v36  ;;  %v4873_v14 = vld [vmem:[%s6042_s1 + $0x4a0] sm:$0xff]  ;;  %3064 = vmatpush.bf16.msra.mxu3 %v4850_v54 }
 0x165   : > { %v5644_v42 = vadd.f32 %v2655_v4, %v2607_v10 }
 0x166   : > { %v2510_v43 = vpop.f32.mrf.mxu3 }
 0x167   : > { %v2511_v45 = vadd.f32 %v2510_v43, %v5439_v2  ;;  %v4578_v43 = vld [vmem:[%s5042_s30 + $0x2c] sm:$0xf] }
 0x168   : > { %v2657_v46 = vpop.f32.mrf.mxu2  ;;  %v2562_v49 = vpop.f32.mrf.mxu0 }
 0x169   : > { %v2560_v55 = vadd.f32 %v2559_v13, %v2511_v45  ;;  %v3918_v13 = vor.u32 %v4709_v59, %v3915_v8 }
 0x16a   : > { %v2611_v56 = vpop.f32.mrf.mxu1 }
 0x16b   : > { %v2609_v57 = vadd.f32 %v2608_v32, %v2560_v55  ;;  %2708 = vmatmul.bf16.gmra.mxu3 %v3842_v0  ;;  %2757 = vmatmul.bf16.gmra.mxu0 %v3846_v48  ;;  %v3405_v0 = vld [vmem:[%s5042_s30 + $0x30] sm:$0xf]  ;;  %v4588_v48 = vld [vmem:[%s5042_s30 + $0x78] sm:$0xf0] }
 0x16d   : > { %2855 = vmatmul.bf16.gmra.mxu2 %v3854_v52  ;;  %2806 = vmatmul.bf16.gmra.mxu1 %v3850_v50  ;;  %v5656_v2 = vadd.f32 %v2657_v46, %v2609_v57  ;;  %v3399_v46 = vld [vmem:[%s5042_s30 + $0x74] sm:$0xf0]  ;;  %v4589_v52 = vld [vmem:[%s5042_s30 + $0x80] sm:$0xf0]  ;;  %v4579_v50 = vld [vmem:[%s5042_s30 + $0x34] sm:$0xf] }
 0x16e   : > { %v2513_v58 = vpop.f32.mrf.mxu3  ;;  %v4867_v57 = vld [vmem:[%s6042_s1 + $0x470] sm:$0xff] }
 0x16f   : > { %v2514_v60 = vadd.f32 %v2513_v58, %v5450_v17  ;;  %v4874_v17 = vld [vmem:[%s6042_s1 + $0x4a8] sm:$0xff]  ;;  %3161 = vmatpush.bf16.msra.mxu1 %v4867_v57 }
 0x170   : > { %v2660_v63 = vpop.f32.mrf.mxu2  ;;  %v2564_v5 = vpop.f32.mrf.mxu0  ;;  %3211 = vmatpush.bf16.msra.mxu2 %v4874_v17 }
 0x171   : > { %v2563_v51 = vadd.f32 %v2562_v49, %v2514_v60  ;;  %v3413_v49 = vld [vmem:[%s5042_s30 + $0x38] sm:$0xf] }
 0x172   : > { %v2613_v6 = vpop.f32.mrf.mxu1 }
 0x173   : > { %v2612_v9 = vadd.f32 %v2611_v56, %v2563_v51  ;;  %v3407_v56 = vld [vmem:[%s5042_s30 + $0x7c] sm:$0xf0] }
 0x174   : > { %v3410_v59 = vor.u32 %v4579_v50, %v3407_v56  ;;  %3212 = vmatpush.bf16.msra.mxu2 %v4873_v14  ;;  %v4865_v14 = vld [vmem:[%s6042_s1 + $0x460] sm:$0xff] }
 0x175   : > { %v5670_v23 = vadd.f32 %v2660_v63, %v2612_v9  ;;  %v3402_v63 = vor.u32 %v4578_v43, %v3399_v46 }
 0x176   : > { %v2515_v26 = vpop.f32.mrf.mxu3 }
 0x177   : > { %v2516_v62 = vadd.f32 %v2515_v26, %v5471_v39  ;;  %v4597_v26 = vld [vmem:[%s5042_s30 + $0xc4] sm:$0xf] }
 0x178   : > { %v2662_v4 = vpop.f32.mrf.mxu2  ;;  %v2567_v32 = vpop.f32.mrf.mxu0 }
 0x179   : > { %v2565_v10 = vadd.f32 %v2564_v5, %v2516_v62  ;;  %v3406_v5 = vor.u32 %v4588_v48, %v3405_v0  ;;  %v4849_v48 = vld [vmem:[%s6042_s1 + $0x3e0] sm:$0xff] }
 0x17a   : > { %v2616_v61 = vpop.f32.mrf.mxu1  ;;  %3065 = vmatpush.bf16.msra.mxu3 %v4849_v48  ;;  %v4864_v48 = vld [vmem:[%s6042_s1 + $0x458] sm:$0xff] }
 0x17b   : > { %v2614_v35 = vadd.f32 %v2613_v6, %v2565_v10  ;;  %2713 = vmatmul.bf16.gmra.mxu3 %v3918_v13  ;;  %2762 = vmatmul.bf16.gmra.mxu0 %v3922_v29  ;;  %v3414_v6 = vor.u32 %v4589_v52, %v3413_v49  ;;  %v3481_v13 = vld [vmem:[%s5042_s30 + $0xc8] sm:$0xf]  ;;  %v4607_v29 = vld [vmem:[%s5042_s30 + $0x110] sm:$0xf0]  ;;  %v4872_v49 = vld [vmem:[%s6042_s1 + $0x498] sm:$0xff] }
 0x17c   : > { %3213 = vmatpush.bf16.msra.mxu2 %v4872_v49 }
 0x17d   : > { %2860 = vmatmul.bf16.gmra.mxu2 %v3930_v21  ;;  %2811 = vmatmul.bf16.gmra.mxu1 %v3926_v7  ;;  %v5682_v39 = vadd.f32 %v2662_v4, %v2614_v35  ;;  %v3475_v4 = vld [vmem:[%s5042_s30 + $0x10c] sm:$0xf0]  ;;  %v4608_v21 = vld [vmem:[%s5042_s30 + $0x118] sm:$0xf0]  ;;  %v4598_v7 = vld [vmem:[%s5042_s30 + $0xcc] sm:$0xf] }
 0x17e   : > { %v2518_v38 = vpop.f32.mrf.mxu3  ;;  %v4866_v35 = vld [vmem:[%s6042_s1 + $0x468] sm:$0xff] }
 0x17f   : > { %v2519_v40 = vadd.f32 %v2518_v38, %v5482_v22  ;;  %v4859_v22 = vld [vmem:[%s6042_s1 + $0x430] sm:$0xff]  ;;  %3162 = vmatpush.bf16.msra.mxu1 %v4866_v35 }
 0x180   : > { %v2665_v30 = vpop.f32.mrf.mxu2  ;;  %v2569_v41 = vpop.f32.mrf.mxu0  ;;  %3112 = vmatpush.bf16.msra.mxu0 %v4859_v22 }
 0x181   : > { %v2568_v31 = vadd.f32 %v2567_v32, %v2519_v40  ;;  %v3489_v32 = vld [vmem:[%s5042_s30 + $0xd0] sm:$0xf] }
 0x182   : > { %v2618_v19 = vpop.f32.mrf.mxu1 }
 0x183   : > { %v2617_v45 = vadd.f32 %v2616_v61, %v2568_v31  ;;  %v3483_v61 = vld [vmem:[%s5042_s30 + $0x114] sm:$0xf0]  ;;  %3163 = vmatpush.bf16.msra.mxu1 %v4865_v14 }
 0x184   : > { %v3486_v43 = vor.u32 %v4598_v7, %v3483_v61 }
 0x185   : > { %v5695_v55 = vadd.f32 %v2665_v30, %v2617_v45  ;;  %v3478_v30 = vor.u32 %v4597_v26, %v3475_v4 }
 0x186   : > { %v2520_v37 = vpop.f32.mrf.mxu3 }
 0x187   : > { %v2521_v58 = vadd.f32 %v2520_v37, %v5500_v15  ;;  %3164 = vmatpush.bf16.msra.mxu1 %v4864_v48 }
 0x188   : > { %v2667_v60 = vpop.f32.mrf.mxu2  ;;  %v2728_v51 = vpop.f32.mrf.mxu0 }
 0x189   : > { %v2570_v8 = vadd.f32 %v2569_v41, %v2521_v58  ;;  %v3482_v41 = vor.u32 %v4607_v29, %v3481_v13  ;;  %v4616_v58 = vld [vmem:[%s5042_s30 + $0x15c] sm:$0xf] }
 0x18a   : > { %v2777_v9 = vpop.f32.mrf.mxu1  ;;  %v4848_v29 = vld [vmem:[%s6042_s1 + $0x3d8] sm:$0xff] }
 0x18b   : > { %v2619_v36 = vadd.f32 %v2618_v19, %v2570_v8  ;;  %2874 = vmatmul.bf16.vlgmr.msrb.gmra.mxu3 %v3402_v63  ;;  %2923 = vmatmul.bf16.vlgmr.msrb.gmra.mxu0 %v3406_v5  ;;  %v3490_v19 = vor.u32 %v4608_v21, %v3489_v32  ;;  %v3551_v63 = vld [vmem:[%s5042_s30 + $0x1a4] sm:$0xf0]  ;;  %v3557_v5 = vld [vmem:[%s5042_s30 + $0x160] sm:$0xf]  ;;  %v4617_v8 = vld [vmem:[%s5042_s30 + $0x164] sm:$0xf] }
 0x18c   : > { %3066 = vmatpush.bf16.msra.mxu3 %v4848_v29 }
 0x18d   : > { %3021 = vmatmul.bf16.vlgmr.msrb.gmra.mxu2 %v3414_v6  ;;  %2972 = vmatmul.bf16.vlgmr.msrb.gmra.mxu1 %v3410_v59  ;;  %v5705_v15 = vadd.f32 %v2667_v60, %v2619_v36  ;;  %v3565_v6 = vld [vmem:[%s5042_s30 + $0x168] sm:$0xf]  ;;  %v4627_v59 = vld [vmem:[%s5042_s30 + $0x1b0] sm:$0xf0]  ;;  %v3559_v36 = vld [vmem:[%s5042_s30 + $0x1ac] sm:$0xf0] }
 0x18e   : > { %v2679_v18 = vpop.f32.mrf.mxu3  ;;  %v3562_v26 = vor.u32 %v4617_v8, %v3559_v36 }
 0x18f   : > { %v2680_v1 = vadd.f32 %v2679_v18, %v5514_v34  ;;  %v4858_v34 = vld [vmem:[%s6042_s1 + $0x428] sm:$0xff] }
 0x190   : > { %v2826_v20 = vpop.f32.mrf.mxu2  ;;  %v2730_v17 = vpop.f32.mrf.mxu0  ;;  %3113 = vmatpush.bf16.msra.mxu0 %v4858_v34 }
 0x191   : > { %v2729_v24 = vadd.f32 %v2728_v51, %v2680_v1  ;;  %v4626_v51 = vld [vmem:[%s5042_s30 + $0x1a8] sm:$0xf0] }
 0x192   : > { %v2779_v25 = vpop.f32.mrf.mxu1 }
 0x193   : > { %v2778_v62 = vadd.f32 %v2777_v9, %v2729_v24 }
 0x195   : > { %v5721_v10 = vadd.f32 %v2826_v20, %v2778_v62  ;;  %v3554_v20 = vor.u32 %v4616_v58, %v3551_v63 }
 0x196   : > { %v2681_v16 = vpop.f32.mrf.mxu3 }
 0x197   : > { %v2682_v38 = vadd.f32 %v2681_v16, %v5526_v11  ;;  %v4635_v16 = vld [vmem:[%s5042_s30 + $0x1f4] sm:$0xf] }
 0x198   : > { %v2828_v40 = vpop.f32.mrf.mxu2  ;;  %v2733_v31 = vpop.f32.mrf.mxu0 }
 0x199   : > { %v2731_v45 = vadd.f32 %v2730_v17, %v2682_v38  ;;  %v3558_v17 = vor.u32 %v4626_v51, %v3557_v5  ;;  %v3627_v38 = vld [vmem:[%s5042_s30 + $0x23c] sm:$0xf0]  ;;  %v4847_v51 = vld [vmem:[%s6042_s1 + $0x3d0] sm:$0xff] }
 0x19a   : > { %v2782_v46 = vpop.f32.mrf.mxu1  ;;  %3067 = vmatpush.bf16.msra.mxu3 %v4847_v51 }
 0x19b   : > { %v2780_v0 = vadd.f32 %v2779_v25, %v2731_v45  ;;  %2879 = vmatmul.bf16.gmra.mxu3 %v3478_v30  ;;  %2928 = vmatmul.bf16.gmra.mxu0 %v3482_v41  ;;  %v3566_v25 = vor.u32 %v4627_v59, %v3565_v6  ;;  %v3633_v30 = vld [vmem:[%s5042_s30 + $0x1f8] sm:$0xf]  ;;  %v4645_v41 = vld [vmem:[%s5042_s30 + $0x240] sm:$0xf0]  ;;  %v3635_v45 = vld [vmem:[%s5042_s30 + $0x244] sm:$0xf0] }
 0x19d   : > { %3026 = vmatmul.bf16.gmra.mxu2 %v3490_v19  ;;  %2977 = vmatmul.bf16.gmra.mxu1 %v3486_v43  ;;  %v5731_v11 = vadd.f32 %v2828_v40, %v2780_v0  ;;  %v4646_v19 = vld [vmem:[%s5042_s30 + $0x248] sm:$0xf0]  ;;  %v4636_v43 = vld [vmem:[%s5042_s30 + $0x1fc] sm:$0xf] }
 0x19e   : > { %v2684_v52 = vpop.f32.mrf.mxu3  ;;  %v4856_v0 = vld [vmem:[%s6042_s1 + $0x418] sm:$0xff]  ;;  %v3638_v58 = vor.u32 %v4636_v43, %v3635_v45 }
 0x19f   : > { %v2685_v50 = vadd.f32 %v2684_v52, %v5540_v12  ;;  %v4857_v12 = vld [vmem:[%s6042_s1 + $0x420] sm:$0xff] }
 0x1a0   : > { %v2831_v56 = vpop.f32.mrf.mxu2  ;;  %v2735_v22 = vpop.f32.mrf.mxu0  ;;  %3114 = vmatpush.bf16.msra.mxu0 %v4857_v12 }
 0x1a1   : > { %v2734_v57 = vadd.f32 %v2733_v31, %v2685_v50  ;;  %v3641_v31 = vld [vmem:[%s5042_s30 + $0x200] sm:$0xf] }
 0x1a2   : > { %v2784_v37 = vpop.f32.mrf.mxu1 }
 0x1a3   : > { %v2783_v60 = vadd.f32 %v2782_v46, %v2734_v57 }
 0x1a4   : > { %3115 = vmatpush.bf16.msra.mxu0 %v4856_v0 }
 0x1a5   : > { %v5747_v9 = vadd.f32 %v2831_v56, %v2783_v60  ;;  %v3630_v56 = vor.u32 %v4635_v16, %v3627_v38 }
 0x1a6   : > { %v2686_v54 = vpop.f32.mrf.mxu3 }
 0x1a7   : > { %v2687_v18 = vadd.f32 %v2686_v54, %v5552_v44  ;;  %v4654_v54 = vld [vmem:[%s5042_s30 + $0x28c] sm:$0xf] }
 0x1a8   : > { %v2833_v1 = vpop.f32.mrf.mxu2  ;;  %v2738_v24 = vpop.f32.mrf.mxu0 }
 0x1a9   : > { %v2736_v62 = vadd.f32 %v2735_v22, %v2687_v18  ;;  %v3634_v22 = vor.u32 %v4645_v41, %v3633_v30  ;;  %v4870_v41 = vld [vmem:[%s6042_s1 + $0x488] sm:$0xff] }
 0x1aa   : > { %v2787_v4 = vpop.f32.mrf.mxu1 }
 0x1ab   : > { %v2785_v13 = vadd.f32 %v2784_v37, %v2736_v62  ;;  %2884 = vmatmul.bf16.gmra.mxu3 %v3554_v20  ;;  %2933 = vmatmul.bf16.gmra.mxu0 %v3558_v17  ;;  %v3642_v37 = vor.u32 %v4646_v19, %v3641_v31  ;;  %v3709_v20 = vld [vmem:[%s5042_s30 + $0x290] sm:$0xf]  ;;  %v4664_v17 = vld [vmem:[%s5042_s30 + $0x2d8] sm:$0xf0]  ;;  %v4846_v31 = vld [vmem:[%s6042_s1 + $0x3c8] sm:$0xff] }
 0x1ac   : > { %3068 = vmatpush.bf16.msra.mxu3 %v4846_v31 }
 0x1ad   : > { %3031 = vmatmul.bf16.gmra.mxu2 %v3566_v25  ;;  %2982 = vmatmul.bf16.gmra.mxu1 %v3562_v26  ;;  %v5757_v44 = vadd.f32 %v2833_v1, %v2785_v13  ;;  %v3703_v1 = vld [vmem:[%s5042_s30 + $0x2d4] sm:$0xf0]  ;;  %v4665_v25 = vld [vmem:[%s5042_s30 + $0x2e0] sm:$0xf0]  ;;  %v4655_v26 = vld [vmem:[%s5042_s30 + $0x294] sm:$0xf] }
 0x1ae   : > { %v2689_v32 = vpop.f32.mrf.mxu3  ;;  %v4863_v13 = vld [vmem:[%s6042_s1 + $0x450] sm:$0xff] }
 0x1af   : > { %v2690_v21 = vadd.f32 %v2689_v32, %v5566_v47  ;;  %v4871_v47 = vld [vmem:[%s6042_s1 + $0x490] sm:$0xff]  ;;  %3165 = vmatpush.bf16.msra.mxu1 %v4863_v13 }
 0x1b0   : > { %v2836_v7 = vpop.f32.mrf.mxu2  ;;  %v2740_v61 = vpop.f32.mrf.mxu0  ;;  %3214 = vmatpush.bf16.msra.mxu2 %v4871_v47 }
 0x1b1   : > { %v2739_v34 = vadd.f32 %v2738_v24, %v2690_v21  ;;  %v3717_v24 = vld [vmem:[%s5042_s30 + $0x298] sm:$0xf] }
 0x1b2   : > { %v2789_v35 = vpop.f32.mrf.mxu1 }
 0x1b3   : > { %v2788_v40 = vadd.f32 %v2787_v4, %v2739_v34  ;;  %v3711_v4 = vld [vmem:[%s5042_s30 + $0x2dc] sm:$0xf0] }
 0x1b4   : > { %v3714_v16 = vor.u32 %v4655_v26, %v3711_v4  ;;  %3215 = vmatpush.bf16.msra.mxu2 %v4870_v41  ;;  %v4861_v41 = vld [vmem:[%s6042_s1 + $0x440] sm:$0xff] }
 0x1b5   : > { %v5771_v46 = vadd.f32 %v2836_v7, %v2788_v40  ;;  %v3706_v7 = vor.u32 %v4654_v54, %v3703_v1 }
 0x1b6   : > { %v2691_v49 = vpop.f32.mrf.mxu3 }
 0x1b7   : > { %v2692_v52 = vadd.f32 %v2691_v49, %v5578_v27  ;;  %v4673_v49 = vld [vmem:[%s5042_s30 + $0x324] sm:$0xf] }
 0x1b8   : > { %v2838_v50 = vpop.f32.mrf.mxu2  ;;  %v2743_v57 = vpop.f32.mrf.mxu0 }
 0x1b9   : > { %v2741_v60 = vadd.f32 %v2740_v61, %v2692_v52  ;;  %v3710_v61 = vor.u32 %v4664_v17, %v3709_v20  ;;  %v4845_v17 = vld [vmem:[%s6042_s1 + $0x3c0] sm:$0xff] }
 0x1ba   : > { %v2792_v63 = vpop.f32.mrf.mxu1  ;;  %3069 = vmatpush.bf16.msra.mxu3 %v4845_v17 }
 0x1bb   : > { %v2790_v5 = vadd.f32 %v2789_v35, %v2741_v60  ;;  %2889 = vmatmul.bf16.gmra.mxu3 %v3630_v56  ;;  %2938 = vmatmul.bf16.gmra.mxu0 %v3634_v22  ;;  %v3718_v35 = vor.u32 %v4665_v25, %v3717_v24  ;;  %v3785_v56 = vld [vmem:[%s5042_s30 + $0x328] sm:$0xf]  ;;  %v4683_v22 = vld [vmem:[%s5042_s30 + $0x370] sm:$0xf0]  ;;  %v4869_v24 = vld [vmem:[%s6042_s1 + $0x480] sm:$0xff] }
 0x1bc   : > { %3216 = vmatpush.bf16.msra.mxu2 %v4869_v24 }
 0x1bd   : > { %3036 = vmatmul.bf16.gmra.mxu2 %v3642_v37  ;;  %2987 = vmatmul.bf16.gmra.mxu1 %v3638_v58  ;;  %v5783_v27 = vadd.f32 %v2838_v50, %v2790_v5  ;;  %v3779_v50 = vld [vmem:[%s5042_s30 + $0x36c] sm:$0xf0]  ;;  %v4684_v37 = vld [vmem:[%s5042_s30 + $0x378] sm:$0xf0]  ;;  %v4674_v58 = vld [vmem:[%s5042_s30 + $0x32c] sm:$0xf] }
 0x1be   : > { %v2694_v6 = vpop.f32.mrf.mxu3  ;;  %v4862_v5 = vld [vmem:[%s6042_s1 + $0x448] sm:$0xff] }
 0x1bf   : > { %v2695_v59 = vadd.f32 %v2694_v6, %v5592_v28  ;;  %v4855_v28 = vld [vmem:[%s6042_s1 + $0x410] sm:$0xff]  ;;  %3166 = vmatpush.bf16.msra.mxu1 %v4862_v5 }
 0x1c0   : > { %v2841_v8 = vpop.f32.mrf.mxu2  ;;  %v2745_v36 = vpop.f32.mrf.mxu0  ;;  %3116 = vmatpush.bf16.msra.mxu0 %v4855_v28 }
 0x1c1   : > { %v2744_v12 = vadd.f32 %v2743_v57, %v2695_v59  ;;  %v3793_v57 = vld [vmem:[%s5042_s30 + $0x330] sm:$0xf] }
 0x1c2   : > { %v2794_v14 = vpop.f32.mrf.mxu1 }
 0x1c3   : > { %v2793_v18 = vadd.f32 %v2792_v63, %v2744_v12  ;;  %v3787_v63 = vld [vmem:[%s5042_s30 + $0x374] sm:$0xf0]  ;;  %3167 = vmatpush.bf16.msra.mxu1 %v4861_v41  ;;  %v4590_v41 = vld [vmem:[%s5042_s30 + $0x88] sm:$0xf0] }
 0x1c4   : > { %v3790_v54 = vor.u32 %v4674_v58, %v3787_v63 }
 0x1c5   : > { %v5796_v62 = vadd.f32 %v2841_v8, %v2793_v18  ;;  %v3782_v8 = vor.u32 %v4673_v49, %v3779_v50 }
 0x1c6   : > { %v2696_v29 = vpop.f32.mrf.mxu3 }
 0x1c7   : > { %v2697_v32 = vadd.f32 %v2696_v29, %v5604_v53 }
 0x1c8   : > { %v2843_v21 = vpop.f32.mrf.mxu2  ;;  %v2748_v34 = vpop.f32.mrf.mxu0 }
 0x1c9   : > { %v2746_v38 = vadd.f32 %v2745_v36, %v2697_v32  ;;  %v3786_v36 = vor.u32 %v4683_v22, %v3785_v56  ;;  %v4692_v32 = vld [vmem:[%s5042_s30 + $0x3bc] sm:$0xf] }
 0x1ca   : > { %v2797_v40 = vpop.f32.mrf.mxu1 }
 0x1cb   : > { %v2795_v30 = vadd.f32 %v2794_v14, %v2746_v38  ;;  %2894 = vmatmul.bf16.gmra.mxu3 %v3706_v7  ;;  %2943 = vmatmul.bf16.gmra.mxu0 %v3710_v61  ;;  %v3794_v14 = vor.u32 %v4684_v37, %v3793_v57  ;;  %v3855_v7 = vld [vmem:[%s5042_s30 + $0x404] sm:$0xf0]  ;;  %v3861_v61 = vld [vmem:[%s5042_s30 + $0x3c0] sm:$0xf]  ;;  %v4693_v38 = vld [vmem:[%s5042_s30 + $0x3c4] sm:$0xf] }
 0x1cd   : > { %3041 = vmatmul.bf16.gmra.mxu2 %v3718_v35  ;;  %2992 = vmatmul.bf16.gmra.mxu1 %v3714_v16  ;;  %v5806_v53 = vadd.f32 %v2843_v21, %v2795_v30  ;;  %v3869_v35 = vld [vmem:[%s5042_s30 + $0x3c8] sm:$0xf]  ;;  %v4703_v16 = vld [vmem:[%s5042_s30 + $0x410] sm:$0xf0]  ;;  %v3863_v30 = vld [vmem:[%s5042_s30 + $0x40c] sm:$0xf0] }
 0x1ce   : > { %v2699_v19 = vpop.f32.mrf.mxu3  ;;  %v3866_v49 = vor.u32 %v4693_v38, %v3863_v30  ;;  %v4580_v38 = vld [vmem:[%s5042_s30 + $0x3c] sm:$0xf]  ;;  %v3415_v30 = vld [vmem:[%s5042_s30 + $0x84] sm:$0xf0] }
 0x1cf   : > { %v2700_v43 = vadd.f32 %v2699_v19, %v5618_v3  ;;  %v4854_v3 = vld [vmem:[%s6042_s1 + $0x408] sm:$0xff] }
 0x1d0   : > { %v2846_v45 = vpop.f32.mrf.mxu2  ;;  %v2750_v47 = vpop.f32.mrf.mxu0  ;;  %3117 = vmatpush.bf16.msra.mxu0 %v4854_v3 }
 0x1d1   : > { %v2749_v0 = vadd.f32 %v2748_v34, %v2700_v43  ;;  %v4702_v34 = vld [vmem:[%s5042_s30 + $0x408] sm:$0xf0] }
 0x1d2   : > { %v2799_v48 = vpop.f32.mrf.mxu1 }
 0x1d3   : > { %v2798_v52 = vadd.f32 %v2797_v40, %v2749_v0 }
 0x1d5   : > { %v5822_v60 = vadd.f32 %v2846_v45, %v2798_v52  ;;  %v3858_v45 = vor.u32 %v4692_v32, %v3855_v7 }
 0x1d6   : > { %v2701_v51 = vpop.f32.mrf.mxu3 }
 0x1d7   : > { %v2702_v6 = vadd.f32 %v2701_v51, %v5630_v33  ;;  %v4711_v51 = vld [vmem:[%s5042_s30 + $0x454] sm:$0xf] }
 0x1d8   : > { %v2848_v59 = vpop.f32.mrf.mxu2  ;;  %v2753_v12 = vpop.f32.mrf.mxu0 }
 0x1d9   : > { %v2751_v18 = vadd.f32 %v2750_v47, %v2702_v6  ;;  %v3862_v47 = vor.u32 %v4702_v34, %v3861_v61  ;;  %v3931_v6 = vld [vmem:[%s5042_s30 + $0x49c] sm:$0xf0] }
 0x1da   : > { %v2802_v1 = vpop.f32.mrf.mxu1 }
 0x1db   : > { %v2800_v20 = vadd.f32 %v2799_v48, %v2751_v18  ;;  %2899 = vmatmul.bf16.gmra.mxu3 %v3782_v8  ;;  %2948 = vmatmul.bf16.gmra.mxu0 %v3786_v36  ;;  %v3870_v48 = vor.u32 %v4703_v16, %v3869_v35  ;;  %v4721_v8 = vld [vmem:[%s5042_s30 + $0x4a0] sm:$0xf0]  ;;  %v3945_v36 = vld [vmem:[%s5042_s30 + $0x460] sm:$0xf]  ;;  %v3939_v18 = vld [vmem:[%s5042_s30 + $0x4a4] sm:$0xf0] }
 0x1dd   : > { %3046 = vmatmul.bf16.gmra.mxu2 %v3794_v14  ;;  %2997 = vmatmul.bf16.gmra.mxu1 %v3790_v54  ;;  %v5832_v33 = vadd.f32 %v2848_v59, %v2800_v20  ;;  %v3937_v59 = vld [vmem:[%s5042_s30 + $0x458] sm:$0xf]  ;;  %v4722_v14 = vld [vmem:[%s5042_s30 + $0x4a8] sm:$0xf0]  ;;  %v4712_v54 = vld [vmem:[%s5042_s30 + $0x45c] sm:$0xf] }
 0x1de   : > { %v2704_v25 = vpop.f32.mrf.mxu3  ;;  %v3938_v24 = vor.u32 %v4721_v8, %v3937_v59 }
 0x1df   : > { %v2705_v26 = vadd.f32 %v2704_v25, %v5644_v42  ;;  %v4853_v42 = vld [vmem:[%s6042_s1 + $0x400] sm:$0xff] }
 0x1e0   : > { %v2851_v4 = vpop.f32.mrf.mxu2  ;;  %v2755_v28 = vpop.f32.mrf.mxu0  ;;  %3118 = vmatpush.bf16.msra.mxu0 %v4853_v42  ;;  %v3421_v42 = vld [vmem:[%s5042_s30 + $0x40] sm:$0xf] }
 0x1e1   : > { %v2754_v13 = vadd.f32 %v2753_v12, %v2705_v26  ;;  %v3946_v26 = vor.u32 %v4722_v14, %v3945_v36  ;;  %v4599_v36 = vld [vmem:[%s5042_s30 + $0xd4] sm:$0xf]  ;;  %v3491_v14 = vld [vmem:[%s5042_s30 + $0x11c] sm:$0xf0] }
 0x1e2   : > { %v2804_v29 = vpop.f32.mrf.mxu1 }
 0x1e3   : > { %v2803_v21 = vadd.f32 %v2802_v1, %v2754_v13 }
 0x1e5   : > { %v5848_v40 = vadd.f32 %v2851_v4, %v2803_v21  ;;  %v3942_v4 = vor.u32 %v4712_v54, %v3939_v18  ;;  %v3497_v54 = vld [vmem:[%s5042_s30 + $0xd8] sm:$0xf]  ;;  %v4609_v18 = vld [vmem:[%s5042_s30 + $0x120] sm:$0xf0] }
 0x1e6   : > { %v2706_v31 = vpop.f32.mrf.mxu3 }
 0x1e7   : > { %v2707_v19 = vadd.f32 %v2706_v31, %v5656_v2  ;;  %v3429_v31 = vld [vmem:[%s5042_s30 + $0x48] sm:$0xf] }
 0x1e8   : > { %v2853_v43 = vpop.f32.mrf.mxu2  ;;  %v2758_v0 = vpop.f32.mrf.mxu0 }
 0x1e9   : > { %v2756_v52 = vadd.f32 %v2755_v28, %v2707_v19 }
 0x1ea   : > { %v2807_v50 = vpop.f32.mrf.mxu1 }
 0x1eb   : > { %v2805_v56 = vadd.f32 %v2804_v29, %v2756_v52  ;;  %2904 = vmatmul.bf16.gmra.mxu3 %v3858_v45  ;;  %2953 = vmatmul.bf16.gmra.mxu0 %v3862_v47  ;;  %v4581_v45 = vld [vmem:[%s5042_s30 + $0x44] sm:$0xf]  ;;  %v3423_v47 = vld [vmem:[%s5042_s30 + $0x8c] sm:$0xf0]  ;;  %v3422_v52 = vor.u32 %v4590_v41, %v3421_v42 }
 0x1ed   : > { %3051 = vmatmul.bf16.gmra.mxu2 %v3870_v48  ;;  %3002 = vmatmul.bf16.gmra.mxu1 %v3866_v49  ;;  %v5858_v2 = vadd.f32 %v2853_v43, %v2805_v56  ;;  %v4591_v43 = vld [vmem:[%s5042_s30 + $0x90] sm:$0xf0] }
 0x1ee   : > { %v2709_v22 = vpop.f32.mrf.mxu3  ;;  %v3430_v56 = vor.u32 %v4591_v43, %v3429_v31  ;;  %v4618_v31 = vld [vmem:[%s5042_s30 + $0x16c] sm:$0xf]  ;;  %v3567_v43 = vld [vmem:[%s5042_s30 + $0x1b4] sm:$0xf0] }
 0x1ef   : > { %v2710_v57 = vadd.f32 %v2709_v22, %v5670_v23  ;;  %v3934_v23 = vor.u32 %v4711_v51, %v3931_v6  ;;  %v3426_v22 = vor.u32 %v4581_v45, %v3423_v47  ;;  %v3573_v45 = vld [vmem:[%s5042_s30 + $0x170] sm:$0xf]  ;;  %v4628_v47 = vld [vmem:[%s5042_s30 + $0x1b8] sm:$0xf0] }
 0x1f0   : > { %v2856_v37 = vpop.f32.mrf.mxu2  ;;  %v2760_v58 = vpop.f32.mrf.mxu0 }
 0x1f1   : > { %v2759_v63 = vadd.f32 %v2758_v0, %v2710_v57 }
 0x1f2   : > { %v2809_v3 = vpop.f32.mrf.mxu1 }
 0x1f3   : > { %v2808_v5 = vadd.f32 %v2807_v50, %v2759_v63 }
 0x1f5   : > { %v5866_v12 = vadd.f32 %v2856_v37, %v2808_v5 }
 0x1f6   : > { %v2711_v1 = vpop.f32.mrf.mxu3 }
 0x1f7   : > { %v2712_v20 = vadd.f32 %v2711_v1, %v5682_v39  ;;  %v3505_v1 = vld [vmem:[%s5042_s30 + $0xe0] sm:$0xf] }
 0x1f8   : > { %v2858_v17 = vpop.f32.mrf.mxu2  ;;  %v2763_v25 = vpop.f32.mrf.mxu0 }
 0x1f9   : > { %v2761_v28 = vadd.f32 %v2760_v58, %v2712_v20 }
 0x1fa   : > { %v2812_v13 = vpop.f32.mrf.mxu1 }
 0x1fb   : > { %v2810_v29 = vadd.f32 %v2809_v3, %v2761_v28  ;;  %2909 = vmatmul.bf16.gmra.mxu3 %v3934_v23  ;;  %2958 = vmatmul.bf16.gmra.mxu0 %v3938_v24  ;;  %v4600_v23 = vld [vmem:[%s5042_s30 + $0xdc] sm:$0xf]  ;;  %v3499_v24 = vld [vmem:[%s5042_s30 + $0x124] sm:$0xf0]  ;;  %v3498_v28 = vor.u32 %v4609_v18, %v3497_v54 }
 0x1fd   : > { %3056 = vmatmul.bf16.gmra.mxu2 %v3946_v26  ;;  %3007 = vmatmul.bf16.gmra.mxu1 %v3942_v4  ;;  %v5872_v39 = vadd.f32 %v2858_v17, %v2810_v29  ;;  %v4610_v17 = vld [vmem:[%s5042_s30 + $0x128] sm:$0xf0] }
 0x1fe   : > { %v2714_v32 = vpop.f32.mrf.mxu3  ;;  %v3506_v29 = vor.u32 %v4610_v17, %v3505_v1  ;;  %v4637_v1 = vld [vmem:[%s5042_s30 + $0x204] sm:$0xf]  ;;  %v3643_v17 = vld [vmem:[%s5042_s30 + $0x24c] sm:$0xf0] }
 0x1ff   : > { %v2715_v21 = vadd.f32 %v2714_v32, %v5695_v55  ;;  %v3418_v55 = vor.u32 %v4580_v38, %v3415_v30  ;;  %v3502_v32 = vor.u32 %v4600_v23, %v3499_v24  ;;  %v3649_v23 = vld [vmem:[%s5042_s30 + $0x208] sm:$0xf]  ;;  %v4647_v24 = vld [vmem:[%s5042_s30 + $0x250] sm:$0xf0] }
 0x200   : > { %v2861_v7 = vpop.f32.mrf.mxu2  ;;  %v2765_v61 = vpop.f32.mrf.mxu0 }
 0x201   : > { %v2764_v34 = vadd.f32 %v2763_v25, %v2715_v21 }
 0x202   : > { %v2814_v35 = vpop.f32.mrf.mxu1 }
 0x203   : > { %v2813_v16 = vadd.f32 %v2812_v13, %v2764_v34 }
 0x205   : > { %v5880_v19 = vadd.f32 %v2861_v7, %v2813_v16 }
 0x206   : > { %v2716_v0 = vpop.f32.mrf.mxu3 }
 0x207   : > { %v2717_v48 = vadd.f32 %v2716_v0, %v5705_v15  ;;  %v3581_v0 = vld [vmem:[%s5042_s30 + $0x178] sm:$0xf] }
 0x208   : > { %v2863_v49 = vpop.f32.mrf.mxu2  ;;  %v2924_v50 = vpop.f32.mrf.mxu0 }
 0x209   : > { %v2766_v57 = vadd.f32 %v2765_v61, %v2717_v48 }
 0x20a   : > { %v2973_v37 = vpop.f32.mrf.mxu1 }
 0x20b   : > { %v2815_v58 = vadd.f32 %v2814_v35, %v2766_v57  ;;  %3070 = vmatmul.bf16.vlgmr.msra.gmra.mxu3 %v3418_v55  ;;  %3119 = vmatmul.bf16.vlgmr.msra.gmra.mxu0 %v3422_v52  ;;  %v4619_v55 = vld [vmem:[%s5042_s30 + $0x174] sm:$0xf]  ;;  %v3575_v52 = vld [vmem:[%s5042_s30 + $0x1bc] sm:$0xf0]  ;;  %v3574_v57 = vor.u32 %v4628_v47, %v3573_v45 }
 0x20d   : > { %4563 = vmatmul.msk.bf16.vlgmr.msra.gmra.mxu2 %vm2302_vm0, %v3430_v56  ;;  %3168 = vmatmul.bf16.vlgmr.msra.gmra.mxu1 %v3426_v22  ;;  %v5887_v15 = vadd.f32 %v2863_v49, %v2815_v58  ;;  %v4629_v49 = vld [vmem:[%s5042_s30 + $0x1c0] sm:$0xf0] }
 0x20e   : > { %v2875_v63 = vpop.f32.mrf.mxu3  ;;  %v3582_v58 = vor.u32 %v4629_v49, %v3581_v0  ;;  %v4656_v0 = vld [vmem:[%s5042_s30 + $0x29c] sm:$0xf]  ;;  %v3719_v49 = vld [vmem:[%s5042_s30 + $0x2e4] sm:$0xf0] }
 0x20f   : > { %v2876_v3 = vadd.f32 %v2875_v63, %v5721_v10  ;;  %v3494_v10 = vor.u32 %v4599_v36, %v3491_v14  ;;  %v3578_v63 = vor.u32 %v4619_v55, %v3575_v52  ;;  %v3725_v55 = vld [vmem:[%s5042_s30 + $0x2a0] sm:$0xf]  ;;  %v4666_v52 = vld [vmem:[%s5042_s30 + $0x2e8] sm:$0xf0] }
 0x210   : > { %v3022_v5 = vpop.f32.mrf.mxu2  ;;  %v2926_v51 = vpop.f32.mrf.mxu0 }
 0x211   : > { %v2925_v6 = vadd.f32 %v2924_v50, %v2876_v3 }
 0x212   : > { %v2975_v59 = vpop.f32.mrf.mxu1 }
 0x213   : > { %v2974_v8 = vadd.f32 %v2973_v37, %v2925_v6 }
 0x215   : > { %v5895_v20 = vadd.f32 %v3022_v5, %v2974_v8 }
 0x216   : > { %v2877_v25 = vpop.f32.mrf.mxu3 }
 0x217   : > { %v2878_v26 = vadd.f32 %v2877_v25, %v5731_v11  ;;  %v3657_v25 = vld [vmem:[%s5042_s30 + $0x210] sm:$0xf] }
 0x218   : > { %v3024_v4 = vpop.f32.mrf.mxu2  ;;  %v2929_v13 = vpop.f32.mrf.mxu0 }
 0x219   : > { %v2927_v21 = vadd.f32 %v2926_v51, %v2878_v26 }
 0x21a   : > { %v2978_v7 = vpop.f32.mrf.mxu1 }
 0x21b   : > { %v2976_v61 = vadd.f32 %v2975_v59, %v2927_v21  ;;  %3075 = vmatmul.bf16.gmra.mxu3 %v3494_v10  ;;  %3124 = vmatmul.bf16.gmra.mxu0 %v3498_v28  ;;  %v4638_v10 = vld [vmem:[%s5042_s30 + $0x20c] sm:$0xf]  ;;  %v3651_v28 = vld [vmem:[%s5042_s30 + $0x254] sm:$0xf0]  ;;  %v3650_v21 = vor.u32 %v4647_v24, %v3649_v23 }
 0x21d   : > { %4564 = vmatmul.msk.bf16.gmra.mxu2 %vm2302_vm0, %v3506_v29  ;;  %3173 = vmatmul.bf16.gmra.mxu1 %v3502_v32  ;;  %v5902_v11 = vadd.f32 %v3024_v4, %v2976_v61  ;;  %v4648_v4 = vld [vmem:[%s5042_s30 + $0x258] sm:$0xf0] }
 0x21e   : > { %v2880_v34 = vpop.f32.mrf.mxu3  ;;  %v3658_v61 = vor.u32 %v4648_v4, %v3657_v25  ;;  %v4675_v25 = vld [vmem:[%s5042_s30 + $0x334] sm:$0xf]  ;;  %v3795_v4 = vld [vmem:[%s5042_s30 + $0x37c] sm:$0xf0] }
 0x21f   : > { %v2881_v35 = vadd.f32 %v2880_v34, %v5747_v9  ;;  %v3570_v9 = vor.u32 %v4618_v31, %v3567_v43  ;;  %v3654_v34 = vor.u32 %v4638_v10, %v3651_v28  ;;  %v3801_v10 = vld [vmem:[%s5042_s30 + $0x338] sm:$0xf]  ;;  %v4685_v28 = vld [vmem:[%s5042_s30 + $0x380] sm:$0xf0] }
 0x220   : > { %v3027_v16 = vpop.f32.mrf.mxu2  ;;  %v2931_v38 = vpop.f32.mrf.mxu0 }
 0x221   : > { %v2930_v30 = vadd.f32 %v2929_v13, %v2881_v35 }
 0x222   : > { %v2980_v42 = vpop.f32.mrf.mxu1 }
 0x223   : > { %v2979_v41 = vadd.f32 %v2978_v7, %v2930_v30 }
 0x225   : > { %v5910_v48 = vadd.f32 %v3027_v16, %v2979_v41 }
 0x226   : > { %v2882_v50 = vpop.f32.mrf.mxu3 }
 0x227   : > { %v2883_v56 = vadd.f32 %v2882_v50, %v5757_v44  ;;  %v3733_v50 = vld [vmem:[%s5042_s30 + $0x2a8] sm:$0xf] }
 0x228   : > { %v3029_v22 = vpop.f32.mrf.mxu2  ;;  %v2934_v37 = vpop.f32.mrf.mxu0 }
 0x229   : > { %v2932_v3 = vadd.f32 %v2931_v38, %v2883_v56 }
 0x22a   : > { %v2983_v5 = vpop.f32.mrf.mxu1 }
 0x22b   : > { %v2981_v51 = vadd.f32 %v2980_v42, %v2932_v3  ;;  %3080 = vmatmul.bf16.gmra.mxu3 %v3570_v9  ;;  %3129 = vmatmul.bf16.gmra.mxu0 %v3574_v57  ;;  %v4657_v9 = vld [vmem:[%s5042_s30 + $0x2a4] sm:$0xf]  ;;  %v3727_v57 = vld [vmem:[%s5042_s30 + $0x2ec] sm:$0xf0]  ;;  %v3726_v3 = vor.u32 %v4666_v52, %v3725_v55 }
 0x22d   : > { %4565 = vmatmul.msk.bf16.gmra.mxu2 %vm2302_vm0, %v3582_v58  ;;  %3178 = vmatmul.bf16.gmra.mxu1 %v3578_v63  ;;  %v5917_v44 = vadd.f32 %v3029_v22, %v2981_v51  ;;  %v4667_v22 = vld [vmem:[%s5042_s30 + $0x2f0] sm:$0xf0] }
 0x22e   : > { %v2885_v6 = vpop.f32.mrf.mxu3  ;;  %v3734_v51 = vor.u32 %v4667_v22, %v3733_v50  ;;  %v4694_v50 = vld [vmem:[%s5042_s30 + $0x3cc] sm:$0xf]  ;;  %v3871_v22 = vld [vmem:[%s5042_s30 + $0x414] sm:$0xf0] }
 0x22f   : > { %v2886_v59 = vadd.f32 %v2885_v6, %v5771_v46  ;;  %v3646_v46 = vor.u32 %v4637_v1, %v3643_v17  ;;  %v3730_v6 = vor.u32 %v4657_v9, %v3727_v57  ;;  %v3877_v9 = vld [vmem:[%s5042_s30 + $0x3d0] sm:$0xf]  ;;  %v4704_v57 = vld [vmem:[%s5042_s30 + $0x418] sm:$0xf0] }
 0x230   : > { %v3032_v8 = vpop.f32.mrf.mxu2  ;;  %v2936_v36 = vpop.f32.mrf.mxu0 }
 0x231   : > { %v2935_v14 = vadd.f32 %v2934_v37, %v2886_v59 }
 0x232   : > { %v2985_v54 = vpop.f32.mrf.mxu1 }
 0x233   : > { %v2984_v18 = vadd.f32 %v2983_v5, %v2935_v14 }
 0x235   : > { %v5925_v26 = vadd.f32 %v3032_v8, %v2984_v18 }
 0x236   : > { %v2887_v13 = vpop.f32.mrf.mxu3 }
 0x237   : > { %v2888_v29 = vadd.f32 %v2887_v13, %v5783_v27  ;;  %v3809_v13 = vld [vmem:[%s5042_s30 + $0x340] sm:$0xf] }
 0x238   : > { %v3034_v32 = vpop.f32.mrf.mxu2  ;;  %v2939_v7 = vpop.f32.mrf.mxu0 }
 0x239   : > { %v2937_v35 = vadd.f32 %v2936_v36, %v2888_v29 }
 0x23a   : > { %v2988_v16 = vpop.f32.mrf.mxu1 }
 0x23b   : > { %v2986_v38 = vadd.f32 %v2985_v54, %v2937_v35  ;;  %3085 = vmatmul.bf16.gmra.mxu3 %v3646_v46  ;;  %3134 = vmatmul.bf16.gmra.mxu0 %v3650_v21  ;;  %v4676_v46 = vld [vmem:[%s5042_s30 + $0x33c] sm:$0xf]  ;;  %v3803_v21 = vld [vmem:[%s5042_s30 + $0x384] sm:$0xf0]  ;;  %v3802_v35 = vor.u32 %v4685_v28, %v3801_v10 }
 0x23d   : > { %4566 = vmatmul.msk.bf16.gmra.mxu2 %vm2302_vm0, %v3658_v61  ;;  %3183 = vmatmul.bf16.gmra.mxu1 %v3654_v34  ;;  %v5932_v27 = vadd.f32 %v3034_v32, %v2986_v38  ;;  %v4686_v32 = vld [vmem:[%s5042_s30 + $0x388] sm:$0xf0] }
 0x23e   : > { %v2890_v30 = vpop.f32.mrf.mxu3  ;;  %v3810_v38 = vor.u32 %v4686_v32, %v3809_v13  ;;  %v4713_v13 = vld [vmem:[%s5042_s30 + $0x464] sm:$0xf]  ;;  %v3947_v32 = vld [vmem:[%s5042_s30 + $0x4ac] sm:$0xf0] }
 0x23f   : > { %v2891_v42 = vadd.f32 %v2890_v30, %v5796_v62  ;;  %v3722_v62 = vor.u32 %v4656_v0, %v3719_v49  ;;  %v3806_v30 = vor.u32 %v4676_v46, %v3803_v21  ;;  %v3953_v46 = vld [vmem:[%s5042_s30 + $0x468] sm:$0xf]  ;;  %v4723_v21 = vld [vmem:[%s5042_s30 + $0x4b0] sm:$0xf0] }
 0x240   : > { %v3037_v41 = vpop.f32.mrf.mxu2  ;;  %v2941_v31 = vpop.f32.mrf.mxu0 }
 0x241   : > { %v2940_v43 = vadd.f32 %v2939_v7, %v2891_v42 }
 0x242   : > { %v2990_v45 = vpop.f32.mrf.mxu1 }
 0x243   : > { %v2989_v47 = vadd.f32 %v2988_v16, %v2940_v43 }
 0x245   : > { %v5940_v56 = vadd.f32 %v3037_v41, %v2989_v47 }
 0x246   : > { %v2892_v37 = vpop.f32.mrf.mxu3 }
 0x247   : > { %v2893_v58 = vadd.f32 %v2892_v37, %v5806_v53  ;;  %v3885_v37 = vld [vmem:[%s5042_s30 + $0x3d8] sm:$0xf] }
 0x248   : > { %v3039_v63 = vpop.f32.mrf.mxu2  ;;  %v2944_v5 = vpop.f32.mrf.mxu0 }
 0x249   : > { %v2942_v59 = vadd.f32 %v2941_v31, %v2893_v58 }
 0x24a   : > { %v2993_v8 = vpop.f32.mrf.mxu1 }
 0x24b   : > { %v2991_v36 = vadd.f32 %v2990_v45, %v2942_v59  ;;  %3090 = vmatmul.bf16.gmra.mxu3 %v3722_v62  ;;  %3139 = vmatmul.bf16.gmra.mxu0 %v3726_v3  ;;  %v4695_v62 = vld [vmem:[%s5042_s30 + $0x3d4] sm:$0xf]  ;;  %v3879_v3 = vld [vmem:[%s5042_s30 + $0x41c] sm:$0xf0]  ;;  %v3878_v59 = vor.u32 %v4704_v57, %v3877_v9 }
 0x24d   : > { %4567 = vmatmul.msk.bf16.gmra.mxu2 %vm2302_vm0, %v3734_v51  ;;  %3188 = vmatmul.bf16.gmra.mxu1 %v3730_v6  ;;  %v5947_v53 = vadd.f32 %v3039_v63, %v2991_v36  ;;  %v4705_v63 = vld [vmem:[%s5042_s30 + $0x420] sm:$0xf0] }
 0x24e   : > { %v2895_v14 = vpop.f32.mrf.mxu3  ;;  %v3886_v36 = vor.u32 %v4705_v63, %v3885_v37 }
 0x24f   : > { %v2896_v54 = vadd.f32 %v2895_v14, %v5822_v60  ;;  %v3798_v60 = vor.u32 %v4675_v25, %v3795_v4  ;;  %v3882_v14 = vor.u32 %v4695_v62, %v3879_v3 }
 0x250   : > { %v3042_v18 = vpop.f32.mrf.mxu2  ;;  %v2946_v1 = vpop.f32.mrf.mxu0 }
 0x251   : > { %v2945_v17 = vadd.f32 %v2944_v5, %v2896_v54 }
 0x252   : > { %v2995_v23 = vpop.f32.mrf.mxu1 }
 0x253   : > { %v2994_v24 = vadd.f32 %v2993_v8, %v2945_v17 }
 0x255   : > { %v5955_v29 = vadd.f32 %v3042_v18, %v2994_v24 }
 0x256   : > { %v2897_v7 = vpop.f32.mrf.mxu3 }
 0x257   : > { %v2898_v61 = vadd.f32 %v2897_v7, %v5832_v33  ;;  %v3961_v7 = vld [vmem:[%s5042_s30 + $0x470] sm:$0xf] }
 0x258   : > { %v3044_v34 = vpop.f32.mrf.mxu2  ;;  %v2949_v16 = vpop.f32.mrf.mxu0 }
 0x259   : > { %v2947_v42 = vadd.f32 %v2946_v1, %v2898_v61 }
 0x25a   : > { %v2998_v41 = vpop.f32.mrf.mxu1 }
 0x25b   : > { %v2996_v31 = vadd.f32 %v2995_v23, %v2947_v42  ;;  %3095 = vmatmul.bf16.gmra.mxu3 %v3798_v60  ;;  %3144 = vmatmul.bf16.gmra.mxu0 %v3802_v35  ;;  %v4714_v60 = vld [vmem:[%s5042_s30 + $0x46c] sm:$0xf]  ;;  %v3955_v35 = vld [vmem:[%s5042_s30 + $0x4b4] sm:$0xf0]  ;;  %v3954_v42 = vor.u32 %v4723_v21, %v3953_v46 }
 0x25d   : > { %4568 = vmatmul.msk.bf16.gmra.mxu2 %vm2302_vm0, %v3810_v38  ;;  %3193 = vmatmul.bf16.gmra.mxu1 %v3806_v30  ;;  %v5962_v33 = vadd.f32 %v3044_v34, %v2996_v31  ;;  %v4724_v34 = vld [vmem:[%s5042_s30 + $0x4b8] sm:$0xf0]  ;;  %s3354_s30 = sshll.u32 %s6046_s5, 3 }
 0x25e   : > { %v2900_v43 = vpop.f32.mrf.mxu3  ;;  %v3962_v31 = vor.u32 %v4724_v34, %v3961_v7  ;;  %s6005_s7 = scalar_lea.vmem %s6044_s3, %s3354_s30 }
 0x25f   : > { %v2901_v45 = vadd.f32 %v2900_v43, %v5848_v40  ;;  %v3874_v40 = vor.u32 %v4694_v50, %v3871_v22  ;;  %v3958_v43 = vor.u32 %v4714_v60, %v3955_v35 }
 0x260   : > { %v3047_v47 = vpop.f32.mrf.mxu2  ;;  %v2951_v0 = vpop.f32.mrf.mxu0 }
 0x261   : > { %v2950_v49 = vadd.f32 %v2949_v16, %v2901_v45 }
 0x262   : > { %v3000_v55 = vpop.f32.mrf.mxu1 }
 0x263   : > { %v2999_v52 = vadd.f32 %v2998_v41, %v2950_v49 }
 0x265   : > { %v5970_v58 = vadd.f32 %v3047_v47, %v2999_v52 }
 0x266   : > { %v2902_v5 = vpop.f32.mrf.mxu3 }
 0x267   : > { %v2903_v51 = vadd.f32 %v2902_v5, %v5858_v2 }
 0x268   : > { %v3049_v6 = vpop.f32.mrf.mxu2  ;;  %v2954_v8 = vpop.f32.mrf.mxu0 }
 0x269   : > { %v2952_v54 = vadd.f32 %v2951_v0, %v2903_v51 }
 0x26a   : > { %v3003_v18 = vpop.f32.mrf.mxu1 }
 0x26b   : > { %v3001_v1 = vadd.f32 %v3000_v55, %v2952_v54  ;;  %3100 = vmatmul.bf16.gmra.mxu3 %v3874_v40  ;;  %3149 = vmatmul.bf16.gmra.mxu0 %v3878_v59 }
 0x26d   : > { %4569 = vmatmul.msk.bf16.gmra.mxu2 %vm2302_vm0, %v3886_v36  ;;  %3198 = vmatmul.bf16.gmra.mxu1 %v3882_v14  ;;  %v5977_v2 = vadd.f32 %v3049_v6, %v3001_v1 }
 0x26e   : > { %v2905_v17 = vpop.f32.mrf.mxu3 }
 0x26f   : > { %v2906_v23 = vadd.f32 %v2905_v17, %v5866_v12  ;;  %v3950_v12 = vor.u32 %v4713_v13, %v3947_v32 }
 0x270   : > { %v3052_v24 = vpop.f32.mrf.mxu2  ;;  %v2956_v25 = vpop.f32.mrf.mxu0 }
 0x271   : > { %v2955_v4 = vadd.f32 %v2954_v8, %v2906_v23 }
 0x272   : > { %v3005_v10 = vpop.f32.mrf.mxu1 }
 0x273   : > { %v3004_v28 = vadd.f32 %v3003_v18, %v2955_v4 }
 0x275   : > { %v5985_v61 = vadd.f32 %v3052_v24, %v3004_v28 }
 0x276   : > { %v2907_v16 = vpop.f32.mrf.mxu3 }
 0x277   : > { %v2908_v38 = vadd.f32 %v2907_v16, %v5872_v39 }
 0x278   : > { %v3054_v30 = vpop.f32.mrf.mxu2  ;;  %v2959_v41 = vpop.f32.mrf.mxu0 }
 0x279   : > { %v2957_v45 = vadd.f32 %v2956_v25, %v2908_v38 }
 0x27a   : > { %v3008_v47 = vpop.f32.mrf.mxu1 }
 0x27b   : > { %v3006_v0 = vadd.f32 %v3005_v10, %v2957_v45  ;;  %3105 = vmatmul.bf16.gmra.mxu3 %v3950_v12  ;;  %3154 = vmatmul.bf16.gmra.mxu0 %v3954_v42 }
 0x27d   : > { %4570 = vmatmul.msk.bf16.gmra.mxu2 %vm2302_vm0, %v3962_v31  ;;  %3203 = vmatmul.bf16.gmra.mxu1 %v3958_v43  ;;  %v5992_v49 = vadd.f32 %v3054_v30, %v3006_v0 }
 0x27e   : > { %v2910_v55 = vpop.f32.mrf.mxu3 }
 0x27f   : > { %v2911_v52 = vadd.f32 %v2910_v55, %v5880_v19 }
 0x280   : > { %v3057_v39 = vpop.f32.mrf.mxu2  ;;  %v2961_v50 = vpop.f32.mrf.mxu0 }
 0x281   : > { %v2960_v22 = vadd.f32 %v2959_v41, %v2911_v52 }
 0x282   : > { %v3010_v9 = vpop.f32.mrf.mxu1 }
 0x283   : > { %v3009_v57 = vadd.f32 %v3008_v47, %v2960_v22 }
 0x285   : > { %v5995_v37 = vadd.f32 %v3057_v39, %v3009_v57 }
 0x286   : > { %v2912_v63 = vpop.f32.mrf.mxu3 }
 0x287   : > { %v2913_v62 = vadd.f32 %v2912_v63, %v5887_v15 }
 0x288   : > { %v3059_v3 = vpop.f32.mrf.mxu2  ;;  %v3120_v5 = vpop.f32.mrf.mxu0 }
 0x289   : > { %v2962_v51 = vadd.f32 %v2961_v50, %v2913_v62 }
 0x28a   : > { %v3169_v6 = vpop.f32.mrf.mxu1 }
 0x28b   : > { %v3011_v40 = vadd.f32 %v3010_v9, %v2962_v51 }
 0x28d   : > { %v5998_v59 = vadd.f32 %v3059_v3, %v3011_v40 }
 0x28e   : > { %v3071_v8 = vpop.f32.mrf.mxu3 }
 0x28f   : > { %v3072_v19 = vadd.f32 %v3071_v8, %v5895_v20 }
 0x290   : > { %v3218_v36 = vpop.f32.mrf.mxu2  ;;  %v3122_v14 = vpop.f32.mrf.mxu0 }
 0x291   : > { %v3121_v54 = vadd.f32 %v3120_v5, %v3072_v19 }
 0x292   : > { %v3171_v18 = vpop.f32.mrf.mxu1 }
 0x293   : > { %v3170_v1 = vadd.f32 %v3169_v6, %v3121_v54 }
 0x295   : > { %v3219_v17 = vadd.f32 %v3218_v36, %v3170_v1 }
 0x296   : > { %v3073_v15 = vpop.f32.mrf.mxu3 }
 0x297   : > { %v3258_v23 = vmax.f32 %v3219_v17, 0.0  ;;  %v3074_v24 = vadd.f32 %v3073_v15, %v5902_v11 }
 0x298   : > { %v3220_v25 = vpop.f32.mrf.mxu2  ;;  %v3125_v20 = vpop.f32.mrf.mxu0 }
 0x299   : > { %3274 = vst [vmem:[%s6005_s7] sm:$0xff] %v3258_v23  ;;  %v3123_v4 = vadd.f32 %v3122_v14, %v3074_v24 }
 0x29a   : > { %v3174_v10 = vpop.f32.mrf.mxu1 }
 0x29b   : > { %v3172_v28 = vadd.f32 %v3171_v18, %v3123_v4 }
 0x29d   : > { %v3221_v13 = vadd.f32 %v3220_v25, %v3172_v28 }
 0x29e   : > { %v3076_v32 = vpop.f32.mrf.mxu3 }
 0x29f   : > { %v3259_v46 = vmax.f32 %v3221_v13, 0.0  ;;  %v3077_v21 = vadd.f32 %v3076_v32, %v5910_v48 }
 0x2a0   : > { %v3223_v7 = vpop.f32.mrf.mxu2  ;;  %v3127_v34 = vpop.f32.mrf.mxu0 }
 0x2a1   : > { %3275 = vst [vmem:[%s6005_s7 + $0x8] sm:$0xff] %v3259_v46  ;;  %v3126_v60 = vadd.f32 %v3125_v20, %v3077_v21 }
 0x2a2   : > { %v3176_v35 = vpop.f32.mrf.mxu1 }
 0x2a3   : > { %v3175_v16 = vadd.f32 %v3174_v10, %v3126_v60 }
 0x2a5   : > { %v3224_v38 = vadd.f32 %v3223_v7, %v3175_v16 }
 0x2a6   : > { %v3078_v11 = vpop.f32.mrf.mxu3 }
 0x2a7   : > { %v3260_v30 = vmax.f32 %v3224_v38, 0.0  ;;  %v3079_v12 = vadd.f32 %v3078_v11, %v5917_v44 }
 0x2a8   : > { %v3225_v42 = vpop.f32.mrf.mxu2  ;;  %v3130_v41 = vpop.f32.mrf.mxu0 }
 0x2a9   : > { %3276 = vst [vmem:[%s6005_s7 + $0x10] sm:$0xff] %v3260_v30  ;;  %v3128_v31 = vadd.f32 %v3127_v34, %v3079_v12 }
 0x2aa   : > { %v3179_v43 = vpop.f32.mrf.mxu1 }
 0x2ab   : > { %v3177_v45 = vadd.f32 %v3176_v35, %v3128_v31 }
 0x2ad   : > { %v3226_v47 = vadd.f32 %v3225_v42, %v3177_v45 }
 0x2ae   : > { %v3081_v48 = vpop.f32.mrf.mxu3 }
 0x2af   : > { %v3261_v0 = vmax.f32 %v3226_v47, 0.0  ;;  %v3082_v55 = vadd.f32 %v3081_v48, %v5925_v26 }
 0x2b0   : > { %v3228_v52 = vpop.f32.mrf.mxu2  ;;  %v3132_v39 = vpop.f32.mrf.mxu0 }
 0x2b1   : > { %3277 = vst [vmem:[%s6005_s7 + $0x18] sm:$0xff] %v3261_v0  ;;  %v3131_v50 = vadd.f32 %v3130_v41, %v3082_v55 }
 0x2b2   : > { %v3181_v22 = vpop.f32.mrf.mxu1 }
 0x2b3   : > { %v3180_v9 = vadd.f32 %v3179_v43, %v3131_v50 }
 0x2b5   : > { %v3229_v57 = vadd.f32 %v3228_v52, %v3180_v9 }
 0x2b6   : > { %v3083_v44 = vpop.f32.mrf.mxu3 }
 0x2b7   : > { %v3262_v63 = vmax.f32 %v3229_v57, 0.0  ;;  %v3084_v62 = vadd.f32 %v3083_v44, %v5932_v27 }
 0x2b8   : > { %v3230_v3 = vpop.f32.mrf.mxu2  ;;  %v3135_v5 = vpop.f32.mrf.mxu0 }
 0x2b9   : > { %3278 = vst [vmem:[%s6005_s7 + $0x20] sm:$0xff] %v3262_v63  ;;  %v3133_v51 = vadd.f32 %v3132_v39, %v3084_v62 }
 0x2ba   : > { %v3184_v6 = vpop.f32.mrf.mxu1 }
 0x2bb   : > { %v3182_v40 = vadd.f32 %v3181_v22, %v3133_v51 }
 0x2bd   : > { %v3231_v8 = vadd.f32 %v3230_v3, %v3182_v40 }
 0x2be   : > { %v3086_v26 = vpop.f32.mrf.mxu3 }
 0x2bf   : > { %v3263_v19 = vmax.f32 %v3231_v8, 0.0  ;;  %v3087_v36 = vadd.f32 %v3086_v26, %v5940_v56 }
 0x2c0   : > { %v3233_v14 = vpop.f32.mrf.mxu2  ;;  %v3137_v54 = vpop.f32.mrf.mxu0 }
 0x2c1   : > { %3279 = vst [vmem:[%s6005_s7 + $0x28] sm:$0xff] %v3263_v19  ;;  %v3136_v18 = vadd.f32 %v3135_v5, %v3087_v36 }
 0x2c2   : > { %v3186_v1 = vpop.f32.mrf.mxu1 }
 0x2c3   : > { %v3185_v17 = vadd.f32 %v3184_v6, %v3136_v18 }
 0x2c5   : > { %v3234_v15 = vadd.f32 %v3233_v14, %v3185_v17 }
 0x2c6   : > { %v3088_v27 = vpop.f32.mrf.mxu3 }
 0x2c7   : > { %v3264_v23 = vmax.f32 %v3234_v15, 0.0  ;;  %v3089_v24 = vadd.f32 %v3088_v27, %v5947_v53 }
 0x2c8   : > { %v3235_v25 = vpop.f32.mrf.mxu2  ;;  %v3140_v20 = vpop.f32.mrf.mxu0 }
 0x2c9   : > { %3280 = vst [vmem:[%s6005_s7 + $0x30] sm:$0xff] %v3264_v23  ;;  %v3138_v4 = vadd.f32 %v3137_v54, %v3089_v24 }
 0x2ca   : > { %v3189_v10 = vpop.f32.mrf.mxu1 }
 0x2cb   : > { %v3187_v28 = vadd.f32 %v3186_v1, %v3138_v4 }
 0x2cd   : > { %v3236_v13 = vadd.f32 %v3235_v25, %v3187_v28 }
 0x2ce   : > { %v3091_v56 = vpop.f32.mrf.mxu3 }
 0x2cf   : > { %v3265_v32 = vmax.f32 %v3236_v13, 0.0  ;;  %v3092_v46 = vadd.f32 %v3091_v56, %v5955_v29 }
 0x2d0   : > { %v3238_v21 = vpop.f32.mrf.mxu2  ;;  %v3142_v7 = vpop.f32.mrf.mxu0 }
 0x2d1   : > { %3281 = vst [vmem:[%s6005_s7 + $0x38] sm:$0xff] %v3265_v32  ;;  %v3141_v34 = vadd.f32 %v3140_v20, %v3092_v46 }
 0x2d2   : > { %v3191_v60 = vpop.f32.mrf.mxu1 }
 0x2d3   : > { %v3190_v35 = vadd.f32 %v3189_v10, %v3141_v34 }
 0x2d5   : > { %v3239_v16 = vadd.f32 %v3238_v21, %v3190_v35 }
 0x2d6   : > { %v3093_v53 = vpop.f32.mrf.mxu3 }
 0x2d7   : > { %v3266_v38 = vmax.f32 %v3239_v16, 0.0  ;;  %v3094_v11 = vadd.f32 %v3093_v53, %v5962_v33 }
 0x2d8   : > { %v3240_v30 = vpop.f32.mrf.mxu2  ;;  %v3145_v12 = vpop.f32.mrf.mxu0 }
 0x2d9   : > { %3282 = vst [vmem:[%s6005_s7 + $0x40] sm:$0xff] %v3266_v38  ;;  %v3143_v42 = vadd.f32 %v3142_v7, %v3094_v11 }
 0x2da   : > { %v3194_v41 = vpop.f32.mrf.mxu1 }
 0x2db   : > { %v3192_v31 = vadd.f32 %v3191_v60, %v3143_v42 }
 0x2dd   : > { %v3241_v29 = vadd.f32 %v3240_v30, %v3192_v31 }
 0x2de   : > { %v3096_v43 = vpop.f32.mrf.mxu3 }
 0x2df   : > { %v3267_v45 = vmax.f32 %v3241_v29, 0.0  ;;  %v3097_v47 = vadd.f32 %v3096_v43, %v5970_v58 }
 0x2e0   : > { %v3243_v48 = vpop.f32.mrf.mxu2  ;;  %v3147_v0 = vpop.f32.mrf.mxu0 }
 0x2e1   : > { %3283 = vst [vmem:[%s6005_s7 + $0x48] sm:$0xff] %v3267_v45  ;;  %v3146_v55 = vadd.f32 %v3145_v12, %v3097_v47 }
 0x2e2   : > { %v3196_v52 = vpop.f32.mrf.mxu1 }
 0x2e3   : > { %v3195_v39 = vadd.f32 %v3194_v41, %v3146_v55 }
 0x2e5   : > { %v3244_v33 = vadd.f32 %v3243_v48, %v3195_v39 }
 0x2e6   : > { %v3098_v50 = vpop.f32.mrf.mxu3 }
 0x2e7   : > { %v3268_v22 = vmax.f32 %v3244_v33, 0.0  ;;  %v3099_v9 = vadd.f32 %v3098_v50, %v5977_v2 }
 0x2e8   : > { %v3245_v57 = vpop.f32.mrf.mxu2  ;;  %v3150_v63 = vpop.f32.mrf.mxu0 }
 0x2e9   : > { %3284 = vst [vmem:[%s6005_s7 + $0x50] sm:$0xff] %v3268_v22  ;;  %v3148_v44 = vadd.f32 %v3147_v0, %v3099_v9 }
 0x2ea   : > { %v3199_v3 = vpop.f32.mrf.mxu1 }
 0x2eb   : > { %v3197_v62 = vadd.f32 %v3196_v52, %v3148_v44 }
 0x2ed   : > { %v3246_v58 = vadd.f32 %v3245_v57, %v3197_v62 }
 0x2ee   : > { %v3101_v5 = vpop.f32.mrf.mxu3 }
 0x2ef   : > { %v3269_v51 = vmax.f32 %v3246_v58, 0.0  ;;  %v3102_v6 = vadd.f32 %v3101_v5, %v5985_v61 }
 0x2f0   : > { %v3248_v40 = vpop.f32.mrf.mxu2  ;;  %v3152_v19 = vpop.f32.mrf.mxu0 }
 0x2f1   : > { %3285 = vst [vmem:[%s6005_s7 + $0x58] sm:$0xff] %v3269_v51  ;;  %v3151_v8 = vadd.f32 %v3150_v63, %v3102_v6 }
 0x2f2   : > { %v3201_v2 = vpop.f32.mrf.mxu1 }
 0x2f3   : > { %v3200_v26 = vadd.f32 %v3199_v3, %v3151_v8 }
 0x2f5   : > { %v3249_v36 = vadd.f32 %v3248_v40, %v3200_v26 }
 0x2f6   : > { %v3103_v14 = vpop.f32.mrf.mxu3 }
 0x2f7   : > { %v3270_v54 = vmax.f32 %v3249_v36, 0.0  ;;  %v3104_v18 = vadd.f32 %v3103_v14, %v5992_v49 }
 0x2f8   : > { %v3250_v1 = vpop.f32.mrf.mxu2  ;;  %v3155_v23 = vpop.f32.mrf.mxu0 }
 0x2f9   : > { %3286 = vst [vmem:[%s6005_s7 + $0x60] sm:$0xff] %v3270_v54  ;;  %v3153_v17 = vadd.f32 %v3152_v19, %v3104_v18 }
 0x2fa   : > { %v3204_v20 = vpop.f32.mrf.mxu1 }
 0x2fb   : > { %v3202_v15 = vadd.f32 %v3201_v2, %v3153_v17 }
 0x2fd   : > { %v3251_v27 = vadd.f32 %v3250_v1, %v3202_v15 }
 0x2fe   : > { %v3106_v61 = vpop.f32.mrf.mxu3 }
 0x2ff   : > { %v3271_v24 = vmax.f32 %v3251_v27, 0.0  ;;  %v3107_v25 = vadd.f32 %v3106_v61, %v5995_v37 }
 0x300   : > { %v3253_v10 = vpop.f32.mrf.mxu2  ;;  %v3157_v46 = vpop.f32.mrf.mxu0 }
 0x301   : > { %3287 = vst [vmem:[%s6005_s7 + $0x68] sm:$0xff] %v3271_v24  ;;  %v3156_v4 = vadd.f32 %v3155_v23, %v3107_v25 }
 0x302   : > { %v3206_v7 = vpop.f32.mrf.mxu1 }
 0x303   : > { %v3205_v28 = vadd.f32 %v3204_v20, %v3156_v4 }
 0x305   : > { %v3254_v13 = vadd.f32 %v3253_v10, %v3205_v28 }
 0x306   : > { %v3108_v56 = vpop.f32.mrf.mxu3 }
 0x307   : > { %v3272_v49 = vmax.f32 %v3254_v13, 0.0  ;;  %v3109_v32 = vadd.f32 %v3108_v56, %v5998_v59 }
 0x308   : > { %v3255_v60 = vpop.f32.mrf.mxu2 }
 0x309   : > { %3288 = vst [vmem:[%s6005_s7 + $0x70] sm:$0xff] %v3272_v49  ;;  %v3158_v21 = vadd.f32 %v3157_v46, %v3109_v32 }
 0x30b   : > { %v3207_v34 = vadd.f32 %v3206_v7, %v3158_v21 }
 0x30d   : > { %v3256_v35 = vadd.f32 %v3255_v60, %v3207_v34 }
 0x30f   : > { %v3273_v16 = vmax.f32 %v3256_v35, 0.0 }
 0x311   : > { %3289 = vst [vmem:[%s6005_s7 + $0x78] sm:$0xff] %v3273_v16 }
 0x312 PF: > { %s13_s12 = sadd.s32 1, %s4915_s12  }
 0x313   : > { %p10_p4 = scmp.ge.s32.totalorder %s13_s12, 6  }
 0x315   :  { %12 = sbr.rel (!%p10_p4) target bundleno = 1 (0x1), region = 62 }

// kernel: complex_inception_a.6
= control target key start
LH: loop header
LB: loop body
LE: loop exit
PB: predicated region body
PF: predicated region fallthrough
CT: control target
= control target key end

     0   :  { %s3649_s12 = smov 0   ;;  %s5254_s0 = inlined_call_operand.vmem [shape: bf16[512,1152], index: 0, kind: input, shape index: {}]   ;;  %s5255_s1 = inlined_call_operand.vmem [shape: bf16[1152,192], index: 1, kind: input, shape index: {}]   ;;  %s5256_s2 = inlined_call_operand.vmem [shape: f32[1,192], index: 2, kind: input, shape index: {}]   ;;  %s5257_s3 = inlined_call_operand.vmem [shape: f32[512,192], index: 3, kind: output, shape index: {}]  }
   0x1 LB: > { %s2502_s13 = sadd.s32 4294967295, %s3627_s12   ;;  %p2506_p0 = scmp.ge.s32.totalorder %s3627_s12, 1  ;;  %s3627_s12 = sphi %s3649_s12, %s13_s12  }
   0x2   : > { %p139_p1 = scmp.lt.s32.totalorder %s3627_s12, 5 }
   0x4   : > { %p140_p2 = pnand %p2506_p0, %p139_p1 }
   0x6   : > { %143 = sbr.rel (%p140_p2) target bundleno = 757 (0x2f5), region = 32 }
   0xb   : > { %v2858_v0 = vld [vmem:[%s5255_s1 + $0x70] sm:$0xf]  ;;  %v3466_v1 = vld [vmem:[%s5255_s1 + $0x74] sm:$0xf0]  ;;  %v2850_v5 = vld [vmem:[%s5255_s1 + $0x60] sm:$0xf] }
   0xc   : > { %v2922_v2 = vld [vmem:[%s5255_s1 + $0xf0] sm:$0xf]  ;;  %v2859_v3 = vor.u32 %v3466_v1, %v2858_v0  ;;  %v3482_v4 = vld [vmem:[%s5255_s1 + $0xf4] sm:$0xf0]  ;;  %v3464_v6 = vld [vmem:[%s5255_s1 + $0x64] sm:$0xf0] }
   0xd   : > { %v2923_v7 = vor.u32 %v3482_v4, %v2922_v2  ;;  %v2914_v8 = vld [vmem:[%s5255_s1 + $0xe0] sm:$0xf]  ;;  %v3480_v9 = vld [vmem:[%s5255_s1 + $0xe4] sm:$0xf0]  ;;  %v2851_v10 = vor.u32 %v3464_v6, %v2850_v5  ;;  %v2842_v12 = vld [vmem:[%s5255_s1 + $0x50] sm:$0xf] }
   0xe   : > { %3595 = vmatpush.bf16.msra.mxu2 %v2859_v3  ;;  %1497 = vmatpush.bf16.msra.mxu0 %v2859_v3  ;;  %v2915_v11 = vor.u32 %v3480_v9, %v2914_v8  ;;  %v3462_v13 = vld [vmem:[%s5255_s1 + $0x54] sm:$0xf0]  ;;  %v2906_v14 = vld [vmem:[%s5255_s1 + $0xd0] sm:$0xf]  ;;  %v2834_v18 = vld [vmem:[%s5255_s1 + $0x40] sm:$0xf] }
   0xf   : > { %3603 = vmatpush.bf16.msra.mxu3 %v2923_v7  ;;  %1546 = vmatpush.bf16.msra.mxu1 %v2923_v7  ;;  %v3478_v15 = vld [vmem:[%s5255_s1 + $0xd4] sm:$0xf0]  ;;  %v2843_v16 = vor.u32 %v3462_v13, %v2842_v12  ;;  %v3460_v19 = vld [vmem:[%s5255_s1 + $0x44] sm:$0xf0]  ;;  %v2898_v20 = vld [vmem:[%s5255_s1 + $0xc0] sm:$0xf] }
  0x10   : > { %v2907_v17 = vor.u32 %v3478_v15, %v2906_v14  ;;  %v3476_v21 = vld [vmem:[%s5255_s1 + $0xc4] sm:$0xf0]  ;;  %s2507_s21 = sshll.u32 %s2502_s13, 4  ;;  %v2835_v22 = vor.u32 %v3460_v19, %v2834_v18  ;;  %v2826_v24 = vld [vmem:[%s5255_s1 + $0x30] sm:$0xf]  ;;  %vm2412_vm0 = vcmask 523264  }
  0x11   : > { %p166_p3 = scmp.lt.s32.totalorder %s2507_s21, 63  ;;  %v2899_v23 = vor.u32 %v3476_v21, %v2898_v20  ;;  %v3458_v25 = vld [vmem:[%s5255_s1 + $0x34] sm:$0xf0]  ;;  %v2890_v26 = vld [vmem:[%s5255_s1 + $0xb0] sm:$0xf] }
  0x12   : > { %3596 = vmatpush.bf16.msra.mxu2 %v2851_v10  ;;  %1498 = vmatpush.bf16.msra.mxu0 %v2851_v10  ;;  %v3474_v27 = vld [vmem:[%s5255_s1 + $0xb4] sm:$0xf0]  ;;  %v2827_v28 = vor.u32 %v3458_v25, %v2826_v24  ;;  %v2818_v30 = vld [vmem:[%s5255_s1 + $0x20] sm:$0xf]  ;;  %v3456_v31 = vld [vmem:[%s5255_s1 + $0x24] sm:$0xf0] }
  0x13   : > { %3604 = vmatpush.bf16.msra.mxu3 %v2915_v11  ;;  %1547 = vmatpush.bf16.msra.mxu1 %v2915_v11  ;;  %s5367_s21 = smov (!%p166_p3, %s2507_s21), 63  ;;  %v2891_v29 = vor.u32 %v3474_v27, %v2890_v26  ;;  %v2882_v32 = vld [vmem:[%s5255_s1 + $0xa0] sm:$0xf]  ;;  %v3472_v33 = vld [vmem:[%s5255_s1 + $0xa4] sm:$0xf0]  ;;  %v2819_v34 = vor.u32 %v3456_v31, %v2818_v30 }
  0x14   : > { %s3611_s10 = smul.u32 36, %s5367_s21  ;;  %v2883_v35 = vor.u32 %v3472_v33, %v2882_v32  ;;  %v2810_v36 = vld [vmem:[%s5255_s1 + $0x10] sm:$0xf]  ;;  %v3454_v37 = vld [vmem:[%s5255_s1 + $0x14] sm:$0xf0]  ;;  %s3378_s24 = sshll.u32 %s5367_s21, 4 }
  0x15   : > { %v2874_v38 = vld [vmem:[%s5255_s1 + $0x90] sm:$0xf]  ;;  %v3470_v39 = vld [vmem:[%s5255_s1 + $0x94] sm:$0xf0]  ;;  %v2811_v40 = vor.u32 %v3454_v37, %v2810_v36  ;;  %v2802_v41 = vld [vmem:[%s5255_s1] sm:$0xf]  ;;  %s4881_s13 = scalar_lea.vmem %s5257_s3, %s3378_s24 }
  0x16   : > { %3597 = vmatpush.bf16.msra.mxu2 %v2843_v16  ;;  %1499 = vmatpush.bf16.msra.mxu0 %v2843_v16  ;;  %s3752_s26 = scalar_lea.vmem %s5254_s0, %s3611_s10  ;;  %v2875_v42 = vor.u32 %v3470_v39, %v2874_v38  ;;  %v3452_v43 = vld [vmem:[%s5255_s1 + $0x4] sm:$0xf0]  ;;  %v2866_v44 = vld [vmem:[%s5255_s1 + $0x80] sm:$0xf]  ;;  %v2986_v46 = vld [vmem:[%s5255_s1 + $0x170] sm:$0xf] }
  0x17   : > { %3605 = vmatpush.bf16.msra.mxu3 %v2907_v17  ;;  %1548 = vmatpush.bf16.msra.mxu1 %v2907_v17  ;;  %v3468_v45 = vld [vmem:[%s5255_s1 + $0x84] sm:$0xf0]  ;;  %v3498_v47 = vld [vmem:[%s5255_s1 + $0x174] sm:$0xf0]  ;;  %v3050_v48 = vld [vmem:[%s5255_s1 + $0x1f0] sm:$0xf]  ;;  %v2803_v52 = vor.u32 %v3452_v43, %v2802_v41 }
  0x18   : > { %v2658_v49 = vld [vmem:[%s3752_s26 + $0x120] sm:$0xf]  ;;  %v3514_v50 = vld [vmem:[%s5255_s1 + $0x1f4] sm:$0xf0]  ;;  %v3114_v51 = vld [vmem:[%s5255_s1 + $0x270] sm:$0xf]  ;;  %v2867_v58 = vor.u32 %v3468_v45, %v2866_v44  ;;  %v2987_v61 = vor.u32 %v3498_v47, %v2986_v46 }
  0x19   : > { %v3419_v53 = vld [vmem:[%s3752_s26 + $0x140] sm:$0xf0]  ;;  %v2514_v54 = vld [vmem:[%s3752_s26] sm:$0xf]  ;;  %v3496_v57 = vld [vmem:[%s5255_s1 + $0x164] sm:$0xf0]  ;;  %v3051_v63 = vor.u32 %v3514_v50, %v3050_v48 }
  0x1a   : > { %3598 = vmatpush.bf16.msra.mxu2 %v2835_v22  ;;  %1500 = vmatpush.bf16.msra.mxu0 %v2835_v22  ;;  %v3383_v55 = vld [vmem:[%s3752_s26 + $0x20] sm:$0xf0]  ;;  %v2978_v56 = vld [vmem:[%s5255_s1 + $0x160] sm:$0xf]  ;;  %v2660_v60 = vld [vmem:[%s3752_s26 + $0x144] sm:$0xf0]  ;;  %v3798_v3 = vor.u32 %v3419_v53, %v2658_v49 }
  0x1b   : > { %3606 = vmatpush.bf16.msra.mxu3 %v2899_v23  ;;  %1549 = vmatpush.bf16.msra.mxu1 %v2899_v23  ;;  %v3415_v59 = vld [vmem:[%s3752_s26 + $0x124] sm:$0xf]  ;;  %v3530_v62 = vld [vmem:[%s5255_s1 + $0x274] sm:$0xf0]  ;;  %v2516_v1 = vld [vmem:[%s3752_s26 + $0x24] sm:$0xf0]  ;;  %v3800_v4 = vor.u32 %v3383_v55, %v2514_v54  ;;  %v2979_v11 = vor.u32 %v3496_v57, %v2978_v56 }
  0x1c   : > { %v3379_v0 = vld [vmem:[%s3752_s26 + $0x4] sm:$0xf]  ;;  %v3042_v2 = vld [vmem:[%s5255_s1 + $0x1e0] sm:$0xf]  ;;  %v3512_v5 = vld [vmem:[%s5255_s1 + $0x1e4] sm:$0xf0]  ;;  %v3811_v8 = vor.u32 %v3415_v59, %v2660_v60  ;;  %v3115_v9 = vor.u32 %v3530_v62, %v3114_v51 }
  0x1d   : > { %v3178_v6 = vld [vmem:[%s5255_s1 + $0x2f0] sm:$0xf]  ;;  %v3546_v7 = vld [vmem:[%s5255_s1 + $0x2f4] sm:$0xf0]  ;;  %v3813_v10 = vor.u32 %v3379_v0, %v2516_v1  ;;  %v3106_v12 = vld [vmem:[%s5255_s1 + $0x260] sm:$0xf]  ;;  %v3043_v14 = vor.u32 %v3512_v5, %v3042_v2 }
  0x1e   : > { %3599 = vmatpush.bf16.msra.mxu2 %v2827_v28  ;;  %1501 = vmatpush.bf16.msra.mxu0 %v2827_v28  ;;  %v3528_v13 = vld [vmem:[%s5255_s1 + $0x264] sm:$0xf0]  ;;  %v3179_v15 = vor.u32 %v3546_v7, %v3178_v6  ;;  %v2970_v16 = vld [vmem:[%s5255_s1 + $0x150] sm:$0xf]  ;;  %v3494_v17 = vld [vmem:[%s5255_s1 + $0x154] sm:$0xf0] }
  0x1f   : > { %3607 = vmatpush.bf16.msra.mxu3 %v2891_v29  ;;  %1550 = vmatpush.bf16.msra.mxu1 %v2891_v29  ;;  %v3034_v18 = vld [vmem:[%s5255_s1 + $0x1d0] sm:$0xf]  ;;  %v3510_v19 = vld [vmem:[%s5255_s1 + $0x1d4] sm:$0xf0]  ;;  %v3170_v20 = vld [vmem:[%s5255_s1 + $0x2e0] sm:$0xf]  ;;  %v3107_v22 = vor.u32 %v3528_v13, %v3106_v12  ;;  %v2971_v23 = vor.u32 %v3494_v17, %v2970_v16 }
  0x20   : > { %v3544_v21 = vld [vmem:[%s5255_s1 + $0x2e4] sm:$0xf0]  ;;  %v3098_v24 = vld [vmem:[%s5255_s1 + $0x250] sm:$0xf]  ;;  %v3526_v25 = vld [vmem:[%s5255_s1 + $0x254] sm:$0xf0]  ;;  %v3035_v26 = vor.u32 %v3510_v19, %v3034_v18 }
  0x21   : > { %v3171_v27 = vor.u32 %v3544_v21, %v3170_v20  ;;  %v2962_v28 = vld [vmem:[%s5255_s1 + $0x140] sm:$0xf]  ;;  %v3492_v29 = vld [vmem:[%s5255_s1 + $0x144] sm:$0xf0]  ;;  %v3162_v32 = vld [vmem:[%s5255_s1 + $0x2d0] sm:$0xf] }
  0x22   : > { %3600 = vmatpush.bf16.msra.mxu2 %v2819_v34  ;;  %1502 = vmatpush.bf16.msra.mxu0 %v2819_v34  ;;  %v3026_v30 = vld [vmem:[%s5255_s1 + $0x1c0] sm:$0xf]  ;;  %v3508_v31 = vld [vmem:[%s5255_s1 + $0x1c4] sm:$0xf0]  ;;  %v3542_v33 = vld [vmem:[%s5255_s1 + $0x2d4] sm:$0xf0]  ;;  %v3099_v34 = vor.u32 %v3526_v25, %v3098_v24 }
  0x23   : > { %3608 = vmatpush.bf16.msra.mxu3 %v2883_v35  ;;  %1551 = vmatpush.bf16.msra.mxu1 %v2883_v35  ;;  %v2963_v35 = vor.u32 %v3492_v29, %v2962_v28  ;;  %v3090_v36 = vld [vmem:[%s5255_s1 + $0x240] sm:$0xf]  ;;  %v3524_v37 = vld [vmem:[%s5255_s1 + $0x244] sm:$0xf0]  ;;  %v3428_v39 = vld [vmem:[%s3752_s26 + $0x188] sm:$0xf0]  ;;  %v3163_v41 = vor.u32 %v3542_v33, %v3162_v32 }
  0x24   : > { %v2694_v38 = vld [vmem:[%s3752_s26 + $0x168] sm:$0xf]  ;;  %v3490_v43 = vld [vmem:[%s5255_s1 + $0x134] sm:$0xf0]  ;;  %v3018_v44 = vld [vmem:[%s5255_s1 + $0x1b0] sm:$0xf]  ;;  %v3091_v53 = vor.u32 %v3524_v37, %v3090_v36 }
  0x25   : > { %v3424_v45 = vld [vmem:[%s3752_s26 + $0x16c] sm:$0xf]  ;;  %v2696_v46 = vld [vmem:[%s3752_s26 + $0x18c] sm:$0xf0]  ;;  %v3506_v47 = vld [vmem:[%s5255_s1 + $0x1b4] sm:$0xf0] }
  0x26   : > { %3601 = vmatpush.bf16.msra.mxu2 %v2811_v40  ;;  %1503 = vmatpush.bf16.msra.mxu0 %v2811_v40  ;;  %v3027_v40 = vor.u32 %v3508_v31, %v3026_v30  ;;  %v3154_v48 = vld [vmem:[%s5255_s1 + $0x2c0] sm:$0xf]  ;;  %v3540_v49 = vld [vmem:[%s5255_s1 + $0x2c4] sm:$0xf0]  ;;  %v3392_v51 = vld [vmem:[%s3752_s26 + $0x68] sm:$0xf0]  ;;  %v3927_v6 = vor.u32 %v3424_v45, %v2696_v46 }
  0x27   : > { %3609 = vmatpush.bf16.msra.mxu3 %v2875_v42  ;;  %1552 = vmatpush.bf16.msra.mxu1 %v2875_v42  ;;  %v2954_v42 = vld [vmem:[%s5255_s1 + $0x130] sm:$0xf]  ;;  %v2550_v50 = vld [vmem:[%s3752_s26 + $0x48] sm:$0xf]  ;;  %v3522_v57 = vld [vmem:[%s5255_s1 + $0x234] sm:$0xf0]  ;;  %v3155_v59 = vor.u32 %v3540_v49, %v3154_v48 }
  0x28   : > { %v2552_v54 = vld [vmem:[%s3752_s26 + $0x6c] sm:$0xf0]  ;;  %v2955_v55 = vor.u32 %v3490_v43, %v2954_v42  ;;  %v2946_v60 = vld [vmem:[%s5255_s1 + $0x120] sm:$0xf]  ;;  %v3916_v0 = vor.u32 %v3392_v51, %v2550_v50  ;;  %v3504_v1 = vld [vmem:[%s5255_s1 + $0x1a4] sm:$0xf0] }
  0x29   : > { %v3082_v56 = vld [vmem:[%s5255_s1 + $0x230] sm:$0xf]  ;;  %v3010_v62 = vld [vmem:[%s5255_s1 + $0x1a0] sm:$0xf]  ;;  %v3538_v5 = vld [vmem:[%s5255_s1 + $0x2b4] sm:$0xf0] }
  0x2a   : > { %3602 = vmatpush.bf16.msra.mxu2 %v2803_v52  ;;  %1504 = vmatpush.bf16.msra.mxu0 %v2803_v52  ;;  %v3388_v52 = vld [vmem:[%s3752_s26 + $0x4c] sm:$0xf]  ;;  %v3146_v2 = vld [vmem:[%s5255_s1 + $0x2b0] sm:$0xf]  ;;  %5294 = vst [vmem:[#allocation2_spill] sm:$0xff] %v3927_v6  ;;  %v3083_v7 = vor.u32 %v3522_v57, %v3082_v56  ;;  %v3011_v12 = vor.u32 %v3504_v1, %v3010_v62 }
  0x2b   : > { %3610 = vmatpush.bf16.msra.mxu3 %v2867_v58  ;;  %1553 = vmatpush.bf16.msra.mxu1 %v2867_v58  ;;  %v3019_v58 = vor.u32 %v3506_v47, %v3018_v44  ;;  %v3147_v13 = vor.u32 %v3538_v5, %v3146_v2  ;;  %v3002_v16 = vld [vmem:[%s5255_s1 + $0x190] sm:$0xf]  ;;  %v3502_v18 = vld [vmem:[%s5255_s1 + $0x194] sm:$0xf0]  ;;  %v3074_v19 = vld [vmem:[%s5255_s1 + $0x220] sm:$0xf] }
  0x2c   : > { %v3520_v20 = vld [vmem:[%s5255_s1 + $0x224] sm:$0xf0]  ;;  %v3003_v21 = vor.u32 %v3502_v18, %v3002_v16  ;;  %v2930_v25 = vld [vmem:[%s5255_s1 + $0x100] sm:$0xf]  ;;  %v3066_v30 = vld [vmem:[%s5255_s1 + $0x210] sm:$0xf] }
  0x2d   : > { %1525 = vmatmul.bf16.vlgmr.msra.gmra.mxu2 %v3798_v3  ;;  %1505 = vmatmul.bf16.vlgmr.msra.gmra.mxu0 %v3800_v4  ;;  %v3536_v24 = vld [vmem:[%s5255_s1 + $0x2a4] sm:$0xf0]  ;;  %v2994_v28 = vld [vmem:[%s5255_s1 + $0x180] sm:$0xf]  ;;  %v3518_v32 = vld [vmem:[%s5255_s1 + $0x214] sm:$0xf0] }
  0x2e   : > { %1595 = vmatpush.bf16.msrb.mxu2 %v2987_v61  ;;  %1574 = vmatmul.bf16.vlgmr.msra.gmra.mxu3 %v3811_v8  ;;  %v3488_v61 = vld [vmem:[%s5255_s1 + $0x124] sm:$0xf0]  ;;  %v3130_v33 = vld [vmem:[%s5255_s1 + $0x290] sm:$0xf]  ;;  %v3067_v36 = vor.u32 %v3518_v32, %v3066_v30  ;;  %v3401_v43 = vld [vmem:[%s3752_s26 + $0xb0] sm:$0xf0] }
  0x2f   : > { %1644 = vmatpush.bf16.msrb.mxu3 %v3051_v63  ;;  %1693 = vmatpush.bf16.msrb.mxu0 %v3115_v9  ;;  %v3914_v63 = vor.u32 %v3428_v39, %v2694_v38  ;;  %v3929_v9 = vor.u32 %v3388_v52, %v2552_v54  ;;  %v3500_v29 = vld [vmem:[%s5255_s1 + $0x184] sm:$0xf0]  ;;  %v3058_v38 = vld [vmem:[%s5255_s1 + $0x200] sm:$0xf]  ;;  %v2586_v42 = vld [vmem:[%s3752_s26 + $0x90] sm:$0xf] }
  0x30   : > { %1554 = vmatmul.bf16.vlgmr.msra.gmra.mxu1 %v3813_v10  ;;  %v3516_v39 = vld [vmem:[%s5255_s1 + $0x204] sm:$0xf0]  ;;  %v3433_v45 = vld [vmem:[%s3752_s26 + $0x1b4] sm:$0xf]  ;;  %v2732_v46 = vld [vmem:[%s3752_s26 + $0x1d4] sm:$0xf0]  ;;  %v3999_v50 = vor.u32 %v3401_v43, %v2586_v42 }
  0x31   : > { %1742 = vmatpush.bf16.msrb.mxu1 %v3179_v15  ;;  %v3486_v15 = vld [vmem:[%s5255_s1 + $0x114] sm:$0xf0]  ;;  %v3059_v44 = vor.u32 %v3516_v39, %v3058_v38  ;;  %v3397_v47 = vld [vmem:[%s3752_s26 + $0x94] sm:$0xf]  ;;  %v4001_v51 = vor.u32 %v3433_v45, %v2732_v46  ;;  %v3532_v54 = vld [vmem:[%s5255_s1 + $0x284] sm:$0xf0] }
  0x32   : > { %1596 = vmatpush.bf16.msrb.mxu2 %v2979_v11  ;;  %v2947_v11 = vor.u32 %v3488_v61, %v2946_v60  ;;  %v2588_v48 = vld [vmem:[%s3752_s26 + $0xb4] sm:$0xf0]  ;;  %v3242_v56 = vld [vmem:[%s5255_s1 + $0x370] sm:$0xf]  ;;  %v3465_v2 = vld [vmem:[%s5255_s1 + $0x74] sm:$0xf] }
  0x33   : > { %1645 = vmatpush.bf16.msrb.mxu3 %v3043_v14  ;;  %1694 = vmatpush.bf16.msrb.mxu0 %v3107_v22  ;;  %v2938_v14 = vld [vmem:[%s5255_s1 + $0x110] sm:$0xf]  ;;  %v3075_v22 = vor.u32 %v3520_v20, %v3074_v19  ;;  %5295 = vst [vmem:[#allocation3_spill] sm:$0xff] %v4001_v51  ;;  %v4003_v52 = vor.u32 %v3397_v47, %v2588_v48  ;;  %v3562_v57 = vld [vmem:[%s5255_s1 + $0x374] sm:$0xf0] }
  0x34   : > { %v2939_v17 = vor.u32 %v3486_v15, %v2938_v14  ;;  %v3578_v60 = vld [vmem:[%s5255_s1 + $0x3f4] sm:$0xf0]  ;;  %v3370_v62 = vld [vmem:[%s5255_s1 + $0x470] sm:$0xf]  ;;  %v3410_v15 = vld [vmem:[%s3752_s26 + $0xf8] sm:$0xf0] }
  0x35   : > { %1743 = vmatpush.bf16.msrb.mxu1 %v3171_v27  ;;  %v3594_v1 = vld [vmem:[%s5255_s1 + $0x474] sm:$0xf0]  ;;  %v3442_v16 = vld [vmem:[%s3752_s26 + $0x1fc] sm:$0xf]  ;;  %v2624_v19 = vld [vmem:[%s3752_s26 + $0xfc] sm:$0xf0] }
  0x36   : > { %1597 = vmatpush.bf16.msrb.mxu2 %v2971_v23  ;;  %v3138_v23 = vld [vmem:[%s5255_s1 + $0x2a0] sm:$0xf]  ;;  %v3371_v5 = vor.u32 %v3594_v1, %v3370_v62  ;;  %v2622_v14 = vld [vmem:[%s3752_s26 + $0xd8] sm:$0xf]  ;;  %v3406_v18 = vld [vmem:[%s3752_s26 + $0xdc] sm:$0xf] }
  0x37   : > { %1646 = vmatpush.bf16.msrb.mxu3 %v3035_v26  ;;  %1695 = vmatpush.bf16.msrb.mxu0 %v3099_v34  ;;  %v3484_v26 = vld [vmem:[%s5255_s1 + $0x104] sm:$0xf0]  ;;  %v3139_v27 = vor.u32 %v3536_v24, %v3138_v23  ;;  %v3534_v34 = vld [vmem:[%s5255_s1 + $0x294] sm:$0xf0]  ;;  %v4053_v23 = vor.u32 %v3406_v18, %v2624_v19  ;;  %v3234_v24 = vld [vmem:[%s5255_s1 + $0x360] sm:$0xf] }
  0x38   : > { %v2931_v31 = vor.u32 %v3484_v26, %v2930_v25  ;;  %v3131_v37 = vor.u32 %v3534_v34, %v3130_v33  ;;  %v3560_v25 = vld [vmem:[%s5255_s1 + $0x364] sm:$0xf0]  ;;  %v3298_v26 = vld [vmem:[%s5255_s1 + $0x3e0] sm:$0xf]  ;;  %v3463_v32 = vld [vmem:[%s5255_s1 + $0x64] sm:$0xf] }
  0x39   : > { %1744 = vmatpush.bf16.msrb.mxu1 %v3163_v41  ;;  %v3437_v41 = vld [vmem:[%s3752_s26 + $0x1d0] sm:$0xf0]  ;;  %v3362_v30 = vld [vmem:[%s5255_s1 + $0x460] sm:$0xf]  ;;  %v2852_v34 = vld [vmem:[%s5255_s1 + $0x68] sm:$0xf0] }
  0x3a   : > { %1598 = vmatpush.bf16.msrb.mxu2 %v2963_v35  ;;  %v2995_v35 = vor.u32 %v3500_v29, %v2994_v28  ;;  %v3576_v28 = vld [vmem:[%s5255_s1 + $0x3e4] sm:$0xf0]  ;;  %v2530_v38 = vld [vmem:[%s3752_s26 + $0x10] sm:$0xf]  ;;  %v3385_v39 = vld [vmem:[%s3752_s26 + $0x30] sm:$0xf0] }
  0x3b   : > { %1647 = vmatpush.bf16.msrb.mxu3 %v3027_v40  ;;  %1696 = vmatpush.bf16.msrb.mxu0 %v3091_v53  ;;  %v2730_v40 = vld [vmem:[%s3752_s26 + $0x1b0] sm:$0xf]  ;;  %v3122_v53 = vld [vmem:[%s5255_s1 + $0x280] sm:$0xf]  ;;  %v3299_v29 = vor.u32 %v3576_v28, %v3298_v26  ;;  %v3381_v42 = vld [vmem:[%s3752_s26 + $0x14] sm:$0xf]  ;;  %v4093_v45 = vor.u32 %v3385_v39, %v2530_v38 }
  0x3c   : > { %v3997_v49 = vor.u32 %v3437_v41, %v2730_v40  ;;  %v3380_v40 = vld [vmem:[%s3752_s26 + $0xc] sm:$0xf]  ;;  %v2524_v41 = vld [vmem:[%s3752_s26 + $0x2c] sm:$0xf0]  ;;  %v2532_v43 = vld [vmem:[%s3752_s26 + $0x34] sm:$0xf0] }
  0x3d   : > { %1745 = vmatpush.bf16.msrb.mxu1 %v3155_v59  ;;  %1530 = vmatmul.bf16.gmra.mxu2 %v3914_v63  ;;  %v3243_v59 = vor.u32 %v3562_v57, %v3242_v56  ;;  %v4095_v46 = vor.u32 %v3380_v40, %v2524_v41  ;;  %v4097_v47 = vor.u32 %v3381_v42, %v2532_v43  ;;  %v3226_v48 = vld [vmem:[%s5255_s1 + $0x350] sm:$0xf]  ;;  %v3574_v56 = vld [vmem:[%s5255_s1 + $0x3d4] sm:$0xf0]  ;;  %v2844_v62 = vld [vmem:[%s5255_s1 + $0x58] sm:$0xf0] }
  0x3e   : > { %1599 = vmatpush.bf16.msrb.mxu2 %v2955_v55  ;;  %1510 = vmatmul.bf16.gmra.mxu0 %v3916_v0  ;;  %v3123_v55 = vor.u32 %v3532_v54, %v3122_v53  ;;  %v3558_v53 = vld [vmem:[%s5255_s1 + $0x354] sm:$0xf0]  ;;  %v3290_v54 = vld [vmem:[%s5255_s1 + $0x3d0] sm:$0xf]  ;;  %v3282_v26 = vld [vmem:[%s5255_s1 + $0x3c0] sm:$0xf] }
  0x3f   : > { %1648 = vmatpush.bf16.msrb.mxu3 %v3019_v58  ;;  %1697 = vmatpush.bf16.msrb.mxu0 %v3083_v7  ;;  %v3306_v58 = vld [vmem:[%s5255_s1 + $0x3f0] sm:$0xf]  ;;  %v2860_v7 = vld [vmem:[%s5255_s1 + $0x78] sm:$0xf0]  ;;  %5297 = vst [vmem:[#allocation5_spill] sm:$0xff] %v4097_v47  ;;  %v3291_v57 = vor.u32 %v3574_v56, %v3290_v54 }
  0x40   : > { %1579 = vmatmul.bf16.gmra.mxu3 %v3927_v6  ;;  %1559 = vmatmul.bf16.gmra.mxu1 %v3929_v9  ;;  %v3307_v61 = vor.u32 %v3578_v60, %v3306_v58  ;;  %v3354_v58 = vld [vmem:[%s5255_s1 + $0x450] sm:$0xf]  ;;  %v3461_v60 = vld [vmem:[%s5255_s1 + $0x54] sm:$0xf]  ;;  %v3572_v28 = vld [vmem:[%s5255_s1 + $0x3c4] sm:$0xf0] }
  0x41   : > { %1746 = vmatpush.bf16.msrb.mxu1 %v3147_v13  ;;  %v3446_v13 = vld [vmem:[%s3752_s26 + $0x218] sm:$0xf0]  ;;  %v2847_v1 = vor.u32 %v3461_v60, %v2844_v62  ;;  %v2602_v38 = vld [vmem:[%s3752_s26 + $0xa0] sm:$0xf]  ;;  %v3403_v39 = vld [vmem:[%s3752_s26 + $0xc0] sm:$0xf0] }
  0x42   : > { %1600 = vmatpush.bf16.msrb.mxu2 %v2947_v11  ;;  %v2863_v11 = vor.u32 %v3465_v2, %v2860_v7  ;;  %v2558_v2 = vld [vmem:[%s3752_s26 + $0x50] sm:$0xf]  ;;  %v2566_v7 = vld [vmem:[%s3752_s26 + $0x58] sm:$0xf]  ;;  %v3398_v40 = vld [vmem:[%s3752_s26 + $0x9c] sm:$0xf] }
  0x43   : > { %1649 = vmatpush.bf16.msrb.mxu3 %v3011_v12  ;;  %1698 = vmatpush.bf16.msrb.mxu0 %v3075_v22  ;;  %v2766_v12 = vld [vmem:[%s3752_s26 + $0x1f8] sm:$0xf]  ;;  %v2596_v41 = vld [vmem:[%s3752_s26 + $0xbc] sm:$0xf0]  ;;  %v3399_v42 = vld [vmem:[%s3752_s26 + $0xa4] sm:$0xf] }
  0x44   : > { %v4047_v20 = vor.u32 %v3446_v13, %v2766_v12  ;;  %v3389_v12 = vld [vmem:[%s3752_s26 + $0x54] sm:$0xf]  ;;  %v2560_v13 = vld [vmem:[%s3752_s26 + $0x74] sm:$0xf0]  ;;  %v2604_v43 = vld [vmem:[%s3752_s26 + $0xc4] sm:$0xf0]  ;;  %v4183_v54 = vor.u32 %v3398_v40, %v2596_v41 }
  0x45   : > { %1747 = vmatpush.bf16.msrb.mxu1 %v3139_v27  ;;  %v3235_v27 = vor.u32 %v3560_v25, %v3234_v24  ;;  %v4139_v18 = vor.u32 %v3389_v12, %v2560_v13  ;;  %v3218_v24 = vld [vmem:[%s5255_s1 + $0x340] sm:$0xf]  ;;  %v3556_v25 = vld [vmem:[%s5255_s1 + $0x344] sm:$0xf0]  ;;  %v3210_v56 = vld [vmem:[%s5255_s1 + $0x330] sm:$0xf] }
  0x46   : > { %1601 = vmatpush.bf16.msrb.mxu2 %v2939_v17  ;;  %v2768_v17 = vld [vmem:[%s3752_s26 + $0x21c] sm:$0xf0]  ;;  %v3570_v60 = vld [vmem:[%s5255_s1 + $0x3b4] sm:$0xf0]  ;;  %v3407_v13 = vld [vmem:[%s3752_s26 + $0xe4] sm:$0xf] }
  0x47   : > { %1650 = vmatpush.bf16.msrb.mxu3 %v3003_v21  ;;  %1699 = vmatpush.bf16.msrb.mxu0 %v3067_v36  ;;  %v4049_v21 = vor.u32 %v3410_v15, %v2622_v14  ;;  %v4051_v22 = vor.u32 %v3442_v16, %v2768_v17  ;;  %v2522_v36 = vld [vmem:[%s3752_s26 + $0x8] sm:$0xf]  ;;  %v3390_v14 = vld [vmem:[%s3752_s26 + $0x5c] sm:$0xf]  ;;  %v2568_v15 = vld [vmem:[%s3752_s26 + $0x7c] sm:$0xf0] }
  0x48   : > { %v4141_v19 = vor.u32 %v3390_v14, %v2568_v15  ;;  %v2630_v62 = vld [vmem:[%s3752_s26 + $0xe0] sm:$0xf]  ;;  %v2632_v14 = vld [vmem:[%s3752_s26 + $0x104] sm:$0xf0]  ;;  %v3408_v15 = vld [vmem:[%s3752_s26 + $0xec] sm:$0xf] }
  0x49   : > { %1748 = vmatpush.bf16.msrb.mxu1 %v3131_v37  ;;  %5296 = vst [vmem:[#allocation4_spill] sm:$0xff] %v4051_v22  ;;  %v3384_v37 = vld [vmem:[%s3752_s26 + $0x28] sm:$0xf0]  ;;  %v3330_v40 = vld [vmem:[%s5255_s1 + $0x420] sm:$0xf] }
  0x4a   : > { %1602 = vmatpush.bf16.msrb.mxu2 %v2931_v31  ;;  %v3592_v31 = vld [vmem:[%s5255_s1 + $0x464] sm:$0xf0]  ;;  %5298 = vst [vmem:[#allocation6_spill] sm:$0xff] %v4141_v19 }
  0x4b   : > { %1651 = vmatpush.bf16.msrb.mxu3 %v2995_v35  ;;  %1700 = vmatpush.bf16.msrb.mxu0 %v3059_v44  ;;  %v3363_v33 = vor.u32 %v3592_v31, %v3362_v30  ;;  %v2855_v35 = vor.u32 %v3463_v32, %v2852_v34  ;;  %v4091_v44 = vor.u32 %v3384_v37, %v2522_v36  ;;  %v3346_v30 = vld [vmem:[%s5255_s1 + $0x440] sm:$0xf]  ;;  %v3588_v31 = vld [vmem:[%s5255_s1 + $0x444] sm:$0xf0]  ;;  %v3459_v32 = vld [vmem:[%s5255_s1 + $0x44] sm:$0xf] }
  0x4c   : > { %v2836_v34 = vld [vmem:[%s5255_s1 + $0x48] sm:$0xf0]  ;;  %v2594_v36 = vld [vmem:[%s3752_s26 + $0x98] sm:$0xf]  ;;  %v3402_v37 = vld [vmem:[%s3752_s26 + $0xb8] sm:$0xf0] }
  0x4d   : > { %1535 = vmatmul.bf16.gmra.mxu2 %v3997_v49  ;;  %1749 = vmatpush.bf16.msrb.mxu1 %v3123_v55  ;;  %v3227_v55 = vor.u32 %v3558_v53, %v3226_v48  ;;  %v4179_v48 = vor.u32 %v3402_v37, %v2594_v36  ;;  %v4181_v53 = vor.u32 %v3403_v39, %v2602_v38  ;;  %v3568_v36 = vld [vmem:[%s5255_s1 + $0x3a4] sm:$0xf0]  ;;  %v403_v38 = vld [vmem:[%s5256_s2] sm:$0x3] }
  0x4e   : > { %1515 = vmatmul.bf16.gmra.mxu0 %v3999_v50  ;;  %1791 = vmatpush.bf16.msra.mxu2 %v3243_v59  ;;  %v3590_v59 = vld [vmem:[%s5255_s1 + $0x454] sm:$0xf0]  ;;  %v2666_v39 = vld [vmem:[%s3752_s26 + $0x128] sm:$0xf] }
  0x4f   : > { %1840 = vmatpush.bf16.msra.mxu3 %v3307_v61  ;;  %1889 = vmatpush.bf16.msra.mxu0 %v3371_v5  ;;  %v3355_v61 = vor.u32 %v3590_v59, %v3354_v58  ;;  %v3393_v5 = vld [vmem:[%s3752_s26 + $0x70] sm:$0xf0]  ;;  %v3274_v58 = vld [vmem:[%s5255_s1 + $0x3b0] sm:$0xf]  ;;  %v3584_v41 = vld [vmem:[%s5255_s1 + $0x424] sm:$0xf0] }
  0x50   : > { %1584 = vmatmul.bf16.gmra.mxu3 %v4001_v51  ;;  %1564 = vmatmul.bf16.gmra.mxu1 %v4003_v52  ;;  %v4135_v16 = vor.u32 %v3393_v5, %v2558_v2  ;;  %v3586_v2 = vld [vmem:[%s5255_s1 + $0x434] sm:$0xf0]  ;;  %v3411_v5 = vld [vmem:[%s3752_s26 + $0x100] sm:$0xf0] }
  0x51   : > { %1938 = vmatpush.bf16.msra.mxu1 %v2863_v11  ;;  %v3394_v11 = vld [vmem:[%s3752_s26 + $0x78] sm:$0xf0] }
  0x52   : > { %1792 = vmatpush.bf16.msra.mxu2 %v3235_v27  ;;  %v4137_v17 = vor.u32 %v3394_v11, %v2566_v7  ;;  %v3219_v27 = vor.u32 %v3556_v25, %v3218_v24  ;;  %v2638_v7 = vld [vmem:[%s3752_s26 + $0xe8] sm:$0xf]  ;;  %v3412_v11 = vld [vmem:[%s3752_s26 + $0x108] sm:$0xf0]  ;;  %v2640_v24 = vld [vmem:[%s3752_s26 + $0x10c] sm:$0xf0]  ;;  %v4217_v25 = vor.u32 %v3411_v5, %v2630_v62 }
  0x53   : > { %1841 = vmatpush.bf16.msra.mxu3 %v3299_v29  ;;  %1890 = vmatpush.bf16.msra.mxu0 %v3363_v33  ;;  %v3283_v29 = vor.u32 %v3572_v28, %v3282_v26  ;;  %v3347_v33 = vor.u32 %v3588_v31, %v3346_v30  ;;  %v4219_v26 = vor.u32 %v3412_v11, %v2638_v7  ;;  %v2828_v30 = vld [vmem:[%s5255_s1 + $0x38] sm:$0xf0]  ;;  %v4264_v62 = vperm.slane %v403_v38, 0 }
  0x54   : > { %v4223_v28 = vor.u32 %v3408_v15, %v2640_v24 }
  0x55   : > { %1939 = vmatpush.bf16.msra.mxu1 %v2855_v35  ;;  %v2839_v35 = vor.u32 %v3459_v32, %v2836_v34  ;;  %v3202_v32 = vld [vmem:[%s5255_s1 + $0x320] sm:$0xf] }
  0x56   : > { %1793 = vmatpush.bf16.msra.mxu2 %v3227_v55  ;;  %v4185_v55 = vor.u32 %v3399_v42, %v2604_v43  ;;  %5300 = vst [vmem:[#allocation8_spill] sm:$0xff] %v4223_v28  ;;  %v3266_v34 = vld [vmem:[%s5255_s1 + $0x3a0] sm:$0xf]  ;;  %v3420_v42 = vld [vmem:[%s3752_s26 + $0x148] sm:$0xf0] }
  0x57   : > { %1842 = vmatpush.bf16.msra.mxu3 %v3291_v57  ;;  %1891 = vmatpush.bf16.msra.mxu0 %v3355_v61  ;;  %v3554_v57 = vld [vmem:[%s5255_s1 + $0x334] sm:$0xf0]  ;;  %v3275_v61 = vor.u32 %v3570_v60, %v3274_v58  ;;  %v3267_v37 = vor.u32 %v3568_v36, %v3266_v34  ;;  %v2674_v43 = vld [vmem:[%s3752_s26 + $0x130] sm:$0xf]  ;;  %v3416_v58 = vld [vmem:[%s3752_s26 + $0x12c] sm:$0xf] }
  0x58   : > { %5299 = vst [vmem:[#allocation7_spill] sm:$0xff] %v4185_v55  ;;  %v3211_v59 = vor.u32 %v3554_v57, %v3210_v56  ;;  %v3421_v56 = vld [vmem:[%s3752_s26 + $0x150] sm:$0xf0]  ;;  %v3331_v57 = vor.u32 %v3584_v41, %v3330_v40  ;;  %v3566_v34 = vld [vmem:[%s5255_s1 + $0x394] sm:$0xf0] }
  0x59   : > { %1940 = vmatpush.bf16.msra.mxu1 %v2847_v1  ;;  %v3338_v1 = vld [vmem:[%s5255_s1 + $0x430] sm:$0xf]  ;;  %v3417_v60 = vld [vmem:[%s3752_s26 + $0x134] sm:$0xf] }
  0x5a   : > { %1794 = vmatpush.bf16.msra.mxu2 %v3219_v27  ;;  %v3339_v12 = vor.u32 %v3586_v2, %v3338_v1  ;;  %v4221_v27 = vor.u32 %v3407_v13, %v2632_v14  ;;  %v4266_v1 = vor.u32 %v3420_v42, %v2666_v39  ;;  %v4268_v2 = vor.u32 %v3421_v56, %v2674_v43  ;;  %v3455_v13 = vld [vmem:[%s5255_s1 + $0x24] sm:$0xf]  ;;  %v2820_v14 = vld [vmem:[%s5255_s1 + $0x28] sm:$0xf0]  ;;  %v2702_v56 = vld [vmem:[%s3752_s26 + $0x170] sm:$0xf] }
  0x5b   : > { %1843 = vmatpush.bf16.msra.mxu3 %v3283_v29  ;;  %1892 = vmatpush.bf16.msra.mxu0 %v3347_v33  ;;  %v3457_v29 = vld [vmem:[%s5255_s1 + $0x34] sm:$0xf]  ;;  %v3552_v33 = vld [vmem:[%s5255_s1 + $0x324] sm:$0xf0]  ;;  %v2823_v24 = vor.u32 %v3455_v13, %v2820_v14  ;;  %v2704_v13 = vld [vmem:[%s3752_s26 + $0x194] sm:$0xf0] }
  0x5c   : > { %v2831_v31 = vor.u32 %v3457_v29, %v2828_v30  ;;  %5301 = vst [vmem:[#allocation9_spill] sm:$0xff] %v4266_v1  ;;  %v3194_v30 = vld [vmem:[%s5255_s1 + $0x310] sm:$0xf] }
  0x5d   : > { %1540 = vmatmul.bf16.gmra.mxu2 %v4047_v20  ;;  %1941 = vmatpush.bf16.msra.mxu1 %v2839_v35  ;;  %v3203_v35 = vor.u32 %v3552_v33, %v3202_v32  ;;  %5302 = vst [vmem:[#allocation10_spill] sm:$0xff] %v4268_v2  ;;  %v3258_v32 = vld [vmem:[%s5255_s1 + $0x390] sm:$0xf] }
  0x5e   : > { %1520 = vmatmul.bf16.gmra.mxu0 %v4049_v21  ;;  %1795 = vmatpush.bf16.msra.mxu2 %v3211_v59  ;;  %v2668_v59 = vld [vmem:[%s3752_s26 + $0x14c] sm:$0xf0]  ;;  %v3259_v36 = vor.u32 %v3566_v34, %v3258_v32 }
  0x5f   : > { %1844 = vmatpush.bf16.msra.mxu3 %v3275_v61  ;;  %1893 = vmatpush.bf16.msra.mxu0 %v3339_v12  ;;  %v2676_v61 = vld [vmem:[%s3752_s26 + $0x154] sm:$0xf0]  ;;  %v4270_v7 = vor.u32 %v3416_v58, %v2668_v59  ;;  %v3429_v59 = vld [vmem:[%s3752_s26 + $0x190] sm:$0xf0] }
  0x60   : > { %1589 = vmatmul.bf16.gmra.mxu3 %v4051_v22  ;;  %1569 = vmatmul.bf16.gmra.mxu1 %v4053_v23  ;;  %v4273_v12 = vor.u32 %v3417_v60, %v2676_v61  ;;  %v3582_v58 = vld [vmem:[%s5255_s1 + $0x414] sm:$0xf0]  ;;  %v3430_v61 = vld [vmem:[%s3752_s26 + $0x198] sm:$0xf0]  ;;  %v4320_v32 = vor.u32 %v3429_v59, %v2702_v56  ;;  %v3548_v59 = vld [vmem:[%s5255_s1 + $0x304] sm:$0xf0] }
  0x61   : > { %1942 = vmatpush.bf16.msra.mxu1 %v2831_v31  ;;  %v3550_v31 = vld [vmem:[%s5255_s1 + $0x314] sm:$0xf0] }
  0x62   : > { %1796 = vmatpush.bf16.msra.mxu2 %v3203_v35  ;;  %5303 = vst [vmem:[#allocation11_spill] sm:$0xff] %v4273_v12  ;;  %v3195_v33 = vor.u32 %v3550_v31, %v3194_v30  ;;  %v2710_v60 = vld [vmem:[%s3752_s26 + $0x178] sm:$0xf] }
  0x63   : > { %1845 = vmatpush.bf16.msra.mxu3 %v3267_v37  ;;  %1894 = vmatpush.bf16.msra.mxu0 %v3331_v57  ;;  %v3322_v57 = vld [vmem:[%s5255_s1 + $0x410] sm:$0xf]  ;;  %5304 = vst [vmem:[#allocation12_spill] sm:$0xff] %v4320_v32 }
  0x65   : > { %1943 = vmatpush.bf16.msra.mxu1 %v2823_v24  ;;  %v2712_v24 = vld [vmem:[%s3752_s26 + $0x19c] sm:$0xf0] }
  0x66   : > { %1797 = vmatpush.bf16.msra.mxu2 %v3195_v33  ;;  %v4322_v33 = vor.u32 %v3430_v61, %v2710_v60  ;;  %v3250_v60 = vld [vmem:[%s5255_s1 + $0x380] sm:$0xf] }
  0x67   : > { %1846 = vmatpush.bf16.msra.mxu3 %v3259_v36 }
  0x68   : > { %5305 = vst [vmem:[#allocation13_spill] sm:$0xff] %v4322_v33 }
  0x6d   : > { %1603 = vmatmul.bf16.vlgmr.msrb.gmra.mxu2 %v4091_v44 }
  0x6e   : > { %1701 = vmatmul.bf16.vlgmr.msrb.gmra.mxu0 %v4093_v45 }
  0x70   : > { %1652 = vmatmul.bf16.vlgmr.msrb.gmra.mxu3 %v4095_v46  ;;  %1750 = vmatmul.bf16.vlgmr.msrb.gmra.mxu1 %v4097_v47 }
  0x7d   : > { %1608 = vmatmul.bf16.gmra.mxu2 %v4135_v16 }
  0x7e   : > { %1706 = vmatmul.bf16.gmra.mxu0 %v4137_v17 }
  0x80   : > { %1657 = vmatmul.bf16.gmra.mxu3 %v4139_v18  ;;  %1755 = vmatmul.bf16.gmra.mxu1 %v4141_v19  ;;  %v2784_v19 = vld [vmem:[%s3752_s26 + $0x22c] sm:$0xf0] }
  0x8d   : > { %1613 = vmatmul.bf16.gmra.mxu2 %v4179_v48 }
  0x8e   : > { %1711 = vmatmul.bf16.gmra.mxu0 %v4181_v53 }
  0x90   : > { %1662 = vmatmul.bf16.gmra.mxu3 %v4183_v54  ;;  %1760 = vmatmul.bf16.gmra.mxu1 %v4185_v55 }
  0x9d   : > { %1618 = vmatmul.bf16.gmra.mxu2 %v4217_v25 }
  0x9e   : > { %1716 = vmatmul.bf16.gmra.mxu0 %v4219_v26 }
  0xa0   : > { %1667 = vmatmul.bf16.gmra.mxu3 %v4221_v27  ;;  %1765 = vmatmul.bf16.gmra.mxu1 %v4223_v28 }
  0xaa   : > { %v1506_v5 = vpop.f32.mrf.mxu0 }
  0xab   : > { %v1507_v11 = vadd.f32 %v1506_v5, %v4264_v62  ;;  %v3323_v5 = vor.u32 %v3582_v58, %v3322_v57  ;;  %v3186_v58 = vld [vmem:[%s5255_s1 + $0x300] sm:$0xf] }
  0xac   : > { %v3187_v61 = vor.u32 %v3548_v59, %v3186_v58  ;;  %v2746_v58 = vld [vmem:[%s3752_s26 + $0x1c0] sm:$0xf]  ;;  %v3439_v59 = vld [vmem:[%s3752_s26 + $0x1e0] sm:$0xf0] }
  0xad   : > { %v1555_v15 = vpop.f32.mrf.mxu1  ;;  %1623 = vmatmul.bf16.gmra.mxu2 %v4266_v1  ;;  %1895 = vmatpush.bf16.msra.mxu0 %v3323_v5  ;;  %v3564_v5 = vld [vmem:[%s5255_s1 + $0x384] sm:$0xf0] }
  0xae   : > { %v4282_v29 = vadd.f32 %v1555_v15, %v1507_v11  ;;  %1721 = vmatmul.bf16.gmra.mxu0 %v4268_v2  ;;  %v3425_v11 = vld [vmem:[%s3752_s26 + $0x174] sm:$0xf]  ;;  %v3426_v15 = vld [vmem:[%s3752_s26 + $0x17c] sm:$0xf]  ;;  %1798 = vmatpush.bf16.msra.mxu2 %v3187_v61 }
  0xaf   : > { %v3434_v61 = vld [vmem:[%s3752_s26 + $0x1bc] sm:$0xf] }
  0xb0   : > { %1672 = vmatmul.bf16.gmra.mxu3 %v4270_v7  ;;  %1770 = vmatmul.bf16.gmra.mxu1 %v4273_v12  ;;  %v1526_v35 = vpop.f32.mrf.mxu2 }
  0xb1   : > { %v1527_v37 = vadd.f32 %v1526_v35, %v4264_v62  ;;  %v1575_v38 = vpop.f32.mrf.mxu3  ;;  %v4324_v35 = vor.u32 %v3425_v11, %v2704_v13  ;;  %v3251_v13 = vor.u32 %v3564_v5, %v3250_v60  ;;  %v2740_v5 = vld [vmem:[%s3752_s26 + $0x1dc] sm:$0xf0] }
  0xb2   : > { %v1508_v39 = vpop.f32.mrf.mxu0  ;;  %v4380_v12 = vor.u32 %v3434_v61, %v2740_v5  ;;  %v2924_v61 = vld [vmem:[%s5255_s1 + $0xf8] sm:$0xf0]  ;;  %v3497_v5 = vld [vmem:[%s5255_s1 + $0x174] sm:$0xf] }
  0xb3   : > { %v4300_v40 = vadd.f32 %v1575_v38, %v1527_v37  ;;  %v1509_v41 = vadd.f32 %v1508_v39, %v4264_v62  ;;  %5306 = vst [vmem:[#allocation14_spill] sm:$0xff] %v4324_v35  ;;  %v4329_v38 = vor.u32 %v3426_v15, %v2712_v24  ;;  %v3453_v39 = vld [vmem:[%s5255_s1 + $0x14] sm:$0xf]  ;;  %1847 = vmatpush.bf16.msra.mxu3 %v3251_v13  ;;  %v3435_v13 = vld [vmem:[%s3752_s26 + $0x1c4] sm:$0xf] }
  0xb4   : > { %5310 = vst [vmem:[#allocation18_spill] sm:$0xff] %v4380_v12 }
  0xb5   : > { %v1557_v42 = vpop.f32.mrf.mxu1  ;;  %5307 = vst [vmem:[#allocation15_spill] sm:$0xff] %v4329_v38 }
  0xb6   : > { %v4303_v43 = vadd.f32 %v1557_v42, %v1509_v41  ;;  %v2812_v41 = vld [vmem:[%s5255_s1 + $0x18] sm:$0xf0] }
  0xb7   : > { %v2815_v56 = vor.u32 %v3453_v39, %v2812_v41  ;;  %v2738_v39 = vld [vmem:[%s3752_s26 + $0x1b8] sm:$0xf]  ;;  %v3314_v41 = vld [vmem:[%s5255_s1 + $0x400] sm:$0xf] }
  0xb8   : > { %v1528_v14 = vpop.f32.mrf.mxu2 }
  0xb9   : > { %v1529_v30 = vadd.f32 %v1528_v14, %v4264_v62  ;;  %v1577_v31 = vpop.f32.mrf.mxu3  ;;  %1944 = vmatpush.bf16.msra.mxu1 %v2815_v56  ;;  %v3438_v56 = vld [vmem:[%s3752_s26 + $0x1d8] sm:$0xf0] }
  0xbb   : > { %v1511_v34 = vpop.f32.mrf.mxu0  ;;  %v4326_v36 = vadd.f32 %v1577_v31, %v1529_v30 }
  0xbc   : > { %v1512_v37 = vadd.f32 %v1511_v34, %v4264_v62 }
  0xbd   : > { %v1560_v42 = vpop.f32.mrf.mxu1  ;;  %1628 = vmatmul.bf16.gmra.mxu2 %v4320_v32 }
  0xbe   : > { %v4338_v57 = vadd.f32 %v1560_v42, %v1512_v37  ;;  %1726 = vmatmul.bf16.gmra.mxu0 %v4322_v33  ;;  %v3580_v42 = vld [vmem:[%s5255_s1 + $0x404] sm:$0xf0] }
  0xbf   : > { %v3315_v60 = vor.u32 %v3580_v42, %v3314_v41 }
  0xc0   : > { %1677 = vmatmul.bf16.gmra.mxu3 %v4324_v35  ;;  %1775 = vmatmul.bf16.gmra.mxu1 %v4329_v38  ;;  %v1531_v11 = vpop.f32.mrf.mxu2 }
  0xc1   : > { %v1532_v14 = vadd.f32 %v1531_v11, %v4264_v62  ;;  %1896 = vmatpush.bf16.msra.mxu0 %v3315_v60  ;;  %v3451_v60 = vld [vmem:[%s5255_s1 + $0x4] sm:$0xf] }
  0xc3   : > { %v1580_v15 = vpop.f32.mrf.mxu3  ;;  %v1513_v24 = vpop.f32.mrf.mxu0 }
  0xc4   : > { %v4356_v30 = vadd.f32 %v1580_v15, %v1532_v14  ;;  %v1514_v31 = vadd.f32 %v1513_v24, %v4264_v62  ;;  %v2748_v14 = vld [vmem:[%s3752_s26 + $0x1e4] sm:$0xf0] }
  0xc5   : > { %v1562_v34 = vpop.f32.mrf.mxu1  ;;  %v4385_v42 = vor.u32 %v3435_v13, %v2748_v14  ;;  %v2988_v13 = vld [vmem:[%s5255_s1 + $0x178] sm:$0xf0] }
  0xc6   : > { %v4359_v37 = vadd.f32 %v1562_v34, %v1514_v31  ;;  %v4376_v31 = vor.u32 %v3438_v56, %v2738_v39  ;;  %v4378_v34 = vor.u32 %v3439_v59, %v2746_v58  ;;  %v2804_v39 = vld [vmem:[%s5255_s1 + $0x8] sm:$0xf0] }
  0xc7   : > { %5311 = vst [vmem:[#allocation19_spill] sm:$0xff] %v4385_v42  ;;  %v2807_v58 = vor.u32 %v3451_v60, %v2804_v39 }
  0xc8   : > { %v1533_v11 = vpop.f32.mrf.mxu2  ;;  %5308 = vst [vmem:[#allocation16_spill] sm:$0xff] %v4376_v31 }
  0xc9   : > { %v1534_v15 = vadd.f32 %v1533_v11, %v4264_v62  ;;  %5309 = vst [vmem:[#allocation17_spill] sm:$0xff] %v4378_v34  ;;  %1945 = vmatpush.bf16.msra.mxu1 %v2807_v58 }
  0xcb   : > { %v1582_v24 = vpop.f32.mrf.mxu3  ;;  %v1516_v38 = vpop.f32.mrf.mxu0 }
  0xcc   : > { %v4382_v28 = vadd.f32 %v1582_v24, %v1534_v15  ;;  %v1517_v41 = vadd.f32 %v1516_v38, %v4264_v62  ;;  %v3481_v38 = vld [vmem:[%s5255_s1 + $0xf4] sm:$0xf]  ;;  %v2991_v15 = vor.u32 %v3497_v5, %v2988_v13  ;;  %v3447_v13 = vld [vmem:[%s3752_s26 + $0x220] sm:$0xf0] }
  0xcd   : > { %v1565_v56 = vpop.f32.mrf.mxu1  ;;  %1633 = vmatmul.bf16.gmra.mxu2 %v4376_v31  ;;  %v2927_v11 = vor.u32 %v3481_v38, %v2924_v61  ;;  %v2774_v61 = vld [vmem:[%s3752_s26 + $0x200] sm:$0xf]  ;;  %v3513_v5 = vld [vmem:[%s5255_s1 + $0x1f4] sm:$0xf] }
  0xce   : > { %v4394_v59 = vadd.f32 %v1565_v56, %v1517_v41  ;;  %1731 = vmatmul.bf16.gmra.mxu0 %v4378_v34  ;;  %2036 = vmatpush.bf16.msrb.mxu3 %v2991_v15  ;;  %v3448_v15 = vld [vmem:[%s3752_s26 + $0x228] sm:$0xf0]  ;;  %v4432_v47 = vor.u32 %v3447_v13, %v2774_v61  ;;  %v3116_v61 = vld [vmem:[%s5255_s1 + $0x278] sm:$0xf0] }
  0xcf   : > { %1987 = vmatpush.bf16.msrb.mxu2 %v2927_v11  ;;  %v3052_v11 = vld [vmem:[%s5255_s1 + $0x1f8] sm:$0xf0] }
  0xd0   : > { %1682 = vmatmul.bf16.gmra.mxu3 %v4380_v12  ;;  %1780 = vmatmul.bf16.gmra.mxu1 %v4385_v42  ;;  %v1536_v14 = vpop.f32.mrf.mxu2  ;;  %v3055_v42 = vor.u32 %v3513_v5, %v3052_v11  ;;  %5312 = vst [vmem:[#allocation20_spill] sm:$0xff] %v4432_v47 }
  0xd1   : > { %v1537_v24 = vadd.f32 %v1536_v14, %v4264_v62  ;;  %v2782_v14 = vld [vmem:[%s3752_s26 + $0x208] sm:$0xf] }
  0xd2   : > { %2085 = vmatpush.bf16.msrb.mxu0 %v3055_v42  ;;  %v4434_v22 = vor.u32 %v3448_v15, %v2782_v14  ;;  %v3495_v14 = vld [vmem:[%s5255_s1 + $0x164] sm:$0xf]  ;;  %v2980_v15 = vld [vmem:[%s5255_s1 + $0x168] sm:$0xf0] }
  0xd3   : > { %v1585_v41 = vpop.f32.mrf.mxu3  ;;  %v1518_v60 = vpop.f32.mrf.mxu0 }
  0xd4   : > { %v4412_v39 = vadd.f32 %v1585_v41, %v1537_v24  ;;  %v1519_v56 = vadd.f32 %v1518_v60, %v4264_v62  ;;  %v3443_v24 = vld [vmem:[%s3752_s26 + $0x204] sm:$0xf]  ;;  %v2776_v41 = vld [vmem:[%s3752_s26 + $0x224] sm:$0xf0]  ;;  %v3444_v60 = vld [vmem:[%s3752_s26 + $0x20c] sm:$0xf] }
  0xd5   : > { %v1567_v58 = vpop.f32.mrf.mxu1  ;;  %5313 = vst [vmem:[#allocation21_spill] sm:$0xff] %v4434_v22  ;;  %v4436_v31 = vor.u32 %v3443_v24, %v2776_v41  ;;  %v4441_v11 = vor.u32 %v3444_v60, %v2784_v19  ;;  %v3479_v19 = vld [vmem:[%s5255_s1 + $0xe4] sm:$0xf]  ;;  %v2983_v41 = vor.u32 %v3495_v14, %v2980_v15  ;;  %v3044_v14 = vld [vmem:[%s5255_s1 + $0x1e8] sm:$0xf0] }
  0xd6   : > { %v4415_v38 = vadd.f32 %v1567_v58, %v1519_v56  ;;  %v3386_v15 = vld [vmem:[%s3752_s26 + $0x38] sm:$0xf0] }
  0xd7   : > { %5314 = vst [vmem:[#allocation22_spill] sm:$0xff] %v4436_v31  ;;  %2037 = vmatpush.bf16.msrb.mxu3 %v2983_v41 }
  0xd8   : > { %v1538_v55 = vpop.f32.mrf.mxu2  ;;  %5315 = vst [vmem:[#allocation23_spill] sm:$0xff] %v4441_v11 }
  0xd9   : > { %v1539_v56 = vadd.f32 %v1538_v55, %v4264_v62  ;;  %v3529_v55 = vld [vmem:[%s5255_s1 + $0x274] sm:$0xf] }
  0xdb   : > { %v1587_v58 = vpop.f32.mrf.mxu3  ;;  %v1521_v34 = vpop.f32.mrf.mxu0 }
  0xdc   : > { %v4438_v12 = vadd.f32 %v1587_v58, %v1539_v56  ;;  %v1522_v5 = vadd.f32 %v1521_v34, %v4264_v62  ;;  %v3119_v34 = vor.u32 %v3529_v55, %v3116_v61 }
  0xdd   : > { %v1570_v51 = vpop.f32.mrf.mxu1  ;;  %1638 = vmatmul.bf16.gmra.mxu2 %v4432_v47 }
  0xde   : > { %v4444_v42 = vadd.f32 %v1570_v51, %v1522_v5  ;;  %1736 = vmatmul.bf16.gmra.mxu0 %v4434_v22  ;;  %v2916_v51 = vld [vmem:[%s5255_s1 + $0xe8] sm:$0xf0]  ;;  %2134 = vmatpush.bf16.msrb.mxu1 %v3119_v34  ;;  %v3511_v34 = vld [vmem:[%s5255_s1 + $0x1e4] sm:$0xf] }
  0xdf   : > { %v2919_v13 = vor.u32 %v3479_v19, %v2916_v51  ;;  %v2538_v51 = vld [vmem:[%s3752_s26 + $0x18] sm:$0xf]  ;;  %v3047_v41 = vor.u32 %v3511_v34, %v3044_v14  ;;  %v3527_v34 = vld [vmem:[%s5255_s1 + $0x264] sm:$0xf]  ;;  %v2908_v14 = vld [vmem:[%s5255_s1 + $0xd8] sm:$0xf0] }
  0xe0   : > { %1687 = vmatmul.bf16.gmra.mxu3 %v4436_v31  ;;  %1785 = vmatmul.bf16.gmra.mxu1 %v4441_v11  ;;  %v1541_v24 = vpop.f32.mrf.mxu2 }
  0xe1   : > { %v1542_v60 = vadd.f32 %v1541_v24, %v4264_v62  ;;  %1988 = vmatpush.bf16.msrb.mxu2 %v2919_v13  ;;  %v2546_v13 = vld [vmem:[%s3752_s26 + $0x20] sm:$0xf]  ;;  %v3387_v24 = vld [vmem:[%s3752_s26 + $0x40] sm:$0xf0]  ;;  %2086 = vmatpush.bf16.msrb.mxu0 %v3047_v41 }
  0xe2   : > { %v4488_v22 = vor.u32 %v3387_v24, %v2546_v13  ;;  %v3493_v13 = vld [vmem:[%s5255_s1 + $0x154] sm:$0xf]  ;;  %v2972_v24 = vld [vmem:[%s5255_s1 + $0x158] sm:$0xf0] }
  0xe3   : > { %v1590_v56 = vpop.f32.mrf.mxu3  ;;  %v1523_v58 = vpop.f32.mrf.mxu0 }
  0xe4   : > { %v4468_v5 = vadd.f32 %v1590_v56, %v1542_v60  ;;  %v1524_v55 = vadd.f32 %v1523_v58, %v4264_v62  ;;  %v3382_v60 = vld [vmem:[%s3752_s26 + $0x1c] sm:$0xf]  ;;  %v2540_v56 = vld [vmem:[%s3752_s26 + $0x3c] sm:$0xf0]  ;;  %5317 = vst [vmem:[#allocation25_spill] sm:$0xff] %v4488_v22 }
  0xe5   : > { %v1572_v61 = vpop.f32.mrf.mxu1  ;;  %v4490_v31 = vor.u32 %v3382_v60, %v2540_v56  ;;  %v2975_v60 = vor.u32 %v3493_v13, %v2972_v24  ;;  %v3395_v13 = vld [vmem:[%s3752_s26 + $0x80] sm:$0xf0]  ;;  %v2582_v24 = vld [vmem:[%s3752_s26 + $0x68] sm:$0xf] }
  0xe6   : > { %v4471_v19 = vadd.f32 %v1572_v61, %v1524_v55  ;;  %v4486_v61 = vor.u32 %v3386_v15, %v2538_v51  ;;  %v3477_v51 = vld [vmem:[%s5255_s1 + $0xd4] sm:$0xf] }
  0xe7   : > { %5318 = vst [vmem:[#allocation26_spill] sm:$0xff] %v4490_v31  ;;  %v2911_v15 = vor.u32 %v3477_v51, %v2908_v14  ;;  %2038 = vmatpush.bf16.msrb.mxu3 %v2975_v60  ;;  %v2574_v51 = vld [vmem:[%s3752_s26 + $0x60] sm:$0xf]  ;;  %v3509_v14 = vld [vmem:[%s5255_s1 + $0x1d4] sm:$0xf] }
  0xe8   : > { %v1543_v11 = vpop.f32.mrf.mxu2  ;;  %5316 = vst [vmem:[#allocation24_spill] sm:$0xff] %v4486_v61 }
  0xe9   : > { %v1544_v58 = vadd.f32 %v1543_v11, %v4264_v62  ;;  %v3108_v62 = vld [vmem:[%s5255_s1 + $0x268] sm:$0xf0]  ;;  %1989 = vmatpush.bf16.msrb.mxu2 %v2911_v15  ;;  %v2576_v15 = vld [vmem:[%s3752_s26 + $0x84] sm:$0xf0] }
  0xea   : > { %v3111_v11 = vor.u32 %v3527_v34, %v3108_v62 }
  0xeb   : > { %v1592_v55 = vpop.f32.mrf.mxu3  ;;  %v1702_v47 = vpop.f32.mrf.mxu0 }
  0xec   : > { %v4492_v33 = vadd.f32 %v1592_v55, %v1544_v58  ;;  %2135 = vmatpush.bf16.msrb.mxu1 %v3111_v11  ;;  %v3036_v11 = vld [vmem:[%s5255_s1 + $0x1d8] sm:$0xf0] }
  0xed   : > { %v1751_v32 = vpop.f32.mrf.mxu1  ;;  %1799 = vmatmul.bf16.vlgmr.msra.gmra.mxu2 %v4486_v61 }
  0xee   : > { %1897 = vmatmul.bf16.vlgmr.msra.gmra.mxu0 %v4488_v22  ;;  %v3391_v22 = vld [vmem:[%s3752_s26 + $0x64] sm:$0xf] }
  0xef   : > { %v4536_v35 = vor.u32 %v3391_v22, %v2576_v15  ;;  %v3475_v22 = vld [vmem:[%s5255_s1 + $0xc4] sm:$0xf] }
  0xf0   : > { %1848 = vmatmul.bf16.vlgmr.msra.gmra.mxu3 %v4490_v31  ;;  %1946 = vmatmul.bf16.vlgmr.msra.gmra.mxu1 %v3800_v4  ;;  %v1604_v41 = vpop.f32.mrf.mxu2 }
  0xf1   : > { %v1605_v56 = vadd.f32 %v1604_v41, %v4282_v29  ;;  %v3396_v29 = vld [vmem:[%s3752_s26 + $0x88] sm:$0xf0]  ;;  %v3039_v41 = vor.u32 %v3509_v14, %v3036_v11 }
  0xf2   : > { %v2964_v14 = vld [vmem:[%s5255_s1 + $0x148] sm:$0xf0] }
  0xf3   : > { %v1653_v4 = vpop.f32.mrf.mxu3  ;;  %v1704_v58 = vpop.f32.mrf.mxu0  ;;  %2087 = vmatpush.bf16.msrb.mxu0 %v3039_v41 }
  0xf4   : > { %v1654_v55 = vadd.f32 %v1653_v4, %v1605_v56  ;;  %v4532_v4 = vor.u32 %v3395_v13, %v2574_v51  ;;  %v3491_v51 = vld [vmem:[%s5255_s1 + $0x144] sm:$0xf] }
  0xf5   : > { %v1753_v34 = vpop.f32.mrf.mxu1 }
  0xf6   : > { %v1703_v62 = vadd.f32 %v1702_v47, %v1654_v55  ;;  %5319 = vst [vmem:[#allocation27_spill] sm:$0xff] %v4532_v4  ;;  %v4534_v55 = vor.u32 %v3396_v29, %v2582_v24  ;;  %v2967_v24 = vor.u32 %v3491_v51, %v2964_v14 }
  0xf8   : > { %v4529_v61 = vadd.f32 %v1751_v32, %v1703_v62  ;;  %v1606_v60 = vpop.f32.mrf.mxu2  ;;  %5320 = vst [vmem:[#allocation28_spill] sm:$0xff] %v4534_v55  ;;  %v3525_v32 = vld [vmem:[%s5255_s1 + $0x254] sm:$0xf]  ;;  %2039 = vmatpush.bf16.msrb.mxu3 %v2967_v24 }
  0xf9   : > { %v1607_v47 = vadd.f32 %v1606_v60, %v4303_v43  ;;  %v3100_v43 = vld [vmem:[%s5255_s1 + $0x258] sm:$0xf0] }
  0xfa   : > { %v3103_v62 = vor.u32 %v3525_v32, %v3100_v43  ;;  %v3404_v32 = vld [vmem:[%s3752_s26 + $0xc8] sm:$0xf0]  ;;  %v2618_v43 = vld [vmem:[%s3752_s26 + $0xb0] sm:$0xf] }
  0xfb   : > { %v1655_v56 = vpop.f32.mrf.mxu3  ;;  %v1707_v31 = vpop.f32.mrf.mxu0 }
  0xfc   : > { %v1656_v6 = vadd.f32 %v1655_v56, %v1607_v47  ;;  %2136 = vmatpush.bf16.msrb.mxu1 %v3103_v62  ;;  %v2610_v56 = vld [vmem:[%s3752_s26 + $0xa8] sm:$0xf] }
  0xfd   : > { %v1756_v2 = vpop.f32.mrf.mxu1  ;;  %1804 = vmatmul.bf16.gmra.mxu2 %v4532_v4 }
  0xfe   : > { %v1705_v1 = vadd.f32 %v1704_v58, %v1656_v6  ;;  %1902 = vmatmul.bf16.gmra.mxu0 %v4534_v55  ;;  %v2900_v6 = vld [vmem:[%s5255_s1 + $0xc8] sm:$0xf0] }
  0xff   : > { %v2903_v58 = vor.u32 %v3475_v22, %v2900_v6  ;;  %v3400_v22 = vld [vmem:[%s3752_s26 + $0xac] sm:$0xf]  ;;  %v2612_v6 = vld [vmem:[%s3752_s26 + $0xcc] sm:$0xf0] }
 0x100   : > { %1853 = vmatmul.bf16.gmra.mxu3 %v4536_v35  ;;  %1951 = vmatmul.bf16.gmra.mxu1 %v3916_v0  ;;  %v4560_v11 = vadd.f32 %v1753_v34, %v1705_v1  ;;  %v1609_v13 = vpop.f32.mrf.mxu2  ;;  %v3507_v1 = vld [vmem:[%s5255_s1 + $0x1c4] sm:$0xf]  ;;  %v3028_v34 = vld [vmem:[%s5255_s1 + $0x1c8] sm:$0xf0] }
 0x101   : > { %v1610_v0 = vadd.f32 %v1609_v13, %v4338_v57  ;;  %1990 = vmatpush.bf16.msrb.mxu2 %v2903_v58  ;;  %v3405_v57 = vld [vmem:[%s3752_s26 + $0xd0] sm:$0xf0]  ;;  %v3031_v62 = vor.u32 %v3507_v1, %v3028_v34  ;;  %v4578_v13 = vor.u32 %v3404_v32, %v2610_v56  ;;  %v2956_v32 = vld [vmem:[%s5255_s1 + $0x138] sm:$0xf0] }
 0x102   : > { %v4580_v24 = vor.u32 %v3405_v57, %v2618_v43  ;;  %v3473_v56 = vld [vmem:[%s5255_s1 + $0xb4] sm:$0xf] }
 0x103   : > { %v1658_v29 = vpop.f32.mrf.mxu3  ;;  %v1709_v41 = vpop.f32.mrf.mxu0  ;;  %2088 = vmatpush.bf16.msrb.mxu0 %v3031_v62  ;;  %5321 = vst [vmem:[#allocation29_spill] sm:$0xff] %v4578_v13  ;;  %v3489_v34 = vld [vmem:[%s5255_s1 + $0x134] sm:$0xf] }
 0x104   : > { %v1659_v15 = vadd.f32 %v1658_v29, %v1610_v0  ;;  %5322 = vst [vmem:[#allocation30_spill] sm:$0xff] %v4580_v24  ;;  %v4582_v29 = vor.u32 %v3400_v22, %v2612_v6  ;;  %v2959_v62 = vor.u32 %v3489_v34, %v2956_v32 }
 0x105   : > { %v1758_v60 = vpop.f32.mrf.mxu1 }
 0x106   : > { %v1708_v47 = vadd.f32 %v1707_v31, %v1659_v15  ;;  %2040 = vmatpush.bf16.msrb.mxu3 %v2959_v62 }
 0x108   : > { %v4575_v58 = vadd.f32 %v1756_v2, %v1708_v47  ;;  %v1611_v51 = vpop.f32.mrf.mxu2  ;;  %v3523_v2 = vld [vmem:[%s5255_s1 + $0x244] sm:$0xf] }
 0x109   : > { %v1612_v31 = vadd.f32 %v1611_v51, %v4359_v37  ;;  %v3092_v37 = vld [vmem:[%s5255_s1 + $0x248] sm:$0xf0] }
 0x10a   : > { %v3095_v47 = vor.u32 %v3523_v2, %v3092_v37  ;;  %v3413_v2 = vld [vmem:[%s3752_s26 + $0x110] sm:$0xf0]  ;;  %v2654_v37 = vld [vmem:[%s3752_s26 + $0xf8] sm:$0xf] }
 0x10b   : > { %v1660_v14 = vpop.f32.mrf.mxu3  ;;  %v1712_v0 = vpop.f32.mrf.mxu0 }
 0x10c   : > { %v1661_v15 = vadd.f32 %v1660_v14, %v1612_v31  ;;  %2137 = vmatpush.bf16.msrb.mxu1 %v3095_v47 }
 0x10d   : > { %v1761_v55 = vpop.f32.mrf.mxu1  ;;  %1809 = vmatmul.bf16.gmra.mxu2 %v4578_v13 }
 0x10e   : > { %v1710_v4 = vadd.f32 %v1709_v41, %v1661_v15  ;;  %1907 = vmatmul.bf16.gmra.mxu0 %v4580_v24  ;;  %v2892_v41 = vld [vmem:[%s5255_s1 + $0xb8] sm:$0xf0]  ;;  %v2646_v15 = vld [vmem:[%s3752_s26 + $0xf0] sm:$0xf] }
 0x10f   : > { %v2895_v1 = vor.u32 %v3473_v56, %v2892_v41  ;;  %v3409_v56 = vld [vmem:[%s3752_s26 + $0xf4] sm:$0xf]  ;;  %v2648_v41 = vld [vmem:[%s3752_s26 + $0x114] sm:$0xf0] }
 0x110   : > { %1858 = vmatmul.bf16.gmra.mxu3 %v4582_v29  ;;  %1956 = vmatmul.bf16.gmra.mxu1 %v3999_v50  ;;  %v4606_v43 = vadd.f32 %v1758_v60, %v1710_v4  ;;  %v1614_v57 = vpop.f32.mrf.mxu2  ;;  %v3505_v4 = vld [vmem:[%s5255_s1 + $0x1b4] sm:$0xf]  ;;  %v3020_v60 = vld [vmem:[%s5255_s1 + $0x1b8] sm:$0xf0] }
 0x111   : > { %v1615_v50 = vadd.f32 %v1614_v57, %v4394_v59  ;;  %1991 = vmatpush.bf16.msrb.mxu2 %v2895_v1  ;;  %v3414_v59 = vld [vmem:[%s3752_s26 + $0x118] sm:$0xf0]  ;;  %v3023_v47 = vor.u32 %v3505_v4, %v3020_v60  ;;  %v4624_v57 = vor.u32 %v3413_v2, %v2646_v15  ;;  %v3471_v15 = vld [vmem:[%s5255_s1 + $0xa4] sm:$0xf]  ;;  %v2948_v2 = vld [vmem:[%s5255_s1 + $0x128] sm:$0xf0] }
 0x112   : > { %v4626_v62 = vor.u32 %v3414_v59, %v2654_v37  ;;  %v3487_v60 = vld [vmem:[%s5255_s1 + $0x124] sm:$0xf] }
 0x113   : > { %v1663_v22 = vpop.f32.mrf.mxu3  ;;  %v1714_v6 = vpop.f32.mrf.mxu0  ;;  %2089 = vmatpush.bf16.msrb.mxu0 %v3023_v47  ;;  %5323 = vst [vmem:[#allocation31_spill] sm:$0xff] %v4624_v57  ;;  %v2951_v47 = vor.u32 %v3487_v60, %v2948_v2 }
 0x114   : > { %v1664_v51 = vadd.f32 %v1663_v22, %v1615_v50  ;;  %5324 = vst [vmem:[#allocation32_spill] sm:$0xff] %v4626_v62  ;;  %v4628_v22 = vor.u32 %v3409_v56, %v2648_v41 }
 0x115   : > { %v1763_v31 = vpop.f32.mrf.mxu1  ;;  %2041 = vmatpush.bf16.msrb.mxu3 %v2951_v47 }
 0x116   : > { %v1713_v14 = vadd.f32 %v1712_v0, %v1664_v51 }
 0x118   : > { %v4621_v1 = vadd.f32 %v1761_v55, %v1713_v14  ;;  %v1616_v34 = vpop.f32.mrf.mxu2  ;;  %v3521_v55 = vld [vmem:[%s5255_s1 + $0x234] sm:$0xf] }
 0x119   : > { %v1617_v0 = vadd.f32 %v1616_v34, %v4415_v38  ;;  %v3084_v38 = vld [vmem:[%s5255_s1 + $0x238] sm:$0xf0] }
 0x11a   : > { %v3087_v14 = vor.u32 %v3521_v55, %v3084_v38  ;;  %v3422_v55 = vld [vmem:[%s3752_s26 + $0x158] sm:$0xf0]  ;;  %v2690_v38 = vld [vmem:[%s3752_s26 + $0x140] sm:$0xf] }
 0x11b   : > { %v1665_v32 = vpop.f32.mrf.mxu3  ;;  %v1717_v50 = vpop.f32.mrf.mxu0 }
 0x11c   : > { %v1666_v51 = vadd.f32 %v1665_v32, %v1617_v0  ;;  %2138 = vmatpush.bf16.msrb.mxu1 %v3087_v14 }
 0x11d   : > { %v1766_v24 = vpop.f32.mrf.mxu1  ;;  %1814 = vmatmul.bf16.gmra.mxu2 %v4624_v57 }
 0x11e   : > { %v1715_v13 = vadd.f32 %v1714_v6, %v1666_v51  ;;  %1912 = vmatmul.bf16.gmra.mxu0 %v4626_v62  ;;  %v2884_v6 = vld [vmem:[%s5255_s1 + $0xa8] sm:$0xf0]  ;;  %v2682_v51 = vld [vmem:[%s3752_s26 + $0x138] sm:$0xf] }
 0x11f   : > { %v2887_v4 = vor.u32 %v3471_v15, %v2884_v6  ;;  %v3418_v15 = vld [vmem:[%s3752_s26 + $0x13c] sm:$0xf]  ;;  %v2684_v6 = vld [vmem:[%s3752_s26 + $0x15c] sm:$0xf0] }
 0x120   : > { %1863 = vmatmul.bf16.gmra.mxu3 %v4628_v22  ;;  %1961 = vmatmul.bf16.gmra.mxu1 %v4049_v21  ;;  %v4652_v37 = vadd.f32 %v1763_v31, %v1715_v13  ;;  %v1619_v59 = vpop.f32.mrf.mxu2  ;;  %v3503_v13 = vld [vmem:[%s5255_s1 + $0x1a4] sm:$0xf]  ;;  %v3012_v31 = vld [vmem:[%s5255_s1 + $0x1a8] sm:$0xf0] }
 0x121   : > { %v1620_v21 = vadd.f32 %v1619_v59, %v4444_v42  ;;  %1992 = vmatpush.bf16.msrb.mxu2 %v2887_v4  ;;  %v3423_v42 = vld [vmem:[%s3752_s26 + $0x160] sm:$0xf0]  ;;  %v3015_v14 = vor.u32 %v3503_v13, %v3012_v31  ;;  %v4670_v59 = vor.u32 %v3422_v55, %v2682_v51  ;;  %v3469_v51 = vld [vmem:[%s5255_s1 + $0x94] sm:$0xf]  ;;  %v2940_v55 = vld [vmem:[%s5255_s1 + $0x118] sm:$0xf0] }
 0x122   : > { %v4672_v47 = vor.u32 %v3423_v42, %v2690_v38  ;;  %v3485_v31 = vld [vmem:[%s5255_s1 + $0x114] sm:$0xf] }
 0x123   : > { %v1668_v56 = vpop.f32.mrf.mxu3  ;;  %v1719_v41 = vpop.f32.mrf.mxu0  ;;  %2090 = vmatpush.bf16.msrb.mxu0 %v3015_v14  ;;  %5325 = vst [vmem:[#allocation33_spill] sm:$0xff] %v4670_v59  ;;  %v2943_v14 = vor.u32 %v3485_v31, %v2940_v55 }
 0x124   : > { %v1669_v34 = vadd.f32 %v1668_v56, %v1620_v21  ;;  %5326 = vst [vmem:[#allocation34_spill] sm:$0xff] %v4672_v47  ;;  %v4674_v56 = vor.u32 %v3418_v15, %v2684_v6 }
 0x125   : > { %v1768_v0 = vpop.f32.mrf.mxu1  ;;  %2042 = vmatpush.bf16.msrb.mxu3 %v2943_v14 }
 0x126   : > { %v1718_v32 = vadd.f32 %v1717_v50, %v1669_v34 }
 0x128   : > { %v4667_v4 = vadd.f32 %v1766_v24, %v1718_v32  ;;  %v1621_v60 = vpop.f32.mrf.mxu2  ;;  %v3519_v24 = vld [vmem:[%s5255_s1 + $0x224] sm:$0xf] }
 0x129   : > { %v1622_v50 = vadd.f32 %v1621_v60, %v4471_v19  ;;  %v3076_v19 = vld [vmem:[%s5255_s1 + $0x228] sm:$0xf0] }
 0x12a   : > { %v3079_v32 = vor.u32 %v3519_v24, %v3076_v19  ;;  %v3431_v24 = vld [vmem:[%s3752_s26 + $0x1a0] sm:$0xf0]  ;;  %v2726_v19 = vld [vmem:[%s3752_s26 + $0x188] sm:$0xf] }
 0x12b   : > { %v1670_v2 = vpop.f32.mrf.mxu3  ;;  %v1722_v21 = vpop.f32.mrf.mxu0 }
 0x12c   : > { %v1671_v34 = vadd.f32 %v1670_v2, %v1622_v50  ;;  %2139 = vmatpush.bf16.msrb.mxu1 %v3079_v32 }
 0x12d   : > { %v1771_v62 = vpop.f32.mrf.mxu1  ;;  %1819 = vmatmul.bf16.gmra.mxu2 %v4670_v59 }
 0x12e   : > { %v1720_v57 = vadd.f32 %v1719_v41, %v1671_v34  ;;  %1917 = vmatmul.bf16.gmra.mxu0 %v4672_v47  ;;  %v2876_v41 = vld [vmem:[%s5255_s1 + $0x98] sm:$0xf0]  ;;  %v2718_v34 = vld [vmem:[%s3752_s26 + $0x180] sm:$0xf] }
 0x12f   : > { %v2879_v13 = vor.u32 %v3469_v51, %v2876_v41  ;;  %v3427_v51 = vld [vmem:[%s3752_s26 + $0x184] sm:$0xf]  ;;  %v2720_v41 = vld [vmem:[%s3752_s26 + $0x1a4] sm:$0xf0] }
 0x130   : > { %1868 = vmatmul.bf16.gmra.mxu3 %v4674_v56  ;;  %1966 = vmatmul.bf16.gmra.mxu1 %v3798_v3  ;;  %v4698_v38 = vadd.f32 %v1768_v0, %v1720_v57  ;;  %v1624_v42 = vpop.f32.mrf.mxu2  ;;  %v3501_v57 = vld [vmem:[%s5255_s1 + $0x194] sm:$0xf]  ;;  %v3004_v0 = vld [vmem:[%s5255_s1 + $0x198] sm:$0xf0] }
 0x131   : > { %v1625_v3 = vadd.f32 %v1624_v42, %v4300_v40  ;;  %1993 = vmatpush.bf16.msrb.mxu2 %v2879_v13  ;;  %v3432_v40 = vld [vmem:[%s3752_s26 + $0x1a8] sm:$0xf0]  ;;  %v3007_v32 = vor.u32 %v3501_v57, %v3004_v0  ;;  %v4716_v42 = vor.u32 %v3431_v24, %v2718_v34  ;;  %v3467_v34 = vld [vmem:[%s5255_s1 + $0x84] sm:$0xf] }
 0x132   : > { %v4718_v14 = vor.u32 %v3432_v40, %v2726_v19  ;;  %v3483_v0 = vld [vmem:[%s5255_s1 + $0x104] sm:$0xf]  ;;  %v2932_v24 = vld [vmem:[%s5255_s1 + $0x108] sm:$0xf0] }
 0x133   : > { %v1673_v15 = vpop.f32.mrf.mxu3  ;;  %v1724_v6 = vpop.f32.mrf.mxu0  ;;  %2091 = vmatpush.bf16.msrb.mxu0 %v3007_v32  ;;  %v2935_v32 = vor.u32 %v3483_v0, %v2932_v24 }
 0x134   : > { %v1674_v60 = vadd.f32 %v1673_v15, %v1625_v3  ;;  %5327 = vst [vmem:[#allocation35_spill] sm:$0xff] %v4718_v14  ;;  %v4720_v15 = vor.u32 %v3427_v51, %v2720_v41 }
 0x135   : > { %v1773_v50 = vpop.f32.mrf.mxu1  ;;  %2043 = vmatpush.bf16.msrb.mxu3 %v2935_v32 }
 0x136   : > { %v1723_v2 = vadd.f32 %v1722_v21, %v1674_v60 }
 0x138   : > { %v4713_v13 = vadd.f32 %v1771_v62, %v1723_v2  ;;  %v1626_v31 = vpop.f32.mrf.mxu2  ;;  %v3517_v62 = vld [vmem:[%s5255_s1 + $0x214] sm:$0xf] }
 0x139   : > { %v1627_v21 = vadd.f32 %v1626_v31, %v4326_v36  ;;  %v3068_v36 = vld [vmem:[%s5255_s1 + $0x218] sm:$0xf0] }
 0x13a   : > { %v3071_v2 = vor.u32 %v3517_v62, %v3068_v36  ;;  %v3440_v62 = vld [vmem:[%s3752_s26 + $0x1e8] sm:$0xf0]  ;;  %v2762_v36 = vld [vmem:[%s3752_s26 + $0x1d0] sm:$0xf] }
 0x13b   : > { %v1675_v55 = vpop.f32.mrf.mxu3  ;;  %v1727_v3 = vpop.f32.mrf.mxu0 }
 0x13c   : > { %v1676_v60 = vadd.f32 %v1675_v55, %v1627_v21  ;;  %2140 = vmatpush.bf16.msrb.mxu1 %v3071_v2 }
 0x13d   : > { %v1776_v47 = vpop.f32.mrf.mxu1  ;;  %1824 = vmatmul.bf16.gmra.mxu2 %v4716_v42 }
 0x13e   : > { %v1725_v59 = vadd.f32 %v1724_v6, %v1676_v60  ;;  %1922 = vmatmul.bf16.gmra.mxu0 %v4718_v14  ;;  %v2868_v6 = vld [vmem:[%s5255_s1 + $0x88] sm:$0xf0]  ;;  %v2754_v60 = vld [vmem:[%s3752_s26 + $0x1c8] sm:$0xf] }
 0x13f   : > { %v2871_v57 = vor.u32 %v3467_v34, %v2868_v6  ;;  %v3436_v34 = vld [vmem:[%s3752_s26 + $0x1cc] sm:$0xf]  ;;  %v2756_v6 = vld [vmem:[%s3752_s26 + $0x1ec] sm:$0xf0] }
 0x140   : > { %1873 = vmatmul.bf16.gmra.mxu3 %v4720_v15  ;;  %1971 = vmatmul.bf16.gmra.mxu1 %v3914_v63  ;;  %v4744_v19 = vadd.f32 %v1773_v50, %v1725_v59  ;;  %v1629_v40 = vpop.f32.mrf.mxu2  ;;  %v3499_v59 = vld [vmem:[%s5255_s1 + $0x184] sm:$0xf]  ;;  %v2996_v50 = vld [vmem:[%s5255_s1 + $0x188] sm:$0xf0] }
 0x141   : > { %v1630_v63 = vadd.f32 %v1629_v40, %v4356_v30  ;;  %1994 = vmatpush.bf16.msrb.mxu2 %v2871_v57  ;;  %v3441_v30 = vld [vmem:[%s3752_s26 + $0x1f0] sm:$0xf0]  ;;  %v2999_v2 = vor.u32 %v3499_v59, %v2996_v50  ;;  %v4762_v40 = vor.u32 %v3440_v62, %v2754_v60  ;;  %v3515_v59 = vld [vmem:[%s5255_s1 + $0x204] sm:$0xf]  ;;  %v3180_v50 = vld [vmem:[%s5255_s1 + $0x2f8] sm:$0xf0] }
 0x142   : > { %v4764_v32 = vor.u32 %v3441_v30, %v2762_v36  ;;  %v3545_v60 = vld [vmem:[%s5255_s1 + $0x2f4] sm:$0xf]  ;;  %v3244_v36 = vld [vmem:[%s5255_s1 + $0x378] sm:$0xf0] }
 0x143   : > { %v1678_v51 = vpop.f32.mrf.mxu3  ;;  %v1729_v41 = vpop.f32.mrf.mxu0  ;;  %2092 = vmatpush.bf16.msrb.mxu0 %v2999_v2  ;;  %5328 = vst [vmem:[#allocation36_spill] sm:$0xff] %v4762_v40  ;;  %v3183_v62 = vor.u32 %v3545_v60, %v3180_v50  ;;  %v2798_v60 = vld [vmem:[%s3752_s26 + $0x218] sm:$0xf]  ;;  %v3450_v50 = vld [vmem:[%s3752_s26 + $0x238] sm:$0xf0] }
 0x144   : > { %v1679_v31 = vadd.f32 %v1678_v51, %v1630_v63  ;;  %5329 = vst [vmem:[#allocation37_spill] sm:$0xff] %v4764_v32  ;;  %v4766_v51 = vor.u32 %v3436_v34, %v2756_v6 }
 0x145   : > { %v1778_v21 = vpop.f32.mrf.mxu1  ;;  %2183 = vmatpush.bf16.msra.mxu2 %v3183_v62  ;;  %v4804_v62 = vor.u32 %v3450_v50, %v2798_v60  ;;  %v3543_v60 = vld [vmem:[%s5255_s1 + $0x2e4] sm:$0xf] }
 0x146   : > { %v1728_v55 = vadd.f32 %v1727_v3, %v1679_v31 }
 0x148   : > { %v4759_v57 = vadd.f32 %v1776_v47, %v1728_v55  ;;  %v1631_v0 = vpop.f32.mrf.mxu2  ;;  %v3060_v47 = vld [vmem:[%s5255_s1 + $0x208] sm:$0xf0] }
 0x149   : > { %v1632_v3 = vadd.f32 %v1631_v0, %v4382_v28  ;;  %v3063_v28 = vor.u32 %v3515_v59, %v3060_v47  ;;  %v2790_v59 = vld [vmem:[%s3752_s26 + $0x210] sm:$0xf]  ;;  %v3449_v47 = vld [vmem:[%s3752_s26 + $0x230] sm:$0xf0] }
 0x14b   : > { %v1680_v24 = vpop.f32.mrf.mxu3  ;;  %v1732_v63 = vpop.f32.mrf.mxu0  ;;  %2141 = vmatpush.bf16.msrb.mxu1 %v3063_v28 }
 0x14c   : > { %v1681_v31 = vadd.f32 %v1680_v24, %v1632_v3 }
 0x14d   : > { %v1781_v14 = vpop.f32.mrf.mxu1  ;;  %1829 = vmatmul.bf16.gmra.mxu2 %v4762_v40 }
 0x14e   : > { %v1730_v55 = vadd.f32 %v1729_v41, %v1681_v31  ;;  %1927 = vmatmul.bf16.gmra.mxu0 %v4764_v32  ;;  %v3561_v41 = vld [vmem:[%s5255_s1 + $0x374] sm:$0xf] }
 0x150   : > { %1878 = vmatmul.bf16.gmra.mxu3 %v4766_v51  ;;  %1976 = vmatmul.bf16.gmra.mxu1 %v3997_v49  ;;  %v4790_v30 = vadd.f32 %v1778_v21, %v1730_v55  ;;  %v1634_v2 = vpop.f32.mrf.mxu2  ;;  %v3247_v49 = vor.u32 %v3561_v41, %v3244_v36  ;;  %v3445_v21 = vld [vmem:[%s3752_s26 + $0x214] sm:$0xf]  ;;  %v2792_v55 = vld [vmem:[%s3752_s26 + $0x234] sm:$0xf0]  ;;  %v3308_v36 = vld [vmem:[%s5255_s1 + $0x3f8] sm:$0xf0] }
 0x151   : > { %v1635_v34 = vadd.f32 %v1634_v2, %v4412_v39  ;;  %v4802_v39 = vor.u32 %v3449_v47, %v2790_v59  ;;  %v3593_v47 = vld [vmem:[%s5255_s1 + $0x474] sm:$0xf] }
 0x152   : > { %2232 = vmatpush.bf16.msra.mxu3 %v3247_v49  ;;  %v4812_v49 = vor.u32 %v3445_v21, %v2792_v55  ;;  %v3236_v21 = vld [vmem:[%s5255_s1 + $0x368] sm:$0xf0] }
 0x153   : > { %v1683_v6 = vpop.f32.mrf.mxu3  ;;  %v1734_v0 = vpop.f32.mrf.mxu0 }
 0x154   : > { %v1684_v3 = vadd.f32 %v1683_v6, %v1635_v34 }
 0x155   : > { %v1783_v24 = vpop.f32.mrf.mxu1 }
 0x156   : > { %v1733_v31 = vadd.f32 %v1732_v63, %v1684_v3  ;;  %v3577_v63 = vld [vmem:[%s5255_s1 + $0x3f4] sm:$0xf] }
 0x158   : > { %v4799_v32 = vadd.f32 %v1781_v14, %v1733_v31  ;;  %v1636_v40 = vpop.f32.mrf.mxu2  ;;  %v3311_v14 = vor.u32 %v3577_v63, %v3308_v36 }
 0x159   : > { %v1637_v28 = vadd.f32 %v1636_v40, %v4438_v12 }
 0x15a   : > { %2281 = vmatpush.bf16.msra.mxu0 %v3311_v14 }
 0x15b   : > { %v1685_v41 = vpop.f32.mrf.mxu3  ;;  %v1737_v2 = vpop.f32.mrf.mxu0 }
 0x15c   : > { %v1686_v34 = vadd.f32 %v1685_v41, %v1637_v28 }
 0x15d   : > { %v1786_v6 = vpop.f32.mrf.mxu1  ;;  %1834 = vmatmul.bf16.gmra.mxu2 %v4802_v39 }
 0x15e   : > { %v1735_v12 = vadd.f32 %v1734_v0, %v1686_v34  ;;  %1932 = vmatmul.bf16.gmra.mxu0 %v4804_v62  ;;  %v3372_v0 = vld [vmem:[%s5255_s1 + $0x478] sm:$0xf0] }
 0x160   : > { %1883 = vmatmul.bf16.gmra.mxu3 %v4812_v49  ;;  %1981 = vmatmul.bf16.gmra.mxu1 %v4047_v20  ;;  %v4818_v40 = vadd.f32 %v1783_v24, %v1735_v12  ;;  %v1639_v3 = vpop.f32.mrf.mxu2  ;;  %v3375_v20 = vor.u32 %v3593_v47, %v3372_v0  ;;  %v3172_v24 = vld [vmem:[%s5255_s1 + $0x2e8] sm:$0xf0]  ;;  %v3575_v47 = vld [vmem:[%s5255_s1 + $0x3e4] sm:$0xf] }
 0x161   : > { %v1640_v31 = vadd.f32 %v1639_v3, %v4468_v5  ;;  %v3559_v5 = vld [vmem:[%s5255_s1 + $0x364] sm:$0xf]  ;;  %v3175_v28 = vor.u32 %v3543_v60, %v3172_v24 }
 0x162   : > { %v3239_v41 = vor.u32 %v3559_v5, %v3236_v21  ;;  %2330 = vmatpush.bf16.msra.mxu1 %v3375_v20  ;;  %v3591_v21 = vld [vmem:[%s5255_s1 + $0x464] sm:$0xf] }
 0x163   : > { %v1688_v59 = vpop.f32.mrf.mxu3  ;;  %v1739_v50 = vpop.f32.mrf.mxu0  ;;  %2184 = vmatpush.bf16.msra.mxu2 %v3175_v28 }
 0x164   : > { %v1689_v55 = vadd.f32 %v1688_v59, %v1640_v31  ;;  %2233 = vmatpush.bf16.msra.mxu3 %v3239_v41  ;;  %v3300_v31 = vld [vmem:[%s5255_s1 + $0x3e8] sm:$0xf0] }
 0x165   : > { %v1788_v63 = vpop.f32.mrf.mxu1  ;;  %v3303_v0 = vor.u32 %v3575_v47, %v3300_v31 }
 0x166   : > { %v1738_v36 = vadd.f32 %v1737_v2, %v1689_v55  ;;  %v3228_v55 = vld [vmem:[%s5255_s1 + $0x358] sm:$0xf0] }
 0x167   : > { %2282 = vmatpush.bf16.msra.mxu0 %v3303_v0  ;;  %v3573_v0 = vld [vmem:[%s5255_s1 + $0x3d4] sm:$0xf] }
 0x168   : > { %v4839_v14 = vadd.f32 %v1786_v6, %v1738_v36  ;;  %v1641_v34 = vpop.f32.mrf.mxu2 }
 0x169   : > { %v1642_v12 = vadd.f32 %v1641_v34, %v4492_v33 }
 0x16b   : > { %v1690_v3 = vpop.f32.mrf.mxu3  ;;  %v1898_v59 = vpop.f32.mrf.mxu0 }
 0x16c   : > { %v1691_v60 = vadd.f32 %v1690_v3, %v1642_v12 }
 0x16d   : > { %v4848_v2 = vpop.f32.mrf.mxu1  ;;  %1995 = vmatmul.bf16.vlgmr.msrb.gmra.mxu2 %v3813_v10  ;;  %v3364_v10 = vld [vmem:[%s5255_s1 + $0x468] sm:$0xf0] }
 0x16e   : > { %v1740_v6 = vadd.f32 %v1739_v50, %v1691_v60  ;;  %2093 = vmatmul.bf16.vlgmr.msrb.gmra.mxu0 %v4095_v46  ;;  %v3164_v50 = vld [vmem:[%s5255_s1 + $0x2d8] sm:$0xf0] }
 0x170   : > { %2044 = vmatmul.bf16.vlgmr.msrb.gmra.mxu3 %v4091_v44  ;;  %2142 = vmatmul.bf16.vlgmr.msrb.gmra.mxu1 %v4093_v45  ;;  %v4854_v33 = vadd.f32 %v1788_v63, %v1740_v6  ;;  %v1800_v20 = vpop.f32.mrf.mxu2  ;;  %v3541_v44 = vld [vmem:[%s5255_s1 + $0x2d4] sm:$0xf]  ;;  %v3367_v45 = vor.u32 %v3591_v21, %v3364_v10 }
 0x171   : > { %v1801_v24 = vadd.f32 %v1800_v20, %v4529_v61  ;;  %v3557_v61 = vld [vmem:[%s5255_s1 + $0x354] sm:$0xf]  ;;  %v3167_v41 = vor.u32 %v3541_v44, %v3164_v50 }
 0x172   : > { %v3231_v63 = vor.u32 %v3557_v61, %v3228_v55  ;;  %2331 = vmatpush.bf16.msra.mxu1 %v3367_v45  ;;  %v3589_v45 = vld [vmem:[%s5255_s1 + $0x454] sm:$0xf]  ;;  %v3220_v55 = vld [vmem:[%s5255_s1 + $0x348] sm:$0xf0] }
 0x173   : > { %v1849_v5 = vpop.f32.mrf.mxu3  ;;  %v1900_v46 = vpop.f32.mrf.mxu0  ;;  %2185 = vmatpush.bf16.msra.mxu2 %v3167_v41 }
 0x174   : > { %v1850_v28 = vadd.f32 %v1849_v5, %v1801_v24  ;;  %2234 = vmatpush.bf16.msra.mxu3 %v3231_v63 }
 0x175   : > { %v4876_v36 = vpop.f32.mrf.mxu1 }
 0x176   : > { %v1899_v34 = vadd.f32 %v1898_v59, %v1850_v28  ;;  %v3292_v59 = vld [vmem:[%s5255_s1 + $0x3d8] sm:$0xf0] }
 0x177   : > { %v3295_v6 = vor.u32 %v3573_v0, %v3292_v59  ;;  %v3284_v0 = vld [vmem:[%s5255_s1 + $0x3c8] sm:$0xf0] }
 0x178   : > { %v2379_v12 = vmax.f32 %v1899_v34, 0.0  ;;  %v1802_v3 = vpop.f32.mrf.mxu2 }
 0x179   : > { %v1803_v47 = vadd.f32 %v1802_v3, %v4560_v11  ;;  %2283 = vmatpush.bf16.msra.mxu0 %v3295_v6 }
 0x17a   : > { %2411 = vst [vmem:[%s4881_s13] sm:$0xff] %v2379_v12 }
 0x17b   : > { %v1851_v31 = vpop.f32.mrf.mxu3  ;;  %v1903_v60 = vpop.f32.mrf.mxu0 }
 0x17c   : > { %v1852_v20 = vadd.f32 %v1851_v31, %v1803_v47  ;;  %v3571_v31 = vld [vmem:[%s5255_s1 + $0x3c4] sm:$0xf] }
 0x17d   : > { %v4891_v24 = vpop.f32.mrf.mxu1  ;;  %2000 = vmatmul.bf16.gmra.mxu2 %v3929_v9  ;;  %v3356_v9 = vld [vmem:[%s5255_s1 + $0x458] sm:$0xf0]  ;;  %v3287_v6 = vor.u32 %v3571_v31, %v3284_v0 }
 0x17e   : > { %v1901_v5 = vadd.f32 %v1900_v46, %v1852_v20  ;;  %2098 = vmatmul.bf16.gmra.mxu0 %v4139_v18  ;;  %v3359_v18 = vor.u32 %v3589_v45, %v3356_v9 }
 0x17f   : > { %2284 = vmatpush.bf16.msra.mxu0 %v3287_v6 }
 0x180   : > { %2049 = vmatmul.bf16.gmra.mxu3 %v4135_v16  ;;  %v2381_v11 = vmax.f32 %v1901_v5, 0.0  ;;  %2147 = vmatmul.bf16.gmra.mxu1 %v4137_v17  ;;  %v1805_v21 = vpop.f32.mrf.mxu2  ;;  %v3539_v16 = vld [vmem:[%s5255_s1 + $0x2c4] sm:$0xf]  ;;  %v3156_v17 = vld [vmem:[%s5255_s1 + $0x2c8] sm:$0xf0] }
 0x181   : > { %v1806_v10 = vadd.f32 %v1805_v21, %v4575_v58  ;;  %v3555_v58 = vld [vmem:[%s5255_s1 + $0x344] sm:$0xf]  ;;  %v3159_v61 = vor.u32 %v3539_v16, %v3156_v17  ;;  %2332 = vmatpush.bf16.msra.mxu1 %v3359_v18  ;;  %v3212_v18 = vld [vmem:[%s5255_s1 + $0x338] sm:$0xf0] }
 0x182   : > { %2414 = vst [vmem:[%s4881_s13 + $0x10] sm:$0xff] %v2381_v11  ;;  %v3223_v41 = vor.u32 %v3555_v58, %v3220_v55 }
 0x183   : > { %v1854_v44 = vpop.f32.mrf.mxu3  ;;  %v1905_v46 = vpop.f32.mrf.mxu0  ;;  %2186 = vmatpush.bf16.msra.mxu2 %v3159_v61 }
 0x184   : > { %v1855_v50 = vadd.f32 %v1854_v44, %v1806_v10  ;;  %2235 = vmatpush.bf16.msra.mxu3 %v3223_v41  ;;  %v3587_v44 = vld [vmem:[%s5255_s1 + $0x444] sm:$0xf] }
 0x185   : > { %v4917_v28 = vpop.f32.mrf.mxu1 }
 0x186   : > { %v1904_v63 = vadd.f32 %v1903_v60, %v1855_v50 }
 0x188   : > { %v2383_v34 = vmax.f32 %v1904_v63, 0.0  ;;  %v1807_v12 = vpop.f32.mrf.mxu2  ;;  %v3569_v63 = vld [vmem:[%s5255_s1 + $0x3b4] sm:$0xf] }
 0x189   : > { %v1808_v3 = vadd.f32 %v1807_v12, %v4606_v43 }
 0x18a   : > { %2416 = vst [vmem:[%s4881_s13 + $0x20] sm:$0xff] %v2383_v34  ;;  %v3276_v34 = vld [vmem:[%s5255_s1 + $0x3b8] sm:$0xf0] }
 0x18b   : > { %v1856_v47 = vpop.f32.mrf.mxu3  ;;  %v1908_v59 = vpop.f32.mrf.mxu0 }
 0x18c   : > { %v1857_v60 = vadd.f32 %v1856_v47, %v1808_v3  ;;  %v3279_v3 = vor.u32 %v3569_v63, %v3276_v34 }
 0x18d   : > { %v4927_v20 = vpop.f32.mrf.mxu1  ;;  %2005 = vmatmul.bf16.gmra.mxu2 %v4003_v52  ;;  %v3348_v52 = vld [vmem:[%s5255_s1 + $0x448] sm:$0xf0] }
 0x18e   : > { %v1906_v5 = vadd.f32 %v1905_v46, %v1857_v60  ;;  %2103 = vmatmul.bf16.gmra.mxu0 %v4183_v54  ;;  %v3351_v54 = vor.u32 %v3587_v44, %v3348_v52 }
 0x18f   : > { %2285 = vmatpush.bf16.msra.mxu0 %v3279_v3  ;;  %v3583_v3 = vld [vmem:[%s5255_s1 + $0x424] sm:$0xf] }
 0x190   : > { %2054 = vmatmul.bf16.gmra.mxu3 %v4179_v48  ;;  %v2385_v43 = vmax.f32 %v1906_v5, 0.0  ;;  %2152 = vmatmul.bf16.gmra.mxu1 %v4181_v53  ;;  %v1810_v11 = vpop.f32.mrf.mxu2  ;;  %v3537_v48 = vld [vmem:[%s5255_s1 + $0x2b4] sm:$0xf]  ;;  %v3148_v53 = vld [vmem:[%s5255_s1 + $0x2b8] sm:$0xf0] }
 0x191   : > { %v1811_v21 = vadd.f32 %v1810_v11, %v4621_v1  ;;  %v3553_v1 = vld [vmem:[%s5255_s1 + $0x334] sm:$0xf]  ;;  %v3151_v46 = vor.u32 %v3537_v48, %v3148_v53  ;;  %2333 = vmatpush.bf16.msra.mxu1 %v3351_v54 }
 0x192   : > { %2418 = vst [vmem:[%s4881_s13 + $0x30] sm:$0xff] %v2385_v43  ;;  %v3215_v17 = vor.u32 %v3553_v1, %v3212_v18  ;;  %v3585_v5 = vld [vmem:[%s5255_s1 + $0x434] sm:$0xf] }
 0x193   : > { %v1859_v10 = vpop.f32.mrf.mxu3  ;;  %v1910_v45 = vpop.f32.mrf.mxu0  ;;  %2187 = vmatpush.bf16.msra.mxu2 %v3151_v46  ;;  %v3268_v46 = vld [vmem:[%s5255_s1 + $0x3a8] sm:$0xf0] }
 0x194   : > { %v1860_v9 = vadd.f32 %v1859_v10, %v1811_v21  ;;  %2236 = vmatpush.bf16.msra.mxu3 %v3215_v17  ;;  %v3204_v10 = vld [vmem:[%s5255_s1 + $0x328] sm:$0xf0] }
 0x195   : > { %v4953_v16 = vpop.f32.mrf.mxu1 }
 0x196   : > { %v1909_v58 = vadd.f32 %v1908_v59, %v1860_v9  ;;  %v3567_v9 = vld [vmem:[%s5255_s1 + $0x3a4] sm:$0xf] }
 0x197   : > { %v3271_v17 = vor.u32 %v3567_v9, %v3268_v46  ;;  %v5335_v46 = vld [vmem:[#allocation13_spill] sm:$0xff] }
 0x198   : > { %v2387_v50 = vmax.f32 %v1909_v58, 0.0  ;;  %v1812_v61 = vpop.f32.mrf.mxu2 }
 0x199   : > { %v1813_v55 = vadd.f32 %v1812_v61, %v4652_v37  ;;  %2286 = vmatpush.bf16.msra.mxu0 %v3271_v17 }
 0x19a   : > { %2420 = vst [vmem:[%s4881_s13 + $0x40] sm:$0xff] %v2387_v50 }
 0x19b   : > { %v1861_v41 = vpop.f32.mrf.mxu3  ;;  %v1913_v12 = vpop.f32.mrf.mxu0 }
 0x19c   : > { %v1862_v47 = vadd.f32 %v1861_v41, %v1813_v55  ;;  %v5331_v41 = vld [vmem:[#allocation10_spill] sm:$0xff] }
 0x19d   : > { %v4963_v31 = vpop.f32.mrf.mxu1  ;;  %2010 = vmatmul.bf16.gmra.mxu2 %v4053_v23  ;;  %v3340_v23 = vld [vmem:[%s5255_s1 + $0x438] sm:$0xf0] }
 0x19e   : > { %v1911_v0 = vadd.f32 %v1910_v45, %v1862_v47  ;;  %2108 = vmatmul.bf16.gmra.mxu0 %v4221_v27  ;;  %v3343_v27 = vor.u32 %v3585_v5, %v3340_v23 }
 0x1a0   : > { %2059 = vmatmul.bf16.gmra.mxu3 %v4217_v25  ;;  %v2389_v37 = vmax.f32 %v1911_v0, 0.0  ;;  %2157 = vmatmul.bf16.gmra.mxu1 %v4219_v26  ;;  %v1815_v59 = vpop.f32.mrf.mxu2  ;;  %v3535_v25 = vld [vmem:[%s5255_s1 + $0x2a4] sm:$0xf]  ;;  %v3140_v26 = vld [vmem:[%s5255_s1 + $0x2a8] sm:$0xf0] }
 0x1a1   : > { %v1816_v6 = vadd.f32 %v1815_v59, %v4667_v4  ;;  %v3551_v4 = vld [vmem:[%s5255_s1 + $0x324] sm:$0xf]  ;;  %v3143_v21 = vor.u32 %v3535_v25, %v3140_v26  ;;  %2334 = vmatpush.bf16.msra.mxu1 %v3343_v27  ;;  %v3533_v0 = vld [vmem:[%s5255_s1 + $0x294] sm:$0xf] }
 0x1a2   : > { %2422 = vst [vmem:[%s4881_s13 + $0x50] sm:$0xff] %v2389_v37  ;;  %v3207_v52 = vor.u32 %v3551_v4, %v3204_v10  ;;  %v3549_v37 = vld [vmem:[%s5255_s1 + $0x314] sm:$0xf] }
 0x1a3   : > { %v1864_v60 = vpop.f32.mrf.mxu3  ;;  %v1915_v43 = vpop.f32.mrf.mxu0  ;;  %2188 = vmatpush.bf16.msra.mxu2 %v3143_v21  ;;  %v3260_v21 = vld [vmem:[%s5255_s1 + $0x398] sm:$0xf0] }
 0x1a4   : > { %v1865_v11 = vadd.f32 %v1864_v60, %v1816_v6  ;;  %2237 = vmatpush.bf16.msra.mxu3 %v3207_v52  ;;  %v3196_v60 = vld [vmem:[%s5255_s1 + $0x318] sm:$0xf0] }
 0x1a5   : > { %v4989_v44 = vpop.f32.mrf.mxu1  ;;  %v3199_v23 = vor.u32 %v3549_v37, %v3196_v60  ;;  %v3563_v60 = vld [vmem:[%s5255_s1 + $0x384] sm:$0xf] }
 0x1a6   : > { %v1914_v45 = vadd.f32 %v1913_v12, %v1865_v11  ;;  %v3565_v11 = vld [vmem:[%s5255_s1 + $0x394] sm:$0xf] }
 0x1a7   : > { %v3263_v52 = vor.u32 %v3565_v11, %v3260_v21  ;;  %v5336_v21 = vld [vmem:[#allocation3_spill] sm:$0xff] }
 0x1a8   : > { %v2391_v54 = vmax.f32 %v1914_v45, 0.0  ;;  %v1817_v48 = vpop.f32.mrf.mxu2  ;;  %2238 = vmatpush.bf16.msra.mxu3 %v3199_v23  ;;  %v3252_v23 = vld [vmem:[%s5255_s1 + $0x388] sm:$0xf0] }
 0x1a9   : > { %v1818_v53 = vadd.f32 %v1817_v48, %v4698_v38  ;;  %v5330_v38 = vld [vmem:[#allocation9_spill] sm:$0xff]  ;;  %2287 = vmatpush.bf16.msra.mxu0 %v3263_v52 }
 0x1aa   : > { %2424 = vst [vmem:[%s4881_s13 + $0x60] sm:$0xff] %v2391_v54 }
 0x1ab   : > { %v1866_v1 = vpop.f32.mrf.mxu3  ;;  %v1918_v18 = vpop.f32.mrf.mxu0 }
 0x1ac   : > { %v1867_v58 = vadd.f32 %v1866_v1, %v1818_v53  ;;  %v5332_v53 = vld [vmem:[#allocation2_spill] sm:$0xff]  ;;  %v5334_v1 = vld [vmem:[#allocation12_spill] sm:$0xff] }
 0x1ad   : > { %v4999_v50 = vpop.f32.mrf.mxu1  ;;  %2015 = vmatmul.bf16.gmra.mxu2 %v3811_v8  ;;  %v3332_v8 = vld [vmem:[%s5255_s1 + $0x428] sm:$0xf0] }
 0x1ae   : > { %v1916_v61 = vadd.f32 %v1915_v43, %v1867_v58  ;;  %2113 = vmatmul.bf16.gmra.mxu0 %v4270_v7  ;;  %v3335_v7 = vor.u32 %v3583_v3, %v3332_v8  ;;  %v3188_v8 = vld [vmem:[%s5255_s1 + $0x308] sm:$0xf0] }
 0x1b0   : > { %2064 = vmatmul.bf16.gmra.mxu3 %v5330_v38  ;;  %v2393_v55 = vmax.f32 %v1916_v61, 0.0  ;;  %2162 = vmatmul.bf16.gmra.mxu1 %v5331_v41  ;;  %v1820_v63 = vpop.f32.mrf.mxu2  ;;  %v3581_v61 = vld [vmem:[%s5255_s1 + $0x414] sm:$0xf]  ;;  %v3324_v38 = vld [vmem:[%s5255_s1 + $0x418] sm:$0xf0] }
 0x1b1   : > { %v1821_v34 = vadd.f32 %v1820_v63, %v4713_v13  ;;  %v3132_v13 = vld [vmem:[%s5255_s1 + $0x298] sm:$0xf0]  ;;  %2335 = vmatpush.bf16.msra.mxu1 %v3335_v7  ;;  %v3327_v41 = vor.u32 %v3581_v61, %v3324_v38  ;;  %v3531_v63 = vld [vmem:[%s5255_s1 + $0x284] sm:$0xf] }
 0x1b2   : > { %2426 = vst [vmem:[%s4881_s13 + $0x70] sm:$0xff] %v2393_v55  ;;  %v3135_v6 = vor.u32 %v3533_v0, %v3132_v13 }
 0x1b3   : > { %v1869_v12 = vpop.f32.mrf.mxu3  ;;  %v1920_v47 = vpop.f32.mrf.mxu0 }
 0x1b4   : > { %v1870_v59 = vadd.f32 %v1869_v12, %v1821_v34  ;;  %2189 = vmatpush.bf16.msra.mxu2 %v3135_v6  ;;  %v3547_v34 = vld [vmem:[%s5255_s1 + $0x304] sm:$0xf] }
 0x1b5   : > { %v5025_v5 = vpop.f32.mrf.mxu1  ;;  %2336 = vmatpush.bf16.msra.mxu1 %v3327_v41  ;;  %v3191_v7 = vor.u32 %v3547_v34, %v3188_v8  ;;  %v5342_v8 = vld [vmem:[#allocation20_spill] sm:$0xff] }
 0x1b6   : > { %v1919_v43 = vadd.f32 %v1918_v18, %v1870_v59 }
 0x1b7   : > { %2239 = vmatpush.bf16.msra.mxu3 %v3191_v7 }
 0x1b8   : > { %v2395_v27 = vmax.f32 %v1919_v43, 0.0  ;;  %v1822_v25 = vpop.f32.mrf.mxu2 }
 0x1b9   : > { %v1823_v26 = vadd.f32 %v1822_v25, %v4744_v19  ;;  %v5333_v19 = vld [vmem:[#allocation14_spill] sm:$0xff] }
 0x1ba   : > { %2428 = vst [vmem:[%s4881_s13 + $0x80] sm:$0xff] %v2395_v27  ;;  %v3255_v27 = vor.u32 %v3563_v60, %v3252_v23 }
 0x1bb   : > { %v1871_v4 = vpop.f32.mrf.mxu3  ;;  %v1923_v10 = vpop.f32.mrf.mxu0 }
 0x1bc   : > { %v1872_v45 = vadd.f32 %v1871_v4, %v1823_v26  ;;  %2288 = vmatpush.bf16.msra.mxu0 %v3255_v27  ;;  %v3316_v4 = vld [vmem:[%s5255_s1 + $0x408] sm:$0xf0] }
 0x1bd   : > { %v5035_v54 = vpop.f32.mrf.mxu1  ;;  %2020 = vmatmul.bf16.gmra.mxu2 %v5332_v53  ;;  %v5339_v53 = vld [vmem:[#allocation17_spill] sm:$0xff] }
 0x1be   : > { %v1921_v48 = vadd.f32 %v1920_v47, %v1872_v45  ;;  %2118 = vmatmul.bf16.gmra.mxu0 %v5333_v19  ;;  %v5338_v45 = vld [vmem:[#allocation16_spill] sm:$0xff] }
 0x1c0   : > { %2069 = vmatmul.bf16.gmra.mxu3 %v5334_v1  ;;  %v2397_v9 = vmax.f32 %v1921_v48, 0.0  ;;  %2167 = vmatmul.bf16.gmra.mxu1 %v5335_v46  ;;  %v1825_v18 = vpop.f32.mrf.mxu2 }
 0x1c1   : > { %v1826_v17 = vadd.f32 %v1825_v18, %v4759_v57  ;;  %v3124_v57 = vld [vmem:[%s5255_s1 + $0x288] sm:$0xf0] }
 0x1c2   : > { %2430 = vst [vmem:[%s4881_s13 + $0x90] sm:$0xff] %v2397_v9  ;;  %v3127_v3 = vor.u32 %v3531_v63, %v3124_v57 }
 0x1c3   : > { %v1874_v58 = vpop.f32.mrf.mxu3  ;;  %v1925_v55 = vpop.f32.mrf.mxu0 }
 0x1c4   : > { %v1875_v12 = vadd.f32 %v1874_v58, %v1826_v17  ;;  %2190 = vmatpush.bf16.msra.mxu2 %v3127_v3  ;;  %v5340_v3 = vld [vmem:[#allocation4_spill] sm:$0xff] }
 0x1c5   : > { %v5061_v47 = vpop.f32.mrf.mxu1 }
 0x1c6   : > { %v1924_v0 = vadd.f32 %v1923_v10, %v1875_v12  ;;  %v5337_v10 = vld [vmem:[#allocation18_spill] sm:$0xff] }
 0x1c8   : > { %v2399_v13 = vmax.f32 %v1924_v0, 0.0  ;;  %v1827_v37 = vpop.f32.mrf.mxu2  ;;  %v5343_v0 = vld [vmem:[#allocation21_spill] sm:$0xff] }
 0x1c9   : > { %v1828_v59 = vadd.f32 %v1827_v37, %v4790_v30  ;;  %v3579_v30 = vld [vmem:[%s5255_s1 + $0x404] sm:$0xf] }
 0x1ca   : > { %2432 = vst [vmem:[%s4881_s13 + $0xa0] sm:$0xff] %v2399_v13  ;;  %v3319_v52 = vor.u32 %v3579_v30, %v3316_v4 }
 0x1cb   : > { %v1876_v6 = vpop.f32.mrf.mxu3  ;;  %v1928_v43 = vpop.f32.mrf.mxu0 }
 0x1cc   : > { %v1877_v25 = vadd.f32 %v1876_v6, %v1828_v59  ;;  %2337 = vmatpush.bf16.msra.mxu1 %v3319_v52 }
 0x1cd   : > { %v5071_v26 = vpop.f32.mrf.mxu1  ;;  %2025 = vmatmul.bf16.gmra.mxu2 %v5336_v21 }
 0x1ce   : > { %v1926_v11 = vadd.f32 %v1925_v55, %v1877_v25  ;;  %2123 = vmatmul.bf16.gmra.mxu0 %v5337_v10 }
 0x1d0   : > { %2074 = vmatmul.bf16.gmra.mxu3 %v5338_v45  ;;  %v2401_v48 = vmax.f32 %v1926_v11, 0.0  ;;  %2172 = vmatmul.bf16.gmra.mxu1 %v5339_v53  ;;  %v1830_v19 = vpop.f32.mrf.mxu2  ;;  %v3620_v11 = vld [vmem:[%s5256_s2] sm:$0x3]  ;;  %v5344_v45 = vld [vmem:[#allocation5_spill] sm:$0xff]  ;;  %v5346_v53 = vld [vmem:[#allocation24_spill] sm:$0xff] }
 0x1d1   : > { %v1831_v1 = vadd.f32 %v1830_v19, %v4799_v32  ;;  %v5341_v32 = vld [vmem:[#allocation22_spill] sm:$0xff]  ;;  %v5104_v21 = vperm.slane %v3620_v11, 1 }
 0x1d2   : > { %2434 = vst [vmem:[%s4881_s13 + $0xb0] sm:$0xff] %v2401_v48  ;;  %v5345_v48 = vld [vmem:[#allocation26_spill] sm:$0xff] }
 0x1d3   : > { %v1879_v9 = vpop.f32.mrf.mxu3  ;;  %v1930_v46 = vpop.f32.mrf.mxu0 }
 0x1d4   : > { %v1880_v18 = vadd.f32 %v1879_v9, %v1831_v1  ;;  %v5347_v1 = vld [vmem:[#allocation25_spill] sm:$0xff] }
 0x1d5   : > { %v5085_v17 = vpop.f32.mrf.mxu1 }
 0x1d6   : > { %v1929_v58 = vadd.f32 %v1928_v43, %v1880_v18 }
 0x1d8   : > { %v2403_v61 = vmax.f32 %v1929_v58, 0.0  ;;  %v1832_v38 = vpop.f32.mrf.mxu2 }
 0x1d9   : > { %v1833_v55 = vadd.f32 %v1832_v38, %v4818_v40 }
 0x1da   : > { %2436 = vst [vmem:[%s4881_s13 + $0xc0] sm:$0xff] %v2403_v61 }
 0x1db   : > { %v1881_v41 = vpop.f32.mrf.mxu3  ;;  %v1933_v63 = vpop.f32.mrf.mxu0 }
 0x1dc   : > { %v1882_v57 = vadd.f32 %v1881_v41, %v1833_v55  ;;  %v1950_v41 = vadd.f32 %v4876_v36, %v5104_v21 }
 0x1dd   : > { %v5089_v34 = vpop.f32.mrf.mxu1  ;;  %2030 = vmatmul.bf16.gmra.mxu2 %v5340_v3 }
 0x1de   : > { %v1931_v12 = vadd.f32 %v1930_v46, %v1882_v57  ;;  %2128 = vmatmul.bf16.gmra.mxu0 %v5341_v32 }
 0x1e0   : > { %2079 = vmatmul.bf16.gmra.mxu3 %v5342_v8  ;;  %v2405_v7 = vmax.f32 %v1931_v12, 0.0  ;;  %2177 = vmatmul.bf16.gmra.mxu1 %v5343_v0  ;;  %v1835_v13 = vpop.f32.mrf.mxu2  ;;  %v5348_v0 = vld [vmem:[#allocation6_spill] sm:$0xff] }
 0x1e1   : > { %v1836_v40 = vadd.f32 %v1835_v13, %v4839_v14  ;;  %v5349_v13 = vld [vmem:[#allocation27_spill] sm:$0xff] }
 0x1e2   : > { %2438 = vst [vmem:[%s4881_s13 + $0xd0] sm:$0xff] %v2405_v7 }
 0x1e3   : > { %v1884_v37 = vpop.f32.mrf.mxu3  ;;  %v1935_v59 = vpop.f32.mrf.mxu0 }
 0x1e4   : > { %v1885_v6 = vadd.f32 %v1884_v37, %v1836_v40  ;;  %v1953_v40 = vadd.f32 %v4891_v24, %v5104_v21  ;;  %v5350_v37 = vld [vmem:[#allocation28_spill] sm:$0xff] }
 0x1e5   : > { %v5097_v60 = vpop.f32.mrf.mxu1 }
 0x1e6   : > { %v1934_v23 = vadd.f32 %v1933_v63, %v1885_v6 }
 0x1e8   : > { %v2407_v43 = vmax.f32 %v1934_v23, 0.0  ;;  %v1837_v27 = vpop.f32.mrf.mxu2 }
 0x1e9   : > { %v1838_v25 = vadd.f32 %v1837_v27, %v4854_v33  ;;  %v1948_v33 = vadd.f32 %v4848_v2, %v5104_v21 }
 0x1ea   : > { %2440 = vst [vmem:[%s4881_s13 + $0xe0] sm:$0xff] %v2407_v43 }
 0x1eb   : > { %v1886_v30 = vpop.f32.mrf.mxu3  ;;  %v2094_v4 = vpop.f32.mrf.mxu0 }
 0x1ec   : > { %v1887_v14 = vadd.f32 %v1886_v30, %v1838_v25 }
 0x1ed   : > { %v2143_v10 = vpop.f32.mrf.mxu1  ;;  %2191 = vmatmul.bf16.vlgmr.msra.gmra.mxu2 %v5344_v45 }
 0x1ee   : > { %v1936_v52 = vadd.f32 %v1935_v59, %v1887_v14  ;;  %2289 = vmatmul.bf16.vlgmr.msra.gmra.mxu0 %v5345_v48 }
 0x1f0   : > { %2240 = vmatmul.bf16.vlgmr.msra.gmra.mxu3 %v5346_v53  ;;  %v2409_v19 = vmax.f32 %v1936_v52, 0.0  ;;  %2338 = vmatmul.bf16.vlgmr.msra.gmra.mxu1 %v5347_v1  ;;  %v1996_v9 = vpop.f32.mrf.mxu2  ;;  %v5351_v53 = vld [vmem:[#allocation7_spill] sm:$0xff]  ;;  %v5353_v1 = vld [vmem:[#allocation30_spill] sm:$0xff] }
 0x1f1   : > { %v1997_v46 = vadd.f32 %v1996_v9, %v1948_v33  ;;  %v5352_v33 = vld [vmem:[#allocation29_spill] sm:$0xff] }
 0x1f2   : > { %2442 = vst [vmem:[%s4881_s13 + $0xf0] sm:$0xff] %v2409_v19  ;;  %v1958_v19 = vadd.f32 %v4927_v20, %v5104_v21 }
 0x1f3   : > { %v2045_v18 = vpop.f32.mrf.mxu3  ;;  %v2096_v58 = vpop.f32.mrf.mxu0 }
 0x1f4   : > { %v2046_v61 = vadd.f32 %v2045_v18, %v1997_v46 }
 0x1f5   : > { %v2145_v38 = vpop.f32.mrf.mxu1 }
 0x1f6   : > { %v2095_v55 = vadd.f32 %v2094_v4, %v2046_v61  ;;  %v1955_v4 = vadd.f32 %v4917_v28, %v5104_v21 }
 0x1f8   : > { %v5115_v63 = vadd.f32 %v2143_v10, %v2095_v55  ;;  %v1998_v57 = vpop.f32.mrf.mxu2 }
 0x1f9   : > { %v1999_v12 = vadd.f32 %v1998_v57, %v1950_v41  ;;  %v1960_v41 = vadd.f32 %v4953_v16, %v5104_v21 }
 0x1fb   : > { %v2047_v3 = vpop.f32.mrf.mxu3  ;;  %v2099_v2 = vpop.f32.mrf.mxu0 }
 0x1fc   : > { %v2048_v32 = vadd.f32 %v2047_v3, %v1999_v12 }
 0x1fd   : > { %v2148_v8 = vpop.f32.mrf.mxu1  ;;  %2196 = vmatmul.bf16.gmra.mxu2 %v5348_v0  ;;  %v5355_v0 = vld [vmem:[#allocation31_spill] sm:$0xff] }
 0x1fe   : > { %v2097_v7 = vadd.f32 %v2096_v58, %v2048_v32  ;;  %2294 = vmatmul.bf16.gmra.mxu0 %v4536_v35 }
 0x200   : > { %2245 = vmatmul.bf16.gmra.mxu3 %v5349_v13  ;;  %2343 = vmatmul.bf16.gmra.mxu1 %v5350_v37  ;;  %v5123_v36 = vadd.f32 %v2145_v38, %v2097_v7  ;;  %v2001_v59 = vpop.f32.mrf.mxu2  ;;  %v5354_v7 = vld [vmem:[#allocation8_spill] sm:$0xff]  ;;  %v1963_v13 = vadd.f32 %v4963_v31, %v5104_v21 }
 0x201   : > { %v2002_v6 = vadd.f32 %v2001_v59, %v1953_v40  ;;  %v5356_v40 = vld [vmem:[#allocation32_spill] sm:$0xff] }
 0x203   : > { %v2050_v23 = vpop.f32.mrf.mxu3  ;;  %v2101_v43 = vpop.f32.mrf.mxu0 }
 0x204   : > { %v2051_v27 = vadd.f32 %v2050_v23, %v2002_v6 }
 0x205   : > { %v2150_v25 = vpop.f32.mrf.mxu1 }
 0x206   : > { %v2100_v30 = vadd.f32 %v2099_v2, %v2051_v27 }
 0x208   : > { %v5127_v35 = vadd.f32 %v2148_v8, %v2100_v30  ;;  %v2003_v11 = vpop.f32.mrf.mxu2  ;;  %v1965_v30 = vadd.f32 %v4989_v44, %v5104_v21 }
 0x209   : > { %v2004_v14 = vadd.f32 %v2003_v11, %v1955_v4 }
 0x20b   : > { %v2052_v10 = vpop.f32.mrf.mxu3  ;;  %v2104_v24 = vpop.f32.mrf.mxu0 }
 0x20c   : > { %v2053_v52 = vadd.f32 %v2052_v10, %v2004_v14 }
 0x20d   : > { %v2153_v45 = vpop.f32.mrf.mxu1  ;;  %2201 = vmatmul.bf16.gmra.mxu2 %v5351_v53  ;;  %v1968_v53 = vadd.f32 %v4999_v50, %v5104_v21 }
 0x20e   : > { %v2102_v48 = vadd.f32 %v2101_v43, %v2053_v52  ;;  %2299 = vmatmul.bf16.gmra.mxu0 %v4582_v29 }
 0x210   : > { %2250 = vmatmul.bf16.gmra.mxu3 %v5352_v33  ;;  %2348 = vmatmul.bf16.gmra.mxu1 %v5353_v1  ;;  %v5135_v28 = vadd.f32 %v2150_v25, %v2102_v48  ;;  %v2006_v9 = vpop.f32.mrf.mxu2  ;;  %v5358_v48 = vld [vmem:[#allocation33_spill] sm:$0xff]  ;;  %v5359_v33 = vld [vmem:[#allocation34_spill] sm:$0xff] }
 0x211   : > { %v2007_v46 = vadd.f32 %v2006_v9, %v1958_v19 }
 0x213   : > { %v2055_v18 = vpop.f32.mrf.mxu3  ;;  %v2106_v58 = vpop.f32.mrf.mxu0 }
 0x214   : > { %v2056_v61 = vadd.f32 %v2055_v18, %v2007_v46 }
 0x215   : > { %v2155_v38 = vpop.f32.mrf.mxu1 }
 0x216   : > { %v2105_v55 = vadd.f32 %v2104_v24, %v2056_v61 }
 0x218   : > { %v5139_v29 = vadd.f32 %v2153_v45, %v2105_v55  ;;  %v2008_v57 = vpop.f32.mrf.mxu2  ;;  %v5357_v45 = vld [vmem:[#allocation11_spill] sm:$0xff] }
 0x219   : > { %v2009_v12 = vadd.f32 %v2008_v57, %v1960_v41 }
 0x21b   : > { %v2057_v3 = vpop.f32.mrf.mxu3  ;;  %v2109_v20 = vpop.f32.mrf.mxu0 }
 0x21c   : > { %v2058_v2 = vadd.f32 %v2057_v3, %v2009_v12 }
 0x21d   : > { %v2158_v32 = vpop.f32.mrf.mxu1  ;;  %2206 = vmatmul.bf16.gmra.mxu2 %v5354_v7 }
 0x21e   : > { %v2107_v8 = vadd.f32 %v2106_v58, %v2058_v2  ;;  %2304 = vmatmul.bf16.gmra.mxu0 %v4628_v22  ;;  %v5360_v2 = vld [vmem:[#allocation15_spill] sm:$0xff] }
 0x220   : > { %2255 = vmatmul.bf16.gmra.mxu3 %v5355_v0  ;;  %2353 = vmatmul.bf16.gmra.mxu1 %v5356_v40  ;;  %v5147_v16 = vadd.f32 %v2155_v38, %v2107_v8  ;;  %v2011_v37 = vpop.f32.mrf.mxu2  ;;  %v1970_v38 = vadd.f32 %v5025_v5, %v5104_v21  ;;  %v5361_v8 = vld [vmem:[#allocation35_spill] sm:$0xff] }
 0x221   : > { %v2012_v59 = vadd.f32 %v2011_v37, %v1963_v13 }
 0x223   : > { %v2060_v6 = vpop.f32.mrf.mxu3  ;;  %v2111_v23 = vpop.f32.mrf.mxu0 }
 0x224   : > { %v2061_v43 = vadd.f32 %v2060_v6, %v2012_v59 }
 0x225   : > { %v2160_v27 = vpop.f32.mrf.mxu1 }
 0x226   : > { %v2110_v25 = vadd.f32 %v2109_v20, %v2061_v43 }
 0x228   : > { %v5151_v22 = vadd.f32 %v2158_v32, %v2110_v25  ;;  %v2013_v4 = vpop.f32.mrf.mxu2  ;;  %v1973_v32 = vadd.f32 %v5035_v54, %v5104_v21 }
 0x229   : > { %v2014_v11 = vadd.f32 %v2013_v4, %v1965_v30 }
 0x22b   : > { %v2062_v14 = vpop.f32.mrf.mxu3  ;;  %v2114_v31 = vpop.f32.mrf.mxu0 }
 0x22c   : > { %v2063_v10 = vadd.f32 %v2062_v14, %v2014_v11  ;;  %v5362_v11 = vld [vmem:[#allocation19_spill] sm:$0xff]  ;;  %v5363_v14 = vld [vmem:[#allocation36_spill] sm:$0xff] }
 0x22d   : > { %v2163_v24 = vpop.f32.mrf.mxu1  ;;  %2211 = vmatmul.bf16.gmra.mxu2 %v5357_v45 }
 0x22e   : > { %v2112_v52 = vadd.f32 %v2111_v23, %v2063_v10  ;;  %2309 = vmatmul.bf16.gmra.mxu0 %v4674_v56  ;;  %v1975_v23 = vadd.f32 %v5061_v47, %v5104_v21  ;;  %v5364_v10 = vld [vmem:[#allocation37_spill] sm:$0xff] }
 0x230   : > { %2260 = vmatmul.bf16.gmra.mxu3 %v5358_v48  ;;  %2358 = vmatmul.bf16.gmra.mxu1 %v5359_v33  ;;  %v5159_v44 = vadd.f32 %v2160_v27, %v2112_v52  ;;  %v2016_v19 = vpop.f32.mrf.mxu2 }
 0x231   : > { %v2017_v1 = vadd.f32 %v2016_v19, %v1968_v53 }
 0x233   : > { %v2065_v9 = vpop.f32.mrf.mxu3  ;;  %v2116_v46 = vpop.f32.mrf.mxu0 }
 0x234   : > { %v2066_v18 = vadd.f32 %v2065_v9, %v2017_v1  ;;  %v1980_v1 = vadd.f32 %v5085_v17, %v5104_v21 }
 0x235   : > { %v2165_v58 = vpop.f32.mrf.mxu1 }
 0x236   : > { %v2115_v61 = vadd.f32 %v2114_v31, %v2066_v18  ;;  %v1978_v31 = vadd.f32 %v5071_v26, %v5104_v21 }
 0x238   : > { %v5163_v56 = vadd.f32 %v2163_v24, %v2115_v61  ;;  %v2018_v55 = vpop.f32.mrf.mxu2 }
 0x239   : > { %v2019_v41 = vadd.f32 %v2018_v55, %v1970_v38  ;;  %v5365_v55 = vld [vmem:[#allocation23_spill] sm:$0xff] }
 0x23b   : > { %v2067_v57 = vpop.f32.mrf.mxu3  ;;  %v2119_v50 = vpop.f32.mrf.mxu0 }
 0x23c   : > { %v2068_v12 = vadd.f32 %v2067_v57, %v2019_v41  ;;  %v1983_v41 = vadd.f32 %v5089_v34, %v5104_v21 }
 0x23d   : > { %v2168_v3 = vpop.f32.mrf.mxu1  ;;  %2216 = vmatmul.bf16.gmra.mxu2 %v5360_v2 }
 0x23e   : > { %v2117_v20 = vadd.f32 %v2116_v46, %v2068_v12  ;;  %2314 = vmatmul.bf16.gmra.mxu0 %v4720_v15 }
 0x240   : > { %2265 = vmatmul.bf16.gmra.mxu3 %v4716_v42  ;;  %2363 = vmatmul.bf16.gmra.mxu1 %v5361_v8  ;;  %v5171_v5 = vadd.f32 %v2165_v58, %v2117_v20  ;;  %v2021_v7 = vpop.f32.mrf.mxu2  ;;  %v1985_v8 = vadd.f32 %v5097_v60, %v5104_v21 }
 0x241   : > { %v2022_v0 = vadd.f32 %v2021_v7, %v1973_v32 }
 0x243   : > { %v2070_v13 = vpop.f32.mrf.mxu3  ;;  %v2121_v40 = vpop.f32.mrf.mxu0 }
 0x244   : > { %v2071_v37 = vadd.f32 %v2070_v13, %v2022_v0 }
 0x245   : > { %v2170_v59 = vpop.f32.mrf.mxu1 }
 0x246   : > { %v2120_v6 = vadd.f32 %v2119_v50, %v2071_v37 }
 0x248   : > { %v5175_v15 = vadd.f32 %v2168_v3, %v2120_v6  ;;  %v2023_v42 = vpop.f32.mrf.mxu2 }
 0x249   : > { %v2024_v43 = vadd.f32 %v2023_v42, %v1975_v23 }
 0x24b   : > { %v2072_v27 = vpop.f32.mrf.mxu3  ;;  %v2124_v54 = vpop.f32.mrf.mxu0 }
 0x24c   : > { %v2073_v25 = vadd.f32 %v2072_v27, %v2024_v43 }
 0x24d   : > { %v2173_v30 = vpop.f32.mrf.mxu1  ;;  %2221 = vmatmul.bf16.gmra.mxu2 %v5362_v11 }
 0x24e   : > { %v2122_v4 = vadd.f32 %v2121_v40, %v2073_v25  ;;  %2319 = vmatmul.bf16.gmra.mxu0 %v4766_v51 }
 0x250   : > { %2270 = vmatmul.bf16.gmra.mxu3 %v5363_v14  ;;  %2368 = vmatmul.bf16.gmra.mxu1 %v5364_v10  ;;  %v5183_v47 = vadd.f32 %v2170_v59, %v2122_v4  ;;  %v2026_v24 = vpop.f32.mrf.mxu2 }
 0x251   : > { %v2027_v52 = vadd.f32 %v2026_v24, %v1978_v31 }
 0x253   : > { %v2075_v45 = vpop.f32.mrf.mxu3  ;;  %v2126_v48 = vpop.f32.mrf.mxu0 }
 0x254   : > { %v2076_v53 = vadd.f32 %v2075_v45, %v2027_v52 }
 0x255   : > { %v2175_v33 = vpop.f32.mrf.mxu1 }
 0x256   : > { %v2125_v19 = vadd.f32 %v2124_v54, %v2076_v53 }
 0x258   : > { %v5187_v51 = vadd.f32 %v2173_v30, %v2125_v19  ;;  %v2028_v9 = vpop.f32.mrf.mxu2 }
 0x259   : > { %v2029_v46 = vadd.f32 %v2028_v9, %v1980_v1 }
 0x25b   : > { %v2077_v18 = vpop.f32.mrf.mxu3  ;;  %v2129_v26 = vpop.f32.mrf.mxu0 }
 0x25c   : > { %v2078_v58 = vadd.f32 %v2077_v18, %v2029_v46 }
 0x25d   : > { %v2178_v61 = vpop.f32.mrf.mxu1  ;;  %2226 = vmatmul.bf16.gmra.mxu2 %v5365_v55 }
 0x25e   : > { %v2127_v38 = vadd.f32 %v2126_v48, %v2078_v58  ;;  %2324 = vmatmul.bf16.gmra.mxu0 %v4812_v49 }
 0x260   : > { %2275 = vmatmul.bf16.gmra.mxu3 %v4802_v39  ;;  %2373 = vmatmul.bf16.gmra.mxu1 %v4804_v62  ;;  %v5195_v17 = vadd.f32 %v2175_v33, %v2127_v38  ;;  %v2031_v57 = vpop.f32.mrf.mxu2 }
 0x261   : > { %v2032_v50 = vadd.f32 %v2031_v57, %v1983_v41 }
 0x263   : > { %v2080_v12 = vpop.f32.mrf.mxu3  ;;  %v2131_v3 = vpop.f32.mrf.mxu0 }
 0x264   : > { %v2081_v20 = vadd.f32 %v2080_v12, %v2032_v50 }
 0x265   : > { %v2180_v2 = vpop.f32.mrf.mxu1 }
 0x266   : > { %v2130_v32 = vadd.f32 %v2129_v26, %v2081_v20 }
 0x268   : > { %v5199_v49 = vadd.f32 %v2178_v61, %v2130_v32  ;;  %v2033_v39 = vpop.f32.mrf.mxu2 }
 0x269   : > { %v2034_v7 = vadd.f32 %v2033_v39, %v1985_v8 }
 0x26b   : > { %v2082_v0 = vpop.f32.mrf.mxu3  ;;  %v2290_v34 = vpop.f32.mrf.mxu0 }
 0x26c   : > { %v2083_v13 = vadd.f32 %v2082_v0, %v2034_v7 }
 0x26d   : > { %v2339_v62 = vpop.f32.mrf.mxu1 }
 0x26e   : > { %v2132_v40 = vadd.f32 %v2131_v3, %v2083_v13 }
 0x270   : > { %v5201_v37 = vadd.f32 %v2180_v2, %v2132_v40  ;;  %v2192_v59 = vpop.f32.mrf.mxu2 }
 0x271   : > { %v2193_v6 = vadd.f32 %v2192_v59, %v5115_v63 }
 0x273   : > { %v2241_v23 = vpop.f32.mrf.mxu3  ;;  %v2292_v42 = vpop.f32.mrf.mxu0 }
 0x274   : > { %v2242_v43 = vadd.f32 %v2241_v23, %v2193_v6 }
 0x275   : > { %v2341_v27 = vpop.f32.mrf.mxu1 }
 0x276   : > { %v2291_v60 = vadd.f32 %v2290_v34, %v2242_v43 }
 0x278   : > { %v2340_v21 = vadd.f32 %v2339_v62, %v2291_v60  ;;  %v2194_v54 = vpop.f32.mrf.mxu2 }
 0x279   : > { %v2195_v30 = vadd.f32 %v2194_v54, %v5123_v36 }
 0x27a   : > { %v2380_v25 = vmax.f32 %v2340_v21, 0.0 }
 0x27b   : > { %v2243_v4 = vpop.f32.mrf.mxu3  ;;  %v2295_v11 = vpop.f32.mrf.mxu0 }
 0x27c   : > { %2413 = vst.msk [vmem:[%s4881_s13 + $0x8] sm:$0xff] %vm2412_vm0, %v2380_v25  ;;  %v2244_v14 = vadd.f32 %v2243_v4, %v2195_v30 }
 0x27d   : > { %v2344_v31 = vpop.f32.mrf.mxu1 }
 0x27e   : > { %v2293_v10 = vadd.f32 %v2292_v42, %v2244_v14 }
 0x280   : > { %v2342_v63 = vadd.f32 %v2341_v27, %v2293_v10  ;;  %v2197_v24 = vpop.f32.mrf.mxu2 }
 0x281   : > { %v2198_v45 = vadd.f32 %v2197_v24, %v5127_v35 }
 0x282   : > { %v2382_v52 = vmax.f32 %v2342_v63, 0.0 }
 0x283   : > { %v2246_v48 = vpop.f32.mrf.mxu3  ;;  %v2297_v53 = vpop.f32.mrf.mxu0 }
 0x284   : > { %2415 = vst.msk [vmem:[%s4881_s13 + $0x18] sm:$0xff] %vm2412_vm0, %v2382_v52  ;;  %v2247_v33 = vadd.f32 %v2246_v48, %v2198_v45 }
 0x285   : > { %v2346_v19 = vpop.f32.mrf.mxu1 }
 0x286   : > { %v2296_v36 = vadd.f32 %v2295_v11, %v2247_v33 }
 0x288   : > { %v2345_v1 = vadd.f32 %v2344_v31, %v2296_v36  ;;  %v2199_v9 = vpop.f32.mrf.mxu2 }
 0x289   : > { %v2200_v18 = vadd.f32 %v2199_v9, %v5135_v28 }
 0x28a   : > { %v2384_v46 = vmax.f32 %v2345_v1, 0.0 }
 0x28b   : > { %v2248_v26 = vpop.f32.mrf.mxu3  ;;  %v2300_v58 = vpop.f32.mrf.mxu0 }
 0x28c   : > { %2417 = vst.msk [vmem:[%s4881_s13 + $0x28] sm:$0xff] %vm2412_vm0, %v2384_v46  ;;  %v2249_v61 = vadd.f32 %v2248_v26, %v2200_v18 }
 0x28d   : > { %v2349_v38 = vpop.f32.mrf.mxu1 }
 0x28e   : > { %v2298_v35 = vadd.f32 %v2297_v53, %v2249_v61 }
 0x290   : > { %v2347_v55 = vadd.f32 %v2346_v19, %v2298_v35  ;;  %v2202_v41 = vpop.f32.mrf.mxu2 }
 0x291   : > { %v2203_v50 = vadd.f32 %v2202_v41, %v5139_v29 }
 0x292   : > { %v2386_v57 = vmax.f32 %v2347_v55, 0.0 }
 0x293   : > { %v2251_v12 = vpop.f32.mrf.mxu3  ;;  %v2302_v3 = vpop.f32.mrf.mxu0 }
 0x294   : > { %2419 = vst.msk [vmem:[%s4881_s13 + $0x38] sm:$0xff] %vm2412_vm0, %v2386_v57  ;;  %v2252_v20 = vadd.f32 %v2251_v12, %v2203_v50 }
 0x295   : > { %v2351_v2 = vpop.f32.mrf.mxu1 }
 0x296   : > { %v2301_v28 = vadd.f32 %v2300_v58, %v2252_v20 }
 0x298   : > { %v2350_v32 = vadd.f32 %v2349_v38, %v2301_v28  ;;  %v2204_v8 = vpop.f32.mrf.mxu2 }
 0x299   : > { %v2205_v7 = vadd.f32 %v2204_v8, %v5147_v16 }
 0x29a   : > { %v2388_v39 = vmax.f32 %v2350_v32, 0.0 }
 0x29b   : > { %v2253_v0 = vpop.f32.mrf.mxu3  ;;  %v2305_v34 = vpop.f32.mrf.mxu0 }
 0x29c   : > { %2421 = vst.msk [vmem:[%s4881_s13 + $0x48] sm:$0xff] %vm2412_vm0, %v2388_v39  ;;  %v2254_v13 = vadd.f32 %v2253_v0, %v2205_v7 }
 0x29d   : > { %v2354_v62 = vpop.f32.mrf.mxu1 }
 0x29e   : > { %v2303_v29 = vadd.f32 %v2302_v3, %v2254_v13 }
 0x2a0   : > { %v2352_v40 = vadd.f32 %v2351_v2, %v2303_v29  ;;  %v2207_v59 = vpop.f32.mrf.mxu2 }
 0x2a1   : > { %v2208_v23 = vadd.f32 %v2207_v59, %v5151_v22 }
 0x2a2   : > { %v2390_v6 = vmax.f32 %v2352_v40, 0.0 }
 0x2a3   : > { %v2256_v42 = vpop.f32.mrf.mxu3  ;;  %v2307_v43 = vpop.f32.mrf.mxu0 }
 0x2a4   : > { %2423 = vst.msk [vmem:[%s4881_s13 + $0x58] sm:$0xff] %vm2412_vm0, %v2390_v6  ;;  %v2257_v27 = vadd.f32 %v2256_v42, %v2208_v23 }
 0x2a5   : > { %v2356_v60 = vpop.f32.mrf.mxu1 }
 0x2a6   : > { %v2306_v16 = vadd.f32 %v2305_v34, %v2257_v27 }
 0x2a8   : > { %v2355_v21 = vadd.f32 %v2354_v62, %v2306_v16  ;;  %v2209_v54 = vpop.f32.mrf.mxu2 }
 0x2a9   : > { %v2210_v30 = vadd.f32 %v2209_v54, %v5159_v44 }
 0x2aa   : > { %v2392_v25 = vmax.f32 %v2355_v21, 0.0 }
 0x2ab   : > { %v2258_v4 = vpop.f32.mrf.mxu3  ;;  %v2310_v11 = vpop.f32.mrf.mxu0 }
 0x2ac   : > { %2425 = vst.msk [vmem:[%s4881_s13 + $0x68] sm:$0xff] %vm2412_vm0, %v2392_v25  ;;  %v2259_v14 = vadd.f32 %v2258_v4, %v2210_v30 }
 0x2ad   : > { %v2359_v31 = vpop.f32.mrf.mxu1 }
 0x2ae   : > { %v2308_v22 = vadd.f32 %v2307_v43, %v2259_v14 }
 0x2b0   : > { %v2357_v10 = vadd.f32 %v2356_v60, %v2308_v22  ;;  %v2212_v63 = vpop.f32.mrf.mxu2 }
 0x2b1   : > { %v2213_v52 = vadd.f32 %v2212_v63, %v5163_v56 }
 0x2b2   : > { %v2394_v24 = vmax.f32 %v2357_v10, 0.0 }
 0x2b3   : > { %v2261_v45 = vpop.f32.mrf.mxu3  ;;  %v2312_v48 = vpop.f32.mrf.mxu0 }
 0x2b4   : > { %2427 = vst.msk [vmem:[%s4881_s13 + $0x78] sm:$0xff] %vm2412_vm0, %v2394_v24  ;;  %v2262_v53 = vadd.f32 %v2261_v45, %v2213_v52 }
 0x2b5   : > { %v2361_v33 = vpop.f32.mrf.mxu1 }
 0x2b6   : > { %v2311_v44 = vadd.f32 %v2310_v11, %v2262_v53 }
 0x2b8   : > { %v2360_v19 = vadd.f32 %v2359_v31, %v2311_v44  ;;  %v2214_v36 = vpop.f32.mrf.mxu2 }
 0x2b9   : > { %v2215_v9 = vadd.f32 %v2214_v36, %v5171_v5 }
 0x2ba   : > { %v2396_v1 = vmax.f32 %v2360_v19, 0.0 }
 0x2bb   : > { %v2263_v46 = vpop.f32.mrf.mxu3  ;;  %v2315_v18 = vpop.f32.mrf.mxu0 }
 0x2bc   : > { %2429 = vst.msk [vmem:[%s4881_s13 + $0x88] sm:$0xff] %vm2412_vm0, %v2396_v1  ;;  %v2264_v26 = vadd.f32 %v2263_v46, %v2215_v9 }
 0x2bd   : > { %v2364_v58 = vpop.f32.mrf.mxu1 }
 0x2be   : > { %v2313_v56 = vadd.f32 %v2312_v48, %v2264_v26 }
 0x2c0   : > { %v2362_v61 = vadd.f32 %v2361_v33, %v2313_v56  ;;  %v2217_v38 = vpop.f32.mrf.mxu2 }
 0x2c1   : > { %v2218_v55 = vadd.f32 %v2217_v38, %v5175_v15 }
 0x2c2   : > { %v2398_v35 = vmax.f32 %v2362_v61, 0.0 }
 0x2c3   : > { %v2266_v41 = vpop.f32.mrf.mxu3  ;;  %v2317_v50 = vpop.f32.mrf.mxu0 }
 0x2c4   : > { %2431 = vst.msk [vmem:[%s4881_s13 + $0x98] sm:$0xff] %vm2412_vm0, %v2398_v35  ;;  %v2267_v57 = vadd.f32 %v2266_v41, %v2218_v55 }
 0x2c5   : > { %v2366_v5 = vpop.f32.mrf.mxu1 }
 0x2c6   : > { %v2316_v12 = vadd.f32 %v2315_v18, %v2267_v57 }
 0x2c8   : > { %v2365_v3 = vadd.f32 %v2364_v58, %v2316_v12  ;;  %v2219_v20 = vpop.f32.mrf.mxu2 }
 0x2c9   : > { %v2220_v28 = vadd.f32 %v2219_v20, %v5183_v47 }
 0x2ca   : > { %v2400_v2 = vmax.f32 %v2365_v3, 0.0 }
 0x2cb   : > { %v2268_v32 = vpop.f32.mrf.mxu3  ;;  %v2320_v7 = vpop.f32.mrf.mxu0 }
 0x2cc   : > { %2433 = vst.msk [vmem:[%s4881_s13 + $0xa8] sm:$0xff] %vm2412_vm0, %v2400_v2  ;;  %v2269_v8 = vadd.f32 %v2268_v32, %v2220_v28 }
 0x2cd   : > { %v2369_v0 = vpop.f32.mrf.mxu1 }
 0x2ce   : > { %v2318_v39 = vadd.f32 %v2317_v50, %v2269_v8 }
 0x2d0   : > { %v2367_v15 = vadd.f32 %v2366_v5, %v2318_v39  ;;  %v2222_v34 = vpop.f32.mrf.mxu2 }
 0x2d1   : > { %v2223_v62 = vadd.f32 %v2222_v34, %v5187_v51 }
 0x2d2   : > { %v2402_v13 = vmax.f32 %v2367_v15, 0.0 }
 0x2d3   : > { %v2271_v29 = vpop.f32.mrf.mxu3  ;;  %v2322_v47 = vpop.f32.mrf.mxu0 }
 0x2d4   : > { %2435 = vst.msk [vmem:[%s4881_s13 + $0xb8] sm:$0xff] %vm2412_vm0, %v2402_v13  ;;  %v2272_v40 = vadd.f32 %v2271_v29, %v2223_v62 }
 0x2d5   : > { %v2371_v60 = vpop.f32.mrf.mxu1 }
 0x2d6   : > { %v2321_v59 = vadd.f32 %v2320_v7, %v2272_v40 }
 0x2d8   : > { %v2370_v6 = vadd.f32 %v2369_v0, %v2321_v59  ;;  %v2224_v23 = vpop.f32.mrf.mxu2 }
 0x2d9   : > { %v2225_v43 = vadd.f32 %v2224_v23, %v5195_v17 }
 0x2da   : > { %v2404_v42 = vmax.f32 %v2370_v6, 0.0 }
 0x2db   : > { %v2273_v27 = vpop.f32.mrf.mxu3  ;;  %v2325_v11 = vpop.f32.mrf.mxu0 }
 0x2dc   : > { %2437 = vst.msk [vmem:[%s4881_s13 + $0xc8] sm:$0xff] %vm2412_vm0, %v2404_v42  ;;  %v2274_v16 = vadd.f32 %v2273_v27, %v2225_v43 }
 0x2dd   : > { %v2374_v31 = vpop.f32.mrf.mxu1 }
 0x2de   : > { %v2323_v21 = vadd.f32 %v2322_v47, %v2274_v16 }
 0x2e0   : > { %v2372_v51 = vadd.f32 %v2371_v60, %v2323_v21  ;;  %v2227_v54 = vpop.f32.mrf.mxu2 }
 0x2e1   : > { %v2228_v30 = vadd.f32 %v2227_v54, %v5199_v49 }
 0x2e2   : > { %v2406_v25 = vmax.f32 %v2372_v51, 0.0 }
 0x2e3   : > { %v2276_v4 = vpop.f32.mrf.mxu3  ;;  %v2327_v48 = vpop.f32.mrf.mxu0 }
 0x2e4   : > { %2439 = vst.msk [vmem:[%s4881_s13 + $0xd8] sm:$0xff] %vm2412_vm0, %v2406_v25  ;;  %v2277_v14 = vadd.f32 %v2276_v4, %v2228_v30 }
 0x2e5   : > { %v2376_v49 = vpop.f32.mrf.mxu1 }
 0x2e6   : > { %v2326_v17 = vadd.f32 %v2325_v11, %v2277_v14 }
 0x2e8   : > { %v2375_v22 = vadd.f32 %v2374_v31, %v2326_v17  ;;  %v2229_v10 = vpop.f32.mrf.mxu2 }
 0x2e9   : > { %v2230_v24 = vadd.f32 %v2229_v10, %v5201_v37 }
 0x2ea   : > { %v2408_v63 = vmax.f32 %v2375_v22, 0.0 }
 0x2eb   : > { %v2278_v52 = vpop.f32.mrf.mxu3 }
 0x2ec   : > { %2441 = vst.msk [vmem:[%s4881_s13 + $0xe8] sm:$0xff] %vm2412_vm0, %v2408_v63  ;;  %v2279_v45 = vadd.f32 %v2278_v52, %v2230_v24 }
 0x2ee   : > { %v2328_v53 = vadd.f32 %v2327_v48, %v2279_v45 }
 0x2f0   : > { %v2377_v33 = vadd.f32 %v2376_v49, %v2328_v53 }
 0x2f2   : > { %v2410_v44 = vmax.f32 %v2377_v33, 0.0 }
 0x2f4   : > { %2443 = vst.msk [vmem:[%s4881_s13 + $0xf8] sm:$0xff] %vm2412_vm0, %v2410_v44 }
 0x2f5 PF: > { %s13_s12 = sadd.s32 1, %s3627_s12  }
 0x2f6   : > { %p10_p4 = scmp.ge.s32.totalorder %s13_s12, 6  }
 0x2f8   :  { %12 = sbr.rel (!%p10_p4) target bundleno = 1 (0x1), region = 62 }

// kernel: complex_inception_a.7
= control target key start
LH: loop header
LB: loop body
LE: loop exit
PB: predicated region body
PF: predicated region fallthrough
CT: control target
= control target key end

     0   :  { %s5372_s12 = smov 0   ;;  %s7761_s0 = inlined_call_operand.vmem [shape: bf16[512,1728], index: 0, kind: input, shape index: {}]   ;;  %s7762_s1 = inlined_call_operand.vmem [shape: bf16[1728,192], index: 1, kind: input, shape index: {}]   ;;  %s7763_s2 = inlined_call_operand.vmem [shape: f32[1,192], index: 2, kind: input, shape index: {}]   ;;  %s7764_s3 = inlined_call_operand.vmem [shape: f32[512,192], index: 3, kind: output, shape index: {}]  }
   0x1 LB: > { %s3665_s13 = sadd.s32 4294967295, %s5350_s12   ;;  %p3669_p0 = scmp.ge.s32.totalorder %s5350_s12, 1  ;;  %s5350_s12 = sphi %s5372_s12, %s13_s12  }
   0x2   : > { %p139_p1 = scmp.lt.s32.totalorder %s5350_s12, 5 }
   0x4   : > { %p140_p2 = pnand %p3669_p0, %p139_p1 }
   0x6   : > { %143 = sbr.rel (%p140_p2) target bundleno = 1074 (0x432), region = 32 }
   0xb   : > { %v4181_v0 = vld [vmem:[%s7762_s1 + $0x70] sm:$0xf]  ;;  %v5133_v1 = vld [vmem:[%s7762_s1 + $0x74] sm:$0xf0]  ;;  %v4173_v11 = vld [vmem:[%s7762_s1 + $0x60] sm:$0xf] }
   0xc   : > { %v4245_v2 = vld [vmem:[%s7762_s1 + $0xf0] sm:$0xf]  ;;  %v4182_v3 = vor.u32 %v5133_v1, %v4181_v0  ;;  %v5149_v4 = vld [vmem:[%s7762_s1 + $0xf4] sm:$0xf0]  ;;  %v5131_v13 = vld [vmem:[%s7762_s1 + $0x64] sm:$0xf0] }
   0xd   : > { %v4309_v5 = vld [vmem:[%s7762_s1 + $0x170] sm:$0xf]  ;;  %v5165_v6 = vld [vmem:[%s7762_s1 + $0x174] sm:$0xf0]  ;;  %v4246_v7 = vor.u32 %v5149_v4, %v4245_v2  ;;  %v4237_v14 = vld [vmem:[%s7762_s1 + $0xe0] sm:$0xf]  ;;  %v4174_v16 = vor.u32 %v5131_v13, %v4173_v11 }
   0xe   : > { %v4310_v8 = vor.u32 %v5165_v6, %v4309_v5  ;;  %v4373_v9 = vld [vmem:[%s7762_s1 + $0x1f0] sm:$0xf]  ;;  %v5181_v10 = vld [vmem:[%s7762_s1 + $0x1f4] sm:$0xf0]  ;;  %2171 = vmatpush.bf16.msra.mxu0 %v4182_v3  ;;  %v5147_v15 = vld [vmem:[%s7762_s1 + $0xe4] sm:$0xf0] }
   0xf   : > { %v4374_v12 = vor.u32 %v5181_v10, %v4373_v9  ;;  %2220 = vmatpush.bf16.msra.mxu1 %v4246_v7  ;;  %v4238_v17 = vor.u32 %v5147_v15, %v4237_v14  ;;  %v4301_v18 = vld [vmem:[%s7762_s1 + $0x160] sm:$0xf]  ;;  %v5163_v19 = vld [vmem:[%s7762_s1 + $0x164] sm:$0xf0]  ;;  %v4165_v23 = vld [vmem:[%s7762_s1 + $0x50] sm:$0xf] }
  0x10   : > { %2269 = vmatpush.bf16.msra.mxu2 %v4310_v8  ;;  %v4365_v20 = vld [vmem:[%s7762_s1 + $0x1e0] sm:$0xf]  ;;  %v4302_v21 = vor.u32 %v5163_v19, %v4301_v18  ;;  %v5179_v22 = vld [vmem:[%s7762_s1 + $0x1e4] sm:$0xf0]  ;;  %v5129_v24 = vld [vmem:[%s7762_s1 + $0x54] sm:$0xf0] }
  0x11   : > { %2318 = vmatpush.bf16.msra.mxu3 %v4374_v12  ;;  %v4366_v25 = vor.u32 %v5179_v22, %v4365_v20  ;;  %v4229_v26 = vld [vmem:[%s7762_s1 + $0xd0] sm:$0xf]  ;;  %v5145_v27 = vld [vmem:[%s7762_s1 + $0xd4] sm:$0xf0]  ;;  %v4166_v29 = vor.u32 %v5129_v24, %v4165_v23  ;;  %v4157_v35 = vld [vmem:[%s7762_s1 + $0x40] sm:$0xf] }
  0x12   : > { %v4293_v28 = vld [vmem:[%s7762_s1 + $0x150] sm:$0xf]  ;;  %2172 = vmatpush.bf16.msra.mxu0 %v4174_v16  ;;  %v5161_v30 = vld [vmem:[%s7762_s1 + $0x154] sm:$0xf0]  ;;  %v4230_v33 = vor.u32 %v5145_v27, %v4229_v26  ;;  %v5127_v36 = vld [vmem:[%s7762_s1 + $0x44] sm:$0xf0] }
  0x13   : > { %v4357_v31 = vld [vmem:[%s7762_s1 + $0x1d0] sm:$0xf]  ;;  %v5177_v32 = vld [vmem:[%s7762_s1 + $0x1d4] sm:$0xf0]  ;;  %2221 = vmatpush.bf16.msra.mxu1 %v4238_v17  ;;  %v4294_v34 = vor.u32 %v5161_v30, %v4293_v28  ;;  %v4221_v37 = vld [vmem:[%s7762_s1 + $0xc0] sm:$0xf]  ;;  %v4158_v44 = vor.u32 %v5127_v36, %v4157_v35 }
  0x14   : > { %2270 = vmatpush.bf16.msra.mxu2 %v4302_v21  ;;  %v4358_v38 = vor.u32 %v5177_v32, %v4357_v31  ;;  %v5143_v39 = vld [vmem:[%s7762_s1 + $0xc4] sm:$0xf0]  ;;  %v4285_v40 = vld [vmem:[%s7762_s1 + $0x140] sm:$0xf]  ;;  %v4149_v47 = vld [vmem:[%s7762_s1 + $0x30] sm:$0xf] }
  0x15   : > { %2319 = vmatpush.bf16.msra.mxu3 %v4366_v25  ;;  %v5159_v41 = vld [vmem:[%s7762_s1 + $0x144] sm:$0xf0]  ;;  %v4349_v42 = vld [vmem:[%s7762_s1 + $0x1c0] sm:$0xf]  ;;  %v4222_v45 = vor.u32 %v5143_v39, %v4221_v37  ;;  %v5125_v48 = vld [vmem:[%s7762_s1 + $0x34] sm:$0xf0] }
  0x16   : > { %v5175_v43 = vld [vmem:[%s7762_s1 + $0x1c4] sm:$0xf0]  ;;  %2173 = vmatpush.bf16.msra.mxu0 %v4166_v29  ;;  %v4286_v46 = vor.u32 %v5159_v41, %v4285_v40  ;;  %v4213_v49 = vld [vmem:[%s7762_s1 + $0xb0] sm:$0xf]  ;;  %v5141_v51 = vld [vmem:[%s7762_s1 + $0xb4] sm:$0xf0]  ;;  %v4150_v56 = vor.u32 %v5125_v48, %v4149_v47 }
  0x17   : > { %2222 = vmatpush.bf16.msra.mxu1 %v4230_v33  ;;  %v4350_v50 = vor.u32 %v5175_v43, %v4349_v42  ;;  %v4277_v52 = vld [vmem:[%s7762_s1 + $0x130] sm:$0xf]  ;;  %v5157_v53 = vld [vmem:[%s7762_s1 + $0x134] sm:$0xf0]  ;;  %v4214_v57 = vor.u32 %v5141_v51, %v4213_v49  ;;  %v4141_v59 = vld [vmem:[%s7762_s1 + $0x20] sm:$0xf] }
  0x18   : > { %2271 = vmatpush.bf16.msra.mxu2 %v4294_v34  ;;  %v4341_v54 = vld [vmem:[%s7762_s1 + $0x1b0] sm:$0xf]  ;;  %v5173_v55 = vld [vmem:[%s7762_s1 + $0x1b4] sm:$0xf0]  ;;  %v4278_v58 = vor.u32 %v5157_v53, %v4277_v52  ;;  %v5123_v60 = vld [vmem:[%s7762_s1 + $0x24] sm:$0xf0] }
  0x19   : > { %2320 = vmatpush.bf16.msra.mxu3 %v4358_v38  ;;  %v4205_v61 = vld [vmem:[%s7762_s1 + $0xa0] sm:$0xf]  ;;  %v4342_v62 = vor.u32 %v5173_v55, %v4341_v54  ;;  %v5139_v63 = vld [vmem:[%s7762_s1 + $0xa4] sm:$0xf0]  ;;  %v4142_v4 = vor.u32 %v5123_v60, %v4141_v59  ;;  %v4133_v5 = vld [vmem:[%s7762_s1 + $0x10] sm:$0xf] }
  0x1a   : > { %2174 = vmatpush.bf16.msra.mxu0 %v4158_v44  ;;  %v4269_v0 = vld [vmem:[%s7762_s1 + $0x120] sm:$0xf]  ;;  %v5155_v1 = vld [vmem:[%s7762_s1 + $0x124] sm:$0xf0]  ;;  %v4206_v6 = vor.u32 %v5139_v63, %v4205_v61  ;;  %v5121_v8 = vld [vmem:[%s7762_s1 + $0x14] sm:$0xf0] }
  0x1b   : > { %2223 = vmatpush.bf16.msra.mxu1 %v4222_v45  ;;  %v4333_v2 = vld [vmem:[%s7762_s1 + $0x1a0] sm:$0xf]  ;;  %v5171_v3 = vld [vmem:[%s7762_s1 + $0x1a4] sm:$0xf0]  ;;  %v4270_v7 = vor.u32 %v5155_v1, %v4269_v0  ;;  %v4197_v9 = vld [vmem:[%s7762_s1 + $0x90] sm:$0xf]  ;;  %v4134_v16 = vor.u32 %v5121_v8, %v4133_v5 }
  0x1c   : > { %2272 = vmatpush.bf16.msra.mxu2 %v4286_v46  ;;  %v5137_v10 = vld [vmem:[%s7762_s1 + $0x94] sm:$0xf0]  ;;  %v4334_v11 = vor.u32 %v5171_v3, %v4333_v2  ;;  %v4261_v12 = vld [vmem:[%s7762_s1 + $0x110] sm:$0xf]  ;;  %s3670_s22 = sshll.u32 %s3665_s13, 4  ;;  %vm2146_vm0 = vcmask 523264  }
  0x1d   : > { %2321 = vmatpush.bf16.msra.mxu3 %v4350_v50  ;;  %v5153_v13 = vld [vmem:[%s7762_s1 + $0x114] sm:$0xf0]  ;;  %v4325_v14 = vld [vmem:[%s7762_s1 + $0x190] sm:$0xf]  ;;  %p166_p3 = scmp.lt.s32.totalorder %s3670_s22, 63  ;;  %v4198_v20 = vor.u32 %v5137_v10, %v4197_v9 }
  0x1e   : > { %2175 = vmatpush.bf16.msra.mxu0 %v4150_v56  ;;  %v5169_v15 = vld [vmem:[%s7762_s1 + $0x194] sm:$0xf0]  ;;  %v4125_v17 = vld [vmem:[%s7762_s1] sm:$0xf]  ;;  %v5119_v18 = vld [vmem:[%s7762_s1 + $0x4] sm:$0xf0]  ;;  %v4262_v21 = vor.u32 %v5153_v13, %v4261_v12 }
  0x1f   : > { %2224 = vmatpush.bf16.msra.mxu1 %v4214_v57  ;;  %v4189_v19 = vld [vmem:[%s7762_s1 + $0x80] sm:$0xf]  ;;  %v5135_v22 = vld [vmem:[%s7762_s1 + $0x84] sm:$0xf0]  ;;  %s7967_s22 = smov (!%p166_p3, %s3670_s22), 63  ;;  %v4326_v24 = vor.u32 %v5169_v15, %v4325_v14  ;;  %v4126_v30 = vor.u32 %v5119_v18, %v4125_v17 }
  0x20   : > { %2273 = vmatpush.bf16.msra.mxu2 %v4278_v58  ;;  %v4253_v23 = vld [vmem:[%s7762_s1 + $0x100] sm:$0xf]  ;;  %v5151_v25 = vld [vmem:[%s7762_s1 + $0x104] sm:$0xf0]  ;;  %s5334_s17 = smul.u32 56, %s7967_s22  ;;  %v4190_v35 = vor.u32 %v5135_v22, %v4189_v19  ;;  %s5005_s21 = sshll.u32 %s7967_s22, 4 }
  0x21   : > { %2322 = vmatpush.bf16.msra.mxu3 %v4342_v62  ;;  %v4317_v26 = vld [vmem:[%s7762_s1 + $0x180] sm:$0xf]  ;;  %v5167_v27 = vld [vmem:[%s7762_s1 + $0x184] sm:$0xf0]  ;;  %v4565_v28 = vld [vmem:[%s7762_s1 + $0x370] sm:$0xf]  ;;  %v4254_v36 = vor.u32 %v5151_v25, %v4253_v23  ;;  %s7113_s25 = scalar_lea.vmem %s7764_s3, %s5005_s21 }
  0x22   : > { %2176 = vmatpush.bf16.msra.mxu0 %v4142_v4  ;;  %v5229_v29 = vld [vmem:[%s7762_s1 + $0x374] sm:$0xf0]  ;;  %v4437_v31 = vld [vmem:[%s7762_s1 + $0x270] sm:$0xf]  ;;  %s5598_s5 = scalar_lea.vmem %s7761_s0, %s5334_s17  ;;  %v4557_v39 = vld [vmem:[%s7762_s1 + $0x360] sm:$0xf]  ;;  %v4318_v41 = vor.u32 %v5167_v27, %v4317_v26 }
  0x23   : > { %2225 = vmatpush.bf16.msra.mxu1 %v4206_v6  ;;  %v5197_v32 = vld [vmem:[%s7762_s1 + $0x274] sm:$0xf0]  ;;  %v4629_v33 = vld [vmem:[%s7762_s1 + $0x3f0] sm:$0xf]  ;;  %v5227_v40 = vld [vmem:[%s7762_s1 + $0x364] sm:$0xf0]  ;;  %v4566_v45 = vor.u32 %v5229_v29, %v4565_v28 }
  0x24   : > { %2274 = vmatpush.bf16.msra.mxu2 %v4270_v7  ;;  %v5245_v34 = vld [vmem:[%s7762_s1 + $0x3f4] sm:$0xf0]  ;;  %v4501_v37 = vld [vmem:[%s7762_s1 + $0x2f0] sm:$0xf]  ;;  %v3677_v42 = vld [vmem:[%s5598_s5] sm:$0xf]  ;;  %v4438_v58 = vor.u32 %v5197_v32, %v4437_v31  ;;  %v4558_v60 = vor.u32 %v5227_v40, %v4557_v39 }
  0x25   : > { %2323 = vmatpush.bf16.msra.mxu3 %v4334_v11  ;;  %v5213_v38 = vld [vmem:[%s7762_s1 + $0x2f4] sm:$0xf0]  ;;  %v5006_v44 = vld [vmem:[%s5598_s5 + $0x4] sm:$0xf]  ;;  %v4621_v46 = vld [vmem:[%s7762_s1 + $0x3e0] sm:$0xf]  ;;  %v4630_v51 = vor.u32 %v5245_v34, %v4629_v33 }
  0x26   : > { %2177 = vmatpush.bf16.msra.mxu0 %v4134_v16  ;;  %v5013_v43 = vld [vmem:[%s5598_s5 + $0x34] sm:$0xf0]  ;;  %v3679_v48 = vld [vmem:[%s5598_s5 + $0x38] sm:$0xf0]  ;;  %v3685_v49 = vld [vmem:[%s5598_s5 + $0x8] sm:$0xf]  ;;  %v4502_v59 = vor.u32 %v5213_v38, %v4501_v37 }
  0x27   : > { %2226 = vmatpush.bf16.msra.mxu1 %v4198_v20  ;;  %v5618_v47 = vor.u32 %v5013_v43, %v3677_v42  ;;  %v5014_v50 = vld [vmem:[%s5598_s5 + $0x3c] sm:$0xf0]  ;;  %v5623_v52 = vor.u32 %v5006_v44, %v3679_v48  ;;  %v5007_v54 = vld [vmem:[%s5598_s5 + $0xc] sm:$0xf]  ;;  %v3687_v55 = vld [vmem:[%s5598_s5 + $0x40] sm:$0xf0] }
  0x28   : > { %2275 = vmatpush.bf16.msra.mxu2 %v4262_v21  ;;  %v5625_v53 = vor.u32 %v5014_v50, %v3685_v49  ;;  %v5243_v56 = vld [vmem:[%s7762_s1 + $0x3e4] sm:$0xf0]  ;;  %v5632_v57 = vor.u32 %v5007_v54, %v3687_v55  ;;  %v4429_v61 = vld [vmem:[%s7762_s1 + $0x260] sm:$0xf]  ;;  %v4549_v4 = vld [vmem:[%s7762_s1 + $0x350] sm:$0xf] }
  0x29   : > { %2324 = vmatpush.bf16.msra.mxu3 %v4326_v24  ;;  %v5195_v62 = vld [vmem:[%s7762_s1 + $0x264] sm:$0xf0]  ;;  %v4622_v63 = vor.u32 %v5243_v56, %v4621_v46  ;;  %v4493_v0 = vld [vmem:[%s7762_s1 + $0x2e0] sm:$0xf]  ;;  %v5225_v5 = vld [vmem:[%s7762_s1 + $0x354] sm:$0xf0] }
  0x2a   : > { %2178 = vmatpush.bf16.msra.mxu0 %v4126_v30  ;;  %v5211_v1 = vld [vmem:[%s7762_s1 + $0x2e4] sm:$0xf0]  ;;  %v4430_v2 = vor.u32 %v5195_v62, %v4429_v61  ;;  %v4421_v6 = vld [vmem:[%s7762_s1 + $0x250] sm:$0xf]  ;;  %v4550_v7 = vor.u32 %v5225_v5, %v4549_v4  ;;  %v5193_v8 = vld [vmem:[%s7762_s1 + $0x254] sm:$0xf0] }
  0x2b   : > { %2227 = vmatpush.bf16.msra.mxu1 %v4190_v35  ;;  %v4494_v3 = vor.u32 %v5211_v1, %v4493_v0  ;;  %v4613_v9 = vld [vmem:[%s7762_s1 + $0x3d0] sm:$0xf]  ;;  %v5241_v10 = vld [vmem:[%s7762_s1 + $0x3d4] sm:$0xf0]  ;;  %v4422_v14 = vor.u32 %v5193_v8, %v4421_v6  ;;  %v5027_v17 = vld [vmem:[%s5598_s5 + $0xa4] sm:$0xf0] }
  0x2c   : > { %2276 = vmatpush.bf16.msra.mxu2 %v4254_v36  ;;  %v4614_v11 = vor.u32 %v5241_v10, %v4613_v9  ;;  %v4485_v12 = vld [vmem:[%s7762_s1 + $0x2d0] sm:$0xf]  ;;  %v5209_v13 = vld [vmem:[%s7762_s1 + $0x2d4] sm:$0xf0]  ;;  %v5020_v18 = vld [vmem:[%s5598_s5 + $0x74] sm:$0xf] }
  0x2d   : > { %2325 = vmatpush.bf16.msra.mxu3 %v4318_v41  ;;  %2179 = vmatmul.bf16.vlgmr.msra.gmra.mxu0 %v5618_v47  ;;  %v4486_v15 = vor.u32 %v5209_v13, %v4485_v12  ;;  %v3733_v16 = vld [vmem:[%s5598_s5 + $0x70] sm:$0xf]  ;;  %v3735_v19 = vld [vmem:[%s5598_s5 + $0xa8] sm:$0xf0]  ;;  %v3741_v20 = vld [vmem:[%s5598_s5 + $0x78] sm:$0xf] }
  0x2e   : > { %2228 = vmatmul.bf16.vlgmr.msra.gmra.mxu1 %v5623_v52  ;;  %2367 = vmatpush.bf16.msrb.mxu0 %v4438_v58  ;;  %v5028_v21 = vld [vmem:[%s5598_s5 + $0xac] sm:$0xf0]  ;;  %v5021_v22 = vld [vmem:[%s5598_s5 + $0x7c] sm:$0xf]  ;;  %v3743_v23 = vld [vmem:[%s5598_s5 + $0xb0] sm:$0xf0]  ;;  %v5682_v24 = vor.u32 %v5027_v17, %v3733_v16  ;;  %v5684_v25 = vor.u32 %v5020_v18, %v3735_v19 }
  0x2f   : > { %2277 = vmatmul.bf16.vlgmr.msra.gmra.mxu2 %v5625_v53  ;;  %2416 = vmatpush.bf16.msrb.mxu1 %v4502_v59  ;;  %v5686_v26 = vor.u32 %v5028_v21, %v3741_v20  ;;  %v5688_v27 = vor.u32 %v5021_v22, %v3743_v23  ;;  %v4541_v28 = vld [vmem:[%s7762_s1 + $0x340] sm:$0xf]  ;;  %v5223_v29 = vld [vmem:[%s7762_s1 + $0x344] sm:$0xf0]  ;;  %v5041_v41 = vld [vmem:[%s5598_s5 + $0x114] sm:$0xf0] }
  0x30   : > { %2465 = vmatpush.bf16.msrb.mxu2 %v4566_v45  ;;  %2326 = vmatmul.bf16.vlgmr.msra.gmra.mxu3 %v5632_v57  ;;  %v4413_v30 = vld [vmem:[%s7762_s1 + $0x240] sm:$0xf]  ;;  %v4542_v31 = vor.u32 %v5223_v29, %v4541_v28  ;;  %v5191_v32 = vld [vmem:[%s7762_s1 + $0x244] sm:$0xf0]  ;;  %v5034_v42 = vld [vmem:[%s5598_s5 + $0xe4] sm:$0xf] }
  0x31   : > { %2514 = vmatpush.bf16.msrb.mxu3 %v4630_v51  ;;  %v4605_v33 = vld [vmem:[%s7762_s1 + $0x3c0] sm:$0xf]  ;;  %v5239_v34 = vld [vmem:[%s7762_s1 + $0x3c4] sm:$0xf0]  ;;  %v4414_v35 = vor.u32 %v5191_v32, %v4413_v30  ;;  %v3791_v43 = vld [vmem:[%s5598_s5 + $0x118] sm:$0xf0] }
  0x32   : > { %2368 = vmatpush.bf16.msrb.mxu0 %v4430_v2  ;;  %v4606_v36 = vor.u32 %v5239_v34, %v4605_v33  ;;  %v4477_v37 = vld [vmem:[%s7762_s1 + $0x2c0] sm:$0xf]  ;;  %v5207_v38 = vld [vmem:[%s7762_s1 + $0x2c4] sm:$0xf0]  ;;  %v5035_v46 = vld [vmem:[%s5598_s5 + $0xec] sm:$0xf]  ;;  %v5728_v50 = vor.u32 %v5034_v42, %v3791_v43 }
  0x33   : > { %2417 = vmatpush.bf16.msrb.mxu1 %v4494_v3  ;;  %v4478_v39 = vor.u32 %v5207_v38, %v4477_v37  ;;  %v3789_v40 = vld [vmem:[%s5598_s5 + $0xe0] sm:$0xf]  ;;  %v3797_v44 = vld [vmem:[%s5598_s5 + $0xe8] sm:$0xf]  ;;  %v3799_v48 = vld [vmem:[%s5598_s5 + $0x120] sm:$0xf0] }
  0x34   : > { %2466 = vmatpush.bf16.msrb.mxu2 %v4558_v60  ;;  %v5042_v45 = vld [vmem:[%s5598_s5 + $0x11c] sm:$0xf0]  ;;  %v5726_v49 = vor.u32 %v5041_v41, %v3789_v40  ;;  %v5732_v54 = vor.u32 %v5035_v46, %v3799_v48  ;;  %v4533_v55 = vld [vmem:[%s7762_s1 + $0x330] sm:$0xf]  ;;  %v5221_v56 = vld [vmem:[%s7762_s1 + $0x334] sm:$0xf0] }
  0x35   : > { %2515 = vmatpush.bf16.msrb.mxu3 %v4622_v63  ;;  %v5730_v51 = vor.u32 %v5042_v45, %v3797_v44  ;;  %v4405_v58 = vld [vmem:[%s7762_s1 + $0x230] sm:$0xf]  ;;  %v4534_v59 = vor.u32 %v5221_v56, %v4533_v55  ;;  %v5189_v60 = vld [vmem:[%s7762_s1 + $0x234] sm:$0xf0]  ;;  %v5055_v5 = vld [vmem:[%s5598_s5 + $0x184] sm:$0xf0] }
  0x36   : > { %2369 = vmatpush.bf16.msrb.mxu0 %v4422_v14  ;;  %v4597_v61 = vld [vmem:[%s7762_s1 + $0x3b0] sm:$0xf]  ;;  %v5237_v62 = vld [vmem:[%s7762_s1 + $0x3b4] sm:$0xf0]  ;;  %v4406_v63 = vor.u32 %v5189_v60, %v4405_v58  ;;  %v5048_v6 = vld [vmem:[%s5598_s5 + $0x154] sm:$0xf] }
  0x37   : > { %2418 = vmatpush.bf16.msrb.mxu1 %v4486_v15  ;;  %v4598_v0 = vor.u32 %v5237_v62, %v4597_v61  ;;  %v4469_v1 = vld [vmem:[%s7762_s1 + $0x2b0] sm:$0xf]  ;;  %v5205_v2 = vld [vmem:[%s7762_s1 + $0x2b4] sm:$0xf0]  ;;  %v5049_v10 = vld [vmem:[%s5598_s5 + $0x15c] sm:$0xf] }
  0x38   : > { %2467 = vmatpush.bf16.msrb.mxu2 %v4550_v7  ;;  %v4470_v3 = vor.u32 %v5205_v2, %v4469_v1  ;;  %v3845_v4 = vld [vmem:[%s5598_s5 + $0x150] sm:$0xf]  ;;  %v3847_v7 = vld [vmem:[%s5598_s5 + $0x188] sm:$0xf0]  ;;  %v3853_v8 = vld [vmem:[%s5598_s5 + $0x158] sm:$0xf] }
  0x39   : > { %2516 = vmatpush.bf16.msrb.mxu3 %v4614_v11  ;;  %v5056_v9 = vld [vmem:[%s5598_s5 + $0x18c] sm:$0xf0]  ;;  %v3855_v11 = vld [vmem:[%s5598_s5 + $0x190] sm:$0xf0]  ;;  %v5770_v12 = vor.u32 %v5055_v5, %v3845_v4  ;;  %v5772_v13 = vor.u32 %v5048_v6, %v3847_v7  ;;  %v4525_v16 = vld [vmem:[%s7762_s1 + $0x320] sm:$0xf] }
  0x3a   : > { %2370 = vmatpush.bf16.msrb.mxu0 %v4414_v35  ;;  %v5774_v14 = vor.u32 %v5056_v9, %v3853_v8  ;;  %v5776_v15 = vor.u32 %v5049_v10, %v3855_v11  ;;  %v5219_v17 = vld [vmem:[%s7762_s1 + $0x324] sm:$0xf0]  ;;  %v4397_v18 = vld [vmem:[%s7762_s1 + $0x220] sm:$0xf]  ;;  %v5069_v33 = vld [vmem:[%s5598_s5 + $0x1f4] sm:$0xf0] }
  0x3b   : > { %2419 = vmatpush.bf16.msrb.mxu1 %v4478_v39  ;;  %v4526_v19 = vor.u32 %v5219_v17, %v4525_v16  ;;  %v5187_v20 = vld [vmem:[%s7762_s1 + $0x224] sm:$0xf0]  ;;  %v4589_v21 = vld [vmem:[%s7762_s1 + $0x3a0] sm:$0xf]  ;;  %v5062_v34 = vld [vmem:[%s5598_s5 + $0x1c4] sm:$0xf] }
  0x3c   : > { %2468 = vmatpush.bf16.msrb.mxu2 %v4542_v31  ;;  %7832 = vst [vmem:[#allocation2_spill] sm:$0xff] %v5774_v14  ;;  %v5235_v22 = vld [vmem:[%s7762_s1 + $0x3a4] sm:$0xf0]  ;;  %v4398_v23 = vor.u32 %v5187_v20, %v4397_v18  ;;  %v4461_v29 = vld [vmem:[%s7762_s1 + $0x2a0] sm:$0xf] }
  0x3d   : > { %2184 = vmatmul.bf16.gmra.mxu0 %v5682_v24  ;;  %2517 = vmatpush.bf16.msrb.mxu3 %v4606_v36  ;;  %7833 = vst [vmem:[#allocation3_spill] sm:$0xff] %v5776_v15  ;;  %v4590_v28 = vor.u32 %v5235_v22, %v4589_v21  ;;  %v5203_v30 = vld [vmem:[%s7762_s1 + $0x2a4] sm:$0xf0]  ;;  %v3901_v32 = vld [vmem:[%s5598_s5 + $0x1c0] sm:$0xf] }
  0x3e   : > { %2233 = vmatmul.bf16.gmra.mxu1 %v5684_v25  ;;  %2371 = vmatpush.bf16.msrb.mxu0 %v4406_v63  ;;  %v4462_v31 = vor.u32 %v5203_v30, %v4461_v29  ;;  %v3903_v35 = vld [vmem:[%s5598_s5 + $0x1f8] sm:$0xf0]  ;;  %v3909_v36 = vld [vmem:[%s5598_s5 + $0x1c8] sm:$0xf]  ;;  %v5070_v37 = vld [vmem:[%s5598_s5 + $0x1fc] sm:$0xf0]  ;;  %v5814_v40 = vor.u32 %v5069_v33, %v3901_v32 }
  0x3f   : > { %2282 = vmatmul.bf16.gmra.mxu2 %v5686_v26  ;;  %2420 = vmatpush.bf16.msrb.mxu1 %v4470_v3  ;;  %v5063_v38 = vld [vmem:[%s5598_s5 + $0x1cc] sm:$0xf]  ;;  %v3911_v39 = vld [vmem:[%s5598_s5 + $0x200] sm:$0xf0]  ;;  %v5816_v41 = vor.u32 %v5062_v34, %v3903_v35  ;;  %v5818_v42 = vor.u32 %v5070_v37, %v3909_v36  ;;  %v4517_v44 = vld [vmem:[%s7762_s1 + $0x310] sm:$0xf] }
  0x40   : > { %2331 = vmatmul.bf16.gmra.mxu3 %v5688_v27  ;;  %2469 = vmatpush.bf16.msrb.mxu2 %v4534_v59  ;;  %v5820_v43 = vor.u32 %v5063_v38, %v3911_v39  ;;  %v5217_v45 = vld [vmem:[%s7762_s1 + $0x314] sm:$0xf0]  ;;  %v4389_v46 = vld [vmem:[%s7762_s1 + $0x210] sm:$0xf]  ;;  %v5083_v1 = vld [vmem:[%s5598_s5 + $0x264] sm:$0xf0] }
  0x41   : > { %2518 = vmatpush.bf16.msrb.mxu3 %v4598_v0  ;;  %7834 = vst [vmem:[#allocation4_spill] sm:$0xff] %v5818_v42  ;;  %v4518_v48 = vor.u32 %v5217_v45, %v4517_v44  ;;  %v5185_v55 = vld [vmem:[%s7762_s1 + $0x214] sm:$0xf0]  ;;  %v4581_v56 = vld [vmem:[%s7762_s1 + $0x390] sm:$0xf] }
  0x42   : > { %2372 = vmatpush.bf16.msrb.mxu0 %v4398_v23  ;;  %7835 = vst [vmem:[#allocation5_spill] sm:$0xff] %v5820_v43  ;;  %v5233_v58 = vld [vmem:[%s7762_s1 + $0x394] sm:$0xf0]  ;;  %v4390_v59 = vor.u32 %v5185_v55, %v4389_v46  ;;  %v4453_v61 = vld [vmem:[%s7762_s1 + $0x290] sm:$0xf] }
  0x43   : > { %2421 = vmatpush.bf16.msrb.mxu1 %v4462_v31  ;;  %v4582_v60 = vor.u32 %v5233_v58, %v4581_v56  ;;  %v5201_v62 = vld [vmem:[%s7762_s1 + $0x294] sm:$0xf0]  ;;  %v3957_v0 = vld [vmem:[%s5598_s5 + $0x230] sm:$0xf]  ;;  %v5076_v2 = vld [vmem:[%s5598_s5 + $0x234] sm:$0xf] }
  0x44   : > { %2470 = vmatpush.bf16.msrb.mxu2 %v4526_v19  ;;  %v4454_v63 = vor.u32 %v5201_v62, %v4453_v61  ;;  %v3959_v3 = vld [vmem:[%s5598_s5 + $0x268] sm:$0xf0]  ;;  %v3965_v4 = vld [vmem:[%s5598_s5 + $0x238] sm:$0xf]  ;;  %v5084_v5 = vld [vmem:[%s5598_s5 + $0x26c] sm:$0xf0]  ;;  %v5858_v8 = vor.u32 %v5083_v1, %v3957_v0 }
  0x45   : > { %2519 = vmatpush.bf16.msrb.mxu3 %v4590_v28  ;;  %v5077_v6 = vld [vmem:[%s5598_s5 + $0x23c] sm:$0xf]  ;;  %v3967_v7 = vld [vmem:[%s5598_s5 + $0x270] sm:$0xf0]  ;;  %v5860_v9 = vor.u32 %v5076_v2, %v3959_v3  ;;  %v5862_v10 = vor.u32 %v5084_v5, %v3965_v4  ;;  %v4509_v16 = vld [vmem:[%s7762_s1 + $0x300] sm:$0xf] }
  0x46   : > { %2373 = vmatpush.bf16.msrb.mxu0 %v4390_v59  ;;  %v5864_v11 = vor.u32 %v5077_v6, %v3967_v7  ;;  %v5215_v17 = vld [vmem:[%s7762_s1 + $0x304] sm:$0xf0]  ;;  %v4381_v18 = vld [vmem:[%s7762_s1 + $0x200] sm:$0xf]  ;;  %v5097_v33 = vld [vmem:[%s5598_s5 + $0x2d4] sm:$0xf0] }
  0x47   : > { %2422 = vmatpush.bf16.msrb.mxu1 %v4454_v63  ;;  %7836 = vst [vmem:[#allocation6_spill] sm:$0xff] %v5862_v10  ;;  %v4510_v19 = vor.u32 %v5215_v17, %v4509_v16  ;;  %v5183_v20 = vld [vmem:[%s7762_s1 + $0x204] sm:$0xf0]  ;;  %v4573_v21 = vld [vmem:[%s7762_s1 + $0x380] sm:$0xf] }
  0x48   : > { %2471 = vmatpush.bf16.msrb.mxu2 %v4518_v48  ;;  %7837 = vst [vmem:[#allocation7_spill] sm:$0xff] %v5864_v11  ;;  %v5231_v22 = vld [vmem:[%s7762_s1 + $0x384] sm:$0xf0]  ;;  %v4382_v23 = vor.u32 %v5183_v20, %v4381_v18  ;;  %v4445_v29 = vld [vmem:[%s7762_s1 + $0x280] sm:$0xf] }
  0x49   : > { %2520 = vmatpush.bf16.msrb.mxu3 %v4582_v60  ;;  %v4574_v28 = vor.u32 %v5231_v22, %v4573_v21  ;;  %v5199_v30 = vld [vmem:[%s7762_s1 + $0x284] sm:$0xf0]  ;;  %v4013_v32 = vld [vmem:[%s5598_s5 + $0x2a0] sm:$0xf]  ;;  %v5090_v34 = vld [vmem:[%s5598_s5 + $0x2a4] sm:$0xf] }
  0x4a   : > { %v4446_v31 = vor.u32 %v5199_v30, %v4445_v29  ;;  %2374 = vmatpush.bf16.msrb.mxu0 %v4382_v23  ;;  %v4015_v35 = vld [vmem:[%s5598_s5 + $0x2d8] sm:$0xf0]  ;;  %v4021_v36 = vld [vmem:[%s5598_s5 + $0x2a8] sm:$0xf]  ;;  %v5098_v37 = vld [vmem:[%s5598_s5 + $0x2dc] sm:$0xf0]  ;;  %v5902_v44 = vor.u32 %v5097_v33, %v4013_v32 }
  0x4b   : > { %v5091_v38 = vld [vmem:[%s5598_s5 + $0x2ac] sm:$0xf]  ;;  %v4023_v39 = vld [vmem:[%s5598_s5 + $0x2e0] sm:$0xf0]  ;;  %v5904_v45 = vor.u32 %v5090_v34, %v4015_v35  ;;  %v5906_v46 = vor.u32 %v5098_v37, %v4021_v36  ;;  %v4821_v55 = vld [vmem:[%s7762_s1 + $0x570] sm:$0xf] }
  0x4c   : > { %2472 = vmatpush.bf16.msrb.mxu2 %v4510_v19  ;;  %2423 = vmatpush.bf16.msrb.mxu1 %v4446_v31  ;;  %v5908_v48 = vor.u32 %v5091_v38, %v4023_v39  ;;  %v5293_v56 = vld [vmem:[%s7762_s1 + $0x574] sm:$0xf0]  ;;  %v4693_v58 = vld [vmem:[%s7762_s1 + $0x470] sm:$0xf]  ;;  %v5111_v5 = vld [vmem:[%s5598_s5 + $0x344] sm:$0xf0] }
  0x4d   : > { %2189 = vmatmul.bf16.gmra.mxu0 %v5726_v49  ;;  %2521 = vmatpush.bf16.msrb.mxu3 %v4574_v28  ;;  %7838 = vst [vmem:[#allocation8_spill] sm:$0xff] %v5906_v46  ;;  %v4822_v59 = vor.u32 %v5293_v56, %v4821_v55  ;;  %v5261_v60 = vld [vmem:[%s7762_s1 + $0x474] sm:$0xf0]  ;;  %v4885_v61 = vld [vmem:[%s7762_s1 + $0x5f0] sm:$0xf] }
  0x4e   : > { %2238 = vmatmul.bf16.gmra.mxu1 %v5728_v50  ;;  %7839 = vst [vmem:[#allocation9_spill] sm:$0xff] %v5908_v48  ;;  %v5309_v62 = vld [vmem:[%s7762_s1 + $0x5f4] sm:$0xf0]  ;;  %v4694_v63 = vor.u32 %v5261_v60, %v4693_v58  ;;  %v4757_v1 = vld [vmem:[%s7762_s1 + $0x4f0] sm:$0xf] }
  0x4f   : > { %2287 = vmatmul.bf16.gmra.mxu2 %v5730_v51  ;;  %v4886_v0 = vor.u32 %v5309_v62, %v4885_v61  ;;  %v5277_v2 = vld [vmem:[%s7762_s1 + $0x4f4] sm:$0xf0]  ;;  %v4069_v4 = vld [vmem:[%s5598_s5 + $0x310] sm:$0xf]  ;;  %v5104_v6 = vld [vmem:[%s5598_s5 + $0x314] sm:$0xf] }
  0x50   : > { %2336 = vmatmul.bf16.gmra.mxu3 %v5732_v54  ;;  %2661 = vmatpush.bf16.msra.mxu2 %v4822_v59  ;;  %v4758_v3 = vor.u32 %v5277_v2, %v4757_v1  ;;  %v4071_v7 = vld [vmem:[%s5598_s5 + $0x348] sm:$0xf0]  ;;  %v4077_v16 = vld [vmem:[%s5598_s5 + $0x318] sm:$0xf]  ;;  %v5112_v17 = vld [vmem:[%s5598_s5 + $0x34c] sm:$0xf0]  ;;  %v5946_v20 = vor.u32 %v5111_v5, %v4069_v4 }
  0x51   : > { %2563 = vmatpush.bf16.msra.mxu0 %v4694_v63  ;;  %2710 = vmatpush.bf16.msra.mxu3 %v4886_v0  ;;  %v5105_v18 = vld [vmem:[%s5598_s5 + $0x31c] sm:$0xf]  ;;  %v4079_v19 = vld [vmem:[%s5598_s5 + $0x350] sm:$0xf0]  ;;  %v5948_v21 = vor.u32 %v5104_v6, %v4071_v7  ;;  %v5950_v22 = vor.u32 %v5112_v17, %v4077_v16  ;;  %v4813_v28 = vld [vmem:[%s7762_s1 + $0x560] sm:$0xf] }
  0x52   : > { %2612 = vmatpush.bf16.msra.mxu1 %v4758_v3  ;;  %v5952_v23 = vor.u32 %v5105_v18, %v4079_v19  ;;  %v5291_v29 = vld [vmem:[%s7762_s1 + $0x564] sm:$0xf0]  ;;  %v4685_v30 = vld [vmem:[%s7762_s1 + $0x460] sm:$0xf]  ;;  %v3693_v58 = vld [vmem:[%s5598_s5 + $0x10] sm:$0xf] }
  0x53   : > { %7840 = vst [vmem:[#allocation10_spill] sm:$0xff] %v5950_v22  ;;  %v4814_v31 = vor.u32 %v5291_v29, %v4813_v28  ;;  %v5259_v32 = vld [vmem:[%s7762_s1 + $0x464] sm:$0xf0]  ;;  %v4877_v33 = vld [vmem:[%s7762_s1 + $0x5e0] sm:$0xf] }
  0x54   : > { %7841 = vst [vmem:[#allocation11_spill] sm:$0xff] %v5952_v23  ;;  %v5307_v34 = vld [vmem:[%s7762_s1 + $0x5e4] sm:$0xf0]  ;;  %v4686_v35 = vor.u32 %v5259_v32, %v4685_v30  ;;  %v508_v37 = vld [vmem:[%s7763_s2] sm:$0x3] }
  0x55   : > { %v4878_v36 = vor.u32 %v5307_v34, %v4877_v33  ;;  %2662 = vmatpush.bf16.msra.mxu2 %v4814_v31  ;;  %v4749_v38 = vld [vmem:[%s7762_s1 + $0x4e0] sm:$0xf]  ;;  %v5275_v39 = vld [vmem:[%s7762_s1 + $0x4e4] sm:$0xf0]  ;;  %v5985_v55 = vperm.slane %v508_v37, 0 }
  0x56   : > { %2564 = vmatpush.bf16.msra.mxu0 %v4686_v35  ;;  %v4750_v56 = vor.u32 %v5275_v39, %v4749_v38  ;;  %v5015_v59 = vld [vmem:[%s5598_s5 + $0x44] sm:$0xf0]  ;;  %v5008_v60 = vld [vmem:[%s5598_s5 + $0x14] sm:$0xf]  ;;  %v3695_v61 = vld [vmem:[%s5598_s5 + $0x48] sm:$0xf0] }
  0x57   : > { %2711 = vmatpush.bf16.msra.mxu3 %v4878_v36  ;;  %v3701_v62 = vld [vmem:[%s5598_s5 + $0x18] sm:$0xf]  ;;  %v5016_v63 = vld [vmem:[%s5598_s5 + $0x4c] sm:$0xf0]  ;;  %v5009_v0 = vld [vmem:[%s5598_s5 + $0x1c] sm:$0xf]  ;;  %v5995_v2 = vor.u32 %v5015_v59, %v3693_v58  ;;  %v5997_v4 = vor.u32 %v5008_v60, %v3695_v61 }
  0x58   : > { %2613 = vmatpush.bf16.msra.mxu1 %v4750_v56  ;;  %v3703_v1 = vld [vmem:[%s5598_s5 + $0x50] sm:$0xf0]  ;;  %v5999_v5 = vor.u32 %v5016_v63, %v3701_v62  ;;  %v4805_v18 = vld [vmem:[%s7762_s1 + $0x550] sm:$0xf]  ;;  %v5289_v19 = vld [vmem:[%s7762_s1 + $0x554] sm:$0xf0] }
  0x59   : > { %v6002_v16 = vor.u32 %v5009_v0, %v3703_v1  ;;  %v4677_v28 = vld [vmem:[%s7762_s1 + $0x450] sm:$0xf]  ;;  %v4806_v29 = vor.u32 %v5289_v19, %v4805_v18  ;;  %v5257_v30 = vld [vmem:[%s7762_s1 + $0x454] sm:$0xf0]  ;;  %v3749_v63 = vld [vmem:[%s5598_s5 + $0x80] sm:$0xf] }
  0x5a   : > { %7842 = vst [vmem:[#allocation12_spill] sm:$0xff] %v5999_v5  ;;  %v4869_v31 = vld [vmem:[%s7762_s1 + $0x5d0] sm:$0xf]  ;;  %v5305_v32 = vld [vmem:[%s7762_s1 + $0x5d4] sm:$0xf0]  ;;  %v4678_v34 = vor.u32 %v5257_v30, %v4677_v28 }
  0x5b   : > { %7843 = vst [vmem:[#allocation13_spill] sm:$0xff] %v6002_v16  ;;  %v4870_v35 = vor.u32 %v5305_v32, %v4869_v31  ;;  %2663 = vmatpush.bf16.msra.mxu2 %v4806_v29  ;;  %v4741_v59 = vld [vmem:[%s7762_s1 + $0x4d0] sm:$0xf]  ;;  %v5273_v60 = vld [vmem:[%s7762_s1 + $0x4d4] sm:$0xf0] }
  0x5c   : > { %2565 = vmatpush.bf16.msra.mxu0 %v4678_v34  ;;  %v4742_v62 = vor.u32 %v5273_v60, %v4741_v59  ;;  %v5029_v0 = vld [vmem:[%s5598_s5 + $0xb4] sm:$0xf0]  ;;  %v5022_v1 = vld [vmem:[%s5598_s5 + $0x84] sm:$0xf]  ;;  %v4669_v59 = vld [vmem:[%s7762_s1 + $0x440] sm:$0xf] }
  0x5d   : > { %2194 = vmatmul.bf16.gmra.mxu0 %v5770_v12  ;;  %2712 = vmatpush.bf16.msra.mxu3 %v4870_v35  ;;  %v3759_v18 = vld [vmem:[%s5598_s5 + $0xc0] sm:$0xf0]  ;;  %v6043_v28 = vor.u32 %v5029_v0, %v3749_v63  ;;  %v5303_v63 = vld [vmem:[%s7762_s1 + $0x5c4] sm:$0xf0] }
  0x5e   : > { %2243 = vmatmul.bf16.gmra.mxu1 %v5772_v13 }
  0x5f   : > { %2292 = vmatmul.bf16.gmra.mxu2 %v5774_v14  ;;  %2614 = vmatpush.bf16.msra.mxu1 %v4742_v62  ;;  %v4861_v62 = vld [vmem:[%s7762_s1 + $0x5c0] sm:$0xf] }
  0x60   : > { %2341 = vmatmul.bf16.gmra.mxu3 %v5776_v15 }
  0x6d   : > { %2199 = vmatmul.bf16.gmra.mxu0 %v5814_v40 }
  0x6e   : > { %2248 = vmatmul.bf16.gmra.mxu1 %v5816_v41 }
  0x6f   : > { %2297 = vmatmul.bf16.gmra.mxu2 %v5818_v42 }
  0x70   : > { %2346 = vmatmul.bf16.gmra.mxu3 %v5820_v43 }
  0x7d   : > { %2204 = vmatmul.bf16.gmra.mxu0 %v5858_v8 }
  0x7e   : > { %2253 = vmatmul.bf16.gmra.mxu1 %v5860_v9 }
  0x7f   : > { %2302 = vmatmul.bf16.gmra.mxu2 %v5862_v10 }
  0x80   : > { %2351 = vmatmul.bf16.gmra.mxu3 %v5864_v11 }
  0x8d   : > { %2209 = vmatmul.bf16.gmra.mxu0 %v5902_v44 }
  0x8e   : > { %2258 = vmatmul.bf16.gmra.mxu1 %v5904_v45 }
  0x8f   : > { %2307 = vmatmul.bf16.gmra.mxu2 %v5906_v46 }
  0x90   : > { %2356 = vmatmul.bf16.gmra.mxu3 %v5908_v48 }
  0x9d   : > { %2214 = vmatmul.bf16.gmra.mxu0 %v5946_v20 }
  0x9e   : > { %2263 = vmatmul.bf16.gmra.mxu1 %v5948_v21 }
  0x9f   : > { %2312 = vmatmul.bf16.gmra.mxu2 %v5950_v22 }
  0xa0   : > { %2361 = vmatmul.bf16.gmra.mxu3 %v5952_v23 }
  0xaa   : > { %v2180_v3 = vpop.f32.mrf.mxu0 }
  0xab   : > { %v2181_v6 = vadd.f32 %v2180_v3, %v5985_v55  ;;  %v2229_v7 = vpop.f32.mrf.mxu1  ;;  %v3751_v3 = vld [vmem:[%s5598_s5 + $0xb8] sm:$0xf0] }
  0xac   : > { %v6045_v32 = vor.u32 %v5022_v1, %v3751_v3  ;;  %v4862_v3 = vor.u32 %v5303_v63, %v4861_v62  ;;  %v5037_v62 = vld [vmem:[%s5598_s5 + $0xfc] sm:$0xf]  ;;  %v3815_v63 = vld [vmem:[%s5598_s5 + $0x130] sm:$0xf0] }
  0xad   : > { %v2230_v17 = vadd.f32 %v2229_v7, %v2181_v6  ;;  %2375 = vmatmul.bf16.vlgmr.msrb.gmra.mxu0 %v5995_v2  ;;  %v3757_v6 = vld [vmem:[%s5598_s5 + $0x88] sm:$0xf]  ;;  %v5030_v7 = vld [vmem:[%s5598_s5 + $0xbc] sm:$0xf0] }
  0xae   : > { %2424 = vmatmul.bf16.vlgmr.msrb.gmra.mxu1 %v5997_v4  ;;  %2713 = vmatpush.bf16.msra.mxu3 %v4862_v3 }
  0xaf   : > { %2473 = vmatmul.bf16.vlgmr.msrb.gmra.mxu2 %v5999_v5 }
  0xb0   : > { %2522 = vmatmul.bf16.vlgmr.msrb.gmra.mxu3 %v6002_v16 }
  0xb2   : > { %v2278_v33 = vpop.f32.mrf.mxu2  ;;  %v2182_v38 = vpop.f32.mrf.mxu0 }
  0xb3   : > { %v2279_v36 = vadd.f32 %v2278_v33, %v2230_v17  ;;  %v2327_v37 = vpop.f32.mrf.mxu3  ;;  %v2183_v39 = vadd.f32 %v2182_v38, %v5985_v55  ;;  %v2231_v56 = vpop.f32.mrf.mxu1  ;;  %v5023_v17 = vld [vmem:[%s5598_s5 + $0x8c] sm:$0xf]  ;;  %v6047_v33 = vor.u32 %v5030_v7, %v3757_v6 }
  0xb5   : > { %v6027_v58 = vadd.f32 %v2327_v37, %v2279_v36  ;;  %v2232_v61 = vadd.f32 %v2231_v56, %v2183_v39  ;;  %7844 = vst [vmem:[#allocation14_spill] sm:$0xff] %v6047_v33  ;;  %v6050_v36 = vor.u32 %v5023_v17, %v3759_v18  ;;  %v4797_v39 = vld [vmem:[%s7762_s1 + $0x540] sm:$0xf]  ;;  %v5287_v56 = vld [vmem:[%s7762_s1 + $0x544] sm:$0xf0] }
  0xb6   : > { %v4798_v60 = vor.u32 %v5287_v56, %v4797_v39  ;;  %v5043_v39 = vld [vmem:[%s5598_s5 + $0x124] sm:$0xf0]  ;;  %v5036_v56 = vld [vmem:[%s5598_s5 + $0xf4] sm:$0xf] }
  0xb7   : > { %7845 = vst [vmem:[#allocation15_spill] sm:$0xff] %v6050_v36 }
  0xb8   : > { %2664 = vmatpush.bf16.msra.mxu2 %v4798_v60  ;;  %v3813_v60 = vld [vmem:[%s5598_s5 + $0xf8] sm:$0xf] }
  0xba   : > { %v2280_v19 = vpop.f32.mrf.mxu2  ;;  %v2185_v31 = vpop.f32.mrf.mxu0 }
  0xbb   : > { %v2281_v29 = vadd.f32 %v2280_v19, %v2232_v61  ;;  %v2329_v30 = vpop.f32.mrf.mxu3  ;;  %v2186_v34 = vadd.f32 %v2185_v31, %v5985_v55  ;;  %v2234_v35 = vpop.f32.mrf.mxu1  ;;  %v5255_v61 = vld [vmem:[%s7762_s1 + $0x444] sm:$0xf0] }
  0xbc   : > { %v4670_v1 = vor.u32 %v5255_v61, %v4669_v59  ;;  %v5271_v31 = vld [vmem:[%s7762_s1 + $0x4c4] sm:$0xf0]  ;;  %v3807_v59 = vld [vmem:[%s5598_s5 + $0x128] sm:$0xf0]  ;;  %v5044_v61 = vld [vmem:[%s5598_s5 + $0x12c] sm:$0xf0] }
  0xbd   : > { %v6052_v37 = vadd.f32 %v2329_v30, %v2281_v29  ;;  %v2235_v38 = vadd.f32 %v2234_v35, %v2186_v34  ;;  %2380 = vmatmul.bf16.gmra.mxu0 %v6043_v28  ;;  %v4733_v30 = vld [vmem:[%s7762_s1 + $0x4c0] sm:$0xf] }
  0xbe   : > { %2429 = vmatmul.bf16.gmra.mxu1 %v6045_v32  ;;  %2566 = vmatpush.bf16.msra.mxu0 %v4670_v1  ;;  %v4734_v35 = vor.u32 %v5271_v31, %v4733_v30  ;;  %v6100_v30 = vor.u32 %v5037_v62, %v3815_v63 }
  0xbf   : > { %2478 = vmatmul.bf16.gmra.mxu2 %v6047_v33 }
  0xc0   : > { %2527 = vmatmul.bf16.gmra.mxu3 %v6050_v36  ;;  %2615 = vmatpush.bf16.msra.mxu1 %v4734_v35  ;;  %v6097_v36 = vor.u32 %v5044_v61, %v3813_v60  ;;  %7847 = vst [vmem:[#allocation17_spill] sm:$0xff] %v6100_v30  ;;  %v4853_v60 = vld [vmem:[%s7762_s1 + $0x5b0] sm:$0xf]  ;;  %v5301_v61 = vld [vmem:[%s7762_s1 + $0x5b4] sm:$0xf0] }
  0xc2   : > { %v2283_v0 = vpop.f32.mrf.mxu2  ;;  %v2187_v17 = vpop.f32.mrf.mxu0  ;;  %7846 = vst [vmem:[#allocation16_spill] sm:$0xff] %v6097_v36 }
  0xc3   : > { %v2284_v6 = vadd.f32 %v2283_v0, %v2235_v38  ;;  %v2332_v7 = vpop.f32.mrf.mxu3  ;;  %v2188_v18 = vadd.f32 %v2187_v17, %v5985_v55  ;;  %v2236_v19 = vpop.f32.mrf.mxu1  ;;  %v3805_v38 = vld [vmem:[%s5598_s5 + $0xf0] sm:$0xf]  ;;  %v6095_v17 = vor.u32 %v5036_v56, %v3807_v59  ;;  %v5253_v59 = vld [vmem:[%s7762_s1 + $0x434] sm:$0xf0] }
  0xc4   : > { %v6093_v1 = vor.u32 %v5043_v39, %v3805_v38  ;;  %v5285_v38 = vld [vmem:[%s7762_s1 + $0x534] sm:$0xf0]  ;;  %v4661_v39 = vld [vmem:[%s7762_s1 + $0x430] sm:$0xf] }
  0xc5   : > { %v6077_v29 = vadd.f32 %v2332_v7, %v2284_v6  ;;  %v2237_v34 = vadd.f32 %v2236_v19, %v2188_v18  ;;  %v4662_v63 = vor.u32 %v5253_v59, %v4661_v39 }
  0xc7   : > { %2567 = vmatpush.bf16.msra.mxu0 %v4662_v63  ;;  %v5051_v63 = vld [vmem:[%s5598_s5 + $0x16c] sm:$0xf] }
  0xca   : > { %v2285_v0 = vpop.f32.mrf.mxu2  ;;  %v2190_v7 = vpop.f32.mrf.mxu0 }
  0xcb   : > { %v2286_v3 = vadd.f32 %v2285_v0, %v2237_v34  ;;  %v2334_v6 = vpop.f32.mrf.mxu3  ;;  %v2191_v18 = vadd.f32 %v2190_v7, %v5985_v55  ;;  %v2239_v19 = vpop.f32.mrf.mxu1  ;;  %v4789_v34 = vld [vmem:[%s7762_s1 + $0x530] sm:$0xf]  ;;  %v4854_v0 = vor.u32 %v5301_v61, %v4853_v60  ;;  %v5057_v60 = vld [vmem:[%s5598_s5 + $0x194] sm:$0xf0]  ;;  %v5050_v61 = vld [vmem:[%s5598_s5 + $0x164] sm:$0xf] }
  0xcc   : > { %v4790_v56 = vor.u32 %v5285_v38, %v4789_v34  ;;  %v4725_v38 = vld [vmem:[%s7762_s1 + $0x4b0] sm:$0xf] }
  0xcd   : > { %v6102_v31 = vadd.f32 %v2334_v6, %v2286_v3  ;;  %v2240_v35 = vadd.f32 %v2239_v19, %v2191_v18  ;;  %2385 = vmatmul.bf16.gmra.mxu0 %v6093_v1  ;;  %2714 = vmatpush.bf16.msra.mxu3 %v4854_v0  ;;  %v3871_v0 = vld [vmem:[%s5598_s5 + $0x1a0] sm:$0xf0] }
  0xce   : > { %2434 = vmatmul.bf16.gmra.mxu1 %v6095_v17  ;;  %2665 = vmatpush.bf16.msra.mxu2 %v4790_v56  ;;  %v3861_v56 = vld [vmem:[%s5598_s5 + $0x160] sm:$0xf] }
  0xcf   : > { %2483 = vmatmul.bf16.gmra.mxu2 %v6097_v36 }
  0xd0   : > { %2532 = vmatmul.bf16.gmra.mxu3 %v6100_v30  ;;  %v5058_v30 = vld [vmem:[%s5598_s5 + $0x19c] sm:$0xf0] }
  0xd2   : > { %v2288_v62 = vpop.f32.mrf.mxu2  ;;  %v2192_v7 = vpop.f32.mrf.mxu0 }
  0xd3   : > { %v2289_v3 = vadd.f32 %v2288_v62, %v2240_v35  ;;  %v2337_v6 = vpop.f32.mrf.mxu3  ;;  %v2193_v18 = vadd.f32 %v2192_v7, %v5985_v55  ;;  %v2241_v19 = vpop.f32.mrf.mxu1  ;;  %v5269_v35 = vld [vmem:[%s7762_s1 + $0x4b4] sm:$0xf0]  ;;  %v3863_v62 = vld [vmem:[%s5598_s5 + $0x198] sm:$0xf0]  ;;  %v3869_v7 = vld [vmem:[%s5598_s5 + $0x168] sm:$0xf] }
  0xd4   : > { %v4726_v59 = vor.u32 %v5269_v35, %v4725_v38  ;;  %v6145_v5 = vor.u32 %v5050_v61, %v3863_v62  ;;  %v6147_v23 = vor.u32 %v5058_v30, %v3869_v7  ;;  %v6150_v38 = vor.u32 %v5051_v63, %v3871_v0  ;;  %v4781_v30 = vld [vmem:[%s7762_s1 + $0x520] sm:$0xf] }
  0xd5   : > { %v6127_v34 = vadd.f32 %v2337_v6, %v2289_v3  ;;  %v2242_v39 = vadd.f32 %v2241_v19, %v2193_v18  ;;  %v6143_v6 = vor.u32 %v5057_v60, %v3861_v56  ;;  %v4845_v56 = vld [vmem:[%s7762_s1 + $0x5a0] sm:$0xf]  ;;  %v5299_v60 = vld [vmem:[%s7762_s1 + $0x5a4] sm:$0xf0] }
  0xd6   : > { %2616 = vmatpush.bf16.msra.mxu1 %v4726_v59  ;;  %7849 = vst [vmem:[#allocation19_spill] sm:$0xff] %v6145_v5  ;;  %v4846_v7 = vor.u32 %v5299_v60, %v4845_v56  ;;  %v5071_v56 = vld [vmem:[%s5598_s5 + $0x204] sm:$0xf0]  ;;  %v5064_v60 = vld [vmem:[%s5598_s5 + $0x1d4] sm:$0xf] }
  0xd7   : > { %7848 = vst [vmem:[#allocation18_spill] sm:$0xff] %v6143_v6 }
  0xd8   : > { %7850 = vst [vmem:[#allocation20_spill] sm:$0xff] %v6147_v23  ;;  %2715 = vmatpush.bf16.msra.mxu3 %v4846_v7  ;;  %v3927_v7 = vld [vmem:[%s5598_s5 + $0x210] sm:$0xf0] }
  0xd9   : > { %7851 = vst [vmem:[#allocation21_spill] sm:$0xff] %v6150_v38 }
  0xda   : > { %v2290_v3 = vpop.f32.mrf.mxu2  ;;  %v2195_v16 = vpop.f32.mrf.mxu0 }
  0xdb   : > { %v2291_v36 = vadd.f32 %v2290_v3, %v2242_v39  ;;  %v2339_v33 = vpop.f32.mrf.mxu3  ;;  %v2196_v18 = vadd.f32 %v2195_v16, %v5985_v55  ;;  %v2244_v19 = vpop.f32.mrf.mxu1  ;;  %v5283_v16 = vld [vmem:[%s7762_s1 + $0x524] sm:$0xf0] }
  0xdc   : > { %v5251_v39 = vld [vmem:[%s7762_s1 + $0x424] sm:$0xf0] }
  0xdd   : > { %v6152_v35 = vadd.f32 %v2339_v33, %v2291_v36  ;;  %v2245_v59 = vadd.f32 %v2244_v19, %v2196_v18  ;;  %2390 = vmatmul.bf16.gmra.mxu0 %v6143_v6  ;;  %v4653_v33 = vld [vmem:[%s7762_s1 + $0x420] sm:$0xf]  ;;  %v4782_v36 = vor.u32 %v5283_v16, %v4781_v30 }
  0xde   : > { %2439 = vmatmul.bf16.gmra.mxu1 %v6145_v5  ;;  %v4654_v62 = vor.u32 %v5251_v39, %v4653_v33  ;;  %v4717_v16 = vld [vmem:[%s7762_s1 + $0x4a0] sm:$0xf] }
  0xdf   : > { %2488 = vmatmul.bf16.gmra.mxu2 %v6147_v23 }
  0xe0   : > { %2537 = vmatmul.bf16.gmra.mxu3 %v6150_v38  ;;  %2666 = vmatpush.bf16.msra.mxu2 %v4782_v36  ;;  %v3917_v36 = vld [vmem:[%s5598_s5 + $0x1d0] sm:$0xf] }
  0xe1   : > { %2568 = vmatpush.bf16.msra.mxu0 %v4654_v62  ;;  %v5072_v38 = vld [vmem:[%s5598_s5 + $0x20c] sm:$0xf0]  ;;  %v5065_v62 = vld [vmem:[%s5598_s5 + $0x1dc] sm:$0xf] }
  0xe2   : > { %v2293_v61 = vpop.f32.mrf.mxu2  ;;  %v2197_v3 = vpop.f32.mrf.mxu0 }
  0xe3   : > { %v2294_v63 = vadd.f32 %v2293_v61, %v2245_v59  ;;  %v2342_v0 = vpop.f32.mrf.mxu3  ;;  %v2198_v18 = vadd.f32 %v2197_v3, %v5985_v55  ;;  %v2246_v19 = vpop.f32.mrf.mxu1  ;;  %v5267_v59 = vld [vmem:[%s7762_s1 + $0x4a4] sm:$0xf0]  ;;  %v3919_v61 = vld [vmem:[%s5598_s5 + $0x208] sm:$0xf0]  ;;  %v3925_v3 = vld [vmem:[%s5598_s5 + $0x1d8] sm:$0xf] }
  0xe4   : > { %v4718_v39 = vor.u32 %v5267_v59, %v4717_v16  ;;  %v6195_v46 = vor.u32 %v5064_v60, %v3919_v61  ;;  %v6197_v11 = vor.u32 %v5072_v38, %v3925_v3  ;;  %v6200_v16 = vor.u32 %v5065_v62, %v3927_v7  ;;  %v4773_v38 = vld [vmem:[%s7762_s1 + $0x510] sm:$0xf] }
  0xe5   : > { %v6177_v30 = vadd.f32 %v2342_v0, %v2294_v63  ;;  %v2247_v33 = vadd.f32 %v2246_v19, %v2198_v18  ;;  %v6193_v0 = vor.u32 %v5071_v56, %v3917_v36  ;;  %v4837_v36 = vld [vmem:[%s7762_s1 + $0x590] sm:$0xf]  ;;  %v5297_v56 = vld [vmem:[%s7762_s1 + $0x594] sm:$0xf0] }
  0xe6   : > { %2617 = vmatpush.bf16.msra.mxu1 %v4718_v39  ;;  %7853 = vst [vmem:[#allocation23_spill] sm:$0xff] %v6195_v46  ;;  %v4838_v3 = vor.u32 %v5297_v56, %v4837_v36  ;;  %v5085_v36 = vld [vmem:[%s5598_s5 + $0x274] sm:$0xf0]  ;;  %v5078_v56 = vld [vmem:[%s5598_s5 + $0x244] sm:$0xf] }
  0xe7   : > { %7852 = vst [vmem:[#allocation22_spill] sm:$0xff] %v6193_v0 }
  0xe8   : > { %7854 = vst [vmem:[#allocation24_spill] sm:$0xff] %v6197_v11  ;;  %2716 = vmatpush.bf16.msra.mxu3 %v4838_v3  ;;  %v3983_v3 = vld [vmem:[%s5598_s5 + $0x280] sm:$0xf0] }
  0xe9   : > { %7855 = vst [vmem:[#allocation25_spill] sm:$0xff] %v6200_v16 }
  0xea   : > { %v2295_v63 = vpop.f32.mrf.mxu2  ;;  %v2200_v48 = vpop.f32.mrf.mxu0 }
  0xeb   : > { %v2296_v23 = vadd.f32 %v2295_v63, %v2247_v33  ;;  %v2344_v22 = vpop.f32.mrf.mxu3  ;;  %v2201_v18 = vadd.f32 %v2200_v48, %v5985_v55  ;;  %v2249_v19 = vpop.f32.mrf.mxu1  ;;  %v5281_v48 = vld [vmem:[%s7762_s1 + $0x514] sm:$0xf0] }
  0xec   : > { %v5249_v33 = vld [vmem:[%s7762_s1 + $0x414] sm:$0xf0] }
  0xed   : > { %v6202_v59 = vadd.f32 %v2344_v22, %v2296_v23  ;;  %v2250_v39 = vadd.f32 %v2249_v19, %v2201_v18  ;;  %2395 = vmatmul.bf16.gmra.mxu0 %v6193_v0  ;;  %v4645_v22 = vld [vmem:[%s7762_s1 + $0x410] sm:$0xf]  ;;  %v4774_v23 = vor.u32 %v5281_v48, %v4773_v38 }
  0xee   : > { %2444 = vmatmul.bf16.gmra.mxu1 %v6195_v46  ;;  %v4646_v61 = vor.u32 %v5249_v33, %v4645_v22  ;;  %v4709_v48 = vld [vmem:[%s7762_s1 + $0x490] sm:$0xf] }
  0xef   : > { %2493 = vmatmul.bf16.gmra.mxu2 %v6197_v11 }
  0xf0   : > { %2542 = vmatmul.bf16.gmra.mxu3 %v6200_v16  ;;  %2667 = vmatpush.bf16.msra.mxu2 %v4774_v23  ;;  %v3973_v23 = vld [vmem:[%s5598_s5 + $0x240] sm:$0xf] }
  0xf1   : > { %2569 = vmatpush.bf16.msra.mxu0 %v4646_v61  ;;  %v5086_v16 = vld [vmem:[%s5598_s5 + $0x27c] sm:$0xf0]  ;;  %v5079_v61 = vld [vmem:[%s5598_s5 + $0x24c] sm:$0xf] }
  0xf2   : > { %v2298_v60 = vpop.f32.mrf.mxu2  ;;  %v2202_v63 = vpop.f32.mrf.mxu0 }
  0xf3   : > { %v2299_v62 = vadd.f32 %v2298_v60, %v2250_v39  ;;  %v2347_v7 = vpop.f32.mrf.mxu3  ;;  %v2203_v18 = vadd.f32 %v2202_v63, %v5985_v55  ;;  %v2251_v19 = vpop.f32.mrf.mxu1  ;;  %v5265_v39 = vld [vmem:[%s7762_s1 + $0x494] sm:$0xf0]  ;;  %v3975_v60 = vld [vmem:[%s5598_s5 + $0x278] sm:$0xf0]  ;;  %v3981_v63 = vld [vmem:[%s5598_s5 + $0x248] sm:$0xf] }
  0xf4   : > { %v4710_v33 = vor.u32 %v5265_v39, %v4709_v48  ;;  %v6245_v0 = vor.u32 %v5078_v56, %v3975_v60  ;;  %v6247_v43 = vor.u32 %v5086_v16, %v3981_v63  ;;  %v6250_v48 = vor.u32 %v5079_v61, %v3983_v3  ;;  %v4765_v16 = vld [vmem:[%s7762_s1 + $0x500] sm:$0xf] }
  0xf5   : > { %v6227_v38 = vadd.f32 %v2347_v7, %v2299_v62  ;;  %v2252_v22 = vadd.f32 %v2251_v19, %v2203_v18  ;;  %v6243_v7 = vor.u32 %v5085_v36, %v3973_v23  ;;  %v4829_v23 = vld [vmem:[%s7762_s1 + $0x580] sm:$0xf]  ;;  %v5295_v36 = vld [vmem:[%s7762_s1 + $0x584] sm:$0xf0] }
  0xf6   : > { %2618 = vmatpush.bf16.msra.mxu1 %v4710_v33  ;;  %7857 = vst [vmem:[#allocation27_spill] sm:$0xff] %v6245_v0  ;;  %v4830_v63 = vor.u32 %v5295_v36, %v4829_v23  ;;  %v5099_v23 = vld [vmem:[%s5598_s5 + $0x2e4] sm:$0xf0]  ;;  %v5092_v36 = vld [vmem:[%s5598_s5 + $0x2b4] sm:$0xf] }
  0xf7   : > { %7856 = vst [vmem:[#allocation26_spill] sm:$0xff] %v6243_v7 }
  0xf8   : > { %7858 = vst [vmem:[#allocation28_spill] sm:$0xff] %v6247_v43  ;;  %2717 = vmatpush.bf16.msra.mxu3 %v4830_v63  ;;  %v4039_v63 = vld [vmem:[%s5598_s5 + $0x2f0] sm:$0xf0] }
  0xf9   : > { %7859 = vst [vmem:[#allocation29_spill] sm:$0xff] %v6250_v48 }
  0xfa   : > { %v2300_v62 = vpop.f32.mrf.mxu2  ;;  %v2205_v46 = vpop.f32.mrf.mxu0 }
  0xfb   : > { %v2301_v11 = vadd.f32 %v2300_v62, %v2252_v22  ;;  %v2349_v10 = vpop.f32.mrf.mxu3  ;;  %v2206_v18 = vadd.f32 %v2205_v46, %v5985_v55  ;;  %v2254_v19 = vpop.f32.mrf.mxu1  ;;  %v5279_v46 = vld [vmem:[%s7762_s1 + $0x504] sm:$0xf0] }
  0xfc   : > { %v5247_v22 = vld [vmem:[%s7762_s1 + $0x404] sm:$0xf0] }
  0xfd   : > { %v6252_v39 = vadd.f32 %v2349_v10, %v2301_v11  ;;  %v2255_v33 = vadd.f32 %v2254_v19, %v2206_v18  ;;  %2400 = vmatmul.bf16.gmra.mxu0 %v6243_v7  ;;  %v4637_v10 = vld [vmem:[%s7762_s1 + $0x400] sm:$0xf]  ;;  %v4766_v11 = vor.u32 %v5279_v46, %v4765_v16 }
  0xfe   : > { %2449 = vmatmul.bf16.gmra.mxu1 %v6245_v0  ;;  %v4638_v60 = vor.u32 %v5247_v22, %v4637_v10  ;;  %v4701_v46 = vld [vmem:[%s7762_s1 + $0x480] sm:$0xf] }
  0xff   : > { %2498 = vmatmul.bf16.gmra.mxu2 %v6247_v43 }
 0x100   : > { %2547 = vmatmul.bf16.gmra.mxu3 %v6250_v48  ;;  %2668 = vmatpush.bf16.msra.mxu2 %v4766_v11  ;;  %v4029_v11 = vld [vmem:[%s5598_s5 + $0x2b0] sm:$0xf] }
 0x101   : > { %2570 = vmatpush.bf16.msra.mxu0 %v4638_v60  ;;  %v5100_v48 = vld [vmem:[%s5598_s5 + $0x2ec] sm:$0xf0]  ;;  %v5093_v60 = vld [vmem:[%s5598_s5 + $0x2bc] sm:$0xf] }
 0x102   : > { %v2303_v56 = vpop.f32.mrf.mxu2  ;;  %v2207_v62 = vpop.f32.mrf.mxu0 }
 0x103   : > { %v2304_v61 = vadd.f32 %v2303_v56, %v2255_v33  ;;  %v2352_v3 = vpop.f32.mrf.mxu3  ;;  %v2208_v18 = vadd.f32 %v2207_v62, %v5985_v55  ;;  %v2256_v19 = vpop.f32.mrf.mxu1  ;;  %v5263_v33 = vld [vmem:[%s7762_s1 + $0x484] sm:$0xf0]  ;;  %v4031_v56 = vld [vmem:[%s5598_s5 + $0x2e8] sm:$0xf0]  ;;  %v4037_v62 = vld [vmem:[%s5598_s5 + $0x2b8] sm:$0xf] }
 0x104   : > { %v4702_v22 = vor.u32 %v5263_v33, %v4701_v46  ;;  %v6295_v42 = vor.u32 %v5092_v36, %v4031_v56  ;;  %v6297_v5 = vor.u32 %v5100_v48, %v4037_v62  ;;  %v6300_v46 = vor.u32 %v5093_v60, %v4039_v63  ;;  %v5132_v48 = vld [vmem:[%s7762_s1 + $0x74] sm:$0xf] }
 0x105   : > { %v6277_v16 = vadd.f32 %v2352_v3, %v2304_v61  ;;  %v2257_v10 = vadd.f32 %v2256_v19, %v2208_v18  ;;  %v6293_v3 = vor.u32 %v5099_v23, %v4029_v11  ;;  %v5148_v11 = vld [vmem:[%s7762_s1 + $0xf4] sm:$0xf]  ;;  %v4247_v23 = vld [vmem:[%s7762_s1 + $0xf8] sm:$0xf0] }
 0x106   : > { %2619 = vmatpush.bf16.msra.mxu1 %v4702_v22  ;;  %7861 = vst [vmem:[#allocation31_spill] sm:$0xff] %v6295_v42  ;;  %v4250_v62 = vor.u32 %v5148_v11, %v4247_v23  ;;  %v5113_v11 = vld [vmem:[%s5598_s5 + $0x354] sm:$0xf0]  ;;  %v5106_v23 = vld [vmem:[%s5598_s5 + $0x324] sm:$0xf] }
 0x107   : > { %7860 = vst [vmem:[#allocation30_spill] sm:$0xff] %v6293_v3 }
 0x108   : > { %7862 = vst [vmem:[#allocation32_spill] sm:$0xff] %v6297_v5  ;;  %2906 = vmatpush.bf16.msrb.mxu3 %v4250_v62  ;;  %v4095_v62 = vld [vmem:[%s5598_s5 + $0x360] sm:$0xf0] }
 0x109   : > { %7863 = vst [vmem:[#allocation33_spill] sm:$0xff] %v6300_v46 }
 0x10a   : > { %v2305_v61 = vpop.f32.mrf.mxu2  ;;  %v2210_v7 = vpop.f32.mrf.mxu0 }
 0x10b   : > { %v2306_v43 = vadd.f32 %v2305_v61, %v2257_v10  ;;  %v2354_v0 = vpop.f32.mrf.mxu3  ;;  %v2211_v18 = vadd.f32 %v2210_v7, %v5985_v55  ;;  %v2259_v19 = vpop.f32.mrf.mxu1  ;;  %v4183_v7 = vld [vmem:[%s7762_s1 + $0x78] sm:$0xf0]  ;;  %v5325_v10 = vld [vmem:[%s7762_s1 + $0x674] sm:$0xf0] }
 0x10d   : > { %v6302_v33 = vadd.f32 %v2354_v0, %v2306_v43  ;;  %v2260_v22 = vadd.f32 %v2259_v19, %v2211_v18  ;;  %2405 = vmatmul.bf16.gmra.mxu0 %v6293_v3  ;;  %v4949_v43 = vld [vmem:[%s7762_s1 + $0x670] sm:$0xf]  ;;  %v4186_v0 = vor.u32 %v5132_v48, %v4183_v7 }
 0x10e   : > { %2454 = vmatmul.bf16.gmra.mxu1 %v6295_v42  ;;  %v4950_v56 = vor.u32 %v5325_v10, %v4949_v43  ;;  %v4981_v7 = vld [vmem:[%s7762_s1 + $0x6b0] sm:$0xf] }
 0x10f   : > { %2503 = vmatmul.bf16.gmra.mxu2 %v6297_v5 }
 0x110   : > { %2552 = vmatmul.bf16.gmra.mxu3 %v6300_v46  ;;  %2857 = vmatpush.bf16.msrb.mxu2 %v4186_v0  ;;  %v4085_v0 = vld [vmem:[%s5598_s5 + $0x320] sm:$0xf] }
 0x111   : > { %2759 = vmatpush.bf16.msrb.mxu0 %v4950_v56  ;;  %v5114_v46 = vld [vmem:[%s5598_s5 + $0x35c] sm:$0xf0]  ;;  %v5107_v56 = vld [vmem:[%s5598_s5 + $0x32c] sm:$0xf] }
 0x112   : > { %v2308_v36 = vpop.f32.mrf.mxu2  ;;  %v2212_v61 = vpop.f32.mrf.mxu0 }
 0x113   : > { %v2309_v60 = vadd.f32 %v2308_v36, %v2260_v22  ;;  %v2357_v63 = vpop.f32.mrf.mxu3  ;;  %v2213_v18 = vadd.f32 %v2212_v61, %v5985_v55  ;;  %v2261_v19 = vpop.f32.mrf.mxu1  ;;  %v5333_v22 = vld [vmem:[%s7762_s1 + $0x6b4] sm:$0xf0]  ;;  %v4087_v36 = vld [vmem:[%s5598_s5 + $0x358] sm:$0xf0]  ;;  %v4093_v61 = vld [vmem:[%s5598_s5 + $0x328] sm:$0xf] }
 0x114   : > { %v4982_v10 = vor.u32 %v5333_v22, %v4981_v7  ;;  %v6345_v6 = vor.u32 %v5106_v23, %v4087_v36  ;;  %v6347_v15 = vor.u32 %v5114_v46, %v4093_v61  ;;  %v6350_v7 = vor.u32 %v5107_v56, %v4095_v62  ;;  %v5130_v46 = vld [vmem:[%s7762_s1 + $0x64] sm:$0xf] }
 0x115   : > { %v6327_v48 = vadd.f32 %v2357_v63, %v2309_v60  ;;  %v2262_v43 = vadd.f32 %v2261_v19, %v2213_v18  ;;  %v6343_v63 = vor.u32 %v5113_v11, %v4085_v0  ;;  %v5146_v0 = vld [vmem:[%s7762_s1 + $0xe4] sm:$0xf]  ;;  %v4239_v11 = vld [vmem:[%s7762_s1 + $0xe8] sm:$0xf0] }
 0x116   : > { %2812 = vmatpush.bf16.msrb.mxu1 %v4982_v10  ;;  %7865 = vst [vmem:[#allocation35_spill] sm:$0xff] %v6345_v6  ;;  %v4242_v61 = vor.u32 %v5146_v0, %v4239_v11  ;;  %v3717_v0 = vld [vmem:[%s5598_s5 + $0x28] sm:$0xf]  ;;  %v5018_v11 = vld [vmem:[%s5598_s5 + $0x5c] sm:$0xf0] }
 0x117   : > { %7864 = vst [vmem:[#allocation34_spill] sm:$0xff] %v6343_v63 }
 0x118   : > { %7866 = vst [vmem:[#allocation36_spill] sm:$0xff] %v6347_v15  ;;  %2907 = vmatpush.bf16.msrb.mxu3 %v4242_v61 }
 0x119   : > { %7867 = vst [vmem:[#allocation37_spill] sm:$0xff] %v6350_v7 }
 0x11a   : > { %v2310_v60 = vpop.f32.mrf.mxu2  ;;  %v2215_v3 = vpop.f32.mrf.mxu0 }
 0x11b   : > { %v2311_v5 = vadd.f32 %v2310_v60, %v2262_v43  ;;  %v2359_v42 = vpop.f32.mrf.mxu3  ;;  %v2216_v18 = vadd.f32 %v2215_v3, %v5985_v55  ;;  %v2264_v19 = vpop.f32.mrf.mxu1  ;;  %v4175_v3 = vld [vmem:[%s7762_s1 + $0x68] sm:$0xf0]  ;;  %v5323_v43 = vld [vmem:[%s7762_s1 + $0x664] sm:$0xf0] }
 0x11d   : > { %v6352_v22 = vadd.f32 %v2359_v42, %v2311_v5  ;;  %v2265_v10 = vadd.f32 %v2264_v19, %v2216_v18  ;;  %2410 = vmatmul.bf16.gmra.mxu0 %v6343_v63  ;;  %v4941_v42 = vld [vmem:[%s7762_s1 + $0x660] sm:$0xf]  ;;  %v4178_v5 = vor.u32 %v5130_v46, %v4175_v3 }
 0x11e   : > { %2459 = vmatmul.bf16.gmra.mxu1 %v6345_v6  ;;  %v4942_v36 = vor.u32 %v5323_v43, %v4941_v42  ;;  %v5010_v42 = vld [vmem:[%s5598_s5 + $0x24] sm:$0xf]  ;;  %v3711_v43 = vld [vmem:[%s5598_s5 + $0x58] sm:$0xf0] }
 0x11f   : > { %2508 = vmatmul.bf16.gmra.mxu2 %v6347_v15  ;;  %v5017_v15 = vld [vmem:[%s5598_s5 + $0x54] sm:$0xf0] }
 0x120   : > { %2557 = vmatmul.bf16.gmra.mxu3 %v6350_v7  ;;  %2858 = vmatpush.bf16.msrb.mxu2 %v4178_v5  ;;  %v3709_v7 = vld [vmem:[%s5598_s5 + $0x20] sm:$0xf] }
 0x121   : > { %2760 = vmatpush.bf16.msrb.mxu0 %v4942_v36  ;;  %v6387_v63 = vor.u32 %v5017_v15, %v3709_v7  ;;  %v6391_v36 = vor.u32 %v5018_v11, %v3717_v0  ;;  %v5128_v15 = vld [vmem:[%s7762_s1 + $0x54] sm:$0xf]  ;;  %v5321_v7 = vld [vmem:[%s7762_s1 + $0x654] sm:$0xf0] }
 0x122   : > { %v2313_v23 = vpop.f32.mrf.mxu2  ;;  %v2217_v60 = vpop.f32.mrf.mxu0 }
 0x123   : > { %v2314_v56 = vadd.f32 %v2313_v23, %v2265_v10  ;;  %v2362_v62 = vpop.f32.mrf.mxu3  ;;  %v2218_v18 = vadd.f32 %v2217_v60, %v5985_v55  ;;  %v2266_v19 = vpop.f32.mrf.mxu1  ;;  %v5011_v10 = vld [vmem:[%s5598_s5 + $0x2c] sm:$0xf]  ;;  %v3719_v23 = vld [vmem:[%s5598_s5 + $0x60] sm:$0xf0]  ;;  %7868 = vst [vmem:[#allocation38_spill] sm:$0xff] %v6387_v63  ;;  %v6389_v60 = vor.u32 %v5010_v42, %v3711_v43 }
 0x124   : > { %7870 = vst [vmem:[#allocation40_spill] sm:$0xff] %v6391_v36  ;;  %v4231_v42 = vld [vmem:[%s7762_s1 + $0xd8] sm:$0xf0] }
 0x125   : > { %v6377_v46 = vadd.f32 %v2362_v62, %v2314_v56  ;;  %v2267_v3 = vadd.f32 %v2266_v19, %v2218_v18  ;;  %7869 = vst [vmem:[#allocation39_spill] sm:$0xff] %v6389_v60  ;;  %v6394_v62 = vor.u32 %v5011_v10, %v3719_v23 }
 0x127   : > { %7871 = vst [vmem:[#allocation41_spill] sm:$0xff] %v6394_v62 }
 0x12a   : > { %v2315_v6 = vpop.f32.mrf.mxu2  ;;  %v2376_v55 = vpop.f32.mrf.mxu0 }
 0x12b   : > { %v2316_v5 = vadd.f32 %v2315_v6, %v2267_v3  ;;  %v2364_v14 = vpop.f32.mrf.mxu3  ;;  %v2377_v61 = vadd.f32 %v2376_v55, %v6027_v58  ;;  %v2425_v56 = vpop.f32.mrf.mxu1  ;;  %v4167_v58 = vld [vmem:[%s7762_s1 + $0x58] sm:$0xf0]  ;;  %v5144_v3 = vld [vmem:[%s7762_s1 + $0xd4] sm:$0xf] }
 0x12c   : > { %v4170_v6 = vor.u32 %v5128_v15, %v4167_v58  ;;  %v4234_v11 = vor.u32 %v5144_v3, %v4231_v42  ;;  %v4973_v15 = vld [vmem:[%s7762_s1 + $0x6a0] sm:$0xf]  ;;  %v3767_v3 = vld [vmem:[%s5598_s5 + $0xc8] sm:$0xf0]  ;;  %v3773_v42 = vld [vmem:[%s5598_s5 + $0x98] sm:$0xf] }
 0x12d   : > { %v6396_v18 = vadd.f32 %v2364_v14, %v2316_v5  ;;  %v2426_v19 = vadd.f32 %v2425_v56, %v2377_v61  ;;  %2571 = vmatmul.bf16.vlgmr.msra.gmra.mxu0 %v6387_v63  ;;  %v4933_v14 = vld [vmem:[%s7762_s1 + $0x650] sm:$0xf] }
 0x12e   : > { %2620 = vmatmul.bf16.vlgmr.msra.gmra.mxu1 %v6389_v60  ;;  %v4934_v0 = vor.u32 %v5321_v7, %v4933_v14  ;;  %2859 = vmatpush.bf16.msrb.mxu2 %v4170_v6  ;;  %v3765_v6 = vld [vmem:[%s5598_s5 + $0x90] sm:$0xf]  ;;  %v5031_v7 = vld [vmem:[%s5598_s5 + $0xc4] sm:$0xf0] }
 0x12f   : > { %2669 = vmatmul.bf16.vlgmr.msra.gmra.mxu2 %v6391_v36  ;;  %2908 = vmatpush.bf16.msrb.mxu3 %v4234_v11  ;;  %v3775_v11 = vld [vmem:[%s5598_s5 + $0xd0] sm:$0xf0] }
 0x130   : > { %2718 = vmatmul.bf16.vlgmr.msra.gmra.mxu3 %v6394_v62  ;;  %2761 = vmatpush.bf16.msrb.mxu0 %v4934_v0  ;;  %v5025_v0 = vld [vmem:[%s5598_s5 + $0x9c] sm:$0xf] }
 0x132   : > { %v2474_v43 = vpop.f32.mrf.mxu2  ;;  %v2378_v5 = vpop.f32.mrf.mxu0 }
 0x133   : > { %v2475_v10 = vadd.f32 %v2474_v43, %v2426_v19  ;;  %v2523_v23 = vpop.f32.mrf.mxu3  ;;  %v2379_v55 = vadd.f32 %v2378_v5, %v6052_v37  ;;  %v2427_v61 = vpop.f32.mrf.mxu1  ;;  %v5331_v19 = vld [vmem:[%s7762_s1 + $0x6a4] sm:$0xf0]  ;;  %v5024_v37 = vld [vmem:[%s5598_s5 + $0x94] sm:$0xf]  ;;  %v5032_v43 = vld [vmem:[%s5598_s5 + $0xcc] sm:$0xf0] }
 0x134   : > { %v4974_v14 = vor.u32 %v5331_v19, %v4973_v15  ;;  %v6439_v60 = vor.u32 %v5024_v37, %v3767_v3  ;;  %v6441_v63 = vor.u32 %v5032_v43, %v3773_v42  ;;  %v6444_v15 = vor.u32 %v5025_v0, %v3775_v11  ;;  %v4223_v37 = vld [vmem:[%s7762_s1 + $0xc8] sm:$0xf0] }
 0x135   : > { %v6421_v56 = vadd.f32 %v2523_v23, %v2475_v10  ;;  %v2428_v58 = vadd.f32 %v2427_v61, %v2379_v55  ;;  %v6437_v23 = vor.u32 %v5031_v7, %v3765_v6  ;;  %v5319_v6 = vld [vmem:[%s7762_s1 + $0x644] sm:$0xf0]  ;;  %v5142_v7 = vld [vmem:[%s7762_s1 + $0xc4] sm:$0xf] }
 0x136   : > { %2813 = vmatpush.bf16.msrb.mxu1 %v4974_v14  ;;  %7873 = vst [vmem:[#allocation43_spill] sm:$0xff] %v6439_v60  ;;  %v4226_v43 = vor.u32 %v5142_v7, %v4223_v37  ;;  %v3829_v7 = vld [vmem:[%s5598_s5 + $0x108] sm:$0xf]  ;;  %v5046_v37 = vld [vmem:[%s5598_s5 + $0x13c] sm:$0xf0] }
 0x137   : > { %7872 = vst [vmem:[#allocation42_spill] sm:$0xff] %v6437_v23 }
 0x138   : > { %7874 = vst [vmem:[#allocation44_spill] sm:$0xff] %v6441_v63  ;;  %2909 = vmatpush.bf16.msrb.mxu3 %v4226_v43 }
 0x139   : > { %7875 = vst [vmem:[#allocation45_spill] sm:$0xff] %v6444_v15 }
 0x13a   : > { %v2476_v10 = vpop.f32.mrf.mxu2  ;;  %v2381_v36 = vpop.f32.mrf.mxu0 }
 0x13b   : > { %v2477_v5 = vadd.f32 %v2476_v10, %v2428_v58  ;;  %v2525_v62 = vpop.f32.mrf.mxu3  ;;  %v2382_v55 = vadd.f32 %v2381_v36, %v6077_v29  ;;  %v2430_v61 = vpop.f32.mrf.mxu1  ;;  %v5126_v58 = vld [vmem:[%s7762_s1 + $0x44] sm:$0xf]  ;;  %v4159_v29 = vld [vmem:[%s7762_s1 + $0x48] sm:$0xf0]  ;;  %v4925_v36 = vld [vmem:[%s7762_s1 + $0x640] sm:$0xf] }
 0x13c   : > { %v4926_v42 = vor.u32 %v5319_v6, %v4925_v36  ;;  %v5038_v36 = vld [vmem:[%s5598_s5 + $0x104] sm:$0xf]  ;;  %v3823_v6 = vld [vmem:[%s5598_s5 + $0x138] sm:$0xf0] }
 0x13d   : > { %v6446_v19 = vadd.f32 %v2525_v62, %v2477_v5  ;;  %v2431_v14 = vadd.f32 %v2430_v61, %v2382_v55  ;;  %2576 = vmatmul.bf16.gmra.mxu0 %v6437_v23  ;;  %v4162_v62 = vor.u32 %v5126_v58, %v4159_v29  ;;  %v3821_v29 = vld [vmem:[%s5598_s5 + $0x100] sm:$0xf] }
 0x13e   : > { %2625 = vmatmul.bf16.gmra.mxu1 %v6439_v60  ;;  %2762 = vmatpush.bf16.msrb.mxu0 %v4926_v42  ;;  %v6485_v42 = vor.u32 %v5046_v37, %v3829_v7 }
 0x13f   : > { %2674 = vmatmul.bf16.gmra.mxu2 %v6441_v63 }
 0x140   : > { %2723 = vmatmul.bf16.gmra.mxu3 %v6444_v15  ;;  %2860 = vmatpush.bf16.msrb.mxu2 %v4162_v62  ;;  %v5045_v15 = vld [vmem:[%s5598_s5 + $0x134] sm:$0xf0]  ;;  %7878 = vst [vmem:[#allocation48_spill] sm:$0xff] %v6485_v42 }
 0x141   : > { %v6481_v60 = vor.u32 %v5045_v15, %v3821_v29  ;;  %v5140_v29 = vld [vmem:[%s7762_s1 + $0xb4] sm:$0xf] }
 0x142   : > { %v2479_v3 = vpop.f32.mrf.mxu2  ;;  %v2383_v10 = vpop.f32.mrf.mxu0 }
 0x143   : > { %v2480_v0 = vadd.f32 %v2479_v3, %v2431_v14  ;;  %v2528_v11 = vpop.f32.mrf.mxu3  ;;  %v2384_v5 = vadd.f32 %v2383_v10, %v6102_v31  ;;  %v2432_v55 = vpop.f32.mrf.mxu1  ;;  %v5039_v14 = vld [vmem:[%s5598_s5 + $0x10c] sm:$0xf]  ;;  %v3831_v3 = vld [vmem:[%s5598_s5 + $0x140] sm:$0xf0]  ;;  %7876 = vst [vmem:[#allocation46_spill] sm:$0xff] %v6481_v60  ;;  %v6483_v10 = vor.u32 %v5038_v36, %v3823_v6 }
 0x144   : > { %v4215_v36 = vld [vmem:[%s7762_s1 + $0xb8] sm:$0xf0] }
 0x145   : > { %v6471_v61 = vadd.f32 %v2528_v11, %v2480_v0  ;;  %v2433_v58 = vadd.f32 %v2432_v55, %v2384_v5  ;;  %7877 = vst [vmem:[#allocation47_spill] sm:$0xff] %v6483_v10  ;;  %v6488_v11 = vor.u32 %v5039_v14, %v3831_v3  ;;  %v4218_v37 = vor.u32 %v5140_v29, %v4215_v36  ;;  %v3879_v29 = vld [vmem:[%s5598_s5 + $0x1a8] sm:$0xf0]  ;;  %v3885_v36 = vld [vmem:[%s5598_s5 + $0x178] sm:$0xf] }
 0x147   : > { %7879 = vst [vmem:[#allocation49_spill] sm:$0xff] %v6488_v11  ;;  %2910 = vmatpush.bf16.msrb.mxu3 %v4218_v37  ;;  %v3887_v37 = vld [vmem:[%s5598_s5 + $0x1b0] sm:$0xf0] }
 0x14a   : > { %v2481_v63 = vpop.f32.mrf.mxu2  ;;  %v2386_v31 = vpop.f32.mrf.mxu0 }
 0x14b   : > { %v2482_v62 = vadd.f32 %v2481_v63, %v2433_v58  ;;  %v2530_v23 = vpop.f32.mrf.mxu3  ;;  %v2387_v43 = vadd.f32 %v2386_v31, %v6127_v34  ;;  %v2435_v0 = vpop.f32.mrf.mxu1  ;;  %v5124_v63 = vld [vmem:[%s7762_s1 + $0x34] sm:$0xf]  ;;  %v4151_v34 = vld [vmem:[%s7762_s1 + $0x38] sm:$0xf0]  ;;  %v5317_v58 = vld [vmem:[%s7762_s1 + $0x634] sm:$0xf0] }
 0x14c   : > { %v4154_v15 = vor.u32 %v5124_v63, %v4151_v34  ;;  %v4965_v63 = vld [vmem:[%s7762_s1 + $0x690] sm:$0xf] }
 0x14d   : > { %v6490_v5 = vadd.f32 %v2530_v23, %v2482_v62  ;;  %v2436_v55 = vadd.f32 %v2435_v0, %v2387_v43  ;;  %2581 = vmatmul.bf16.gmra.mxu0 %v6481_v60  ;;  %v4917_v23 = vld [vmem:[%s7762_s1 + $0x630] sm:$0xf] }
 0x14e   : > { %2630 = vmatmul.bf16.gmra.mxu1 %v6483_v10  ;;  %v4918_v7 = vor.u32 %v5317_v58, %v4917_v23  ;;  %2861 = vmatpush.bf16.msrb.mxu2 %v4154_v15  ;;  %v3877_v15 = vld [vmem:[%s5598_s5 + $0x170] sm:$0xf]  ;;  %v5059_v58 = vld [vmem:[%s5598_s5 + $0x1a4] sm:$0xf0] }
 0x14f   : > { %2679 = vmatmul.bf16.gmra.mxu2 %v6485_v42 }
 0x150   : > { %2728 = vmatmul.bf16.gmra.mxu3 %v6488_v11  ;;  %2763 = vmatpush.bf16.msrb.mxu0 %v4918_v7  ;;  %v5053_v7 = vld [vmem:[%s5598_s5 + $0x17c] sm:$0xf] }
 0x152   : > { %v2484_v6 = vpop.f32.mrf.mxu2  ;;  %v2388_v62 = vpop.f32.mrf.mxu0 }
 0x153   : > { %v2485_v14 = vadd.f32 %v2484_v6, %v2436_v55  ;;  %v2533_v3 = vpop.f32.mrf.mxu3  ;;  %v2389_v31 = vadd.f32 %v2388_v62, %v6152_v35  ;;  %v2437_v43 = vpop.f32.mrf.mxu1  ;;  %v5329_v55 = vld [vmem:[%s7762_s1 + $0x694] sm:$0xf0]  ;;  %v5052_v35 = vld [vmem:[%s5598_s5 + $0x174] sm:$0xf]  ;;  %v5060_v6 = vld [vmem:[%s5598_s5 + $0x1ac] sm:$0xf0] }
 0x154   : > { %v4966_v23 = vor.u32 %v5329_v55, %v4965_v63  ;;  %v6533_v10 = vor.u32 %v5052_v35, %v3879_v29  ;;  %v6535_v60 = vor.u32 %v5060_v6, %v3885_v36  ;;  %v6538_v63 = vor.u32 %v5053_v7, %v3887_v37  ;;  %v4207_v35 = vld [vmem:[%s7762_s1 + $0xa8] sm:$0xf0] }
 0x155   : > { %v6515_v0 = vadd.f32 %v2533_v3, %v2485_v14  ;;  %v2438_v34 = vadd.f32 %v2437_v43, %v2389_v31  ;;  %v6531_v3 = vor.u32 %v5059_v58, %v3877_v15  ;;  %v5315_v15 = vld [vmem:[%s7762_s1 + $0x624] sm:$0xf0]  ;;  %v5138_v58 = vld [vmem:[%s7762_s1 + $0xa4] sm:$0xf] }
 0x156   : > { %2814 = vmatpush.bf16.msrb.mxu1 %v4966_v23  ;;  %7881 = vst [vmem:[#allocation51_spill] sm:$0xff] %v6533_v10  ;;  %v4210_v6 = vor.u32 %v5138_v58, %v4207_v35  ;;  %v3941_v58 = vld [vmem:[%s5598_s5 + $0x1e8] sm:$0xf]  ;;  %v5074_v35 = vld [vmem:[%s5598_s5 + $0x21c] sm:$0xf0] }
 0x157   : > { %7880 = vst [vmem:[#allocation50_spill] sm:$0xff] %v6531_v3 }
 0x158   : > { %7882 = vst [vmem:[#allocation52_spill] sm:$0xff] %v6535_v60  ;;  %2911 = vmatpush.bf16.msrb.mxu3 %v4210_v6 }
 0x159   : > { %7883 = vst [vmem:[#allocation53_spill] sm:$0xff] %v6538_v63 }
 0x15a   : > { %v2486_v14 = vpop.f32.mrf.mxu2  ;;  %v2391_v42 = vpop.f32.mrf.mxu0 }
 0x15b   : > { %v2487_v62 = vadd.f32 %v2486_v14, %v2438_v34  ;;  %v2535_v11 = vpop.f32.mrf.mxu3  ;;  %v2392_v31 = vadd.f32 %v2391_v42, %v6177_v30  ;;  %v2440_v43 = vpop.f32.mrf.mxu1  ;;  %v5122_v34 = vld [vmem:[%s7762_s1 + $0x24] sm:$0xf]  ;;  %v4143_v30 = vld [vmem:[%s7762_s1 + $0x28] sm:$0xf0]  ;;  %v4909_v42 = vld [vmem:[%s7762_s1 + $0x620] sm:$0xf] }
 0x15c   : > { %v4910_v36 = vor.u32 %v5315_v15, %v4909_v42  ;;  %v5066_v42 = vld [vmem:[%s5598_s5 + $0x1e4] sm:$0xf]  ;;  %v3935_v15 = vld [vmem:[%s5598_s5 + $0x218] sm:$0xf0] }
 0x15d   : > { %v6540_v55 = vadd.f32 %v2535_v11, %v2487_v62  ;;  %v2441_v23 = vadd.f32 %v2440_v43, %v2392_v31  ;;  %2586 = vmatmul.bf16.gmra.mxu0 %v6531_v3  ;;  %v4146_v11 = vor.u32 %v5122_v34, %v4143_v30  ;;  %v3933_v30 = vld [vmem:[%s5598_s5 + $0x1e0] sm:$0xf] }
 0x15e   : > { %2635 = vmatmul.bf16.gmra.mxu1 %v6533_v10  ;;  %2764 = vmatpush.bf16.msrb.mxu0 %v4910_v36  ;;  %v6579_v36 = vor.u32 %v5074_v35, %v3941_v58 }
 0x15f   : > { %2684 = vmatmul.bf16.gmra.mxu2 %v6535_v60 }
 0x160   : > { %2733 = vmatmul.bf16.gmra.mxu3 %v6538_v63  ;;  %2862 = vmatpush.bf16.msrb.mxu2 %v4146_v11  ;;  %v5073_v63 = vld [vmem:[%s5598_s5 + $0x214] sm:$0xf0]  ;;  %7886 = vst [vmem:[#allocation56_spill] sm:$0xff] %v6579_v36 }
 0x161   : > { %v6575_v10 = vor.u32 %v5073_v63, %v3933_v30  ;;  %v5136_v30 = vld [vmem:[%s7762_s1 + $0x94] sm:$0xf] }
 0x162   : > { %v2489_v29 = vpop.f32.mrf.mxu2  ;;  %v2393_v14 = vpop.f32.mrf.mxu0 }
 0x163   : > { %v2490_v7 = vadd.f32 %v2489_v29, %v2441_v23  ;;  %v2538_v37 = vpop.f32.mrf.mxu3  ;;  %v2394_v62 = vadd.f32 %v2393_v14, %v6202_v59  ;;  %v2442_v31 = vpop.f32.mrf.mxu1  ;;  %v5067_v23 = vld [vmem:[%s5598_s5 + $0x1ec] sm:$0xf]  ;;  %v3943_v29 = vld [vmem:[%s5598_s5 + $0x220] sm:$0xf0]  ;;  %7884 = vst [vmem:[#allocation54_spill] sm:$0xff] %v6575_v10  ;;  %v6577_v14 = vor.u32 %v5066_v42, %v3935_v15 }
 0x164   : > { %v4199_v42 = vld [vmem:[%s7762_s1 + $0x98] sm:$0xf0] }
 0x165   : > { %v6565_v43 = vadd.f32 %v2538_v37, %v2490_v7  ;;  %v2443_v34 = vadd.f32 %v2442_v31, %v2394_v62  ;;  %7885 = vst [vmem:[#allocation55_spill] sm:$0xff] %v6577_v14  ;;  %v6582_v37 = vor.u32 %v5067_v23, %v3943_v29  ;;  %v4202_v35 = vor.u32 %v5136_v30, %v4199_v42  ;;  %v3991_v30 = vld [vmem:[%s5598_s5 + $0x288] sm:$0xf0]  ;;  %v3997_v42 = vld [vmem:[%s5598_s5 + $0x258] sm:$0xf] }
 0x167   : > { %7887 = vst [vmem:[#allocation57_spill] sm:$0xff] %v6582_v37  ;;  %2912 = vmatpush.bf16.msrb.mxu3 %v4202_v35  ;;  %v3999_v35 = vld [vmem:[%s5598_s5 + $0x290] sm:$0xf0] }
 0x16a   : > { %v2491_v60 = vpop.f32.mrf.mxu2  ;;  %v2396_v59 = vpop.f32.mrf.mxu0 }
 0x16b   : > { %v2492_v11 = vadd.f32 %v2491_v60, %v2443_v34  ;;  %v2540_v3 = vpop.f32.mrf.mxu3  ;;  %v2397_v6 = vadd.f32 %v2396_v59, %v6227_v38  ;;  %v2445_v7 = vpop.f32.mrf.mxu1  ;;  %v5120_v60 = vld [vmem:[%s7762_s1 + $0x14] sm:$0xf]  ;;  %v4135_v38 = vld [vmem:[%s7762_s1 + $0x18] sm:$0xf0]  ;;  %v5313_v34 = vld [vmem:[%s7762_s1 + $0x614] sm:$0xf0] }
 0x16c   : > { %v4138_v63 = vor.u32 %v5120_v60, %v4135_v38  ;;  %v4957_v60 = vld [vmem:[%s7762_s1 + $0x680] sm:$0xf] }
 0x16d   : > { %v6584_v62 = vadd.f32 %v2540_v3, %v2492_v11  ;;  %v2446_v31 = vadd.f32 %v2445_v7, %v2397_v6  ;;  %2591 = vmatmul.bf16.gmra.mxu0 %v6575_v10  ;;  %v4901_v3 = vld [vmem:[%s7762_s1 + $0x610] sm:$0xf] }
 0x16e   : > { %2640 = vmatmul.bf16.gmra.mxu1 %v6577_v14  ;;  %v4902_v58 = vor.u32 %v5313_v34, %v4901_v3  ;;  %2863 = vmatpush.bf16.msrb.mxu2 %v4138_v63  ;;  %v3989_v63 = vld [vmem:[%s5598_s5 + $0x250] sm:$0xf]  ;;  %v5087_v34 = vld [vmem:[%s5598_s5 + $0x284] sm:$0xf0] }
 0x16f   : > { %2689 = vmatmul.bf16.gmra.mxu2 %v6579_v36 }
 0x170   : > { %2738 = vmatmul.bf16.gmra.mxu3 %v6582_v37  ;;  %2765 = vmatpush.bf16.msrb.mxu0 %v4902_v58  ;;  %v5081_v58 = vld [vmem:[%s5598_s5 + $0x25c] sm:$0xf] }
 0x172   : > { %v2494_v15 = vpop.f32.mrf.mxu2  ;;  %v2398_v11 = vpop.f32.mrf.mxu0 }
 0x173   : > { %v2495_v23 = vadd.f32 %v2494_v15, %v2446_v31  ;;  %v2543_v29 = vpop.f32.mrf.mxu3  ;;  %v2399_v59 = vadd.f32 %v2398_v11, %v6252_v39  ;;  %v2447_v6 = vpop.f32.mrf.mxu1  ;;  %v5327_v31 = vld [vmem:[%s7762_s1 + $0x684] sm:$0xf0]  ;;  %v5080_v39 = vld [vmem:[%s5598_s5 + $0x254] sm:$0xf]  ;;  %v5088_v15 = vld [vmem:[%s5598_s5 + $0x28c] sm:$0xf0] }
 0x174   : > { %v4958_v3 = vor.u32 %v5327_v31, %v4957_v60  ;;  %v6627_v14 = vor.u32 %v5080_v39, %v3991_v30  ;;  %v6629_v10 = vor.u32 %v5088_v15, %v3997_v42  ;;  %v6632_v60 = vor.u32 %v5081_v58, %v3999_v35  ;;  %v4191_v39 = vld [vmem:[%s7762_s1 + $0x88] sm:$0xf0] }
 0x175   : > { %v6609_v7 = vadd.f32 %v2543_v29, %v2495_v23  ;;  %v2448_v38 = vadd.f32 %v2447_v6, %v2399_v59  ;;  %v6625_v29 = vor.u32 %v5087_v34, %v3989_v63  ;;  %v5311_v63 = vld [vmem:[%s7762_s1 + $0x604] sm:$0xf0]  ;;  %v5134_v34 = vld [vmem:[%s7762_s1 + $0x84] sm:$0xf] }
 0x176   : > { %2815 = vmatpush.bf16.msrb.mxu1 %v4958_v3  ;;  %7889 = vst [vmem:[#allocation59_spill] sm:$0xff] %v6627_v14  ;;  %v4194_v15 = vor.u32 %v5134_v34, %v4191_v39  ;;  %v4053_v34 = vld [vmem:[%s5598_s5 + $0x2c8] sm:$0xf]  ;;  %v5102_v39 = vld [vmem:[%s5598_s5 + $0x2fc] sm:$0xf0] }
 0x177   : > { %7888 = vst [vmem:[#allocation58_spill] sm:$0xff] %v6625_v29 }
 0x178   : > { %7890 = vst [vmem:[#allocation60_spill] sm:$0xff] %v6629_v10  ;;  %2913 = vmatpush.bf16.msrb.mxu3 %v4194_v15 }
 0x179   : > { %7891 = vst [vmem:[#allocation61_spill] sm:$0xff] %v6632_v60 }
 0x17a   : > { %v2496_v23 = vpop.f32.mrf.mxu2  ;;  %v2401_v36 = vpop.f32.mrf.mxu0 }
 0x17b   : > { %v2497_v11 = vadd.f32 %v2496_v23, %v2448_v38  ;;  %v2545_v37 = vpop.f32.mrf.mxu3  ;;  %v2402_v59 = vadd.f32 %v2401_v36, %v6277_v16  ;;  %v2450_v6 = vpop.f32.mrf.mxu1  ;;  %v5118_v38 = vld [vmem:[%s7762_s1 + $0x4] sm:$0xf]  ;;  %v4127_v16 = vld [vmem:[%s7762_s1 + $0x8] sm:$0xf0]  ;;  %v4893_v36 = vld [vmem:[%s7762_s1 + $0x600] sm:$0xf] }
 0x17c   : > { %v4894_v42 = vor.u32 %v5311_v63, %v4893_v36  ;;  %v5094_v36 = vld [vmem:[%s5598_s5 + $0x2c4] sm:$0xf]  ;;  %v4047_v63 = vld [vmem:[%s5598_s5 + $0x2f8] sm:$0xf0] }
 0x17d   : > { %v6634_v31 = vadd.f32 %v2545_v37, %v2497_v11  ;;  %v2451_v3 = vadd.f32 %v2450_v6, %v2402_v59  ;;  %2596 = vmatmul.bf16.gmra.mxu0 %v6625_v29  ;;  %v4130_v37 = vor.u32 %v5118_v38, %v4127_v16  ;;  %v4045_v16 = vld [vmem:[%s5598_s5 + $0x2c0] sm:$0xf] }
 0x17e   : > { %2645 = vmatmul.bf16.gmra.mxu1 %v6627_v14  ;;  %2766 = vmatpush.bf16.msrb.mxu0 %v4894_v42  ;;  %v6673_v42 = vor.u32 %v5102_v39, %v4053_v34 }
 0x17f   : > { %2694 = vmatmul.bf16.gmra.mxu2 %v6629_v10 }
 0x180   : > { %2743 = vmatmul.bf16.gmra.mxu3 %v6632_v60  ;;  %2864 = vmatpush.bf16.msrb.mxu2 %v4130_v37  ;;  %v5101_v60 = vld [vmem:[%s5598_s5 + $0x2f4] sm:$0xf0]  ;;  %7894 = vst [vmem:[#allocation64_spill] sm:$0xff] %v6673_v42 }
 0x181   : > { %v6669_v14 = vor.u32 %v5101_v60, %v4045_v16  ;;  %v5212_v16 = vld [vmem:[%s7762_s1 + $0x2f4] sm:$0xf] }
 0x182   : > { %v2499_v30 = vpop.f32.mrf.mxu2  ;;  %v2403_v23 = vpop.f32.mrf.mxu0 }
 0x183   : > { %v2500_v58 = vadd.f32 %v2499_v30, %v2451_v3  ;;  %v2548_v35 = vpop.f32.mrf.mxu3  ;;  %v2404_v11 = vadd.f32 %v2403_v23, %v6302_v33  ;;  %v2452_v59 = vpop.f32.mrf.mxu1  ;;  %v5095_v3 = vld [vmem:[%s5598_s5 + $0x2cc] sm:$0xf]  ;;  %v4055_v30 = vld [vmem:[%s5598_s5 + $0x300] sm:$0xf0]  ;;  %7892 = vst [vmem:[#allocation62_spill] sm:$0xff] %v6669_v14  ;;  %v6671_v23 = vor.u32 %v5094_v36, %v4047_v63 }
 0x184   : > { %v4503_v36 = vld [vmem:[%s7762_s1 + $0x2f8] sm:$0xf0] }
 0x185   : > { %v6659_v6 = vadd.f32 %v2548_v35, %v2500_v58  ;;  %v2453_v38 = vadd.f32 %v2452_v59, %v2404_v11  ;;  %7893 = vst [vmem:[#allocation63_spill] sm:$0xff] %v6671_v23  ;;  %v6676_v35 = vor.u32 %v5095_v3, %v4055_v30  ;;  %v4506_v39 = vor.u32 %v5212_v16, %v4503_v36  ;;  %v4103_v16 = vld [vmem:[%s5598_s5 + $0x368] sm:$0xf0]  ;;  %v4109_v36 = vld [vmem:[%s5598_s5 + $0x338] sm:$0xf] }
 0x187   : > { %7895 = vst [vmem:[#allocation65_spill] sm:$0xff] %v6676_v35  ;;  %3102 = vmatpush.bf16.msra.mxu3 %v4506_v39  ;;  %v4111_v39 = vld [vmem:[%s5598_s5 + $0x370] sm:$0xf0] }
 0x18a   : > { %v2501_v10 = vpop.f32.mrf.mxu2  ;;  %v2406_v33 = vpop.f32.mrf.mxu0 }
 0x18b   : > { %v2502_v37 = vadd.f32 %v2501_v10, %v2453_v38  ;;  %v2550_v29 = vpop.f32.mrf.mxu3  ;;  %v2407_v15 = vadd.f32 %v2406_v33, %v6327_v48  ;;  %v2455_v58 = vpop.f32.mrf.mxu1  ;;  %v5196_v10 = vld [vmem:[%s7762_s1 + $0x274] sm:$0xf]  ;;  %v4439_v48 = vld [vmem:[%s7762_s1 + $0x278] sm:$0xf0] }
 0x18c   : > { %v4442_v60 = vor.u32 %v5196_v10, %v4439_v48  ;;  %v4311_v38 = vld [vmem:[%s7762_s1 + $0x178] sm:$0xf0]  ;;  %v5180_v10 = vld [vmem:[%s7762_s1 + $0x1f4] sm:$0xf] }
 0x18d   : > { %v6678_v11 = vadd.f32 %v2550_v29, %v2502_v37  ;;  %v2456_v59 = vadd.f32 %v2455_v58, %v2407_v15  ;;  %2601 = vmatmul.bf16.gmra.mxu0 %v6669_v14  ;;  %v5164_v29 = vld [vmem:[%s7762_s1 + $0x174] sm:$0xf] }
 0x18e   : > { %2650 = vmatmul.bf16.gmra.mxu1 %v6671_v23  ;;  %v4314_v34 = vor.u32 %v5164_v29, %v4311_v38  ;;  %3053 = vmatpush.bf16.msra.mxu2 %v4442_v60  ;;  %v4101_v60 = vld [vmem:[%s5598_s5 + $0x330] sm:$0xf]  ;;  %v5115_v38 = vld [vmem:[%s5598_s5 + $0x364] sm:$0xf0] }
 0x18f   : > { %2699 = vmatmul.bf16.gmra.mxu2 %v6673_v42 }
 0x190   : > { %2748 = vmatmul.bf16.gmra.mxu3 %v6676_v35  ;;  %2955 = vmatpush.bf16.msra.mxu0 %v4314_v34  ;;  %v5109_v34 = vld [vmem:[%s5598_s5 + $0x33c] sm:$0xf] }
 0x192   : > { %v2504_v63 = vpop.f32.mrf.mxu2  ;;  %v2408_v37 = vpop.f32.mrf.mxu0 }
 0x193   : > { %v2505_v3 = vadd.f32 %v2504_v63, %v2456_v59  ;;  %v2553_v30 = vpop.f32.mrf.mxu3  ;;  %v2409_v33 = vadd.f32 %v2408_v37, %v6352_v22  ;;  %v2457_v15 = vpop.f32.mrf.mxu1  ;;  %v4375_v59 = vld [vmem:[%s7762_s1 + $0x1f8] sm:$0xf0]  ;;  %v5108_v22 = vld [vmem:[%s5598_s5 + $0x334] sm:$0xf]  ;;  %v5116_v63 = vld [vmem:[%s5598_s5 + $0x36c] sm:$0xf0] }
 0x194   : > { %v4378_v29 = vor.u32 %v5180_v10, %v4375_v59  ;;  %v6721_v23 = vor.u32 %v5108_v22, %v4103_v16  ;;  %v6723_v14 = vor.u32 %v5116_v63, %v4109_v36  ;;  %v6726_v10 = vor.u32 %v5109_v34, %v4111_v39  ;;  %v4495_v22 = vld [vmem:[%s7762_s1 + $0x2e8] sm:$0xf0] }
 0x195   : > { %v6703_v58 = vadd.f32 %v2553_v30, %v2505_v3  ;;  %v2458_v48 = vadd.f32 %v2457_v15, %v2409_v33  ;;  %v6719_v30 = vor.u32 %v5115_v38, %v4101_v60  ;;  %v4303_v60 = vld [vmem:[%s7762_s1 + $0x168] sm:$0xf0]  ;;  %v5210_v38 = vld [vmem:[%s7762_s1 + $0x2e4] sm:$0xf] }
 0x196   : > { %3004 = vmatpush.bf16.msra.mxu1 %v4378_v29  ;;  %7896 = vst [vmem:[#allocation66_spill] sm:$0xff] %v6723_v14  ;;  %v4498_v63 = vor.u32 %v5210_v38, %v4495_v22  ;;  %v5019_v38 = vld [vmem:[%s5598_s5 + $0x64] sm:$0xf0]  ;;  %v3727_v22 = vld [vmem:[%s5598_s5 + $0x68] sm:$0xf0] }
 0x197   : > { %7897 = vst [vmem:[#allocation67_spill] sm:$0xff] %v6726_v10 }
 0x198   : > { %3103 = vmatpush.bf16.msra.mxu3 %v4498_v63 }
 0x19a   : > { %v2506_v3 = vpop.f32.mrf.mxu2  ;;  %v2411_v42 = vpop.f32.mrf.mxu0 }
 0x19b   : > { %v2507_v37 = vadd.f32 %v2506_v3, %v2458_v48  ;;  %v2555_v35 = vpop.f32.mrf.mxu3  ;;  %v2412_v33 = vadd.f32 %v2411_v42, %v6377_v46  ;;  %v2460_v15 = vpop.f32.mrf.mxu1  ;;  %v5194_v48 = vld [vmem:[%s7762_s1 + $0x264] sm:$0xf]  ;;  %v4431_v46 = vld [vmem:[%s7762_s1 + $0x268] sm:$0xf0] }
 0x19c   : > { %v5162_v42 = vld [vmem:[%s7762_s1 + $0x164] sm:$0xf] }
 0x19d   : > { %v6728_v59 = vadd.f32 %v2555_v35, %v2507_v37  ;;  %v2461_v29 = vadd.f32 %v2460_v15, %v2412_v33  ;;  %2606 = vmatmul.bf16.gmra.mxu0 %v6719_v30  ;;  %v4434_v35 = vor.u32 %v5194_v48, %v4431_v46  ;;  %v4306_v36 = vor.u32 %v5162_v42, %v4303_v60  ;;  %v5178_v48 = vld [vmem:[%s7762_s1 + $0x1e4] sm:$0xf]  ;;  %v4367_v46 = vld [vmem:[%s7762_s1 + $0x1e8] sm:$0xf0]  ;;  %v3725_v60 = vld [vmem:[%s5598_s5 + $0x30] sm:$0xf] }
 0x19e   : > { %2655 = vmatmul.bf16.gmra.mxu1 %v6721_v23  ;;  %v4370_v42 = vor.u32 %v5178_v48, %v4367_v46  ;;  %v4295_v46 = vld [vmem:[%s7762_s1 + $0x158] sm:$0xf0] }
 0x19f   : > { %2704 = vmatmul.bf16.gmra.mxu2 %v6723_v14  ;;  %2956 = vmatpush.bf16.msra.mxu0 %v4306_v36 }
 0x1a0   : > { %2753 = vmatmul.bf16.gmra.mxu3 %v6726_v10  ;;  %3054 = vmatpush.bf16.msra.mxu2 %v4434_v35  ;;  %v5012_v35 = vld [vmem:[%s5598_s5 + $0x34] sm:$0xf] }
 0x1a1   : > { %3005 = vmatpush.bf16.msra.mxu1 %v4370_v42 }
 0x1a2   : > { %v2509_v16 = vpop.f32.mrf.mxu2  ;;  %v2413_v3 = vpop.f32.mrf.mxu0 }
 0x1a3   : > { %v2510_v34 = vadd.f32 %v2509_v16, %v2461_v29  ;;  %v2558_v39 = vpop.f32.mrf.mxu3  ;;  %v2414_v37 = vadd.f32 %v2413_v3, %v6396_v18  ;;  %v2462_v33 = vpop.f32.mrf.mxu1  ;;  %v6765_v16 = vor.u32 %v5019_v38, %v3725_v60 }
 0x1a5   : > { %v6753_v15 = vadd.f32 %v2558_v39, %v2510_v34  ;;  %v2463_v29 = vadd.f32 %v2462_v33, %v2414_v37  ;;  %v6767_v39 = vor.u32 %v5012_v35, %v3727_v22  ;;  %v5192_v33 = vld [vmem:[%s7762_s1 + $0x254] sm:$0xf] }
 0x1aa   : > { %v2511_v18 = vpop.f32.mrf.mxu2  ;;  %v2572_v34 = vpop.f32.mrf.mxu0 }
 0x1ab   : > { %v2512_v36 = vadd.f32 %v2511_v18, %v2463_v29  ;;  %v2560_v63 = vpop.f32.mrf.mxu3  ;;  %v2573_v3 = vadd.f32 %v2572_v34, %v6421_v56  ;;  %v2621_v10 = vpop.f32.mrf.mxu1  ;;  %v4423_v56 = vld [vmem:[%s7762_s1 + $0x258] sm:$0xf0]  ;;  %v5176_v34 = vld [vmem:[%s7762_s1 + $0x1d4] sm:$0xf] }
 0x1ac   : > { %v4426_v48 = vor.u32 %v5192_v33, %v4423_v56  ;;  %v3781_v56 = vld [vmem:[%s5598_s5 + $0xa0] sm:$0xf] }
 0x1ad   : > { %v6770_v14 = vadd.f32 %v2560_v63, %v2512_v36  ;;  %v2622_v37 = vadd.f32 %v2621_v10, %v2573_v3  ;;  %2767 = vmatmul.bf16.vlgmr.msrb.gmra.mxu0 %v6765_v16  ;;  %v5160_v10 = vld [vmem:[%s7762_s1 + $0x154] sm:$0xf]  ;;  %v4359_v3 = vld [vmem:[%s7762_s1 + $0x1d8] sm:$0xf0] }
 0x1ae   : > { %4987 = vmatmul.msk.bf16.vlgmr.msrb.gmra.mxu1 %vm2146_vm0, %v6767_v39  ;;  %v4298_v42 = vor.u32 %v5160_v10, %v4295_v46  ;;  %3055 = vmatpush.bf16.msra.mxu2 %v4426_v48  ;;  %v4362_v33 = vor.u32 %v5176_v34, %v4359_v3  ;;  %v5033_v10 = vld [vmem:[%s5598_s5 + $0xd4] sm:$0xf0]  ;;  %v5026_v48 = vld [vmem:[%s5598_s5 + $0xa4] sm:$0xf]  ;;  %v3783_v46 = vld [vmem:[%s5598_s5 + $0xd8] sm:$0xf0] }
 0x1af   : > { %2865 = vmatmul.bf16.vlgmr.msrb.gmra.mxu2 %v5618_v47  ;;  %v5208_v47 = vld [vmem:[%s7762_s1 + $0x2d4] sm:$0xf]  ;;  %v5158_v34 = vld [vmem:[%s7762_s1 + $0x144] sm:$0xf] }
 0x1b0   : > { %2914 = vmatmul.bf16.vlgmr.msrb.gmra.mxu3 %v5623_v52  ;;  %v4487_v52 = vld [vmem:[%s7762_s1 + $0x2d8] sm:$0xf0]  ;;  %2957 = vmatpush.bf16.msra.mxu0 %v4298_v42 }
 0x1b1   : > { %v4490_v60 = vor.u32 %v5208_v47, %v4487_v52  ;;  %3006 = vmatpush.bf16.msra.mxu1 %v4362_v33  ;;  %v6808_v47 = vor.u32 %v5033_v10, %v3781_v56 }
 0x1b2   : > { %v2670_v29 = vpop.f32.mrf.mxu2  ;;  %v2574_v22 = vpop.f32.mrf.mxu0 }
 0x1b3   : > { %v2671_v38 = vadd.f32 %v2670_v29, %v2622_v37  ;;  %v2719_v35 = vpop.f32.mrf.mxu3  ;;  %v2575_v18 = vadd.f32 %v2574_v22, %v6446_v19  ;;  %v2623_v36 = vpop.f32.mrf.mxu1  ;;  %3104 = vmatpush.bf16.msra.mxu3 %v4490_v60  ;;  %v6810_v60 = vor.u32 %v5026_v48, %v3783_v46 }
 0x1b5   : > { %v6796_v63 = vadd.f32 %v2719_v35, %v2671_v38  ;;  %v2624_v37 = vadd.f32 %v2623_v36, %v2575_v18  ;;  %v5190_v36 = vld [vmem:[%s7762_s1 + $0x244] sm:$0xf] }
 0x1ba   : > { %v2672_v19 = vpop.f32.mrf.mxu2  ;;  %v2577_v42 = vpop.f32.mrf.mxu0 }
 0x1bb   : > { %v2673_v52 = vadd.f32 %v2672_v19, %v2624_v37  ;;  %v2721_v29 = vpop.f32.mrf.mxu3  ;;  %v2578_v38 = vadd.f32 %v2577_v42, %v6471_v61  ;;  %v2626_v35 = vpop.f32.mrf.mxu1  ;;  %v4415_v61 = vld [vmem:[%s7762_s1 + $0x248] sm:$0xf0] }
 0x1bc   : > { %v4418_v3 = vor.u32 %v5190_v36, %v4415_v61  ;;  %v4287_v37 = vld [vmem:[%s7762_s1 + $0x148] sm:$0xf0]  ;;  %v3837_v61 = vld [vmem:[%s5598_s5 + $0x110] sm:$0xf] }
 0x1bd   : > { %v6813_v22 = vadd.f32 %v2721_v29, %v2673_v52  ;;  %v2627_v18 = vadd.f32 %v2626_v35, %v2578_v38  ;;  %2772 = vmatmul.bf16.gmra.mxu0 %v6808_v47  ;;  %v4290_v56 = vor.u32 %v5158_v34, %v4287_v37  ;;  %v5174_v38 = vld [vmem:[%s7762_s1 + $0x1c4] sm:$0xf]  ;;  %v4351_v35 = vld [vmem:[%s7762_s1 + $0x1c8] sm:$0xf0]  ;;  %v5047_v34 = vld [vmem:[%s5598_s5 + $0x144] sm:$0xf0] }
 0x1be   : > { %4988 = vmatmul.msk.bf16.gmra.mxu1 %vm2146_vm0, %v6810_v60  ;;  %3056 = vmatpush.bf16.msra.mxu2 %v4418_v3  ;;  %v4354_v36 = vor.u32 %v5174_v38, %v4351_v35  ;;  %v5040_v3 = vld [vmem:[%s5598_s5 + $0x114] sm:$0xf]  ;;  %v3839_v37 = vld [vmem:[%s5598_s5 + $0x148] sm:$0xf0] }
 0x1bf   : > { %2870 = vmatmul.bf16.gmra.mxu2 %v5682_v24  ;;  %v5206_v24 = vld [vmem:[%s7762_s1 + $0x2c4] sm:$0xf]  ;;  %2958 = vmatpush.bf16.msra.mxu0 %v4290_v56  ;;  %v5156_v38 = vld [vmem:[%s7762_s1 + $0x134] sm:$0xf] }
 0x1c0   : > { %2919 = vmatmul.bf16.gmra.mxu3 %v5684_v25  ;;  %v4479_v25 = vld [vmem:[%s7762_s1 + $0x2c8] sm:$0xf0]  ;;  %3007 = vmatpush.bf16.msra.mxu1 %v4354_v36 }
 0x1c1   : > { %v4482_v10 = vor.u32 %v5206_v24, %v4479_v25  ;;  %v6851_v24 = vor.u32 %v5047_v34, %v3837_v61 }
 0x1c2   : > { %v2675_v33 = vpop.f32.mrf.mxu2  ;;  %v2579_v19 = vpop.f32.mrf.mxu0 }
 0x1c3   : > { %v2676_v48 = vadd.f32 %v2675_v33, %v2627_v18  ;;  %v2724_v46 = vpop.f32.mrf.mxu3  ;;  %v2580_v52 = vadd.f32 %v2579_v19, %v6490_v5  ;;  %v2628_v29 = vpop.f32.mrf.mxu1  ;;  %3105 = vmatpush.bf16.msra.mxu3 %v4482_v10  ;;  %v6853_v10 = vor.u32 %v5040_v3, %v3839_v37 }
 0x1c5   : > { %v6839_v42 = vadd.f32 %v2724_v46, %v2676_v48  ;;  %v2629_v18 = vadd.f32 %v2628_v29, %v2580_v52  ;;  %v5188_v29 = vld [vmem:[%s7762_s1 + $0x234] sm:$0xf] }
 0x1ca   : > { %v2677_v5 = vpop.f32.mrf.mxu2  ;;  %v2582_v56 = vpop.f32.mrf.mxu0 }
 0x1cb   : > { %v2678_v25 = vadd.f32 %v2677_v5, %v2629_v18  ;;  %v2726_v33 = vpop.f32.mrf.mxu3  ;;  %v2583_v48 = vadd.f32 %v2582_v56, %v6515_v0  ;;  %v2631_v46 = vpop.f32.mrf.mxu1  ;;  %v4407_v0 = vld [vmem:[%s7762_s1 + $0x238] sm:$0xf0] }
 0x1cc   : > { %v4410_v35 = vor.u32 %v5188_v29, %v4407_v0  ;;  %v4279_v18 = vld [vmem:[%s7762_s1 + $0x138] sm:$0xf0]  ;;  %v3893_v0 = vld [vmem:[%s5598_s5 + $0x180] sm:$0xf] }
 0x1cd   : > { %v6856_v19 = vadd.f32 %v2726_v33, %v2678_v25  ;;  %v2632_v52 = vadd.f32 %v2631_v46, %v2583_v48  ;;  %2777 = vmatmul.bf16.gmra.mxu0 %v6851_v24  ;;  %v4282_v61 = vor.u32 %v5156_v38, %v4279_v18  ;;  %v5172_v48 = vld [vmem:[%s7762_s1 + $0x1b4] sm:$0xf]  ;;  %v4343_v46 = vld [vmem:[%s7762_s1 + $0x1b8] sm:$0xf0]  ;;  %v5061_v38 = vld [vmem:[%s5598_s5 + $0x1b4] sm:$0xf0] }
 0x1ce   : > { %4989 = vmatmul.msk.bf16.gmra.mxu1 %vm2146_vm0, %v6853_v10  ;;  %3057 = vmatpush.bf16.msra.mxu2 %v4410_v35  ;;  %v4346_v29 = vor.u32 %v5172_v48, %v4343_v46  ;;  %v5054_v35 = vld [vmem:[%s5598_s5 + $0x184] sm:$0xf]  ;;  %v3895_v18 = vld [vmem:[%s5598_s5 + $0x1b8] sm:$0xf0] }
 0x1cf   : > { %2875 = vmatmul.bf16.gmra.mxu2 %v5726_v49  ;;  %v5204_v49 = vld [vmem:[%s7762_s1 + $0x2b4] sm:$0xf]  ;;  %2959 = vmatpush.bf16.msra.mxu0 %v4282_v61  ;;  %v5154_v48 = vld [vmem:[%s7762_s1 + $0x124] sm:$0xf] }
 0x1d0   : > { %2924 = vmatmul.bf16.gmra.mxu3 %v5728_v50  ;;  %v4471_v50 = vld [vmem:[%s7762_s1 + $0x2b8] sm:$0xf0]  ;;  %3008 = vmatpush.bf16.msra.mxu1 %v4346_v29 }
 0x1d1   : > { %v4474_v34 = vor.u32 %v5204_v49, %v4471_v50  ;;  %v6894_v49 = vor.u32 %v5061_v38, %v3893_v0 }
 0x1d2   : > { %v2680_v36 = vpop.f32.mrf.mxu2  ;;  %v2584_v5 = vpop.f32.mrf.mxu0 }
 0x1d3   : > { %v2681_v3 = vadd.f32 %v2680_v36, %v2632_v52  ;;  %v2729_v37 = vpop.f32.mrf.mxu3  ;;  %v2585_v25 = vadd.f32 %v2584_v5, %v6540_v55  ;;  %v2633_v33 = vpop.f32.mrf.mxu1  ;;  %3106 = vmatpush.bf16.msra.mxu3 %v4474_v34  ;;  %v6896_v34 = vor.u32 %v5054_v35, %v3895_v18 }
 0x1d5   : > { %v6882_v56 = vadd.f32 %v2729_v37, %v2681_v3  ;;  %v2634_v52 = vadd.f32 %v2633_v33, %v2585_v25  ;;  %v5186_v33 = vld [vmem:[%s7762_s1 + $0x224] sm:$0xf] }
 0x1da   : > { %v2682_v55 = vpop.f32.mrf.mxu2  ;;  %v2587_v61 = vpop.f32.mrf.mxu0 }
 0x1db   : > { %v2683_v50 = vadd.f32 %v2682_v55, %v2634_v52  ;;  %v2731_v36 = vpop.f32.mrf.mxu3  ;;  %v2588_v3 = vadd.f32 %v2587_v61, %v6565_v43  ;;  %v2636_v37 = vpop.f32.mrf.mxu1  ;;  %v4399_v43 = vld [vmem:[%s7762_s1 + $0x228] sm:$0xf0] }
 0x1dc   : > { %v4402_v46 = vor.u32 %v5186_v33, %v4399_v43  ;;  %v4271_v52 = vld [vmem:[%s7762_s1 + $0x128] sm:$0xf0]  ;;  %v3949_v43 = vld [vmem:[%s5598_s5 + $0x1f0] sm:$0xf] }
 0x1dd   : > { %v6899_v5 = vadd.f32 %v2731_v36, %v2683_v50  ;;  %v2637_v25 = vadd.f32 %v2636_v37, %v2588_v3  ;;  %2782 = vmatmul.bf16.gmra.mxu0 %v6894_v49  ;;  %v4274_v0 = vor.u32 %v5154_v48, %v4271_v52  ;;  %v5170_v3 = vld [vmem:[%s7762_s1 + $0x1a4] sm:$0xf]  ;;  %v4335_v37 = vld [vmem:[%s7762_s1 + $0x1a8] sm:$0xf0]  ;;  %v5075_v48 = vld [vmem:[%s5598_s5 + $0x224] sm:$0xf0] }
 0x1de   : > { %4990 = vmatmul.msk.bf16.gmra.mxu1 %vm2146_vm0, %v6896_v34  ;;  %3058 = vmatpush.bf16.msra.mxu2 %v4402_v46  ;;  %v4338_v33 = vor.u32 %v5170_v3, %v4335_v37  ;;  %v5068_v46 = vld [vmem:[%s5598_s5 + $0x1f4] sm:$0xf]  ;;  %v3951_v52 = vld [vmem:[%s5598_s5 + $0x228] sm:$0xf0] }
 0x1df   : > { %2880 = vmatmul.bf16.gmra.mxu2 %v5770_v12  ;;  %v5202_v12 = vld [vmem:[%s7762_s1 + $0x2a4] sm:$0xf]  ;;  %2960 = vmatpush.bf16.msra.mxu0 %v4274_v0  ;;  %v5152_v3 = vld [vmem:[%s7762_s1 + $0x114] sm:$0xf] }
 0x1e0   : > { %2929 = vmatmul.bf16.gmra.mxu3 %v5772_v13  ;;  %v4463_v13 = vld [vmem:[%s7762_s1 + $0x2a8] sm:$0xf0]  ;;  %3009 = vmatpush.bf16.msra.mxu1 %v4338_v33 }
 0x1e1   : > { %v4466_v38 = vor.u32 %v5202_v12, %v4463_v13  ;;  %v6937_v12 = vor.u32 %v5075_v48, %v3949_v43 }
 0x1e2   : > { %v2685_v29 = vpop.f32.mrf.mxu2  ;;  %v2589_v55 = vpop.f32.mrf.mxu0 }
 0x1e3   : > { %v2686_v35 = vadd.f32 %v2685_v29, %v2637_v25  ;;  %v2734_v18 = vpop.f32.mrf.mxu3  ;;  %v2590_v50 = vadd.f32 %v2589_v55, %v6584_v62  ;;  %v2638_v36 = vpop.f32.mrf.mxu1  ;;  %3107 = vmatpush.bf16.msra.mxu3 %v4466_v38  ;;  %v6939_v38 = vor.u32 %v5068_v46, %v3951_v52 }
 0x1e5   : > { %v6925_v61 = vadd.f32 %v2734_v18, %v2686_v35  ;;  %v2639_v25 = vadd.f32 %v2638_v36, %v2590_v50  ;;  %v5184_v36 = vld [vmem:[%s7762_s1 + $0x214] sm:$0xf] }
 0x1ea   : > { %v2687_v62 = vpop.f32.mrf.mxu2  ;;  %v2592_v0 = vpop.f32.mrf.mxu0 }
 0x1eb   : > { %v2688_v13 = vadd.f32 %v2687_v62, %v2639_v25  ;;  %v2736_v29 = vpop.f32.mrf.mxu3  ;;  %v2593_v35 = vadd.f32 %v2592_v0, %v6609_v7  ;;  %v2641_v18 = vpop.f32.mrf.mxu1  ;;  %v4391_v7 = vld [vmem:[%s7762_s1 + $0x218] sm:$0xf0] }
 0x1ec   : > { %v4394_v37 = vor.u32 %v5184_v36, %v4391_v7  ;;  %v4263_v25 = vld [vmem:[%s7762_s1 + $0x118] sm:$0xf0]  ;;  %v4005_v7 = vld [vmem:[%s5598_s5 + $0x260] sm:$0xf] }
 0x1ed   : > { %v6942_v55 = vadd.f32 %v2736_v29, %v2688_v13  ;;  %v2642_v50 = vadd.f32 %v2641_v18, %v2593_v35  ;;  %2787 = vmatmul.bf16.gmra.mxu0 %v6937_v12  ;;  %v4266_v43 = vor.u32 %v5152_v3, %v4263_v25  ;;  %v5168_v35 = vld [vmem:[%s7762_s1 + $0x194] sm:$0xf]  ;;  %v4327_v18 = vld [vmem:[%s7762_s1 + $0x198] sm:$0xf0]  ;;  %v5089_v3 = vld [vmem:[%s5598_s5 + $0x294] sm:$0xf0] }
 0x1ee   : > { %4991 = vmatmul.msk.bf16.gmra.mxu1 %vm2146_vm0, %v6939_v38  ;;  %3059 = vmatpush.bf16.msra.mxu2 %v4394_v37  ;;  %v4330_v36 = vor.u32 %v5168_v35, %v4327_v18  ;;  %v5082_v37 = vld [vmem:[%s5598_s5 + $0x264] sm:$0xf]  ;;  %v4007_v25 = vld [vmem:[%s5598_s5 + $0x298] sm:$0xf0] }
 0x1ef   : > { %2885 = vmatmul.bf16.gmra.mxu2 %v5814_v40  ;;  %v5200_v40 = vld [vmem:[%s7762_s1 + $0x294] sm:$0xf]  ;;  %2961 = vmatpush.bf16.msra.mxu0 %v4266_v43  ;;  %v5150_v35 = vld [vmem:[%s7762_s1 + $0x104] sm:$0xf] }
 0x1f0   : > { %2934 = vmatmul.bf16.gmra.mxu3 %v5816_v41  ;;  %v4455_v41 = vld [vmem:[%s7762_s1 + $0x298] sm:$0xf0]  ;;  %3010 = vmatpush.bf16.msra.mxu1 %v4330_v36 }
 0x1f1   : > { %v4458_v48 = vor.u32 %v5200_v40, %v4455_v41  ;;  %v6980_v40 = vor.u32 %v5089_v3, %v4005_v7 }
 0x1f2   : > { %v2690_v33 = vpop.f32.mrf.mxu2  ;;  %v2594_v62 = vpop.f32.mrf.mxu0 }
 0x1f3   : > { %v2691_v46 = vadd.f32 %v2690_v33, %v2642_v50  ;;  %v2739_v52 = vpop.f32.mrf.mxu3  ;;  %v2595_v13 = vadd.f32 %v2594_v62, %v6634_v31  ;;  %v2643_v29 = vpop.f32.mrf.mxu1  ;;  %3108 = vmatpush.bf16.msra.mxu3 %v4458_v48  ;;  %v6982_v48 = vor.u32 %v5082_v37, %v4007_v25 }
 0x1f5   : > { %v6968_v0 = vadd.f32 %v2739_v52, %v2691_v46  ;;  %v2644_v50 = vadd.f32 %v2643_v29, %v2595_v13  ;;  %v5182_v29 = vld [vmem:[%s7762_s1 + $0x204] sm:$0xf] }
 0x1fa   : > { %v2692_v31 = vpop.f32.mrf.mxu2  ;;  %v2597_v43 = vpop.f32.mrf.mxu0 }
 0x1fb   : > { %v2693_v41 = vadd.f32 %v2692_v31, %v2644_v50  ;;  %v2741_v33 = vpop.f32.mrf.mxu3  ;;  %v2598_v46 = vadd.f32 %v2597_v43, %v6659_v6  ;;  %v2646_v52 = vpop.f32.mrf.mxu1  ;;  %v4383_v6 = vld [vmem:[%s7762_s1 + $0x208] sm:$0xf0] }
 0x1fc   : > { %v4386_v18 = vor.u32 %v5182_v29, %v4383_v6  ;;  %v4255_v50 = vld [vmem:[%s7762_s1 + $0x108] sm:$0xf0]  ;;  %v4061_v6 = vld [vmem:[%s5598_s5 + $0x2d0] sm:$0xf] }
 0x1fd   : > { %v6985_v62 = vadd.f32 %v2741_v33, %v2693_v41  ;;  %v2647_v13 = vadd.f32 %v2646_v52, %v2598_v46  ;;  %2792 = vmatmul.bf16.gmra.mxu0 %v6980_v40  ;;  %v4258_v7 = vor.u32 %v5150_v35, %v4255_v50  ;;  %v5166_v46 = vld [vmem:[%s7762_s1 + $0x184] sm:$0xf]  ;;  %v4319_v52 = vld [vmem:[%s7762_s1 + $0x188] sm:$0xf0]  ;;  %v5103_v35 = vld [vmem:[%s5598_s5 + $0x304] sm:$0xf0] }
 0x1fe   : > { %4992 = vmatmul.msk.bf16.gmra.mxu1 %vm2146_vm0, %v6982_v48  ;;  %3060 = vmatpush.bf16.msra.mxu2 %v4386_v18  ;;  %v4322_v29 = vor.u32 %v5166_v46, %v4319_v52  ;;  %v5096_v18 = vld [vmem:[%s5598_s5 + $0x2d4] sm:$0xf]  ;;  %v4063_v50 = vld [vmem:[%s5598_s5 + $0x308] sm:$0xf0] }
 0x1ff   : > { %2890 = vmatmul.bf16.gmra.mxu2 %v5858_v8  ;;  %v5198_v8 = vld [vmem:[%s7762_s1 + $0x284] sm:$0xf]  ;;  %2962 = vmatpush.bf16.msra.mxu0 %v4258_v7  ;;  %v5260_v46 = vld [vmem:[%s7762_s1 + $0x474] sm:$0xf] }
 0x200   : > { %2939 = vmatmul.bf16.gmra.mxu3 %v5860_v9  ;;  %v4447_v9 = vld [vmem:[%s7762_s1 + $0x288] sm:$0xf0]  ;;  %3011 = vmatpush.bf16.msra.mxu1 %v4322_v29  ;;  %v5228_v52 = vld [vmem:[%s7762_s1 + $0x374] sm:$0xf] }
 0x201   : > { %v4450_v3 = vor.u32 %v5198_v8, %v4447_v9  ;;  %v7023_v8 = vor.u32 %v5103_v35, %v4061_v6 }
 0x202   : > { %v2695_v36 = vpop.f32.mrf.mxu2  ;;  %v2599_v31 = vpop.f32.mrf.mxu0 }
 0x203   : > { %v2696_v37 = vadd.f32 %v2695_v36, %v2647_v13  ;;  %v2744_v25 = vpop.f32.mrf.mxu3  ;;  %v2600_v41 = vadd.f32 %v2599_v31, %v6678_v11  ;;  %v2648_v33 = vpop.f32.mrf.mxu1  ;;  %3109 = vmatpush.bf16.msra.mxu3 %v4450_v3  ;;  %v7025_v3 = vor.u32 %v5096_v18, %v4063_v50  ;;  %v4759_v18 = vld [vmem:[%s7762_s1 + $0x4f8] sm:$0xf0] }
 0x205   : > { %v7011_v43 = vadd.f32 %v2744_v25, %v2696_v37  ;;  %v2649_v13 = vadd.f32 %v2648_v33, %v2600_v41  ;;  %7898 = vst [vmem:[#allocation68_spill] sm:$0xff] %v7025_v3 }
 0x20a   : > { %v2697_v11 = vpop.f32.mrf.mxu2  ;;  %v2602_v7 = vpop.f32.mrf.mxu0 }
 0x20b   : > { %v2698_v9 = vadd.f32 %v2697_v11, %v2649_v13  ;;  %v2746_v36 = vpop.f32.mrf.mxu3  ;;  %v2603_v37 = vadd.f32 %v2602_v7, %v6703_v58  ;;  %v2651_v25 = vpop.f32.mrf.mxu1  ;;  %v4695_v58 = vld [vmem:[%s7762_s1 + $0x478] sm:$0xf0] }
 0x20c   : > { %v4698_v35 = vor.u32 %v5260_v46, %v4695_v58  ;;  %v4117_v46 = vld [vmem:[%s5598_s5 + $0x340] sm:$0xf]  ;;  %v5110_v58 = vld [vmem:[%s5598_s5 + $0x344] sm:$0xf] }
 0x20d   : > { %v7028_v31 = vadd.f32 %v2746_v36, %v2698_v9  ;;  %v2652_v41 = vadd.f32 %v2651_v25, %v2603_v37  ;;  %2797 = vmatmul.bf16.gmra.mxu0 %v7023_v8  ;;  %v5244_v37 = vld [vmem:[%s7762_s1 + $0x3f4] sm:$0xf]  ;;  %v4631_v25 = vld [vmem:[%s7762_s1 + $0x3f8] sm:$0xf0] }
 0x20e   : > { %4993 = vmatmul.msk.bf16.gmra.mxu1 %vm2146_vm0, %v7025_v3  ;;  %3249 = vmatpush.bf16.msrb.mxu2 %v4698_v35 }
 0x20f   : > { %2895 = vmatmul.bf16.gmra.mxu2 %v5902_v44  ;;  %v4567_v44 = vld [vmem:[%s7762_s1 + $0x378] sm:$0xf0] }
 0x210   : > { %2944 = vmatmul.bf16.gmra.mxu3 %v5904_v45  ;;  %v5276_v45 = vld [vmem:[%s7762_s1 + $0x4f4] sm:$0xf]  ;;  %v4570_v9 = vor.u32 %v5228_v52, %v4567_v44  ;;  %v4119_v52 = vld [vmem:[%s5598_s5 + $0x378] sm:$0xf0] }
 0x211   : > { %v4762_v36 = vor.u32 %v5276_v45, %v4759_v18  ;;  %v7068_v45 = vor.u32 %v5110_v58, %v4119_v52 }
 0x212   : > { %v2700_v33 = vpop.f32.mrf.mxu2  ;;  %v2604_v6 = vpop.f32.mrf.mxu0  ;;  %3151 = vmatpush.bf16.msrb.mxu0 %v4570_v9 }
 0x213   : > { %v2701_v13 = vadd.f32 %v2700_v33, %v2652_v41  ;;  %v2749_v29 = vpop.f32.mrf.mxu3  ;;  %v2605_v50 = vadd.f32 %v2604_v6, %v6728_v59  ;;  %v2653_v11 = vpop.f32.mrf.mxu1  ;;  %3298 = vmatpush.bf16.msrb.mxu3 %v4762_v36  ;;  %v4634_v33 = vor.u32 %v5244_v37, %v4631_v25  ;;  %v5117_v59 = vld [vmem:[%s5598_s5 + $0x374] sm:$0xf0]  ;;  %v5258_v36 = vld [vmem:[%s7762_s1 + $0x464] sm:$0xf] }
 0x215   : > { %v7054_v7 = vadd.f32 %v2749_v29, %v2701_v13  ;;  %v2654_v41 = vadd.f32 %v2653_v11, %v2605_v50  ;;  %3200 = vmatpush.bf16.msrb.mxu1 %v4634_v33  ;;  %v7066_v29 = vor.u32 %v5117_v59, %v4117_v46  ;;  %v4751_v46 = vld [vmem:[%s7762_s1 + $0x4e8] sm:$0xf0] }
 0x21a   : > { %v2702_v13 = vpop.f32.mrf.mxu2  ;;  %v2607_v44 = vpop.f32.mrf.mxu0 }
 0x21b   : > { %v2703_v6 = vadd.f32 %v2702_v13, %v2654_v41  ;;  %v2751_v35 = vpop.f32.mrf.mxu3  ;;  %v2608_v18 = vadd.f32 %v2607_v44, %v6753_v15  ;;  %v2656_v3 = vpop.f32.mrf.mxu1  ;;  %v4687_v15 = vld [vmem:[%s7762_s1 + $0x468] sm:$0xf0] }
 0x21c   : > { %v4690_v33 = vor.u32 %v5258_v36, %v4687_v15  ;;  %v4623_v44 = vld [vmem:[%s7762_s1 + $0x3e8] sm:$0xf0] }
 0x21d   : > { %v7071_v50 = vadd.f32 %v2751_v35, %v2703_v6  ;;  %v2657_v11 = vadd.f32 %v2656_v3, %v2608_v18  ;;  %2802 = vmatmul.bf16.gmra.mxu0 %v7066_v29  ;;  %v5226_v3 = vld [vmem:[%s7762_s1 + $0x364] sm:$0xf] }
 0x21e   : > { %4994 = vmatmul.msk.bf16.gmra.mxu1 %vm2146_vm0, %v7068_v45  ;;  %3250 = vmatpush.bf16.msrb.mxu2 %v4690_v33  ;;  %v5242_v35 = vld [vmem:[%s7762_s1 + $0x3e4] sm:$0xf] }
 0x21f   : > { %2900 = vmatmul.bf16.gmra.mxu2 %v5946_v20  ;;  %v4559_v20 = vld [vmem:[%s7762_s1 + $0x368] sm:$0xf0] }
 0x220   : > { %2949 = vmatmul.bf16.gmra.mxu3 %v5948_v21  ;;  %v5274_v21 = vld [vmem:[%s7762_s1 + $0x4e4] sm:$0xf]  ;;  %v4562_v52 = vor.u32 %v5226_v3, %v4559_v20 }
 0x221   : > { %v4754_v13 = vor.u32 %v5274_v21, %v4751_v46  ;;  %v5256_v21 = vld [vmem:[%s7762_s1 + $0x454] sm:$0xf] }
 0x222   : > { %v2705_v9 = vpop.f32.mrf.mxu2  ;;  %v2609_v41 = vpop.f32.mrf.mxu0  ;;  %3152 = vmatpush.bf16.msrb.mxu0 %v4562_v52 }
 0x223   : > { %v2706_v37 = vadd.f32 %v2705_v9, %v2657_v11  ;;  %v2754_v25 = vpop.f32.mrf.mxu3  ;;  %v2610_v59 = vadd.f32 %v2609_v41, %v6770_v14  ;;  %v2658_v58 = vpop.f32.mrf.mxu1  ;;  %3299 = vmatpush.bf16.msrb.mxu3 %v4754_v13  ;;  %v4626_v11 = vor.u32 %v5242_v35, %v4623_v44  ;;  %v5272_v13 = vld [vmem:[%s7762_s1 + $0x4d4] sm:$0xf]  ;;  %v4743_v35 = vld [vmem:[%s7762_s1 + $0x4d8] sm:$0xf0] }
 0x225   : > { %v7097_v6 = vadd.f32 %v2754_v25, %v2706_v37  ;;  %v2659_v18 = vadd.f32 %v2658_v58, %v2610_v59  ;;  %3201 = vmatpush.bf16.msrb.mxu1 %v4626_v11 }
 0x22a   : > { %v2707_v14 = vpop.f32.mrf.mxu2  ;;  %v2768_v15 = vpop.f32.mrf.mxu0 }
 0x22b   : > { %v2708_v9 = vadd.f32 %v2707_v14, %v2659_v18  ;;  %v2756_v36 = vpop.f32.mrf.mxu3  ;;  %v2769_v3 = vadd.f32 %v2768_v15, %v6796_v63  ;;  %v2817_v37 = vpop.f32.mrf.mxu1  ;;  %v5343_v63 = vld [vmem:[%s7763_s2] sm:$0x3]  ;;  %v4746_v14 = vor.u32 %v5272_v13, %v4743_v35  ;;  %v4615_v15 = vld [vmem:[%s7762_s1 + $0x3d8] sm:$0xf0]  ;;  %v5270_v35 = vld [vmem:[%s7762_s1 + $0x4c4] sm:$0xf] }
 0x22c   : > { %v7120_v33 = vperm.slane %v5343_v63, 1 }
 0x22d   : > { %v7107_v25 = vadd.f32 %v2756_v36, %v2708_v9  ;;  %v2818_v41 = vadd.f32 %v2817_v37, %v2769_v3  ;;  %2963 = vmatmul.bf16.vlgmr.msra.gmra.mxu0 %v5625_v53  ;;  %v5240_v36 = vld [vmem:[%s7762_s1 + $0x3d4] sm:$0xf]  ;;  %3300 = vmatpush.bf16.msrb.mxu3 %v4746_v14  ;;  %v4735_v14 = vld [vmem:[%s7762_s1 + $0x4c8] sm:$0xf0] }
 0x22e   : > { %3012 = vmatmul.bf16.vlgmr.msra.gmra.mxu1 %v5632_v57  ;;  %v4679_v57 = vld [vmem:[%s7762_s1 + $0x458] sm:$0xf0]  ;;  %v4618_v37 = vor.u32 %v5240_v36, %v4615_v15  ;;  %v4738_v15 = vor.u32 %v5270_v35, %v4735_v14  ;;  %v5236_v14 = vld [vmem:[%s7762_s1 + $0x3b4] sm:$0xf] }
 0x22f   : > { %3061 = vmatmul.bf16.vlgmr.msra.gmra.mxu2 %v5995_v2  ;;  %v3543_v20 = vmax.f32 %v2818_v41, 0.0  ;;  %v5224_v2 = vld [vmem:[%s7762_s1 + $0x354] sm:$0xf]  ;;  %v4682_v52 = vor.u32 %v5256_v21, %v4679_v57 }
 0x230   : > { %3110 = vmatmul.bf16.vlgmr.msra.gmra.mxu3 %v5997_v4  ;;  %v4551_v4 = vld [vmem:[%s7762_s1 + $0x358] sm:$0xf0]  ;;  %3202 = vmatpush.bf16.msrb.mxu1 %v4618_v37  ;;  %v4607_v37 = vld [vmem:[%s7762_s1 + $0x3c8] sm:$0xf0] }
 0x231   : > { %3575 = vst [vmem:[%s7113_s25] sm:$0xff] %v3543_v20  ;;  %v4554_v11 = vor.u32 %v5224_v2, %v4551_v4  ;;  %3251 = vmatpush.bf16.msrb.mxu2 %v4682_v52  ;;  %v5254_v52 = vld [vmem:[%s7762_s1 + $0x444] sm:$0xf]  ;;  %3301 = vmatpush.bf16.msrb.mxu3 %v4738_v15  ;;  %v4599_v15 = vld [vmem:[%s7762_s1 + $0x3b8] sm:$0xf0] }
 0x232   : > { %v2866_v53 = vpop.f32.mrf.mxu2  ;;  %v2770_v58 = vpop.f32.mrf.mxu0 }
 0x233   : > { %v2867_v46 = vadd.f32 %v2866_v53, %v7120_v33  ;;  %v2915_v59 = vpop.f32.mrf.mxu3  ;;  %v2771_v44 = vadd.f32 %v2770_v58, %v6813_v22  ;;  %v2819_v18 = vpop.f32.mrf.mxu1  ;;  %3153 = vmatpush.bf16.msrb.mxu0 %v4554_v11 }
 0x235   : > { %v7144_v9 = vadd.f32 %v2915_v59, %v2867_v46  ;;  %v2820_v3 = vadd.f32 %v2819_v18, %v2771_v44 }
 0x237   : > { %v3545_v41 = vmax.f32 %v2820_v3, 0.0  ;;  %v5238_v3 = vld [vmem:[%s7762_s1 + $0x3c4] sm:$0xf] }
 0x239   : > { %3577 = vst [vmem:[%s7113_s25 + $0x10] sm:$0xff] %v3545_v41 }
 0x23a   : > { %v2868_v22 = vpop.f32.mrf.mxu2  ;;  %v2773_v53 = vpop.f32.mrf.mxu0 }
 0x23b   : > { %v2869_v63 = vadd.f32 %v2868_v22, %v7120_v33  ;;  %v2917_v20 = vpop.f32.mrf.mxu3  ;;  %v2774_v21 = vadd.f32 %v2773_v53, %v6839_v42  ;;  %v2822_v57 = vpop.f32.mrf.mxu1  ;;  %v4671_v42 = vld [vmem:[%s7762_s1 + $0x448] sm:$0xf0] }
 0x23d   : > { %v7155_v2 = vadd.f32 %v2917_v20, %v2869_v63  ;;  %v2823_v46 = vadd.f32 %v2822_v57, %v2774_v21  ;;  %2968 = vmatmul.bf16.gmra.mxu0 %v5686_v26 }
 0x23e   : > { %3017 = vmatmul.bf16.gmra.mxu1 %v5688_v27  ;;  %v4674_v27 = vor.u32 %v5254_v52, %v4671_v42 }
 0x23f   : > { %3066 = vmatmul.bf16.gmra.mxu2 %v6043_v28  ;;  %v3547_v59 = vmax.f32 %v2823_v46, 0.0  ;;  %v5222_v28 = vld [vmem:[%s7762_s1 + $0x344] sm:$0xf] }
 0x240   : > { %3115 = vmatmul.bf16.gmra.mxu3 %v6045_v32  ;;  %v4543_v32 = vld [vmem:[%s7762_s1 + $0x348] sm:$0xf0]  ;;  %3252 = vmatpush.bf16.msrb.mxu2 %v4674_v27  ;;  %v5268_v27 = vld [vmem:[%s7762_s1 + $0x4b4] sm:$0xf] }
 0x241   : > { %3579 = vst [vmem:[%s7113_s25 + $0x20] sm:$0xff] %v3547_v59  ;;  %v4546_v11 = vor.u32 %v5222_v28, %v4543_v32 }
 0x242   : > { %v2871_v58 = vpop.f32.mrf.mxu2  ;;  %v2775_v13 = vpop.f32.mrf.mxu0 }
 0x243   : > { %v2872_v4 = vadd.f32 %v2871_v58, %v7120_v33  ;;  %v2920_v26 = vpop.f32.mrf.mxu3  ;;  %v2776_v44 = vadd.f32 %v2775_v13, %v6856_v19  ;;  %v2824_v18 = vpop.f32.mrf.mxu1  ;;  %3154 = vmatpush.bf16.msrb.mxu0 %v4546_v11  ;;  %v4610_v19 = vor.u32 %v5238_v3, %v4607_v37 }
 0x245   : > { %v7182_v36 = vadd.f32 %v2920_v26, %v2872_v4  ;;  %v2825_v41 = vadd.f32 %v2824_v18, %v2776_v44  ;;  %3203 = vmatpush.bf16.msrb.mxu1 %v4610_v19  ;;  %v5252_v4 = vld [vmem:[%s7762_s1 + $0x434] sm:$0xf]  ;;  %v4727_v44 = vld [vmem:[%s7762_s1 + $0x4b8] sm:$0xf0] }
 0x246   : > { %v4730_v11 = vor.u32 %v5268_v27, %v4727_v44  ;;  %v4527_v27 = vld [vmem:[%s7762_s1 + $0x328] sm:$0xf0] }
 0x247   : > { %v3549_v22 = vmax.f32 %v2825_v41, 0.0 }
 0x248   : > { %3302 = vmatpush.bf16.msrb.mxu3 %v4730_v11  ;;  %v4719_v11 = vld [vmem:[%s7762_s1 + $0x4a8] sm:$0xf0] }
 0x249   : > { %3581 = vst [vmem:[%s7113_s25 + $0x30] sm:$0xff] %v3549_v22 }
 0x24a   : > { %v2873_v63 = vpop.f32.mrf.mxu2  ;;  %v2778_v21 = vpop.f32.mrf.mxu0 }
 0x24b   : > { %v2874_v20 = vadd.f32 %v2873_v63, %v7120_v33  ;;  %v2922_v53 = vpop.f32.mrf.mxu3  ;;  %v2779_v57 = vadd.f32 %v2778_v21, %v6882_v56  ;;  %v2827_v46 = vpop.f32.mrf.mxu1  ;;  %v4663_v56 = vld [vmem:[%s7762_s1 + $0x438] sm:$0xf0] }
 0x24d   : > { %v7193_v59 = vadd.f32 %v2922_v53, %v2874_v20  ;;  %v2828_v58 = vadd.f32 %v2827_v46, %v2779_v57  ;;  %2973 = vmatmul.bf16.gmra.mxu0 %v5730_v51  ;;  %v7899_v46 = vld [vmem:[#allocation2_spill] sm:$0xff] }
 0x24e   : > { %3022 = vmatmul.bf16.gmra.mxu1 %v5732_v54  ;;  %v4666_v54 = vor.u32 %v5252_v4, %v4663_v56  ;;  %v7902_v4 = vld [vmem:[#allocation19_spill] sm:$0xff] }
 0x24f   : > { %3071 = vmatmul.bf16.gmra.mxu2 %v6093_v1  ;;  %v3551_v52 = vmax.f32 %v2828_v58, 0.0  ;;  %v5220_v1 = vld [vmem:[%s7762_s1 + $0x334] sm:$0xf]  ;;  %v7900_v58 = vld [vmem:[#allocation3_spill] sm:$0xff] }
 0x250   : > { %3120 = vmatmul.bf16.gmra.mxu3 %v6095_v17  ;;  %v4535_v17 = vld [vmem:[%s7762_s1 + $0x338] sm:$0xf0]  ;;  %3253 = vmatpush.bf16.msrb.mxu2 %v4666_v54 }
 0x251   : > { %3583 = vst [vmem:[%s7113_s25 + $0x40] sm:$0xff] %v3551_v52  ;;  %v4538_v35 = vor.u32 %v5220_v1, %v4535_v17  ;;  %v7901_v52 = vld [vmem:[#allocation18_spill] sm:$0xff] }
 0x252   : > { %v2876_v42 = vpop.f32.mrf.mxu2  ;;  %v2780_v13 = vpop.f32.mrf.mxu0  ;;  %v5218_v17 = vld [vmem:[%s7762_s1 + $0x324] sm:$0xf] }
 0x253   : > { %v2877_v26 = vadd.f32 %v2876_v42, %v7120_v33  ;;  %v2925_v51 = vpop.f32.mrf.mxu3  ;;  %v2781_v28 = vadd.f32 %v2780_v13, %v6899_v5  ;;  %v2829_v32 = vpop.f32.mrf.mxu1  ;;  %3155 = vmatpush.bf16.msrb.mxu0 %v4538_v35  ;;  %v4602_v5 = vor.u32 %v5236_v14, %v4599_v15  ;;  %v4530_v44 = vor.u32 %v5218_v17, %v4527_v27  ;;  %v5216_v27 = vld [vmem:[%s7762_s1 + $0x314] sm:$0xf] }
 0x255   : > { %v7220_v18 = vadd.f32 %v2925_v51, %v2877_v26  ;;  %v2830_v3 = vadd.f32 %v2829_v32, %v2781_v28  ;;  %3204 = vmatpush.bf16.msrb.mxu1 %v4602_v5  ;;  %v5250_v26 = vld [vmem:[%s7762_s1 + $0x424] sm:$0xf]  ;;  %v4591_v5 = vld [vmem:[%s7762_s1 + $0x3a8] sm:$0xf0] }
 0x256   : > { %v5266_v28 = vld [vmem:[%s7762_s1 + $0x4a4] sm:$0xf] }
 0x257   : > { %v3553_v37 = vmax.f32 %v2830_v3, 0.0  ;;  %v4722_v15 = vor.u32 %v5266_v28, %v4719_v11  ;;  %v5234_v3 = vld [vmem:[%s7762_s1 + $0x3a4] sm:$0xf]  ;;  %3156 = vmatpush.bf16.msrb.mxu0 %v4530_v44  ;;  %v4519_v28 = vld [vmem:[%s7762_s1 + $0x318] sm:$0xf0] }
 0x258   : > { %v4522_v11 = vor.u32 %v5216_v27, %v4519_v28  ;;  %v5214_v28 = vld [vmem:[%s7762_s1 + $0x304] sm:$0xf] }
 0x259   : > { %3585 = vst [vmem:[%s7113_s25 + $0x50] sm:$0xff] %v3553_v37  ;;  %3303 = vmatpush.bf16.msrb.mxu3 %v4722_v15  ;;  %v4711_v15 = vld [vmem:[%s7762_s1 + $0x498] sm:$0xf0] }
 0x25a   : > { %v2878_v41 = vpop.f32.mrf.mxu2  ;;  %v2783_v63 = vpop.f32.mrf.mxu0 }
 0x25b   : > { %v2879_v19 = vadd.f32 %v2878_v41, %v7120_v33  ;;  %v2927_v22 = vpop.f32.mrf.mxu3  ;;  %v2784_v20 = vadd.f32 %v2783_v63, %v6925_v61  ;;  %v2832_v53 = vpop.f32.mrf.mxu1  ;;  %v4655_v61 = vld [vmem:[%s7762_s1 + $0x428] sm:$0xf0]  ;;  %3157 = vmatpush.bf16.msrb.mxu0 %v4522_v11 }
 0x25c   : > { %v4658_v1 = vor.u32 %v5250_v26, %v4655_v61  ;;  %v7906_v26 = vld [vmem:[#allocation23_spill] sm:$0xff] }
 0x25d   : > { %v7231_v21 = vadd.f32 %v2927_v22, %v2879_v19  ;;  %v2833_v57 = vadd.f32 %v2832_v53, %v2784_v20  ;;  %2978 = vmatmul.bf16.gmra.mxu0 %v7899_v46 }
 0x25e   : > { %3027 = vmatmul.bf16.gmra.mxu1 %v7900_v58  ;;  %3254 = vmatpush.bf16.msrb.mxu2 %v4658_v1 }
 0x25f   : > { %3076 = vmatmul.bf16.gmra.mxu2 %v7901_v52  ;;  %v3555_v42 = vmax.f32 %v2833_v57, 0.0  ;;  %v7903_v52 = vld [vmem:[#allocation4_spill] sm:$0xff] }
 0x260   : > { %3125 = vmatmul.bf16.gmra.mxu3 %v7902_v4  ;;  %v7905_v4 = vld [vmem:[#allocation22_spill] sm:$0xff] }
 0x261   : > { %3587 = vst [vmem:[%s7113_s25 + $0x60] sm:$0xff] %v3555_v42  ;;  %v7904_v42 = vld [vmem:[#allocation5_spill] sm:$0xff] }
 0x262   : > { %v2881_v56 = vpop.f32.mrf.mxu2  ;;  %v2785_v54 = vpop.f32.mrf.mxu0 }
 0x263   : > { %v2882_v51 = vadd.f32 %v2881_v56, %v7120_v33  ;;  %v2930_v13 = vpop.f32.mrf.mxu3  ;;  %v2786_v32 = vadd.f32 %v2785_v54, %v6942_v55  ;;  %v2834_v35 = vpop.f32.mrf.mxu1  ;;  %v4594_v55 = vor.u32 %v5234_v3, %v4591_v5 }
 0x265   : > { %v7258_v14 = vadd.f32 %v2930_v13, %v2882_v51  ;;  %v2835_v37 = vadd.f32 %v2834_v35, %v2786_v32  ;;  %3205 = vmatpush.bf16.msrb.mxu1 %v4594_v55  ;;  %v5248_v51 = vld [vmem:[%s7762_s1 + $0x414] sm:$0xf]  ;;  %v4583_v55 = vld [vmem:[%s7762_s1 + $0x398] sm:$0xf0] }
 0x266   : > { %v5264_v32 = vld [vmem:[%s7762_s1 + $0x494] sm:$0xf] }
 0x267   : > { %v3557_v41 = vmax.f32 %v2835_v37, 0.0  ;;  %v4714_v5 = vor.u32 %v5264_v32, %v4711_v15  ;;  %v5232_v37 = vld [vmem:[%s7762_s1 + $0x394] sm:$0xf]  ;;  %v4511_v32 = vld [vmem:[%s7762_s1 + $0x308] sm:$0xf0] }
 0x268   : > { %v4514_v15 = vor.u32 %v5214_v28, %v4511_v32 }
 0x269   : > { %3589 = vst [vmem:[%s7113_s25 + $0x70] sm:$0xff] %v3557_v41  ;;  %3304 = vmatpush.bf16.msrb.mxu3 %v4714_v5  ;;  %v4703_v5 = vld [vmem:[%s7762_s1 + $0x488] sm:$0xf0] }
 0x26a   : > { %v2883_v19 = vpop.f32.mrf.mxu2  ;;  %v2788_v20 = vpop.f32.mrf.mxu0  ;;  %3158 = vmatpush.bf16.msrb.mxu0 %v4514_v15 }
 0x26b   : > { %v2884_v22 = vadd.f32 %v2883_v19, %v7120_v33  ;;  %v2932_v63 = vpop.f32.mrf.mxu3  ;;  %v2789_v53 = vadd.f32 %v2788_v20, %v6968_v0  ;;  %v2837_v57 = vpop.f32.mrf.mxu1  ;;  %v4647_v0 = vld [vmem:[%s7762_s1 + $0x418] sm:$0xf0] }
 0x26c   : > { %v4650_v17 = vor.u32 %v5248_v51, %v4647_v0  ;;  %v7910_v51 = vld [vmem:[#allocation27_spill] sm:$0xff] }
 0x26d   : > { %v7269_v46 = vadd.f32 %v2932_v63, %v2884_v22  ;;  %v2838_v58 = vadd.f32 %v2837_v57, %v2789_v53  ;;  %2983 = vmatmul.bf16.gmra.mxu0 %v7903_v52 }
 0x26e   : > { %3032 = vmatmul.bf16.gmra.mxu1 %v7904_v42  ;;  %3255 = vmatpush.bf16.msrb.mxu2 %v4650_v17 }
 0x26f   : > { %3081 = vmatmul.bf16.gmra.mxu2 %v7905_v4  ;;  %v3559_v56 = vmax.f32 %v2838_v58, 0.0  ;;  %v7907_v4 = vld [vmem:[#allocation6_spill] sm:$0xff] }
 0x270   : > { %3130 = vmatmul.bf16.gmra.mxu3 %v7906_v26  ;;  %v7909_v26 = vld [vmem:[#allocation26_spill] sm:$0xff] }
 0x271   : > { %3591 = vst [vmem:[%s7113_s25 + $0x80] sm:$0xff] %v3559_v56  ;;  %v7908_v56 = vld [vmem:[#allocation7_spill] sm:$0xff] }
 0x272   : > { %v2886_v61 = vpop.f32.mrf.mxu2  ;;  %v2790_v1 = vpop.f32.mrf.mxu0 }
 0x273   : > { %v2887_v13 = vadd.f32 %v2886_v61, %v7120_v33  ;;  %v2935_v54 = vpop.f32.mrf.mxu3  ;;  %v2791_v35 = vadd.f32 %v2790_v1, %v6985_v62  ;;  %v2839_v44 = vpop.f32.mrf.mxu1  ;;  %v4586_v62 = vor.u32 %v5232_v37, %v4583_v55 }
 0x275   : > { %v7296_v3 = vadd.f32 %v2935_v54, %v2887_v13  ;;  %v2840_v41 = vadd.f32 %v2839_v44, %v2791_v35  ;;  %3206 = vmatpush.bf16.msrb.mxu1 %v4586_v62  ;;  %v5246_v13 = vld [vmem:[%s7762_s1 + $0x404] sm:$0xf]  ;;  %v4575_v62 = vld [vmem:[%s7762_s1 + $0x388] sm:$0xf0] }
 0x276   : > { %v5262_v35 = vld [vmem:[%s7762_s1 + $0x484] sm:$0xf] }
 0x277   : > { %v3561_v19 = vmax.f32 %v2840_v41, 0.0  ;;  %v4706_v55 = vor.u32 %v5262_v35, %v4703_v5  ;;  %v5230_v41 = vld [vmem:[%s7762_s1 + $0x384] sm:$0xf]  ;;  %v4983_v35 = vld [vmem:[%s7762_s1 + $0x6b8] sm:$0xf0] }
 0x279   : > { %3593 = vst [vmem:[%s7113_s25 + $0x90] sm:$0xff] %v3561_v19  ;;  %3305 = vmatpush.bf16.msrb.mxu3 %v4706_v55 }
 0x27a   : > { %v2888_v22 = vpop.f32.mrf.mxu2  ;;  %v2793_v53 = vpop.f32.mrf.mxu0 }
 0x27b   : > { %v2889_v63 = vadd.f32 %v2888_v22, %v7120_v33  ;;  %v2937_v20 = vpop.f32.mrf.mxu3  ;;  %v2794_v57 = vadd.f32 %v2793_v53, %v7011_v43  ;;  %v2842_v58 = vpop.f32.mrf.mxu1  ;;  %v4639_v43 = vld [vmem:[%s7762_s1 + $0x408] sm:$0xf0] }
 0x27c   : > { %v4642_v27 = vor.u32 %v5246_v13, %v4639_v43  ;;  %v7914_v13 = vld [vmem:[#allocation31_spill] sm:$0xff]  ;;  %v5324_v43 = vld [vmem:[%s7762_s1 + $0x674] sm:$0xf] }
 0x27d   : > { %v7307_v52 = vadd.f32 %v2937_v20, %v2889_v63  ;;  %v2843_v42 = vadd.f32 %v2842_v58, %v2794_v57  ;;  %2988 = vmatmul.bf16.gmra.mxu0 %v7907_v4 }
 0x27e   : > { %3037 = vmatmul.bf16.gmra.mxu1 %v7908_v56  ;;  %3256 = vmatpush.bf16.msrb.mxu2 %v4642_v27  ;;  %v5332_v27 = vld [vmem:[%s7762_s1 + $0x6b4] sm:$0xf] }
 0x27f   : > { %3086 = vmatmul.bf16.gmra.mxu2 %v7909_v26  ;;  %v3563_v61 = vmax.f32 %v2843_v42, 0.0  ;;  %v7911_v26 = vld [vmem:[#allocation8_spill] sm:$0xff]  ;;  %v4986_v5 = vor.u32 %v5332_v27, %v4983_v35  ;;  %v4815_v27 = vld [vmem:[%s7762_s1 + $0x568] sm:$0xf0] }
 0x280   : > { %3135 = vmatmul.bf16.gmra.mxu3 %v7910_v51  ;;  %v7913_v51 = vld [vmem:[#allocation30_spill] sm:$0xff] }
 0x281   : > { %3595 = vst [vmem:[%s7113_s25 + $0xa0] sm:$0xff] %v3563_v61  ;;  %v7912_v61 = vld [vmem:[#allocation9_spill] sm:$0xff]  ;;  %3498 = vmatpush.bf16.msra.mxu3 %v4986_v5 }
 0x282   : > { %v2891_v0 = vpop.f32.mrf.mxu2  ;;  %v2795_v17 = vpop.f32.mrf.mxu0 }
 0x283   : > { %v2892_v54 = vadd.f32 %v2891_v0, %v7120_v33  ;;  %v2940_v1 = vpop.f32.mrf.mxu3  ;;  %v2796_v44 = vadd.f32 %v2795_v17, %v7028_v31  ;;  %v2844_v11 = vpop.f32.mrf.mxu1  ;;  %v4578_v31 = vor.u32 %v5230_v41, %v4575_v62  ;;  %v4823_v17 = vld [vmem:[%s7762_s1 + $0x578] sm:$0xf0] }
 0x285   : > { %v7334_v37 = vadd.f32 %v2940_v1, %v2892_v54  ;;  %v2845_v19 = vadd.f32 %v2844_v11, %v2796_v44  ;;  %3207 = vmatpush.bf16.msrb.mxu1 %v4578_v31  ;;  %v5292_v1 = vld [vmem:[%s7762_s1 + $0x574] sm:$0xf]  ;;  %v4887_v31 = vld [vmem:[%s7762_s1 + $0x5f8] sm:$0xf0] }
 0x286   : > { %v4826_v32 = vor.u32 %v5292_v1, %v4823_v17  ;;  %v5290_v17 = vld [vmem:[%s7762_s1 + $0x564] sm:$0xf] }
 0x287   : > { %v3565_v22 = vmax.f32 %v2845_v19, 0.0  ;;  %v5308_v19 = vld [vmem:[%s7762_s1 + $0x5f4] sm:$0xf] }
 0x288   : > { %3347 = vmatpush.bf16.msra.mxu0 %v4826_v32  ;;  %v4818_v32 = vor.u32 %v5290_v17, %v4815_v27 }
 0x289   : > { %3597 = vst [vmem:[%s7113_s25 + $0xb0] sm:$0xff] %v3565_v22 }
 0x28a   : > { %v2893_v63 = vpop.f32.mrf.mxu2  ;;  %v2798_v57 = vpop.f32.mrf.mxu0 }
 0x28b   : > { %v2894_v20 = vadd.f32 %v2893_v63, %v7120_v33  ;;  %v2942_v53 = vpop.f32.mrf.mxu3  ;;  %v2799_v58 = vadd.f32 %v2798_v57, %v7054_v7  ;;  %v2847_v42 = vpop.f32.mrf.mxu1  ;;  %v4951_v7 = vld [vmem:[%s7762_s1 + $0x678] sm:$0xf0]  ;;  %v4890_v63 = vor.u32 %v5308_v19, %v4887_v31  ;;  %v4879_v19 = vld [vmem:[%s7762_s1 + $0x5e8] sm:$0xf0] }
 0x28c   : > { %v4954_v54 = vor.u32 %v5324_v43, %v4951_v7  ;;  %v7918_v7 = vld [vmem:[#allocation35_spill] sm:$0xff]  ;;  %3348 = vmatpush.bf16.msra.mxu0 %v4818_v32 }
 0x28d   : > { %v7345_v4 = vadd.f32 %v2942_v53, %v2894_v20  ;;  %v2848_v56 = vadd.f32 %v2847_v42, %v2799_v58  ;;  %2993 = vmatmul.bf16.gmra.mxu0 %v7911_v26  ;;  %3396 = vmatpush.bf16.msra.mxu1 %v4890_v63 }
 0x28e   : > { %3042 = vmatmul.bf16.gmra.mxu1 %v7912_v61  ;;  %3445 = vmatpush.bf16.msra.mxu2 %v4954_v54  ;;  %v5322_v54 = vld [vmem:[%s7762_s1 + $0x664] sm:$0xf] }
 0x28f   : > { %3091 = vmatmul.bf16.gmra.mxu2 %v7913_v51  ;;  %v3567_v0 = vmax.f32 %v2848_v56, 0.0  ;;  %v7915_v51 = vld [vmem:[#allocation10_spill] sm:$0xff] }
 0x290   : > { %3140 = vmatmul.bf16.gmra.mxu3 %v7914_v13  ;;  %v7917_v13 = vld [vmem:[#allocation34_spill] sm:$0xff] }
 0x291   : > { %3599 = vst [vmem:[%s7113_s25 + $0xc0] sm:$0xff] %v3567_v0  ;;  %v7916_v0 = vld [vmem:[#allocation11_spill] sm:$0xff] }
 0x292   : > { %v2896_v28 = vpop.f32.mrf.mxu2  ;;  %v2800_v15 = vpop.f32.mrf.mxu0 }
 0x293   : > { %v2897_v44 = vadd.f32 %v2896_v28, %v7120_v33  ;;  %v2945_v11 = vpop.f32.mrf.mxu3  ;;  %v2801_v55 = vadd.f32 %v2800_v15, %v7071_v50  ;;  %v2849_v41 = vpop.f32.mrf.mxu1 }
 0x295   : > { %v7372_v62 = vadd.f32 %v2945_v11, %v2897_v44  ;;  %v2850_v22 = vadd.f32 %v2849_v41, %v2801_v55  ;;  %v5306_v41 = vld [vmem:[%s7762_s1 + $0x5e4] sm:$0xf] }
 0x297   : > { %v3569_v20 = vmax.f32 %v2850_v22, 0.0  ;;  %v4882_v22 = vor.u32 %v5306_v41, %v4879_v19  ;;  %v5304_v41 = vld [vmem:[%s7762_s1 + $0x5d4] sm:$0xf]  ;;  %v4871_v19 = vld [vmem:[%s7762_s1 + $0x5d8] sm:$0xf0] }
 0x299   : > { %3601 = vst [vmem:[%s7113_s25 + $0xd0] sm:$0xff] %v3569_v20  ;;  %3397 = vmatpush.bf16.msra.mxu1 %v4882_v22  ;;  %v4874_v22 = vor.u32 %v5304_v41, %v4871_v19 }
 0x29a   : > { %v2898_v53 = vpop.f32.mrf.mxu2  ;;  %v2803_v58 = vpop.f32.mrf.mxu0 }
 0x29b   : > { %v2899_v50 = vadd.f32 %v2898_v53, %v7120_v33  ;;  %v2947_v57 = vpop.f32.mrf.mxu3  ;;  %v2804_v42 = vadd.f32 %v2803_v58, %v7097_v6  ;;  %v2852_v56 = vpop.f32.mrf.mxu1  ;;  %v4943_v6 = vld [vmem:[%s7762_s1 + $0x668] sm:$0xf0] }
 0x29c   : > { %v4946_v1 = vor.u32 %v5322_v54, %v4943_v6  ;;  %v4807_v54 = vld [vmem:[%s7762_s1 + $0x558] sm:$0xf0]  ;;  %v5330_v6 = vld [vmem:[%s7762_s1 + $0x6a4] sm:$0xf] }
 0x29d   : > { %v7383_v26 = vadd.f32 %v2947_v57, %v2899_v50  ;;  %v2853_v61 = vadd.f32 %v2852_v56, %v2804_v42  ;;  %2998 = vmatmul.bf16.gmra.mxu0 %v7915_v51  ;;  %v7920_v51 = vld [vmem:[#allocation13_spill] sm:$0xff]  ;;  %3398 = vmatpush.bf16.msra.mxu1 %v4874_v22 }
 0x29e   : > { %3047 = vmatmul.bf16.gmra.mxu1 %v7916_v0  ;;  %3446 = vmatpush.bf16.msra.mxu2 %v4946_v1  ;;  %v7921_v0 = vld [vmem:[#allocation38_spill] sm:$0xff]  ;;  %v4975_v1 = vld [vmem:[%s7762_s1 + $0x6a8] sm:$0xf0] }
 0x29f   : > { %3096 = vmatmul.bf16.gmra.mxu2 %v7917_v13  ;;  %v3571_v43 = vmax.f32 %v2853_v61, 0.0  ;;  %v7919_v61 = vld [vmem:[#allocation12_spill] sm:$0xff]  ;;  %v7922_v13 = vld [vmem:[#allocation39_spill] sm:$0xff] }
 0x2a0   : > { %3145 = vmatmul.bf16.gmra.mxu3 %v7918_v7 }
 0x2a1   : > { %3603 = vst [vmem:[%s7113_s25 + $0xe0] sm:$0xff] %v3571_v43  ;;  %v5288_v43 = vld [vmem:[%s7762_s1 + $0x554] sm:$0xf] }
 0x2a2   : > { %v2901_v28 = vpop.f32.mrf.mxu2  ;;  %v2805_v11 = vpop.f32.mrf.mxu0  ;;  %v4810_v27 = vor.u32 %v5288_v43, %v4807_v54  ;;  %v4799_v43 = vld [vmem:[%s7762_s1 + $0x548] sm:$0xf0] }
 0x2a3   : > { %v2902_v35 = vadd.f32 %v2901_v28, %v7120_v33  ;;  %v2950_v44 = vpop.f32.mrf.mxu3  ;;  %v2806_v15 = vadd.f32 %v2805_v11, %v7107_v25  ;;  %v2854_v5 = vpop.f32.mrf.mxu1  ;;  %v4978_v28 = vor.u32 %v5330_v6, %v4975_v1 }
 0x2a4   : > { %3349 = vmatpush.bf16.msra.mxu0 %v4810_v27 }
 0x2a5   : > { %v7404_v55 = vadd.f32 %v2950_v44, %v2902_v35  ;;  %v2855_v31 = vadd.f32 %v2854_v5, %v2806_v15  ;;  %3499 = vmatpush.bf16.msra.mxu3 %v4978_v28 }
 0x2a7   : > { %v3573_v63 = vmax.f32 %v2855_v31, 0.0 }
 0x2a9   : > { %3605 = vst [vmem:[%s7113_s25 + $0xf0] sm:$0xff] %v3573_v63 }
 0x2aa   : > { %v2903_v20 = vpop.f32.mrf.mxu2  ;;  %v2964_v50 = vpop.f32.mrf.mxu0 }
 0x2ab   : > { %v2904_v25 = vadd.f32 %v2903_v20, %v7120_v33  ;;  %v2952_v53 = vpop.f32.mrf.mxu3  ;;  %v2965_v57 = vadd.f32 %v2964_v50, %v7144_v9  ;;  %v3013_v58 = vpop.f32.mrf.mxu1  ;;  %v5320_v33 = vld [vmem:[%s7762_s1 + $0x654] sm:$0xf]  ;;  %v4935_v9 = vld [vmem:[%s7762_s1 + $0x658] sm:$0xf0] }
 0x2ac   : > { %v4938_v7 = vor.u32 %v5320_v33, %v4935_v9  ;;  %v5286_v33 = vld [vmem:[%s7762_s1 + $0x544] sm:$0xf] }
 0x2ad   : > { %v7415_v42 = vadd.f32 %v2952_v53, %v2904_v25  ;;  %v3014_v56 = vadd.f32 %v3013_v58, %v2965_v57  ;;  %3159 = vmatmul.bf16.vlgmr.msrb.gmra.mxu0 %v7919_v61  ;;  %v7924_v61 = vld [vmem:[#allocation15_spill] sm:$0xff]  ;;  %v4802_v54 = vor.u32 %v5286_v33, %v4799_v43 }
 0x2ae   : > { %3208 = vmatmul.bf16.vlgmr.msrb.gmra.mxu1 %v7920_v51  ;;  %3447 = vmatpush.bf16.msra.mxu2 %v4938_v7  ;;  %v7925_v51 = vld [vmem:[#allocation42_spill] sm:$0xff] }
 0x2af   : > { %3257 = vmatmul.bf16.vlgmr.msrb.gmra.mxu2 %v7921_v0  ;;  %v7926_v0 = vld [vmem:[#allocation43_spill] sm:$0xff]  ;;  %3350 = vmatpush.bf16.msra.mxu0 %v4802_v54 }
 0x2b0   : > { %3306 = vmatmul.bf16.vlgmr.msrb.gmra.mxu3 %v7922_v13  ;;  %v5318_v13 = vld [vmem:[%s7762_s1 + $0x644] sm:$0xf] }
 0x2b2   : > { %v3062_v17 = vpop.f32.mrf.mxu2  ;;  %v2966_v44 = vpop.f32.mrf.mxu0 }
 0x2b3   : > { %v3063_v32 = vadd.f32 %v3062_v17, %v3014_v56  ;;  %v3111_v35 = vpop.f32.mrf.mxu3  ;;  %v2967_v11 = vadd.f32 %v2966_v44, %v7155_v2  ;;  %v3015_v15 = vpop.f32.mrf.mxu1  ;;  %v7923_v56 = vld [vmem:[#allocation14_spill] sm:$0xff]  ;;  %v4863_v44 = vld [vmem:[%s7762_s1 + $0x5c8] sm:$0xf0] }
 0x2b5   : > { %v7440_v5 = vadd.f32 %v3111_v35, %v3063_v32  ;;  %v3016_v31 = vadd.f32 %v3015_v15, %v2967_v11  ;;  %v5302_v35 = vld [vmem:[%s7762_s1 + $0x5c4] sm:$0xf] }
 0x2b6   : > { %v4866_v15 = vor.u32 %v5302_v35, %v4863_v44  ;;  %v4855_v35 = vld [vmem:[%s7762_s1 + $0x5b8] sm:$0xf0] }
 0x2b8   : > { %3399 = vmatpush.bf16.msra.mxu1 %v4866_v15 }
 0x2ba   : > { %v3064_v63 = vpop.f32.mrf.mxu2  ;;  %v2969_v2 = vpop.f32.mrf.mxu0 }
 0x2bb   : > { %v3065_v20 = vadd.f32 %v3064_v63, %v3016_v31  ;;  %v3113_v25 = vpop.f32.mrf.mxu3  ;;  %v2970_v53 = vadd.f32 %v2969_v2, %v7182_v36  ;;  %v3018_v50 = vpop.f32.mrf.mxu1  ;;  %v4927_v36 = vld [vmem:[%s7762_s1 + $0x648] sm:$0xf0]  ;;  %v7927_v2 = vld [vmem:[#allocation16_spill] sm:$0xff] }
 0x2bc   : > { %v4930_v9 = vor.u32 %v5318_v13, %v4927_v36  ;;  %v5328_v13 = vld [vmem:[%s7762_s1 + $0x694] sm:$0xf]  ;;  %v4967_v36 = vld [vmem:[%s7762_s1 + $0x698] sm:$0xf0] }
 0x2bd   : > { %v7449_v57 = vadd.f32 %v3113_v25, %v3065_v20  ;;  %v3019_v58 = vadd.f32 %v3018_v50, %v2970_v53  ;;  %3164 = vmatmul.bf16.gmra.mxu0 %v7923_v56  ;;  %v7928_v53 = vld [vmem:[#allocation17_spill] sm:$0xff]  ;;  %v7929_v50 = vld [vmem:[#allocation46_spill] sm:$0xff]  ;;  %v5316_v56 = vld [vmem:[%s7762_s1 + $0x634] sm:$0xf]  ;;  %v4970_v43 = vor.u32 %v5328_v13, %v4967_v36 }
 0x2be   : > { %3213 = vmatmul.bf16.gmra.mxu1 %v7924_v61  ;;  %3448 = vmatpush.bf16.msra.mxu2 %v4930_v9  ;;  %v5284_v61 = vld [vmem:[%s7762_s1 + $0x534] sm:$0xf] }
 0x2bf   : > { %3262 = vmatmul.bf16.gmra.mxu2 %v7925_v51  ;;  %3500 = vmatpush.bf16.msra.mxu3 %v4970_v43 }
 0x2c0   : > { %3311 = vmatmul.bf16.gmra.mxu3 %v7926_v0  ;;  %v4791_v0 = vld [vmem:[%s7762_s1 + $0x538] sm:$0xf0] }
 0x2c1   : > { %v4794_v9 = vor.u32 %v5284_v61, %v4791_v0  ;;  %v4783_v61 = vld [vmem:[%s7762_s1 + $0x528] sm:$0xf0] }
 0x2c2   : > { %v3067_v7 = vpop.f32.mrf.mxu2  ;;  %v2971_v17 = vpop.f32.mrf.mxu0 }
 0x2c3   : > { %v3068_v6 = vadd.f32 %v3067_v7, %v3019_v58  ;;  %v3116_v1 = vpop.f32.mrf.mxu3  ;;  %v2972_v27 = vadd.f32 %v2971_v17, %v7193_v59  ;;  %v3020_v28 = vpop.f32.mrf.mxu1  ;;  %v7930_v58 = vld [vmem:[#allocation47_spill] sm:$0xff]  ;;  %3351 = vmatpush.bf16.msra.mxu0 %v4794_v9 }
 0x2c5   : > { %v7468_v32 = vadd.f32 %v3116_v1, %v3068_v6  ;;  %v3021_v11 = vadd.f32 %v3020_v28, %v2972_v27  ;;  %v5300_v28 = vld [vmem:[%s7762_s1 + $0x5b4] sm:$0xf] }
 0x2ca   : > { %v3069_v41 = vpop.f32.mrf.mxu2  ;;  %v2974_v22 = vpop.f32.mrf.mxu0 }
 0x2cb   : > { %v3070_v19 = vadd.f32 %v3069_v41, %v3021_v11  ;;  %v3118_v31 = vpop.f32.mrf.mxu3  ;;  %v2975_v59 = vadd.f32 %v2974_v22, %v7220_v18  ;;  %v3023_v63 = vpop.f32.mrf.mxu1  ;;  %v4919_v18 = vld [vmem:[%s7762_s1 + $0x638] sm:$0xf0]  ;;  %v4858_v11 = vor.u32 %v5300_v28, %v4855_v35 }
 0x2cc   : > { %v4922_v51 = vor.u32 %v5316_v56, %v4919_v18  ;;  %v5282_v56 = vld [vmem:[%s7762_s1 + $0x524] sm:$0xf] }
 0x2cd   : > { %v7477_v20 = vadd.f32 %v3118_v31, %v3070_v19  ;;  %v3024_v25 = vadd.f32 %v3023_v63, %v2975_v59  ;;  %3169 = vmatmul.bf16.gmra.mxu0 %v7927_v2  ;;  %3400 = vmatpush.bf16.msra.mxu1 %v4858_v11  ;;  %v7932_v2 = vld [vmem:[#allocation21_spill] sm:$0xff]  ;;  %v4786_v0 = vor.u32 %v5282_v56, %v4783_v61 }
 0x2ce   : > { %3218 = vmatmul.bf16.gmra.mxu1 %v7928_v53  ;;  %3449 = vmatpush.bf16.msra.mxu2 %v4922_v51  ;;  %v7933_v53 = vld [vmem:[#allocation50_spill] sm:$0xff] }
 0x2cf   : > { %3267 = vmatmul.bf16.gmra.mxu2 %v7929_v50  ;;  %v7934_v50 = vld [vmem:[#allocation51_spill] sm:$0xff]  ;;  %3352 = vmatpush.bf16.msra.mxu0 %v4786_v0 }
 0x2d0   : > { %3316 = vmatmul.bf16.gmra.mxu3 %v7930_v58  ;;  %v5314_v58 = vld [vmem:[%s7762_s1 + $0x624] sm:$0xf] }
 0x2d2   : > { %v3072_v33 = vpop.f32.mrf.mxu2  ;;  %v2976_v6 = vpop.f32.mrf.mxu0 }
 0x2d3   : > { %v3073_v7 = vadd.f32 %v3072_v33, %v3024_v25  ;;  %v3121_v54 = vpop.f32.mrf.mxu3  ;;  %v2977_v1 = vadd.f32 %v2976_v6, %v7231_v21  ;;  %v3025_v17 = vpop.f32.mrf.mxu1  ;;  %v7931_v25 = vld [vmem:[#allocation20_spill] sm:$0xff]  ;;  %v4847_v6 = vld [vmem:[%s7762_s1 + $0x5a8] sm:$0xf0] }
 0x2d5   : > { %v7502_v27 = vadd.f32 %v3121_v54, %v3073_v7  ;;  %v3026_v44 = vadd.f32 %v3025_v17, %v2977_v1  ;;  %v5298_v54 = vld [vmem:[%s7762_s1 + $0x5a4] sm:$0xf] }
 0x2d6   : > { %v4850_v17 = vor.u32 %v5298_v54, %v4847_v6  ;;  %v4839_v54 = vld [vmem:[%s7762_s1 + $0x598] sm:$0xf0] }
 0x2d8   : > { %3401 = vmatpush.bf16.msra.mxu1 %v4850_v17 }
 0x2da   : > { %v3074_v15 = vpop.f32.mrf.mxu2  ;;  %v2979_v21 = vpop.f32.mrf.mxu0 }
 0x2db   : > { %v3075_v41 = vadd.f32 %v3074_v15, %v3026_v44  ;;  %v3123_v19 = vpop.f32.mrf.mxu3  ;;  %v2980_v31 = vadd.f32 %v2979_v21, %v7258_v14  ;;  %v3028_v22 = vpop.f32.mrf.mxu1  ;;  %v4911_v14 = vld [vmem:[%s7762_s1 + $0x628] sm:$0xf0]  ;;  %v7935_v21 = vld [vmem:[#allocation24_spill] sm:$0xff] }
 0x2dc   : > { %v4914_v18 = vor.u32 %v5314_v58, %v4911_v14  ;;  %v5326_v58 = vld [vmem:[%s7762_s1 + $0x684] sm:$0xf]  ;;  %v4959_v14 = vld [vmem:[%s7762_s1 + $0x688] sm:$0xf0] }
 0x2dd   : > { %v7511_v59 = vadd.f32 %v3123_v19, %v3075_v41  ;;  %v3029_v63 = vadd.f32 %v3028_v22, %v2980_v31  ;;  %3174 = vmatmul.bf16.gmra.mxu0 %v7931_v25  ;;  %v7936_v31 = vld [vmem:[#allocation25_spill] sm:$0xff]  ;;  %v7937_v22 = vld [vmem:[#allocation54_spill] sm:$0xff]  ;;  %v5312_v25 = vld [vmem:[%s7762_s1 + $0x614] sm:$0xf]  ;;  %v4962_v61 = vor.u32 %v5326_v58, %v4959_v14 }
 0x2de   : > { %3223 = vmatmul.bf16.gmra.mxu1 %v7932_v2  ;;  %3450 = vmatpush.bf16.msra.mxu2 %v4914_v18  ;;  %v5280_v2 = vld [vmem:[%s7762_s1 + $0x514] sm:$0xf] }
 0x2df   : > { %3272 = vmatmul.bf16.gmra.mxu2 %v7933_v53  ;;  %3501 = vmatpush.bf16.msra.mxu3 %v4962_v61 }
 0x2e0   : > { %3321 = vmatmul.bf16.gmra.mxu3 %v7934_v50  ;;  %v4775_v50 = vld [vmem:[%s7762_s1 + $0x518] sm:$0xf0] }
 0x2e1   : > { %v4778_v18 = vor.u32 %v5280_v2, %v4775_v50  ;;  %v4767_v2 = vld [vmem:[%s7762_s1 + $0x508] sm:$0xf0] }
 0x2e2   : > { %v3077_v51 = vpop.f32.mrf.mxu2  ;;  %v2981_v33 = vpop.f32.mrf.mxu0 }
 0x2e3   : > { %v3078_v13 = vadd.f32 %v3077_v51, %v3029_v63  ;;  %v3126_v36 = vpop.f32.mrf.mxu3  ;;  %v2982_v9 = vadd.f32 %v2981_v33, %v7269_v46  ;;  %v3030_v43 = vpop.f32.mrf.mxu1  ;;  %v7938_v63 = vld [vmem:[#allocation55_spill] sm:$0xff]  ;;  %3353 = vmatpush.bf16.msra.mxu0 %v4778_v18 }
 0x2e5   : > { %v7530_v7 = vadd.f32 %v3126_v36, %v3078_v13  ;;  %v3031_v1 = vadd.f32 %v3030_v43, %v2982_v9  ;;  %v5296_v43 = vld [vmem:[%s7762_s1 + $0x594] sm:$0xf] }
 0x2ea   : > { %v3079_v28 = vpop.f32.mrf.mxu2  ;;  %v2984_v11 = vpop.f32.mrf.mxu0 }
 0x2eb   : > { %v3080_v35 = vadd.f32 %v3079_v28, %v3031_v1  ;;  %v3128_v44 = vpop.f32.mrf.mxu3  ;;  %v2985_v46 = vadd.f32 %v2984_v11, %v7296_v3  ;;  %v3033_v15 = vpop.f32.mrf.mxu1  ;;  %v4903_v3 = vld [vmem:[%s7762_s1 + $0x618] sm:$0xf0]  ;;  %v4842_v1 = vor.u32 %v5296_v43, %v4839_v54 }
 0x2ec   : > { %v4906_v53 = vor.u32 %v5312_v25, %v4903_v3  ;;  %v5278_v25 = vld [vmem:[%s7762_s1 + $0x504] sm:$0xf] }
 0x2ed   : > { %v7539_v41 = vadd.f32 %v3128_v44, %v3080_v35  ;;  %v3034_v19 = vadd.f32 %v3033_v15, %v2985_v46  ;;  %3179 = vmatmul.bf16.gmra.mxu0 %v7935_v21  ;;  %3402 = vmatpush.bf16.msra.mxu1 %v4842_v1  ;;  %v7940_v21 = vld [vmem:[#allocation29_spill] sm:$0xff]  ;;  %v4770_v50 = vor.u32 %v5278_v25, %v4767_v2 }
 0x2ee   : > { %3228 = vmatmul.bf16.gmra.mxu1 %v7936_v31  ;;  %3451 = vmatpush.bf16.msra.mxu2 %v4906_v53  ;;  %v7941_v31 = vld [vmem:[#allocation58_spill] sm:$0xff] }
 0x2ef   : > { %3277 = vmatmul.bf16.gmra.mxu2 %v7937_v22  ;;  %v7942_v22 = vld [vmem:[#allocation59_spill] sm:$0xff]  ;;  %3354 = vmatpush.bf16.msra.mxu0 %v4770_v50 }
 0x2f0   : > { %3326 = vmatmul.bf16.gmra.mxu3 %v7938_v63  ;;  %v5310_v63 = vld [vmem:[%s7762_s1 + $0x604] sm:$0xf] }
 0x2f2   : > { %v3082_v56 = vpop.f32.mrf.mxu2  ;;  %v2986_v13 = vpop.f32.mrf.mxu0 }
 0x2f3   : > { %v3083_v51 = vadd.f32 %v3082_v56, %v3034_v19  ;;  %v3131_v0 = vpop.f32.mrf.mxu3  ;;  %v2987_v36 = vadd.f32 %v2986_v13, %v7307_v52  ;;  %v3035_v33 = vpop.f32.mrf.mxu1  ;;  %v7939_v19 = vld [vmem:[#allocation28_spill] sm:$0xff]  ;;  %v4831_v13 = vld [vmem:[%s7762_s1 + $0x588] sm:$0xf0] }
 0x2f5   : > { %v7564_v9 = vadd.f32 %v3131_v0, %v3083_v51  ;;  %v3036_v6 = vadd.f32 %v3035_v33, %v2987_v36  ;;  %v5294_v0 = vld [vmem:[%s7762_s1 + $0x584] sm:$0xf] }
 0x2f6   : > { %v4834_v33 = vor.u32 %v5294_v0, %v4831_v13  ;;  %v7948_v0 = vld [vmem:[#allocation37_spill] sm:$0xff] }
 0x2f8   : > { %3403 = vmatpush.bf16.msra.mxu1 %v4834_v33 }
 0x2fa   : > { %v3084_v17 = vpop.f32.mrf.mxu2  ;;  %v2989_v52 = vpop.f32.mrf.mxu0 }
 0x2fb   : > { %v3085_v28 = vadd.f32 %v3084_v17, %v3036_v6  ;;  %v3133_v35 = vpop.f32.mrf.mxu3  ;;  %v2990_v44 = vadd.f32 %v2989_v52, %v7334_v37  ;;  %v3038_v11 = vpop.f32.mrf.mxu1  ;;  %v4895_v37 = vld [vmem:[%s7762_s1 + $0x608] sm:$0xf0]  ;;  %v7943_v52 = vld [vmem:[#allocation32_spill] sm:$0xff] }
 0x2fc   : > { %v4898_v3 = vor.u32 %v5310_v63, %v4895_v37 }
 0x2fd   : > { %v7573_v46 = vadd.f32 %v3133_v35, %v3085_v28  ;;  %v3039_v15 = vadd.f32 %v3038_v11, %v2990_v44  ;;  %3184 = vmatmul.bf16.gmra.mxu0 %v7939_v19  ;;  %v7944_v44 = vld [vmem:[#allocation33_spill] sm:$0xff]  ;;  %v7945_v11 = vld [vmem:[#allocation62_spill] sm:$0xff] }
 0x2fe   : > { %3233 = vmatmul.bf16.gmra.mxu1 %v7940_v21  ;;  %3452 = vmatpush.bf16.msra.mxu2 %v4898_v3 }
 0x2ff   : > { %3282 = vmatmul.bf16.gmra.mxu2 %v7941_v31 }
 0x300   : > { %3331 = vmatmul.bf16.gmra.mxu3 %v7942_v22 }
 0x302   : > { %v3087_v53 = vpop.f32.mrf.mxu2  ;;  %v2991_v56 = vpop.f32.mrf.mxu0 }
 0x303   : > { %v3088_v58 = vadd.f32 %v3087_v53, %v3039_v15  ;;  %v3136_v14 = vpop.f32.mrf.mxu3  ;;  %v2992_v18 = vadd.f32 %v2991_v56, %v7345_v4  ;;  %v3040_v61 = vpop.f32.mrf.mxu1  ;;  %v7946_v15 = vld [vmem:[#allocation63_spill] sm:$0xff] }
 0x305   : > { %v7592_v51 = vadd.f32 %v3136_v14, %v3088_v58  ;;  %v3041_v36 = vadd.f32 %v3040_v61, %v2992_v18  ;;  %v7947_v61 = vld [vmem:[#allocation36_spill] sm:$0xff] }
 0x30a   : > { %v3089_v43 = vpop.f32.mrf.mxu2  ;;  %v2994_v1 = vpop.f32.mrf.mxu0 }
 0x30b   : > { %v3090_v54 = vadd.f32 %v3089_v43, %v3041_v36  ;;  %v3138_v6 = vpop.f32.mrf.mxu3  ;;  %v2995_v4 = vadd.f32 %v2994_v1, %v7372_v62  ;;  %v3043_v17 = vpop.f32.mrf.mxu1 }
 0x30d   : > { %v7601_v28 = vadd.f32 %v3138_v6, %v3090_v54  ;;  %v3044_v35 = vadd.f32 %v3043_v17, %v2995_v4  ;;  %3189 = vmatmul.bf16.gmra.mxu0 %v7943_v52 }
 0x30e   : > { %3238 = vmatmul.bf16.gmra.mxu1 %v7944_v44 }
 0x30f   : > { %3287 = vmatmul.bf16.gmra.mxu2 %v7945_v11  ;;  %v7949_v11 = vld [vmem:[#allocation40_spill] sm:$0xff] }
 0x310   : > { %3336 = vmatmul.bf16.gmra.mxu3 %v7946_v15  ;;  %v7950_v15 = vld [vmem:[#allocation41_spill] sm:$0xff] }
 0x312   : > { %v3092_v19 = vpop.f32.mrf.mxu2  ;;  %v2996_v22 = vpop.f32.mrf.mxu0 }
 0x313   : > { %v3093_v21 = vadd.f32 %v3092_v19, %v3044_v35  ;;  %v3141_v31 = vpop.f32.mrf.mxu3  ;;  %v2997_v63 = vadd.f32 %v2996_v22, %v7383_v26  ;;  %v3045_v37 = vpop.f32.mrf.mxu1 }
 0x315   : > { %v7608_v62 = vadd.f32 %v3141_v31, %v3093_v21  ;;  %v3046_v25 = vadd.f32 %v3045_v37, %v2997_v63 }
 0x31a   : > { %v3094_v3 = vpop.f32.mrf.mxu2  ;;  %v2999_v50 = vpop.f32.mrf.mxu0 }
 0x31b   : > { %v3095_v2 = vadd.f32 %v3094_v3, %v3046_v25  ;;  %v3143_v53 = vpop.f32.mrf.mxu3  ;;  %v3000_v58 = vadd.f32 %v2999_v50, %v7404_v55  ;;  %v3048_v14 = vpop.f32.mrf.mxu1 }
 0x31d   : > { %v7611_v56 = vadd.f32 %v3143_v53, %v3095_v2  ;;  %v3049_v18 = vadd.f32 %v3048_v14, %v3000_v58  ;;  %3194 = vmatmul.bf16.gmra.mxu0 %v7947_v61  ;;  %v7951_v14 = vld [vmem:[#allocation44_spill] sm:$0xff] }
 0x31e   : > { %3243 = vmatmul.bf16.gmra.mxu1 %v7948_v0 }
 0x31f   : > { %3292 = vmatmul.bf16.gmra.mxu2 %v6719_v30 }
 0x320   : > { %3341 = vmatmul.bf16.gmra.mxu3 %v6721_v23 }
 0x322   : > { %v3097_v26 = vpop.f32.mrf.mxu2  ;;  %v3001_v33 = vpop.f32.mrf.mxu0 }
 0x323   : > { %v3098_v13 = vadd.f32 %v3097_v26, %v3049_v18  ;;  %v3146_v36 = vpop.f32.mrf.mxu3  ;;  %v3002_v43 = vadd.f32 %v3001_v33, %v7415_v42  ;;  %v3050_v54 = vpop.f32.mrf.mxu1  ;;  %v7952_v18 = vld [vmem:[#allocation45_spill] sm:$0xff] }
 0x325   : > { %v7618_v55 = vadd.f32 %v3146_v36, %v3098_v13  ;;  %v3051_v6 = vadd.f32 %v3050_v54, %v3002_v43 }
 0x32a   : > { %v3099_v1 = vpop.f32.mrf.mxu2  ;;  %v3160_v35 = vpop.f32.mrf.mxu0 }
 0x32b   : > { %v3100_v4 = vadd.f32 %v3099_v1, %v3051_v6  ;;  %v3148_v17 = vpop.f32.mrf.mxu3  ;;  %v3161_v52 = vadd.f32 %v3160_v35, %v7440_v5  ;;  %v3209_v44 = vpop.f32.mrf.mxu1  ;;  %v7953_v35 = vld [vmem:[#allocation48_spill] sm:$0xff] }
 0x32d   : > { %v7621_v30 = vadd.f32 %v3148_v17, %v3100_v4  ;;  %v3210_v23 = vadd.f32 %v3209_v44, %v3161_v52  ;;  %3355 = vmatmul.bf16.vlgmr.msra.gmra.mxu0 %v7949_v11  ;;  %v7954_v52 = vld [vmem:[#allocation49_spill] sm:$0xff] }
 0x32e   : > { %3404 = vmatmul.bf16.vlgmr.msra.gmra.mxu1 %v7950_v15 }
 0x32f   : > { %3453 = vmatmul.bf16.vlgmr.msra.gmra.mxu2 %v6765_v16 }
 0x330   : > { %4995 = vmatmul.msk.bf16.vlgmr.msra.gmra.mxu3 %vm2146_vm0, %v6767_v39 }
 0x332   : > { %v3258_v42 = vpop.f32.mrf.mxu2  ;;  %v3162_v31 = vpop.f32.mrf.mxu0 }
 0x333   : > { %v3259_v19 = vadd.f32 %v3258_v42, %v3210_v23  ;;  %v3307_v21 = vpop.f32.mrf.mxu3  ;;  %v3163_v22 = vadd.f32 %v3162_v31, %v7449_v57  ;;  %v3211_v5 = vpop.f32.mrf.mxu1 }
 0x335   : > { %v7629_v63 = vadd.f32 %v3307_v21, %v3259_v19  ;;  %v3212_v37 = vadd.f32 %v3211_v5, %v3163_v22 }
 0x33a   : > { %v3260_v25 = vpop.f32.mrf.mxu2  ;;  %v3165_v53 = vpop.f32.mrf.mxu0 }
 0x33b   : > { %v3261_v3 = vadd.f32 %v3260_v25, %v3212_v37  ;;  %v3309_v2 = vpop.f32.mrf.mxu3  ;;  %v3166_v50 = vadd.f32 %v3165_v53, %v7468_v32  ;;  %v3214_v16 = vpop.f32.mrf.mxu1 }
 0x33d   : > { %v7632_v58 = vadd.f32 %v3309_v2, %v3261_v3  ;;  %v3215_v39 = vadd.f32 %v3214_v16, %v3166_v50  ;;  %3360 = vmatmul.bf16.gmra.mxu0 %v7951_v14  ;;  %v7955_v3 = vld [vmem:[#allocation52_spill] sm:$0xff]  ;;  %v7956_v2 = vld [vmem:[#allocation53_spill] sm:$0xff] }
 0x33e   : > { %3409 = vmatmul.bf16.gmra.mxu1 %v7952_v18 }
 0x33f   : > { %3458 = vmatmul.bf16.gmra.mxu2 %v6808_v47 }
 0x340   : > { %4996 = vmatmul.msk.bf16.gmra.mxu3 %vm2146_vm0, %v6810_v60 }
 0x342   : > { %v3263_v57 = vpop.f32.mrf.mxu2  ;;  %v3167_v26 = vpop.f32.mrf.mxu0 }
 0x343   : > { %v3264_v61 = vadd.f32 %v3263_v57, %v3215_v39  ;;  %v3312_v0 = vpop.f32.mrf.mxu3  ;;  %v3168_v13 = vadd.f32 %v3167_v26, %v7477_v20  ;;  %v3216_v32 = vpop.f32.mrf.mxu1 }
 0x345   : > { %v7640_v36 = vadd.f32 %v3312_v0, %v3264_v61  ;;  %v3217_v33 = vadd.f32 %v3216_v32, %v3168_v13 }
 0x34a   : > { %v3265_v43 = vpop.f32.mrf.mxu2  ;;  %v3170_v1 = vpop.f32.mrf.mxu0 }
 0x34b   : > { %v3266_v54 = vadd.f32 %v3265_v43, %v3217_v33  ;;  %v3314_v6 = vpop.f32.mrf.mxu3  ;;  %v3171_v4 = vadd.f32 %v3170_v1, %v7502_v27  ;;  %v3219_v47 = vpop.f32.mrf.mxu1  ;;  %v7957_v33 = vld [vmem:[#allocation56_spill] sm:$0xff]  ;;  %v7958_v43 = vld [vmem:[#allocation57_spill] sm:$0xff] }
 0x34d   : > { %v7643_v17 = vadd.f32 %v3314_v6, %v3266_v54  ;;  %v3220_v60 = vadd.f32 %v3219_v47, %v3171_v4  ;;  %3365 = vmatmul.bf16.gmra.mxu0 %v7953_v35 }
 0x34e   : > { %3414 = vmatmul.bf16.gmra.mxu1 %v7954_v52 }
 0x34f   : > { %3463 = vmatmul.bf16.gmra.mxu2 %v6851_v24 }
 0x350   : > { %4997 = vmatmul.msk.bf16.gmra.mxu3 %vm2146_vm0, %v6853_v10 }
 0x352   : > { %v3268_v20 = vpop.f32.mrf.mxu2  ;;  %v3172_v11 = vpop.f32.mrf.mxu0 }
 0x353   : > { %v3269_v44 = vadd.f32 %v3268_v20, %v3220_v60  ;;  %v3317_v23 = vpop.f32.mrf.mxu3  ;;  %v3173_v15 = vadd.f32 %v3172_v11, %v7511_v59  ;;  %v3221_v27 = vpop.f32.mrf.mxu1 }
 0x355   : > { %v7651_v42 = vadd.f32 %v3317_v23, %v3269_v44  ;;  %v3222_v19 = vadd.f32 %v3221_v27, %v3173_v15  ;;  %v7959_v15 = vld [vmem:[#allocation60_spill] sm:$0xff]  ;;  %v7960_v27 = vld [vmem:[#allocation61_spill] sm:$0xff] }
 0x35a   : > { %v3270_v21 = vpop.f32.mrf.mxu2  ;;  %v3175_v5 = vpop.f32.mrf.mxu0 }
 0x35b   : > { %v3271_v31 = vadd.f32 %v3270_v21, %v3222_v19  ;;  %v3319_v22 = vpop.f32.mrf.mxu3  ;;  %v3176_v37 = vadd.f32 %v3175_v5, %v7530_v7  ;;  %v3224_v24 = vpop.f32.mrf.mxu1 }
 0x35d   : > { %v7654_v25 = vadd.f32 %v3319_v22, %v3271_v31  ;;  %v3225_v10 = vadd.f32 %v3224_v24, %v3176_v37  ;;  %3370 = vmatmul.bf16.gmra.mxu0 %v7955_v3 }
 0x35e   : > { %3419 = vmatmul.bf16.gmra.mxu1 %v7956_v2 }
 0x35f   : > { %3468 = vmatmul.bf16.gmra.mxu2 %v6894_v49 }
 0x360   : > { %4998 = vmatmul.msk.bf16.gmra.mxu3 %vm2146_vm0, %v6896_v34 }
 0x362   : > { %v3273_v59 = vpop.f32.mrf.mxu2  ;;  %v3177_v16 = vpop.f32.mrf.mxu0 }
 0x363   : > { %v3274_v53 = vadd.f32 %v3273_v59, %v3225_v10  ;;  %v3322_v50 = vpop.f32.mrf.mxu3  ;;  %v3178_v39 = vadd.f32 %v3177_v16, %v7539_v41  ;;  %v3226_v7 = vpop.f32.mrf.mxu1  ;;  %v7962_v16 = vld [vmem:[#allocation65_spill] sm:$0xff] }
 0x365   : > { %v7662_v14 = vadd.f32 %v3322_v50, %v3274_v53  ;;  %v3227_v18 = vadd.f32 %v3226_v7, %v3178_v39  ;;  %v7961_v50 = vld [vmem:[#allocation64_spill] sm:$0xff] }
 0x36a   : > { %v3275_v57 = vpop.f32.mrf.mxu2  ;;  %v3180_v26 = vpop.f32.mrf.mxu0 }
 0x36b   : > { %v3276_v61 = vadd.f32 %v3275_v57, %v3227_v18  ;;  %v3324_v0 = vpop.f32.mrf.mxu3  ;;  %v3181_v13 = vadd.f32 %v3180_v26, %v7564_v9  ;;  %v3229_v49 = vpop.f32.mrf.mxu1 }
 0x36d   : > { %v7665_v32 = vadd.f32 %v3324_v0, %v3276_v61  ;;  %v3230_v34 = vadd.f32 %v3229_v49, %v3181_v13  ;;  %3375 = vmatmul.bf16.gmra.mxu0 %v7957_v33 }
 0x36e   : > { %3424 = vmatmul.bf16.gmra.mxu1 %v7958_v43 }
 0x36f   : > { %3473 = vmatmul.bf16.gmra.mxu2 %v6937_v12 }
 0x370   : > { %4999 = vmatmul.msk.bf16.gmra.mxu3 %vm2146_vm0, %v6939_v38 }
 0x372   : > { %v3278_v41 = vpop.f32.mrf.mxu2  ;;  %v3182_v1 = vpop.f32.mrf.mxu0 }
 0x373   : > { %v3279_v54 = vadd.f32 %v3278_v41, %v3230_v34  ;;  %v3327_v6 = vpop.f32.mrf.mxu3  ;;  %v3183_v4 = vadd.f32 %v3182_v1, %v7573_v46  ;;  %v3231_v9 = vpop.f32.mrf.mxu1  ;;  %v7965_v1 = vld [vmem:[#allocation67_spill] sm:$0xff] }
 0x375   : > { %v7673_v47 = vadd.f32 %v3327_v6, %v3279_v54  ;;  %v3232_v60 = vadd.f32 %v3231_v9, %v3183_v4  ;;  %v7964_v6 = vld [vmem:[#allocation66_spill] sm:$0xff] }
 0x37a   : > { %v3280_v35 = vpop.f32.mrf.mxu2  ;;  %v3185_v44 = vpop.f32.mrf.mxu0 }
 0x37b   : > { %v3281_v52 = vadd.f32 %v3280_v35, %v3232_v60  ;;  %v3329_v20 = vpop.f32.mrf.mxu3  ;;  %v3186_v23 = vadd.f32 %v3185_v44, %v7592_v51  ;;  %v3234_v12 = vpop.f32.mrf.mxu1 }
 0x37d   : > { %v7676_v11 = vadd.f32 %v3329_v20, %v3281_v52  ;;  %v3235_v38 = vadd.f32 %v3234_v12, %v3186_v23  ;;  %3380 = vmatmul.bf16.gmra.mxu0 %v7959_v15 }
 0x37e   : > { %3429 = vmatmul.bf16.gmra.mxu1 %v7960_v27 }
 0x37f   : > { %3478 = vmatmul.bf16.gmra.mxu2 %v6980_v40 }
 0x380   : > { %5000 = vmatmul.msk.bf16.gmra.mxu3 %vm2146_vm0, %v6982_v48 }
 0x382   : > { %v3283_v46 = vpop.f32.mrf.mxu2  ;;  %v3187_v31 = vpop.f32.mrf.mxu0 }
 0x383   : > { %v3284_v19 = vadd.f32 %v3283_v46, %v3235_v38  ;;  %v3332_v21 = vpop.f32.mrf.mxu3  ;;  %v3188_v22 = vadd.f32 %v3187_v31, %v7601_v28  ;;  %v3236_v51 = vpop.f32.mrf.mxu1  ;;  %v7963_v28 = vld [vmem:[#allocation68_spill] sm:$0xff] }
 0x385   : > { %v7684_v5 = vadd.f32 %v3332_v21, %v3284_v19  ;;  %v3237_v37 = vadd.f32 %v3236_v51, %v3188_v22 }
 0x38a   : > { %v3285_v24 = vpop.f32.mrf.mxu2  ;;  %v3190_v2 = vpop.f32.mrf.mxu0 }
 0x38b   : > { %v3286_v10 = vadd.f32 %v3285_v24, %v3237_v37  ;;  %v3334_v3 = vpop.f32.mrf.mxu3  ;;  %v3191_v59 = vadd.f32 %v3190_v2, %v7608_v62  ;;  %v3239_v40 = vpop.f32.mrf.mxu1 }
 0x38d   : > { %v7687_v53 = vadd.f32 %v3334_v3, %v3286_v10  ;;  %v3240_v48 = vadd.f32 %v3239_v40, %v3191_v59  ;;  %3385 = vmatmul.bf16.gmra.mxu0 %v7961_v50 }
 0x38e   : > { %3434 = vmatmul.bf16.gmra.mxu1 %v7962_v16 }
 0x38f   : > { %3483 = vmatmul.bf16.gmra.mxu2 %v7023_v8 }
 0x390   : > { %5001 = vmatmul.msk.bf16.gmra.mxu3 %vm2146_vm0, %v7963_v28 }
 0x392   : > { %v3288_v39 = vpop.f32.mrf.mxu2  ;;  %v3192_v57 = vpop.f32.mrf.mxu0 }
 0x393   : > { %v3289_v7 = vadd.f32 %v3288_v39, %v3240_v48  ;;  %v3337_v18 = vpop.f32.mrf.mxu3  ;;  %v3193_v61 = vadd.f32 %v3192_v57, %v7611_v56  ;;  %v3241_v62 = vpop.f32.mrf.mxu1 }
 0x395   : > { %v7695_v0 = vadd.f32 %v3337_v18, %v3289_v7  ;;  %v3242_v26 = vadd.f32 %v3241_v62, %v3193_v61 }
 0x39a   : > { %v3290_v13 = vpop.f32.mrf.mxu2  ;;  %v3195_v33 = vpop.f32.mrf.mxu0 }
 0x39b   : > { %v3291_v49 = vadd.f32 %v3290_v13, %v3242_v26  ;;  %v3339_v34 = vpop.f32.mrf.mxu3  ;;  %v3196_v43 = vadd.f32 %v3195_v33, %v7618_v55  ;;  %v3244_v8 = vpop.f32.mrf.mxu1 }
 0x39d   : > { %v7698_v41 = vadd.f32 %v3339_v34, %v3291_v49  ;;  %v3245_v54 = vadd.f32 %v3244_v8, %v3196_v43  ;;  %3390 = vmatmul.bf16.gmra.mxu0 %v7964_v6 }
 0x39e   : > { %3439 = vmatmul.bf16.gmra.mxu1 %v7965_v1 }
 0x39f   : > { %3488 = vmatmul.bf16.gmra.mxu2 %v7066_v29 }
 0x3a0   : > { %5002 = vmatmul.msk.bf16.gmra.mxu3 %vm2146_vm0, %v7068_v45 }
 0x3a2   : > { %v3293_v56 = vpop.f32.mrf.mxu2  ;;  %v3197_v60 = vpop.f32.mrf.mxu0 }
 0x3a3   : > { %v3294_v4 = vadd.f32 %v3293_v56, %v3245_v54  ;;  %v3342_v9 = vpop.f32.mrf.mxu3  ;;  %v3198_v35 = vadd.f32 %v3197_v60, %v7621_v30  ;;  %v3246_v55 = vpop.f32.mrf.mxu1 }
 0x3a5   : > { %v7706_v52 = vadd.f32 %v3342_v9, %v3294_v4  ;;  %v3247_v20 = vadd.f32 %v3246_v55, %v3198_v35 }
 0x3aa   : > { %v3295_v44 = vpop.f32.mrf.mxu2  ;;  %v3356_v38 = vpop.f32.mrf.mxu0 }
 0x3ab   : > { %v3296_v23 = vadd.f32 %v3295_v44, %v3247_v20  ;;  %v3344_v12 = vpop.f32.mrf.mxu3  ;;  %v3405_v15 = vpop.f32.mrf.mxu1  ;;  %v3357_v45 = vadd.f32 %v3356_v38, %v7629_v63 }
 0x3ad   : > { %v7708_v29 = vadd.f32 %v3344_v12, %v3296_v23  ;;  %v3406_v27 = vadd.f32 %v3405_v15, %v3357_v45 }
 0x3b2   : > { %v3454_v46 = vpop.f32.mrf.mxu2  ;;  %v3358_v30 = vpop.f32.mrf.mxu0 }
 0x3b3   : > { %v3455_v19 = vadd.f32 %v3454_v46, %v3406_v27  ;;  %v3503_v21 = vpop.f32.mrf.mxu3  ;;  %v3407_v31 = vpop.f32.mrf.mxu1  ;;  %v3359_v51 = vadd.f32 %v3358_v30, %v7632_v58 }
 0x3b5   : > { %v3504_v22 = vadd.f32 %v3503_v21, %v3455_v19  ;;  %v3408_v24 = vadd.f32 %v3407_v31, %v3359_v51 }
 0x3b7   : > { %v3544_v37 = vmax.f32 %v3504_v22, 0.0 }
 0x3b9   : > { %3576 = vst.msk [vmem:[%s7113_s25 + $0x8] sm:$0xff] %vm2146_vm0, %v3544_v37 }
 0x3ba   : > { %v3456_v10 = vpop.f32.mrf.mxu2  ;;  %v3361_v59 = vpop.f32.mrf.mxu0 }
 0x3bb   : > { %v3457_v3 = vadd.f32 %v3456_v10, %v3408_v24  ;;  %v3505_v2 = vpop.f32.mrf.mxu3  ;;  %v3410_v63 = vpop.f32.mrf.mxu1  ;;  %v3362_v48 = vadd.f32 %v3361_v59, %v7640_v36 }
 0x3bd   : > { %v3506_v40 = vadd.f32 %v3505_v2, %v3457_v3  ;;  %v3411_v16 = vadd.f32 %v3410_v63, %v3362_v48 }
 0x3bf   : > { %v3546_v50 = vmax.f32 %v3506_v40, 0.0 }
 0x3c1   : > { %3578 = vst.msk [vmem:[%s7113_s25 + $0x18] sm:$0xff] %vm2146_vm0, %v3546_v50 }
 0x3c2   : > { %v3459_v28 = vpop.f32.mrf.mxu2  ;;  %v3363_v7 = vpop.f32.mrf.mxu0 }
 0x3c3   : > { %v3460_v39 = vadd.f32 %v3459_v28, %v3411_v16  ;;  %v3508_v58 = vpop.f32.mrf.mxu3  ;;  %v3412_v18 = vpop.f32.mrf.mxu1  ;;  %v3364_v61 = vadd.f32 %v3363_v7, %v7643_v17 }
 0x3c5   : > { %v3509_v57 = vadd.f32 %v3508_v58, %v3460_v39  ;;  %v3413_v26 = vadd.f32 %v3412_v18, %v3364_v61 }
 0x3c7   : > { %v3548_v62 = vmax.f32 %v3509_v57, 0.0 }
 0x3c9   : > { %3580 = vst.msk [vmem:[%s7113_s25 + $0x28] sm:$0xff] %vm2146_vm0, %v3548_v62 }
 0x3ca   : > { %v3461_v13 = vpop.f32.mrf.mxu2  ;;  %v3366_v34 = vpop.f32.mrf.mxu0 }
 0x3cb   : > { %v3462_v49 = vadd.f32 %v3461_v13, %v3413_v26  ;;  %v3510_v36 = vpop.f32.mrf.mxu3  ;;  %v3415_v33 = vpop.f32.mrf.mxu1  ;;  %v3367_v8 = vadd.f32 %v3366_v34, %v7651_v42 }
 0x3cd   : > { %v3511_v43 = vadd.f32 %v3510_v36, %v3462_v49  ;;  %v3416_v6 = vadd.f32 %v3415_v33, %v3367_v8 }
 0x3cf   : > { %v3550_v54 = vmax.f32 %v3511_v43, 0.0 }
 0x3d1   : > { %3582 = vst.msk [vmem:[%s7113_s25 + $0x38] sm:$0xff] %vm2146_vm0, %v3550_v54 }
 0x3d2   : > { %v3464_v1 = vpop.f32.mrf.mxu2  ;;  %v3368_v4 = vpop.f32.mrf.mxu0 }
 0x3d3   : > { %v3465_v56 = vadd.f32 %v3464_v1, %v3416_v6  ;;  %v3513_v17 = vpop.f32.mrf.mxu3  ;;  %v3417_v9 = vpop.f32.mrf.mxu1  ;;  %v3369_v35 = vadd.f32 %v3368_v4, %v7654_v25 }
 0x3d5   : > { %v3514_v60 = vadd.f32 %v3513_v17, %v3465_v56  ;;  %v3418_v20 = vadd.f32 %v3417_v9, %v3369_v35 }
 0x3d7   : > { %v3552_v55 = vmax.f32 %v3514_v60, 0.0 }
 0x3d9   : > { %3584 = vst.msk [vmem:[%s7113_s25 + $0x48] sm:$0xff] %vm2146_vm0, %v3552_v55 }
 0x3da   : > { %v3466_v44 = vpop.f32.mrf.mxu2  ;;  %v3371_v12 = vpop.f32.mrf.mxu0 }
 0x3db   : > { %v3467_v23 = vadd.f32 %v3466_v44, %v3418_v20  ;;  %v3515_v42 = vpop.f32.mrf.mxu3  ;;  %v3420_v38 = vpop.f32.mrf.mxu1  ;;  %v3372_v45 = vadd.f32 %v3371_v12, %v7662_v14 }
 0x3dd   : > { %v3516_v15 = vadd.f32 %v3515_v42, %v3467_v23  ;;  %v3421_v46 = vadd.f32 %v3420_v38, %v3372_v45 }
 0x3df   : > { %v3554_v27 = vmax.f32 %v3516_v15, 0.0 }
 0x3e1   : > { %3586 = vst.msk [vmem:[%s7113_s25 + $0x58] sm:$0xff] %vm2146_vm0, %v3554_v27 }
 0x3e2   : > { %v3469_v19 = vpop.f32.mrf.mxu2  ;;  %v3373_v30 = vpop.f32.mrf.mxu0 }
 0x3e3   : > { %v3470_v21 = vadd.f32 %v3469_v19, %v3421_v46  ;;  %v3518_v25 = vpop.f32.mrf.mxu3  ;;  %v3422_v31 = vpop.f32.mrf.mxu1  ;;  %v3374_v51 = vadd.f32 %v3373_v30, %v7665_v32 }
 0x3e5   : > { %v3519_v22 = vadd.f32 %v3518_v25, %v3470_v21  ;;  %v3423_v24 = vadd.f32 %v3422_v31, %v3374_v51 }
 0x3e7   : > { %v3556_v37 = vmax.f32 %v3519_v22, 0.0 }
 0x3e9   : > { %3588 = vst.msk [vmem:[%s7113_s25 + $0x68] sm:$0xff] %vm2146_vm0, %v3556_v37 }
 0x3ea   : > { %v3471_v10 = vpop.f32.mrf.mxu2  ;;  %v3376_v2 = vpop.f32.mrf.mxu0 }
 0x3eb   : > { %v3472_v3 = vadd.f32 %v3471_v10, %v3423_v24  ;;  %v3520_v14 = vpop.f32.mrf.mxu3  ;;  %v3425_v59 = vpop.f32.mrf.mxu1  ;;  %v3377_v40 = vadd.f32 %v3376_v2, %v7673_v47 }
 0x3ed   : > { %v3521_v63 = vadd.f32 %v3520_v14, %v3472_v3  ;;  %v3426_v50 = vadd.f32 %v3425_v59, %v3377_v40 }
 0x3ef   : > { %v3558_v48 = vmax.f32 %v3521_v63, 0.0 }
 0x3f1   : > { %3590 = vst.msk [vmem:[%s7113_s25 + $0x78] sm:$0xff] %vm2146_vm0, %v3558_v48 }
 0x3f2   : > { %v3474_v16 = vpop.f32.mrf.mxu2  ;;  %v3378_v39 = vpop.f32.mrf.mxu0 }
 0x3f3   : > { %v3475_v28 = vadd.f32 %v3474_v16, %v3426_v50  ;;  %v3523_v32 = vpop.f32.mrf.mxu3  ;;  %v3427_v58 = vpop.f32.mrf.mxu1  ;;  %v3379_v18 = vadd.f32 %v3378_v39, %v7676_v11 }
 0x3f5   : > { %v3524_v7 = vadd.f32 %v3523_v32, %v3475_v28  ;;  %v3428_v61 = vadd.f32 %v3427_v58, %v3379_v18 }
 0x3f7   : > { %v3560_v57 = vmax.f32 %v3524_v7, 0.0 }
 0x3f9   : > { %3592 = vst.msk [vmem:[%s7113_s25 + $0x88] sm:$0xff] %vm2146_vm0, %v3560_v57 }
 0x3fa   : > { %v3476_v62 = vpop.f32.mrf.mxu2  ;;  %v3381_v13 = vpop.f32.mrf.mxu0 }
 0x3fb   : > { %v3477_v26 = vadd.f32 %v3476_v62, %v3428_v61  ;;  %v3525_v47 = vpop.f32.mrf.mxu3  ;;  %v3430_v49 = vpop.f32.mrf.mxu1  ;;  %v3382_v34 = vadd.f32 %v3381_v13, %v7684_v5 }
 0x3fd   : > { %v3526_v36 = vadd.f32 %v3525_v47, %v3477_v26  ;;  %v3431_v43 = vadd.f32 %v3430_v49, %v3382_v34 }
 0x3ff   : > { %v3562_v33 = vmax.f32 %v3526_v36, 0.0 }
 0x401   : > { %3594 = vst.msk [vmem:[%s7113_s25 + $0x98] sm:$0xff] %vm2146_vm0, %v3562_v33 }
 0x402   : > { %v3479_v8 = vpop.f32.mrf.mxu2  ;;  %v3383_v6 = vpop.f32.mrf.mxu0 }
 0x403   : > { %v3480_v54 = vadd.f32 %v3479_v8, %v3431_v43  ;;  %v3528_v11 = vpop.f32.mrf.mxu3  ;;  %v3432_v1 = vpop.f32.mrf.mxu1  ;;  %v3384_v17 = vadd.f32 %v3383_v6, %v7687_v53 }
 0x405   : > { %v3529_v56 = vadd.f32 %v3528_v11, %v3480_v54  ;;  %v3433_v9 = vadd.f32 %v3432_v1, %v3384_v17 }
 0x407   : > { %v3564_v4 = vmax.f32 %v3529_v56, 0.0 }
 0x409   : > { %3596 = vst.msk [vmem:[%s7113_s25 + $0xa8] sm:$0xff] %vm2146_vm0, %v3564_v4 }
 0x40a   : > { %v3481_v60 = vpop.f32.mrf.mxu2  ;;  %v3386_v55 = vpop.f32.mrf.mxu0 }
 0x40b   : > { %v3482_v35 = vadd.f32 %v3481_v60, %v3433_v9  ;;  %v3530_v5 = vpop.f32.mrf.mxu3  ;;  %v3435_v20 = vpop.f32.mrf.mxu1  ;;  %v3387_v23 = vadd.f32 %v3386_v55, %v7695_v0 }
 0x40d   : > { %v3531_v44 = vadd.f32 %v3530_v5, %v3482_v35  ;;  %v3436_v12 = vadd.f32 %v3435_v20, %v3387_v23 }
 0x40f   : > { %v3566_v42 = vmax.f32 %v3531_v44, 0.0 }
 0x411   : > { %3598 = vst.msk [vmem:[%s7113_s25 + $0xb8] sm:$0xff] %vm2146_vm0, %v3566_v42 }
 0x412   : > { %v3484_v38 = vpop.f32.mrf.mxu2  ;;  %v3388_v45 = vpop.f32.mrf.mxu0 }
 0x413   : > { %v3485_v15 = vadd.f32 %v3484_v38, %v3436_v12  ;;  %v3533_v53 = vpop.f32.mrf.mxu3  ;;  %v3437_v27 = vpop.f32.mrf.mxu1  ;;  %v3389_v19 = vadd.f32 %v3388_v45, %v7698_v41 }
 0x415   : > { %v3534_v46 = vadd.f32 %v3533_v53, %v3485_v15  ;;  %v3438_v25 = vadd.f32 %v3437_v27, %v3389_v19 }
 0x417   : > { %v3568_v21 = vmax.f32 %v3534_v46, 0.0 }
 0x419   : > { %3600 = vst.msk [vmem:[%s7113_s25 + $0xc8] sm:$0xff] %vm2146_vm0, %v3568_v21 }
 0x41a   : > { %v3486_v30 = vpop.f32.mrf.mxu2  ;;  %v3391_v22 = vpop.f32.mrf.mxu0 }
 0x41b   : > { %v3487_v31 = vadd.f32 %v3486_v30, %v3438_v25  ;;  %v3535_v0 = vpop.f32.mrf.mxu3  ;;  %v3392_v37 = vadd.f32 %v3391_v22, %v7706_v52  ;;  %v3440_v24 = vpop.f32.mrf.mxu1 }
 0x41d   : > { %v3536_v51 = vadd.f32 %v3535_v0, %v3487_v31  ;;  %v3441_v3 = vadd.f32 %v3440_v24, %v3392_v37 }
 0x41f   : > { %v3570_v10 = vmax.f32 %v3536_v51, 0.0 }
 0x421   : > { %3602 = vst.msk [vmem:[%s7113_s25 + $0xd8] sm:$0xff] %vm2146_vm0, %v3570_v10 }
 0x422   : > { %v3489_v14 = vpop.f32.mrf.mxu2  ;;  %v3393_v59 = vpop.f32.mrf.mxu0 }
 0x423   : > { %v3490_v41 = vadd.f32 %v3489_v14, %v3441_v3  ;;  %v3538_v2 = vpop.f32.mrf.mxu3  ;;  %v3394_v40 = vadd.f32 %v3393_v59, %v7708_v29  ;;  %v3442_v50 = vpop.f32.mrf.mxu1 }
 0x425   : > { %v3539_v63 = vadd.f32 %v3538_v2, %v3490_v41  ;;  %v3443_v16 = vadd.f32 %v3442_v50, %v3394_v40 }
 0x427   : > { %v3572_v48 = vmax.f32 %v3539_v63, 0.0 }
 0x429   : > { %3604 = vst.msk [vmem:[%s7113_s25 + $0xe8] sm:$0xff] %vm2146_vm0, %v3572_v48 }
 0x42a   : > { %v3491_v28 = vpop.f32.mrf.mxu2 }
 0x42b   : > { %v3492_v52 = vadd.f32 %v3491_v28, %v3443_v16  ;;  %v3540_v32 = vpop.f32.mrf.mxu3 }
 0x42d   : > { %v3541_v39 = vadd.f32 %v3540_v32, %v3492_v52 }
 0x42f   : > { %v3574_v58 = vmax.f32 %v3541_v39, 0.0 }
 0x431   : > { %3606 = vst.msk [vmem:[%s7113_s25 + $0xf8] sm:$0xff] %vm2146_vm0, %v3574_v58 }
 0x432 PF: > { %s13_s12 = sadd.s32 1, %s5350_s12  }
 0x433   : > { %p10_p4 = scmp.ge.s32.totalorder %s13_s12, 6  }
 0x435   :  { %12 = sbr.rel (!%p10_p4) target bundleno = 1 (0x1), region = 62 }

</bundles_post_ra>
